<compile_context>
chip_gen: v7x
topology: tpu7x:2x2x1
jax: 0.10.0
libtpu: 0.0.40
codegen_flags: <defaults>
</compile_context>

<pallas_src>
import functools
import math

import jax
import jax.numpy as jnp
from jax import lax
from jax.experimental import pallas as pl
from jax.experimental.pallas import tpu as pltpu


_CONTRACT_LAST = (((1,), (1,)), ((), ()))  # contract dim-1 of LHS with dim-1 of RHS


# ------------------------------ helpers --------------------------------------

def _pick_tile(dim, target):
    """Largest divisor of `dim` that is <= target.

    Never falls back to the full dimension for large dims, so tiles stay inside
    the derived VMEM budget (review item on _pick_tile footgun)."""
    if dim <= target:
        return dim
    t = target
    while dim % t:
        t -= 1
    return t


def _head_group_size(num_heads, head_dim):
    """Smallest head-group size g (dividing num_heads) with g*head_dim % 128 == 0,
    so the qkv head-group BlockSpec slices are lane-aligned."""
    for g in range(1, num_heads + 1):
        if num_heads % g == 0 and (g * head_dim) % 128 == 0:
            return g
    return num_heads   # tiny-embed fallback: one group spanning all heads


# ----------------------------- in-projection GEMM ----------------------------

def _linear_kernel(x_ref, w_ref, b_ref, o_ref, acc_ref):
    """Tiled y = x @ w + b (w already in (in, out) layout); f32 acc over K."""
    @pl.when(pl.program_id(2) == 0)
    def _():
        acc_ref[...] = jnp.zeros_like(acc_ref)

    acc_ref[...] += jnp.dot(x_ref[...], w_ref[...],
                            preferred_element_type=jnp.float32)

    @pl.when(pl.program_id(2) == pl.num_programs(2) - 1)
    def _():
        o_ref[...] = (acc_ref[...] + b_ref[...].astype(jnp.float32)).astype(o_ref.dtype)


def _linear(x2d, w_t, b, *, tm=256, tn=256, tk=512):
    """y = x2d @ w_t + b via a tiled, pipelined Pallas GEMM.

    w_t is the (in, out)-layout weight (transposed once in the wrapper), so the
    kernel consumes plain (tk, tn) tiles with no per-step relayout."""
    n, d_in = x2d.shape
    d_out = w_t.shape[1]
    tm = _pick_tile(n, tm)
    tn = _pick_tile(d_out, tn)
    tk = _pick_tile(d_in, tk)
    grid = (n // tm, d_out // tn, d_in // tk)

    return pl.pallas_call(
        _linear_kernel,
        out_shape=jax.ShapeDtypeStruct((n, d_out), x2d.dtype),
        grid_spec=pltpu.PrefetchScalarGridSpec(
            num_scalar_prefetch=0,
            grid=grid,
            in_specs=[
                pl.BlockSpec((tm, tk), lambda i, j, k: (i, k)),
                pl.BlockSpec((tk, tn), lambda i, j, k: (k, j)),
                pl.BlockSpec((1, tn), lambda i, j, k: (0, j)),
            ],
            out_specs=pl.BlockSpec((tm, tn), lambda i, j, k: (i, j)),
            scratch_shapes=[pltpu.VMEM((tm, tn), jnp.float32)],
        ),
        compiler_params=pltpu.CompilerParams(
            dimension_semantics=("parallel", "parallel", "arbitrary")),
    )(x2d, w_t, b.reshape(1, d_out))


# --------------------- fused attention + out-projection ----------------------

def _attn_kernel(q_ref, k_ref, v_ref, ow_ref, ob_ref, o_ref, w_ref,
                 w_acc, out_acc, ctx_buf, *,
                 heads_per_group, head_dim, scaling, num_heads):
    """One (batch, q-tile, head-group) grid step.

    q_ref : (1, tq, g*hd)   head-group slice of Q
    k_ref : (1, S,  g*hd)   head-group slice of K
    v_ref : (1, S,  g*hd)   head-group slice of V
    ow_ref: (g*hd, E)       matching rows of the (in, out) out-proj weight
    ob_ref: (1, E)
    o_ref : (1, tq, E)      attention output tile   (written at last group)
    w_ref : (1, tq, S)      head-averaged weights   (written at last group)
    w_acc : (tq, S) f32     accumulator over head-groups (VMEM scratch)
    out_acc:(tq, E) f32     accumulator over head-groups (VMEM scratch)
    ctx_buf:(tq, g*hd) f32  per-group context staging buffer
    """
    j = pl.program_id(2)

    @pl.when(j == 0)
    def _():
        w_acc[...] = jnp.zeros_like(w_acc)
        out_acc[...] = jnp.zeros_like(out_acc)

    for i in range(heads_per_group):        # tiny static loop (g*hd >= 128)
        lo = i * head_dim
        hi = lo + head_dim
        # Native-dtype MXU operands (no full-block upcast); f32 accumulation.
        q_h = q_ref[0, :, lo:hi] * scaling                    # (tq, hd)
        k_h = k_ref[0, :, lo:hi]                              # (S,  hd)
        v_h = v_ref[0, :, lo:hi]                              # (S,  hd)

        # scores = q_h @ k_h^T without materializing a transpose.
        s = lax.dot_general(q_h, k_h, _CONTRACT_LAST,
                            preferred_element_type=jnp.float32)   # (tq, S)
        m = jnp.max(s, axis=-1, keepdims=True)
        e = jnp.exp(s - m)                    # f32 softmax math (v5e-safe)
        denom = jnp.sum(e, axis=-1, keepdims=True)
        p = e / denom                         # exact: returned rows sum to 1
        # TODO(synk): attn_dropout on p not implemented (p_drop = 0.0).

        w_acc[...] += p
        ctx_buf[:, lo:hi] = jnp.dot(p.astype(v_h.dtype), v_h,
                                    preferred_element_type=jnp.float32)

    # Fold the out-projection for this head-group with ONE wide matmul:
    # contraction depth = g*hd (>= 128), N = E (lane-dense).
    out_acc[...] += jnp.dot(ctx_buf[...].astype(ow_ref.dtype), ow_ref[...],
                            preferred_element_type=jnp.float32)

    @pl.when(j == pl.num_programs(2) - 1)
    def _():
        o_ref[0] = (out_acc[...] + ob_ref[...].astype(jnp.float32)).astype(o_ref.dtype)
        w_ref[0] = (w_acc[...] * (1.0 / num_heads)).astype(w_ref.dtype)


def _fused_attention(qkv, out_w_t, out_b, *, num_heads, head_dim, scaling, tq=256):
    """qkv: (B, T, 3E) -> (attn (B, T, E), head-averaged weights (B, T, S))."""
    bsz, tgt_len, _ = qkv.shape
    embed_dim = num_heads * head_dim
    src_len = tgt_len

    g = _head_group_size(num_heads, head_dim)
    gd = g * head_dim                      # head-group width (lane aligned)
    num_groups = num_heads // g

    tq = _pick_tile(tgt_len, tq)
    grid = (bsz, tgt_len // tq, num_groups)

    kernel = functools.partial(
        _attn_kernel, heads_per_group=g, head_dim=head_dim,
        scaling=scaling, num_heads=num_heads)

    # VMEM budget: double-buffered pipeline blocks + scratch.  Kept well under
    # the v5e/v6e scoped defaults and the v7x 64 MiB physical ceiling.
    esz = jnp.dtype(qkv.dtype).itemsize
    block_bytes = (tq * gd + 2 * src_len * gd + gd * embed_dim + embed_dim
                   + tq * embed_dim + tq * src_len) * esz
    scratch_bytes = (tq * src_len + tq * embed_dim + tq * gd) * 4
    vmem_limit = int(min(48 * 2**20, max(32 * 2**20, 2 * block_bytes + scratch_bytes)))

    return pl.pallas_call(
        kernel,
        out_shape=(
            jax.ShapeDtypeStruct((bsz, tgt_len, embed_dim), qkv.dtype),
            jax.ShapeDtypeStruct((bsz, tgt_len, src_len), qkv.dtype),
        ),
        grid_spec=pltpu.PrefetchScalarGridSpec(
            num_scalar_prefetch=0,
            grid=grid,
            in_specs=[
                # Per-head-group slices of the SAME qkv array (q / k / v thirds):
                pl.BlockSpec((1, tq, gd), lambda b, t, j: (b, t, j)),
                pl.BlockSpec((1, src_len, gd),
                             lambda b, t, j: (b, 0, num_groups + j)),
                pl.BlockSpec((1, src_len, gd),
                             lambda b, t, j: (b, 0, 2 * num_groups + j)),
                # Matching rows of the out-projection weight / resident bias:
                pl.BlockSpec((gd, embed_dim), lambda b, t, j: (j, 0)),
                pl.BlockSpec((1, embed_dim), lambda b, t, j: (0, 0)),
            ],
            out_specs=(
                pl.BlockSpec((1, tq, embed_dim), lambda b, t, j: (b, t, 0)),
                pl.BlockSpec((1, tq, src_len), lambda b, t, j: (b, t, 0)),
            ),
            scratch_shapes=[
                pltpu.VMEM((tq, src_len), jnp.float32),    # w_acc
                pltpu.VMEM((tq, embed_dim), jnp.float32),  # out_acc
                pltpu.VMEM((tq, gd), jnp.float32),         # ctx staging
            ],
        ),
        compiler_params=pltpu.CompilerParams(
            dimension_semantics=("parallel", "parallel", "arbitrary"),
            vmem_limit_bytes=vmem_limit),
    )(qkv, qkv, qkv, out_w_t, out_b.reshape(1, embed_dim))


# ------------------------------ module wrapper --------------------------------

def multihead_attention(query, key, value, params, num_heads,
                        key_padding_mask=None, attn_mask=None):
    """Self-attention forward (q = k = v path of the PyTorch module)."""
    # TODO(synk): key_padding_mask / attn_mask / attn_dropout / separate q,k,v
    #             (cross-attention) projection paths are not implemented.
    assert key_padding_mask is None and attn_mask is None
    in_w, in_b, out_w, out_b = params

    tgt_len, bsz, embed_dim = query.shape
    head_dim = embed_dim // num_heads
    scaling = head_dim ** (-0.5)

    # One-time weight transposes to (in, out) layout so both GEMMs consume
    # plain (K, N) tiles (amortized over all M tiles; review item 8).
    in_w_t = in_w.T                         # (E, 3E)
    out_w_t = out_w.T                       # (E, E)

    # (T, B, E) -> (B, T, E) so the attention kernel takes per-batch rectangular
    # blocks.  TODO(synk): fold this relayout into the in-projection out BlockSpec.
    x_btc = jnp.transpose(query, (1, 0, 2))

    # in-projection (qkv_same path): one tiled (B*T, E) @ (E, 3E) GEMM.
    qkv = _linear(x_btc.reshape(bsz * tgt_len, embed_dim), in_w_t, in_b)
    qkv = qkv.reshape(bsz, tgt_len, 3 * embed_dim)            # (B, T, 3E)

    attn_bte, attn_weights = _fused_attention(
        qkv, out_w_t, out_b,
        num_heads=num_heads, head_dim=head_dim, scaling=scaling)

    attn = jnp.transpose(attn_bte, (1, 0, 2))                 # (T, B, E)
    return attn, attn_weights                                 # (B, T, S)


# -------------------------- deterministic init --------------------------------

def xavier_uniform(key, shape):
    fan_out, fan_in = shape
    bound = math.sqrt(6.0 / (fan_in + fan_out))
    return jax.random.uniform(key, shape, jnp.float32, -bound, bound)


def init_params(key, embed_dim):
    k1, k2 = jax.random.split(key)
    in_proj_weight = xavier_uniform(k1, (3 * embed_dim, embed_dim))
    in_proj_bias = jnp.zeros((3 * embed_dim,), jnp.float32)
    out_proj_weight = xavier_uniform(k2, (embed_dim, embed_dim))
    out_proj_bias = jnp.zeros((embed_dim,), jnp.float32)
    return in_proj_weight, in_proj_bias, out_proj_weight, out_proj_bias


# ----------------------------- reference (JAX) --------------------------------

def reference(query, params, num_heads):
    in_w, in_b, out_w, out_b = params
    tgt_len, bsz, embed_dim = query.shape
    head_dim = embed_dim // num_heads
    scaling = head_dim ** (-0.5)

    qkv = query @ in_w.T + in_b
    q, k, v = jnp.split(qkv, 3, axis=-1)
    q = q * scaling
    q = q.reshape(tgt_len, bsz * num_heads, head_dim).transpose(1, 0, 2)
    k = k.reshape(tgt_len, bsz * num_heads, head_dim).transpose(1, 0, 2)
    v = v.reshape(tgt_len, bsz * num_heads, head_dim).transpose(1, 0, 2)
    w = jax.nn.softmax(jnp.einsum("btd,bsd->bts", q, k), axis=-1)
    attn = jnp.einsum("bts,bsd->btd", w, v)
    attn = attn.transpose(1, 0, 2).reshape(tgt_len, bsz, embed_dim)
    attn = attn @ out_w.T + out_b
    w = w.reshape(bsz, num_heads, tgt_len, tgt_len).sum(axis=1) / num_heads
    return attn, w


# ---------------------------------- main ---------------------------------------

if __name__ == "__main__":
    # High-precision f32 matmuls for both the kernel and the reference so the
    # numeric comparison is tight (review: validate at representative shapes).
    jax.config.update("jax_default_matmul_precision", "highest")

    embed_dim = 256      # head_dim = 64 -> head-groups of 2 (128-lane aligned)
    num_heads = 4
    seq = 128
    bsz = 2

    root = jax.random.PRNGKey(0)
    pkey, xkey = jax.random.split(root)
    params = init_params(pkey, embed_dim)

    x = jax.random.normal(xkey, (seq, bsz, embed_dim), jnp.float32)  # (T, B, E)

    fwd = jax.jit(functools.partial(multihead_attention,
                                    params=params, num_heads=num_heads))
    attn, attn_weights = fwd(x, x, x)
    attn = jax.block_until_ready(attn)
    attn_weights = jax.block_until_ready(attn_weights)

    ref_attn, ref_w = reference(x, params, num_heads)
    assert attn.shape == (seq, bsz, embed_dim)
    assert attn_weights.shape == (bsz, seq, seq)
    assert jnp.allclose(attn, ref_attn, atol=2e-3, rtol=2e-3)
    assert jnp.allclose(attn_weights, ref_w, atol=2e-3, rtol=2e-3)

    print("KERNEL_OK")
</pallas_src>

<mosaic_0001>
module attributes {stable_mosaic.version = 11 : i64} {
  func.func @_linear_kernel(%arg0: i32, %arg1: i32, %arg2: i32, %arg3: memref<256x256xf32, #tpu.memory_space<vmem>>, %arg4: memref<256x256xf32, #tpu.memory_space<vmem>>, %arg5: memref<1x256xf32, #tpu.memory_space<vmem>>, %arg6: memref<256x256xf32, #tpu.memory_space<vmem>>, %arg7: memref<256x256xf32, #tpu.memory_space<vmem>>) attributes {dimension_semantics = [#tpu.dimension_semantics<parallel>, #tpu.dimension_semantics<parallel>, #tpu.dimension_semantics<arbitrary>], iteration_bounds = array<i64: 1, 3, 1>, scalar_prefetch = 0 : i64, scratch_operands = 1 : i64, tpu.core_type = #tpu.core_type<tc>, window_params = [{transform_indices = @transform_0, window_bounds = array<i64: 256, 256>}, {transform_indices = @transform_1, window_bounds = array<i64: 256, 256>}, {transform_indices = @transform_2, window_bounds = array<i64: 1, 256>}, {transform_indices = @transform_3, window_bounds = array<i64: 256, 256>}]} {
    %c0_i32 = arith.constant 0 : i32
    %0 = arith.cmpi eq, %arg2, %c0_i32 : i32
    %1 = arith.extui %0 : i1 to i32
    %c0_i32_0 = arith.constant 0 : i32
    %2 = arith.cmpi ne, %1, %c0_i32_0 : i32
    scf.if %2 {
      %cst_10 = arith.constant 0.000000e+00 : f32
      %12 = vector.broadcast %cst_10 : f32 to vector<256x256xf32>
      %c0_11 = arith.constant 0 : index
      %c0_12 = arith.constant 0 : index
      %13 = vector.load %arg7[%c0_11, %c0_12] : memref<256x256xf32, #tpu.memory_space<vmem>>, vector<256x256xf32>
      tpu.vector_store %arg7[%c0_11, %c0_12], %12 {strides = array<i32>} : memref<256x256xf32, #tpu.memory_space<vmem>>, vector<256x256xf32>,
    } else {
    }
    %c0 = arith.constant 0 : index
    %c0_1 = arith.constant 0 : index
    %3 = vector.load %arg7[%c0, %c0_1] : memref<256x256xf32, #tpu.memory_space<vmem>>, vector<256x256xf32>
    %c0_2 = arith.constant 0 : index
    %c0_3 = arith.constant 0 : index
    %4 = vector.load %arg3[%c0_2, %c0_3] : memref<256x256xf32, #tpu.memory_space<vmem>>, vector<256x256xf32>
    %c0_4 = arith.constant 0 : index
    %c0_5 = arith.constant 0 : index
    %5 = vector.load %arg4[%c0_4, %c0_5] : memref<256x256xf32, #tpu.memory_space<vmem>>, vector<256x256xf32>
    %cst = arith.constant dense<0.000000e+00> : vector<256x256xf32>
    %6 = tpu.matmul %4, %5, %cst {dimension_numbers = #tpu.dot_dimension_numbers<[1], [0], [0], [1], [0, 0, 1, 1], [], []>, precision = #tpu.contract_precision<fp32>} : vector<256x256xf32>, vector<256x256xf32>, vector<256x256xf32> -> vector<256x256xf32>
    %7 = arith.addf %3, %6 : vector<256x256xf32>
    %c0_6 = arith.constant 0 : index
    %c0_7 = arith.constant 0 : index
    %8 = vector.load %arg7[%c0_6, %c0_7] : memref<256x256xf32, #tpu.memory_space<vmem>>, vector<256x256xf32>
    tpu.vector_store %arg7[%c0_6, %c0_7], %7 {strides = array<i32>} : memref<256x256xf32, #tpu.memory_space<vmem>>, vector<256x256xf32>,
    %c0_i32_8 = arith.constant 0 : i32
    %9 = arith.cmpi eq, %arg2, %c0_i32_8 : i32
    %10 = arith.extui %9 : i1 to i32
    %c0_i32_9 = arith.constant 0 : i32
    %11 = arith.cmpi ne, %10, %c0_i32_9 : i32
    scf.if %11 {
      %c0_10 = arith.constant 0 : index
      %c0_11 = arith.constant 0 : index
      %12 = vector.load %arg7[%c0_10, %c0_11] : memref<256x256xf32, #tpu.memory_space<vmem>>, vector<256x256xf32>
      %c0_12 = arith.constant 0 : index
      %c0_13 = arith.constant 0 : index
      %13 = vector.load %arg5[%c0_12, %c0_13] : memref<1x256xf32, #tpu.memory_space<vmem>>, vector<1x256xf32>
      %14 = vector.broadcast %13 : vector<1x256xf32> to vector<256x256xf32>
      %15 = arith.addf %12, %14 : vector<256x256xf32>
      %c0_14 = arith.constant 0 : index
      %c0_15 = arith.constant 0 : index
      %16 = vector.load %arg6[%c0_14, %c0_15] : memref<256x256xf32, #tpu.memory_space<vmem>>, vector<256x256xf32>
      tpu.vector_store %arg6[%c0_14, %c0_15], %15 {strides = array<i32>} : memref<256x256xf32, #tpu.memory_space<vmem>>, vector<256x256xf32>,
    } else {
    }
    return
  }
  func.func @transform_0(%arg0: i32, %arg1: i32, %arg2: i32) -> (i32, i32) {
    %c0_i32 = arith.constant 0 : i32
    return %arg0, %arg2 : i32, i32
  }
  func.func @transform_1(%arg0: i32, %arg1: i32, %arg2: i32) -> (i32, i32) {
    %c0_i32 = arith.constant 0 : i32
    return %arg2, %arg1 : i32, i32
  }
  func.func @transform_2(%arg0: i32, %arg1: i32, %arg2: i32) -> (i32, i32) {
    %c0_i32 = arith.constant 0 : i32
    %c0_i32_0 = arith.constant 0 : i32
    return %c0_i32, %arg1 : i32, i32
  }
  func.func @transform_3(%arg0: i32, %arg1: i32, %arg2: i32) -> (i32, i32) {
    %c0_i32 = arith.constant 0 : i32
    return %arg0, %arg1 : i32, i32
  }
}

module attributes {stable_mosaic.version = 11 : i64} {
  func.func @_attn_kernel(%arg0: i32, %arg1: i32, %arg2: i32, %arg3: memref<1x128x128xf32, #tpu.memory_space<vmem>>, %arg4: memref<1x128x128xf32, #tpu.memory_space<vmem>>, %arg5: memref<1x128x128xf32, #tpu.memory_space<vmem>>, %arg6: memref<128x256xf32, #tpu.memory_space<vmem>>, %arg7: memref<1x256xf32, #tpu.memory_space<vmem>>, %arg8: memref<1x128x256xf32, #tpu.memory_space<vmem>>, %arg9: memref<1x128x128xf32, #tpu.memory_space<vmem>>, %arg10: memref<128x128xf32, #tpu.memory_space<vmem>>, %arg11: memref<128x256xf32, #tpu.memory_space<vmem>>, %arg12: memref<128x128xf32, #tpu.memory_space<vmem>>) attributes {dimension_semantics = [#tpu.dimension_semantics<parallel>, #tpu.dimension_semantics<parallel>, #tpu.dimension_semantics<arbitrary>], iteration_bounds = array<i64: 2, 1, 2>, scalar_prefetch = 0 : i64, scratch_operands = 3 : i64, tpu.core_type = #tpu.core_type<tc>, window_params = [{transform_indices = @transform_0, window_bounds = array<i64: 1, 128, 128>}, {transform_indices = @transform_1, window_bounds = array<i64: 1, 128, 128>}, {transform_indices = @transform_2, window_bounds = array<i64: 1, 128, 128>}, {transform_indices = @transform_3, window_bounds = array<i64: 128, 256>}, {pipeline_mode = #tpu.pipeline_mode<synchronous>, transform_indices = @transform_4, window_bounds = array<i64: 1, 256>}, {transform_indices = @transform_5, window_bounds = array<i64: 1, 128, 256>}, {transform_indices = @transform_6, window_bounds = array<i64: 1, 128, 128>}]} {
    %c0_i32 = arith.constant 0 : i32
    %0 = arith.cmpi eq, %arg2, %c0_i32 : i32
    %1 = arith.extui %0 : i1 to i32
    %c0_i32_0 = arith.constant 0 : i32
    %2 = arith.cmpi ne, %1, %c0_i32_0 : i32
    scf.if %2 {
      %cst_48 = arith.constant 0.000000e+00 : f32
      %58 = vector.broadcast %cst_48 : f32 to vector<128x128xf32>
      %c0_49 = arith.constant 0 : index
      %c0_50 = arith.constant 0 : index
      %59 = vector.load %arg10[%c0_49, %c0_50] : memref<128x128xf32, #tpu.memory_space<vmem>>, vector<128x128xf32>
      tpu.vector_store %arg10[%c0_49, %c0_50], %58 {strides = array<i32>} : memref<128x128xf32, #tpu.memory_space<vmem>>, vector<128x128xf32>,
      %cst_51 = arith.constant 0.000000e+00 : f32
      %60 = vector.broadcast %cst_51 : f32 to vector<128x256xf32>
      %c0_52 = arith.constant 0 : index
      %c0_53 = arith.constant 0 : index
      %61 = vector.load %arg11[%c0_52, %c0_53] : memref<128x256xf32, #tpu.memory_space<vmem>>, vector<128x256xf32>
      tpu.vector_store %arg11[%c0_52, %c0_53], %60 {strides = array<i32>} : memref<128x256xf32, #tpu.memory_space<vmem>>, vector<128x256xf32>,
    } else {
    }
    %c0 = arith.constant 0 : index
    %c0_1 = arith.constant 0 : index
    %c0_2 = arith.constant 0 : index
    %3 = vector.load %arg3[%c0, %c0_1, %c0_2] : memref<1x128x128xf32, #tpu.memory_space<vmem>>, vector<1x128x64xf32>
    %4 = vector.shape_cast %3 : vector<1x128x64xf32> to vector<128x64xf32>
    %cst = arith.constant 1.250000e-01 : f32
    %5 = vector.broadcast %cst : f32 to vector<128x64xf32>
    %6 = arith.mulf %4, %5 : vector<128x64xf32>
    %c0_3 = arith.constant 0 : index
    %c0_4 = arith.constant 0 : index
    %c0_5 = arith.constant 0 : index
    %7 = vector.load %arg4[%c0_3, %c0_4, %c0_5] : memref<1x128x128xf32, #tpu.memory_space<vmem>>, vector<1x128x64xf32>
    %8 = vector.shape_cast %7 : vector<1x128x64xf32> to vector<128x64xf32>
    %c0_6 = arith.constant 0 : index
    %c0_7 = arith.constant 0 : index
    %c0_8 = arith.constant 0 : index
    %9 = vector.load %arg5[%c0_6, %c0_7, %c0_8] : memref<1x128x128xf32, #tpu.memory_space<vmem>>, vector<1x128x64xf32>
    %10 = vector.shape_cast %9 : vector<1x128x64xf32> to vector<128x64xf32>
    %cst_9 = arith.constant dense<0.000000e+00> : vector<128x128xf32>
    %11 = tpu.matmul %6, %8, %cst_9 {dimension_numbers = #tpu.dot_dimension_numbers<[1], [1], [0], [0], [0, 0, 1, 0], [], []>, precision = #tpu.contract_precision<fp32>} : vector<128x64xf32>, vector<128x64xf32>, vector<128x128xf32> -> vector<128x128xf32>
    %cst_10 = arith.constant dense<0xFF800000> : vector<128xf32>
    %12 = vector.multi_reduction <maximumf>, %11, %cst_10 [1] : vector<128x128xf32> to vector<128xf32>
    %13 = vector.shape_cast %12 : vector<128xf32> to vector<128x1xf32>
    %14 = vector.broadcast %13 : vector<128x1xf32> to vector<128x128xf32>
    %15 = arith.subf %11, %14 : vector<128x128xf32>
    %16 = math.exp %15 : vector<128x128xf32>
    %cst_11 = arith.constant dense<0.000000e+00> : vector<128xf32>
    %17 = vector.multi_reduction <add>, %16, %cst_11 [1] : vector<128x128xf32> to vector<128xf32>
    %18 = vector.shape_cast %17 : vector<128xf32> to vector<128x1xf32>
    %19 = vector.broadcast %18 : vector<128x1xf32> to vector<128x128xf32>
    %20 = arith.divf %16, %19 : vector<128x128xf32>
    %c0_12 = arith.constant 0 : index
    %c0_13 = arith.constant 0 : index
    %21 = vector.load %arg10[%c0_12, %c0_13] : memref<128x128xf32, #tpu.memory_space<vmem>>, vector<128x128xf32>
    %22 = arith.addf %21, %20 : vector<128x128xf32>
    %c0_14 = arith.constant 0 : index
    %c0_15 = arith.constant 0 : index
    %23 = vector.load %arg10[%c0_14, %c0_15] : memref<128x128xf32, #tpu.memory_space<vmem>>, vector<128x128xf32>
    tpu.vector_store %arg10[%c0_14, %c0_15], %22 {strides = array<i32>} : memref<128x128xf32, #tpu.memory_space<vmem>>, vector<128x128xf32>,
    %cst_16 = arith.constant dense<0.000000e+00> : vector<128x64xf32>
    %24 = tpu.matmul %20, %10, %cst_16 {dimension_numbers = #tpu.dot_dimension_numbers<[1], [0], [0], [1], [0, 0, 1, 1], [], []>, precision = #tpu.contract_precision<fp32>} : vector<128x128xf32>, vector<128x64xf32>, vector<128x64xf32> -> vector<128x64xf32>
    %c0_17 = arith.constant 0 : index
    %c0_18 = arith.constant 0 : index
    %25 = vector.load %arg12[%c0_17, %c0_18] : memref<128x128xf32, #tpu.memory_space<vmem>>, vector<128x64xf32>
    tpu.vector_store %arg12[%c0_17, %c0_18], %24 {strides = array<i32>} : memref<128x128xf32, #tpu.memory_space<vmem>>, vector<128x64xf32>,
    %c0_19 = arith.constant 0 : index
    %c0_20 = arith.constant 0 : index
    %c64 = arith.constant 64 : index
    %26 = vector.load %arg3[%c0_19, %c0_20, %c64] : memref<1x128x128xf32, #tpu.memory_space<vmem>>, vector<1x128x64xf32>
    %27 = vector.shape_cast %26 : vector<1x128x64xf32> to vector<128x64xf32>
    %cst_21 = arith.constant 1.250000e-01 : f32
    %28 = vector.broadcast %cst_21 : f32 to vector<128x64xf32>
    %29 = arith.mulf %27, %28 : vector<128x64xf32>
    %c0_22 = arith.constant 0 : index
    %c0_23 = arith.constant 0 : index
    %c64_24 = arith.constant 64 : index
    %30 = vector.load %arg4[%c0_22, %c0_23, %c64_24] : memref<1x128x128xf32, #tpu.memory_space<vmem>>, vector<1x128x64xf32>
    %31 = vector.shape_cast %30 : vector<1x128x64xf32> to vector<128x64xf32>
    %c0_25 = arith.constant 0 : index
    %c0_26 = arith.constant 0 : index
    %c64_27 = arith.constant 64 : index
    %32 = vector.load %arg5[%c0_25, %c0_26, %c64_27] : memref<1x128x128xf32, #tpu.memory_space<vmem>>, vector<1x128x64xf32>
    %33 = vector.shape_cast %32 : vector<1x128x64xf32> to vector<128x64xf32>
    %cst_28 = arith.constant dense<0.000000e+00> : vector<128x128xf32>
    %34 = tpu.matmul %29, %31, %cst_28 {dimension_numbers = #tpu.dot_dimension_numbers<[1], [1], [0], [0], [0, 0, 1, 0], [], []>, precision = #tpu.contract_precision<fp32>} : vector<128x64xf32>, vector<128x64xf32>, vector<128x128xf32> -> vector<128x128xf32>
    %cst_29 = arith.constant dense<0xFF800000> : vector<128xf32>
    %35 = vector.multi_reduction <maximumf>, %34, %cst_29 [1] : vector<128x128xf32> to vector<128xf32>
    %36 = vector.shape_cast %35 : vector<128xf32> to vector<128x1xf32>
    %37 = vector.broadcast %36 : vector<128x1xf32> to vector<128x128xf32>
    %38 = arith.subf %34, %37 : vector<128x128xf32>
    %39 = math.exp %38 : vector<128x128xf32>
    %cst_30 = arith.constant dense<0.000000e+00> : vector<128xf32>
    %40 = vector.multi_reduction <add>, %39, %cst_30 [1] : vector<128x128xf32> to vector<128xf32>
    %41 = vector.shape_cast %40 : vector<128xf32> to vector<128x1xf32>
    %42 = vector.broadcast %41 : vector<128x1xf32> to vector<128x128xf32>
    %43 = arith.divf %39, %42 : vector<128x128xf32>
    %c0_31 = arith.constant 0 : index
    %c0_32 = arith.constant 0 : index
    %44 = vector.load %arg10[%c0_31, %c0_32] : memref<128x128xf32, #tpu.memory_space<vmem>>, vector<128x128xf32>
    %45 = arith.addf %44, %43 : vector<128x128xf32>
    %c0_33 = arith.constant 0 : index
    %c0_34 = arith.constant 0 : index
    %46 = vector.load %arg10[%c0_33, %c0_34] : memref<128x128xf32, #tpu.memory_space<vmem>>, vector<128x128xf32>
    tpu.vector_store %arg10[%c0_33, %c0_34], %45 {strides = array<i32>} : memref<128x128xf32, #tpu.memory_space<vmem>>, vector<128x128xf32>,
    %cst_35 = arith.constant dense<0.000000e+00> : vector<128x64xf32>
    %47 = tpu.matmul %43, %33, %cst_35 {dimension_numbers = #tpu.dot_dimension_numbers<[1], [0], [0], [1], [0, 0, 1, 1], [], []>, precision = #tpu.contract_precision<fp32>} : vector<128x128xf32>, vector<128x64xf32>, vector<128x64xf32> -> vector<128x64xf32>
    %c0_36 = arith.constant 0 : index
    %c64_37 = arith.constant 64 : index
    %48 = vector.load %arg12[%c0_36, %c64_37] : memref<128x128xf32, #tpu.memory_space<vmem>>, vector<128x64xf32>
    tpu.vector_store %arg12[%c0_36, %c64_37], %47 {strides = array<i32>} : memref<128x128xf32, #tpu.memory_space<vmem>>, vector<128x64xf32>,
    %c0_38 = arith.constant 0 : index
    %c0_39 = arith.constant 0 : index
    %49 = vector.load %arg11[%c0_38, %c0_39] : memref<128x256xf32, #tpu.memory_space<vmem>>, vector<128x256xf32>
    %c0_40 = arith.constant 0 : index
    %c0_41 = arith.constant 0 : index
    %50 = vector.load %arg12[%c0_40, %c0_41] : memref<128x128xf32, #tpu.memory_space<vmem>>, vector<128x128xf32>
    %c0_42 = arith.constant 0 : index
    %c0_43 = arith.constant 0 : index
    %51 = vector.load %arg6[%c0_42, %c0_43] : memref<128x256xf32, #tpu.memory_space<vmem>>, vector<128x256xf32>
    %cst_44 = arith.constant dense<0.000000e+00> : vector<128x256xf32>
    %52 = tpu.matmul %50, %51, %cst_44 {dimension_numbers = #tpu.dot_dimension_numbers<[1], [0], [0], [1], [0, 0, 1, 1], [], []>, precision = #tpu.contract_precision<fp32>} : vector<128x128xf32>, vector<128x256xf32>, vector<128x256xf32> -> vector<128x256xf32>
    %53 = arith.addf %49, %52 : vector<128x256xf32>
    %c0_45 = arith.constant 0 : index
    %c0_46 = arith.constant 0 : index
    %54 = vector.load %arg11[%c0_45, %c0_46] : memref<128x256xf32, #tpu.memory_space<vmem>>, vector<128x256xf32>
    tpu.vector_store %arg11[%c0_45, %c0_46], %53 {strides = array<i32>} : memref<128x256xf32, #tpu.memory_space<vmem>>, vector<128x256xf32>,
    %c1_i32 = arith.constant 1 : i32
    %55 = arith.cmpi eq, %arg2, %c1_i32 : i32
    %56 = arith.extui %55 : i1 to i32
    %c0_i32_47 = arith.constant 0 : i32
    %57 = arith.cmpi ne, %56, %c0_i32_47 : i32
    scf.if %57 {
      %c0_48 = arith.constant 0 : index
      %c0_49 = arith.constant 0 : index
      %58 = vector.load %arg11[%c0_48, %c0_49] : memref<128x256xf32, #tpu.memory_space<vmem>>, vector<128x256xf32>
      %c0_50 = arith.constant 0 : index
      %c0_51 = arith.constant 0 : index
      %59 = vector.load %arg7[%c0_50, %c0_51] : memref<1x256xf32, #tpu.memory_space<vmem>>, vector<1x256xf32>
      %60 = vector.broadcast %59 : vector<1x256xf32> to vector<128x256xf32>
      %61 = arith.addf %58, %60 : vector<128x256xf32>
      %c0_52 = arith.constant 0 : index
      %c0_53 = arith.constant 0 : index
      %c0_54 = arith.constant 0 : index
      %62 = vector.load %arg8[%c0_52, %c0_53, %c0_54] : memref<1x128x256xf32, #tpu.memory_space<vmem>>, vector<1x128x256xf32>
      %63 = vector.shape_cast %62 : vector<1x128x256xf32> to vector<128x256xf32>
      %64 = vector.shape_cast %61 : vector<128x256xf32> to vector<1x128x256xf32>
      tpu.vector_store %arg8[%c0_52, %c0_53, %c0_54], %64 {strides = array<i32>} : memref<1x128x256xf32, #tpu.memory_space<vmem>>, vector<1x128x256xf32>,
      %c0_55 = arith.constant 0 : index
      %c0_56 = arith.constant 0 : index
      %65 = vector.load %arg10[%c0_55, %c0_56] : memref<128x128xf32, #tpu.memory_space<vmem>>, vector<128x128xf32>
      %cst_57 = arith.constant 2.500000e-01 : f32
      %66 = vector.broadcast %cst_57 : f32 to vector<128x128xf32>
      %67 = arith.mulf %65, %66 : vector<128x128xf32>
      %c0_58 = arith.constant 0 : index
      %c0_59 = arith.constant 0 : index
      %c0_60 = arith.constant 0 : index
      %68 = vector.load %arg9[%c0_58, %c0_59, %c0_60] : memref<1x128x128xf32, #tpu.memory_space<vmem>>, vector<1x128x128xf32>
      %69 = vector.shape_cast %68 : vector<1x128x128xf32> to vector<128x128xf32>
      %70 = vector.shape_cast %67 : vector<128x128xf32> to vector<1x128x128xf32>
      tpu.vector_store %arg9[%c0_58, %c0_59, %c0_60], %70 {strides = array<i32>} : memref<1x128x128xf32, #tpu.memory_space<vmem>>, vector<1x128x128xf32>,
    } else {
    }
    return
  }
  func.func @transform_0(%arg0: i32, %arg1: i32, %arg2: i32) -> (i32, i32, i32) {
    %c0_i32 = arith.constant 0 : i32
    return %arg0, %arg1, %arg2 : i32, i32, i32
  }
  func.func @transform_1(%arg0: i32, %arg1: i32, %arg2: i32) -> (i32, i32, i32) {
    %c2_i32 = arith.constant 2 : i32
    %0 = arith.addi %c2_i32, %arg2 : i32
    %c0_i32 = arith.constant 0 : i32
    %c0_i32_0 = arith.constant 0 : i32
    return %arg0, %c0_i32, %0 : i32, i32, i32
  }
  func.func @transform_2(%arg0: i32, %arg1: i32, %arg2: i32) -> (i32, i32, i32) {
    %c4_i32 = arith.constant 4 : i32
    %0 = arith.addi %c4_i32, %arg2 : i32
    %c0_i32 = arith.constant 0 : i32
    %c0_i32_0 = arith.constant 0 : i32
    return %arg0, %c0_i32, %0 : i32, i32, i32
  }
  func.func @transform_3(%arg0: i32, %arg1: i32, %arg2: i32) -> (i32, i32) {
    %c0_i32 = arith.constant 0 : i32
    %c0_i32_0 = arith.constant 0 : i32
    return %arg2, %c0_i32 : i32, i32
  }
  func.func @transform_4(%arg0: i32, %arg1: i32, %arg2: i32) -> (i32, i32) {
    %c0_i32 = arith.constant 0 : i32
    %c0_i32_0 = arith.constant 0 : i32
    %c0_i32_1 = arith.constant 0 : i32
    return %c0_i32, %c0_i32_0 : i32, i32
  }
  func.func @transform_5(%arg0: i32, %arg1: i32, %arg2: i32) -> (i32, i32, i32) {
    %c0_i32 = arith.constant 0 : i32
    %c0_i32_0 = arith.constant 0 : i32
    return %arg0, %arg1, %c0_i32 : i32, i32, i32
  }
  func.func @transform_6(%arg0: i32, %arg1: i32, %arg2: i32) -> (i32, i32, i32) {
    %c0_i32 = arith.constant 0 : i32
    %c0_i32_0 = arith.constant 0 : i32
    return %arg0, %arg1, %c0_i32 : i32, i32, i32
  }
}

</mosaic_0001>

<bundles_post_ra>
// kernel: multihead_attention.2
= control target key start
LH: loop header
LB: loop body
LE: loop exit
PB: predicated region body
PF: predicated region fallthrough
CT: control target
= control target key end

     0   :  { %8 = vsyncpa [#allocation4], 0  ;;  %s7497_s0 = inlined_call_operand.vmem [shape: f32[256,256], index: 0, kind: input, shape index: {}]   ;;  %s7498_s1 = inlined_call_operand.hbm [shape: f32[256,768], index: 1, kind: input, shape index: {}]   ;;  %s7499_s2 = inlined_call_operand.vmem [shape: f32[1,768], index: 2, kind: input, shape index: {}]   ;;  %s7500_s3 = inlined_call_operand.vmem [shape: f32[256,768], index: 3, kind: output, shape index: {}]  }
   0x1   :  { %10 = vsyncpa [#allocation4 + $0x1], 0  ;;  %s5228_s12 = smov 0   ;;  %s5230_s13 = smov 0  }
   0x2   :  { %s5232_s14 = smov 0   ;;  %s5234_s15 = smov 0  }
   0x3   :  { %s5236_s16 = smov 0   ;;  %s5238_s17 = smov 0  }
   0x4 LB: > { %s4341_s18 = sadd.s32 4294967295, %s5202_s17   ;;  %s31_s19 = sadd.s32 1, %s5198_s16  ;;  %s5202_s17 = sphi %s5238_s17, %s16_s17   ;;  %s5198_s16 = sphi %s5236_s16, %s8361_s16   ;;  %s5194_s15 = sphi %s5234_s15, %s8360_s15   ;;  %s5190_s14 = sphi %s5232_s14, %s8359_s14   ;;  %s5186_s13 = sphi %s5230_s13, %s8358_s13   ;;  %s5182_s12 = sphi %s5228_s12, %s8357_s12  }
   0x5   : > { %p33_p0 = scmp.ge.s32.totalorder %s31_s19, 3  ;;  %s72_s20 = sadd.s32 1, %s5190_s14 }
   0x6   : > { %p79_p1 = scmp.ne.s32.totalorder %s5190_s14, %s5186_s13  ;;  %p80_p2 = scmp.eq.s32.totalorder %s5202_s17, 0 }
   0x7   : > { %s8363_s19 = smov (%p33_p0, %s31_s19), 0  ;;  %p85_p4 = scmp.ne.s32.totalorder %s5186_s13, %s5182_s12 }
   0x8   : > { %p5264_p3 = por %p80_p2, %p79_p1  ;;  %s68_s22 = ssub.s32 %s5198_s16, %s8363_s19 }
   0x9   : > { %p86_p5 = scmp.eq.s32.totalorder %s4341_s18, 0  ;;  %p70_p6 = scmp.eq.s32.totalorder %s68_s22, 0 }
   0xa   : > { %p137_p7 = scmp.eq.s32.totalorder %s4341_s18, 2  ;;  %p5070_p10 = scmp.lt.s32.totalorder %s5202_s17, 3 }
   0xb   : > { %p5271_p8 = por %p86_p5, %p85_p4  ;;  %s178_s26 = sand.u32 1, %s5190_s14  }
   0xc   : > { %s5276_s24 = scalar_select %p70_p6, %s5190_s14, %s72_s20  }
   0xd   : > { %p5278_p9 = por %p137_p7, %p79_p1  ;;  %s4358_s27 = sshll.u32 %s5198_s16, 8 }
   0xe   : > { %s4346_s28 = sshll.u32 %s178_s26, 9  ;;  %s5288_s4 = scalar_lea.hbm %s7498_s1, %s4358_s27 }
   0xf   : > { %s7827_s25 = scalar_select %p5278_p9, 1, 0 }
  0x10   : > { %s182_s5 = scalar_lea.vmem [#allocation3], %s4346_s28  ;;  %p5292_p11 = pnand %p5070_p10, %p5264_p3 }
  0x11   : > { %s192_s6 = sshll.u32 %s182_s5, 4  ;;  %s5299_s8 = scalar_lea.sflag [#allocation4], %s178_s26  ;;  %s5296_s6 = int_to_ptr.vmem [resolvable:$true] %s192_s6 }
  0x12   : > { %s5122_s9 = scalar_lea.hbm %s5288_s4, 8192  ;;  %p5124_p0 = pneg %p5292_p11 }
  0x13   : > { %p5123_p13 = scmp.ne.s32.totalorder %s5288_s4, %s5122_s9  ;;  %s5127_s12 = scalar_lea.hbm %s7498_s1, 24576 }
  0x14   : > { %p5128_p3 = scmp.lt.u32.totalorder %s5288_s4, %s7498_s1  ;;  %p5129_p4 = scmp.lt.u32.totalorder %s5127_s12, %s5122_s9 }
  0x15   : > { %p5125_p1 = pnand %p5124_p0, %p5123_p13  ;;  %p5131_p6 = scmp.lt.u32.totalorder %s5122_s9, %s5288_s4 }
  0x16   : > { %p5130_p5 = por %p5129_p4, %p5128_p3 }
  0x17   : > { %p5126_p2 = pneg %p5125_p1 }
  0x18   : > { %p5132_p7 = por %p5131_p6, %p5130_p5 }
  0x1a   : > { %p5133_p10 = pnand %p5132_p7, %p5126_p2 }
  0x1c   : > { %5136 = shalt.err (!%p5133_p10)
}
  0x1d   : > { %s5137_s21 = scalar_lea.vmem %s5296_s6, 8192  ;;  %s5204_s22 = smov [#allocation3]  }
  0x1e   : > { %p5138_p13 = scmp.ne.s32.totalorder %s5296_s6, %s5137_s21  ;;  %s5142_s26 = sshll.u32 %s5204_s22, 4  ;;  %s5143_s26 = int_to_ptr.vmem [resolvable:$false] %s5142_s26 }
  0x1f   : > { %s5144_s27 = scalar_lea.vmem %s5143_s26, 16384  ;;  %p5145_p9 = scmp.lt.s32.totalorder %s5296_s6, %s5143_s26 }
  0x20   : > { %p5140_p1 = pnand %p5138_p13, %p5124_p0  ;;  %p5146_p3 = scmp.lt.s32.totalorder %s5144_s27, %s5137_s21 }
  0x22   : > { %p5141_p12 = pneg %p5140_p1  ;;  %p5147_p4 = por %p5146_p3, %p5145_p9 }
  0x24   : > { %p5148_p5 = pnand %p5147_p4, %p5141_p12 }
  0x26   : > { %5151 = shalt.err (!%p5148_p5)
}
  0x27   : > { %s5205_s28 = smov 768   ;;  %s5206_s29 = smov 256  }
  0x28   : > { %s5207_s30 = smov 16   ;;  %p208_p0 = scmp.lt.s32.totalorder %s5202_s17, 4 }
  0x29   : > { %5069 = dma.hbm_to_vmem [thread:$0]  (!%p5292_p11), %s5288_s4, 8192, %s5296_s6, %s5299_s8, %s5205_s28, %s5206_s29, %s5207_s30  }
  0x2a   : > { %p7829_p2 = scmp.ge.s32.totalorder %s5202_s17, 1 }
  0x2c   : > { %p209_p6 = pnand %p7829_p2, %p208_p0 }
  0x2e   : > { %212 = sbr.rel (%p209_p6) target bundleno = 754 (0x2f2), region = 32 }
  0x35   : > { %s214_s5 = sand.u32 1, %s5186_s13  }
  0x36   : > { %s5331_s9 = sshll.u32 %s214_s5, 9  ;;  %s215_s10 = scalar_lea.sflag [#allocation4], %s214_s5 }
  0x37   : > { %s5334_s11 = scalar_lea.vmem [#allocation3], %s5331_s9 }
  0x38   : > { %5177 = dma.done.wait (%p5271_p8), %s215_s10, 8192  }
  0x39   : > { %5179 = vsyncadd (%p5271_p8), %s215_s10, 4294959104  ;;  %v472_v0 = vld [vmem:[%s5334_s11 + $0x8] sm:$0xff]  ;;  %v474_v1 = vld [vmem:[%s5334_s11 + $0x18] sm:$0xff]  ;;  %s4352_s6 = sshll.u32 %s5194_s15, 1  ;;  %s7215_s18 = scalar_lea.vmem [#allocation5], %s5331_s9 }
  0x3a   : > { %v471_v2 = vld [vmem:[%s5334_s11] sm:$0xff]  ;;  %v535_v3 = vand.u32 4294901760, %v472_v0  ;;  %v539_v4 = vand.u32 4294901760, %v474_v1  ;;  %v473_v5 = vld [vmem:[%s5334_s11 + $0x10] sm:$0xff]  ;;  %v476_v7 = vld [vmem:[%s5334_s11 + $0x28] sm:$0xff]  ;;  %p269_p8 = scmp.lt.s32.totalorder %s4352_s6, 5 }
  0x3b   : > { %v537_v6 = vand.u32 4294901760, %v471_v2  ;;  %v478_v8 = vld [vmem:[%s5334_s11 + $0x38] sm:$0xff]  ;;  %v541_v9 = vand.u32 4294901760, %v473_v5  ;;  %v543_v10 = vand.u32 4294901760, %v476_v7  ;;  %v475_v12 = vld [vmem:[%s5334_s11 + $0x20] sm:$0xff]  ;;  %v477_v13 = vld [vmem:[%s5334_s11 + $0x30] sm:$0xff] }
  0x3c   : > { %v547_v11 = vand.u32 4294901760, %v478_v8  ;;  %v480_v14 = vld [vmem:[%s5334_s11 + $0x48] sm:$0xff]  ;;  %v5349_v15 = vpack.c.bf16 %v539_v4, %v535_v3  ;;  %v5351_v16 = vsub.f32 %v472_v0, %v535_v3  ;;  %v5353_v17 = vsub.f32 %v474_v1, %v539_v4  ;;  %v482_v19 = vld [vmem:[%s5334_s11 + $0x58] sm:$0xff]  ;;  %v479_v20 = vld [vmem:[%s5334_s11 + $0x40] sm:$0xff]  ;;  %s8365_s6 = smov (!%p269_p8, %s4352_s6), 5  ;;  %p8356_p9 = scmp.ne.s32.totalorder %s7827_s25, 0 }
  0x3d   : > { %v5355_v18 = vsub.f32 %v471_v2, %v537_v6  ;;  %v481_v21 = vld [vmem:[%s5334_s11 + $0x50] sm:$0xff]  ;;  %v5360_v22 = vpack.c.bf16 %v541_v9, %v537_v6  ;;  %v5362_v23 = vsub.f32 %v473_v5, %v541_v9  ;;  %v5366_v25 = vsub.f32 %v476_v7, %v543_v10  ;;  %v484_v26 = vld [vmem:[%s5334_s11 + $0x68] sm:$0xff]  ;;  %v486_v27 = vld [vmem:[%s5334_s11 + $0x78] sm:$0xff]  ;;  %s271_s12 = scalar_lea.vmem %s7499_s2, %s8365_s6  ;;  %s4359_s9 = sshll.u32 (%p8356_p9), %s5194_s15, 4 }
  0x3e   : > { %7830 = vst [vmem:[#allocation7_spill] sm:$0xff] %v5349_v15  ;;  %7831 = vst [vmem:[#allocation8_spill] sm:$0xff] %v5351_v16  ;;  %v5364_v24 = vpack.c.bf16 %v547_v11, %v543_v10  ;;  %4361 = vmatprep.subr.bf16.mxu1 %v5349_v15  ;;  %4553 = vmatprep.subr.bf16.mxu0 %v5349_v15  ;;  %v5372_v28 = vsub.f32 %v478_v8, %v547_v11  ;;  %v545_v29 = vand.u32 4294901760, %v475_v12  ;;  %v483_v36 = vld [vmem:[%s5334_s11 + $0x60] sm:$0xff]  ;;  %v485_v41 = vld [vmem:[%s5334_s11 + $0x70] sm:$0xff]  ;;  %s7352_s22 = scalar_lea.vmem (%p8356_p9), %s7500_s3, %s4359_s9 }
  0x3f   : > { %7832 = vst [vmem:[#allocation9_spill] sm:$0xff] %v5353_v17  ;;  %7833 = vst [vmem:[#allocation10_spill] sm:$0xff] %v5355_v18  ;;  %v549_v30 = vand.u32 4294901760, %v477_v13  ;;  %v551_v31 = vand.u32 4294901760, %v480_v14  ;;  %4363 = vmatpush1.bf16.msra.mxu1 %v5360_v22  ;;  %4555 = vmatpush1.bf16.msra.mxu0 %v5360_v22  ;;  %v555_v32 = vand.u32 4294901760, %v482_v19  ;;  %v553_v33 = vand.u32 4294901760, %v479_v20 }
  0x40   : > { %7834 = vst [vmem:[#allocation11_spill] sm:$0xff] %v5360_v22  ;;  %7835 = vst [vmem:[#allocation12_spill] sm:$0xff] %v5362_v23  ;;  %v557_v34 = vand.u32 4294901760, %v481_v21  ;;  %v559_v35 = vand.u32 4294901760, %v484_v26  ;;  %4365 = vmatprep.subr.bf16.mxu1 %v5364_v24  ;;  %4557 = vmatprep.subr.bf16.mxu0 %v5364_v24  ;;  %v5381_v38 = vsub.f32 %v475_v12, %v545_v29  ;;  %v563_v40 = vand.u32 4294901760, %v486_v27  ;;  %v488_v42 = vld [vmem:[%s5334_s11 + $0x88] sm:$0xff] }
  0x41   : > { %7836 = vst [vmem:[#allocation13_spill] sm:$0xff] %v5364_v24  ;;  %7837 = vst [vmem:[#allocation14_spill] sm:$0xff] %v5366_v25  ;;  %v5379_v37 = vpack.c.bf16 %v549_v30, %v545_v29  ;;  %v5383_v39 = vsub.f32 %v477_v13, %v549_v30  ;;  %v490_v43 = vld [vmem:[%s5334_s11 + $0x98] sm:$0xff]  ;;  %v5388_v44 = vpack.c.bf16 %v555_v32, %v551_v31  ;;  %v487_v48 = vld [vmem:[%s5334_s11 + $0x80] sm:$0xff]  ;;  %v561_v56 = vand.u32 4294901760, %v483_v36 }
  0x42   : > { %7838 = vst [vmem:[#allocation15_spill] sm:$0xff] %v5372_v28  ;;  %7840 = vst [vmem:[#allocation17_spill] sm:$0xff] %v5381_v38  ;;  %v5390_v45 = vsub.f32 %v480_v14, %v551_v31  ;;  %v5392_v46 = vsub.f32 %v482_v19, %v555_v32  ;;  %v5394_v47 = vpack.c.bf16 %v557_v34, %v553_v33  ;;  %v489_v49 = vld [vmem:[%s5334_s11 + $0x90] sm:$0xff]  ;;  %v492_v50 = vld [vmem:[%s5334_s11 + $0xa8] sm:$0xff]  ;;  %v565_v57 = vand.u32 4294901760, %v485_v41 }
  0x43   : > { %7839 = vst [vmem:[#allocation16_spill] sm:$0xff] %v5379_v37  ;;  %7841 = vst [vmem:[#allocation18_spill] sm:$0xff] %v5383_v39  ;;  %v5399_v51 = vsub.f32 %v479_v20, %v553_v33  ;;  %v5401_v52 = vsub.f32 %v481_v21, %v557_v34  ;;  %v5403_v53 = vpack.c.bf16 %v563_v40, %v559_v35  ;;  %4367 = vmatpush1.bf16.msra.mxu1 %v5379_v37  ;;  %v494_v59 = vld [vmem:[%s5334_s11 + $0xb8] sm:$0xff]  ;;  %v491_v0 = vld [vmem:[%s5334_s11 + $0xa0] sm:$0xff] }
  0x44   : > { %7842 = vst [vmem:[#allocation19_spill] sm:$0xff] %v5388_v44  ;;  %7843 = vst [vmem:[#allocation20_spill] sm:$0xff] %v5390_v45  ;;  %v5405_v54 = vsub.f32 %v484_v26, %v559_v35  ;;  %4559 = vmatpush1.bf16.msra.mxu0 %v5379_v37  ;;  %v5409_v55 = vsub.f32 %v486_v27, %v563_v40  ;;  %v567_v58 = vand.u32 4294901760, %v488_v42  ;;  %4369 = vmatprep.subr.bf16.mxu1 %v5388_v44  ;;  %v493_v1 = vld [vmem:[%s5334_s11 + $0xb0] sm:$0xff]  ;;  %v496_v6 = vld [vmem:[%s5334_s11 + $0xc8] sm:$0xff] }
  0x45   : > { %7844 = vst [vmem:[#allocation21_spill] sm:$0xff] %v5392_v46  ;;  %7845 = vst [vmem:[#allocation22_spill] sm:$0xff] %v5394_v47  ;;  %4561 = vmatprep.subr.bf16.mxu0 %v5388_v44  ;;  %v571_v60 = vand.u32 4294901760, %v490_v43  ;;  %v569_v61 = vand.u32 4294901760, %v487_v48  ;;  %v573_v62 = vand.u32 4294901760, %v489_v49  ;;  %v575_v63 = vand.u32 4294901760, %v492_v50 }
  0x46   : > { %7846 = vst [vmem:[#allocation23_spill] sm:$0xff] %v5399_v51  ;;  %7847 = vst [vmem:[#allocation24_spill] sm:$0xff] %v5401_v52  ;;  %v5416_v2 = vpack.c.bf16 %v565_v57, %v561_v56  ;;  %v5418_v3 = vsub.f32 %v483_v36, %v561_v56  ;;  %v5420_v4 = vsub.f32 %v485_v41, %v565_v57  ;;  %v498_v7 = vld [vmem:[%s5334_s11 + $0xd8] sm:$0xff]  ;;  %v495_v8 = vld [vmem:[%s5334_s11 + $0xc0] sm:$0xff]  ;;  %v579_v19 = vand.u32 4294901760, %v494_v59 }
  0x47   : > { %7848 = vst [vmem:[#allocation25_spill] sm:$0xff] %v5403_v53  ;;  %v5422_v5 = vsub.f32 %v488_v42, %v567_v58  ;;  %v5427_v9 = vpack.c.bf16 %v571_v60, %v567_v58  ;;  %v5429_v10 = vsub.f32 %v490_v43, %v571_v60  ;;  %v5431_v11 = vpack.c.bf16 %v573_v62, %v569_v61  ;;  %v497_v13 = vld [vmem:[%s5334_s11 + $0xd0] sm:$0xff]  ;;  %v500_v31 = vld [vmem:[%s5334_s11 + $0xe8] sm:$0xff]  ;;  %v502_v36 = vld [vmem:[%s5334_s11 + $0xf8] sm:$0xff] }
  0x48   : > { %7849 = vst [vmem:[#allocation26_spill] sm:$0xff] %v5416_v2  ;;  %7850 = vst [vmem:[#allocation27_spill] sm:$0xff] %v5418_v3  ;;  %v5433_v12 = vsub.f32 %v487_v48, %v569_v61  ;;  %4371 = vmatpush1.bf16.msra.mxu1 %v5394_v47  ;;  %4563 = vmatpush1.bf16.msra.mxu0 %v5394_v47  ;;  %v5438_v14 = vsub.f32 %v489_v49, %v573_v62  ;;  %v577_v21 = vand.u32 4294901760, %v491_v0  ;;  %v499_v40 = vld [vmem:[%s5334_s11 + $0xe0] sm:$0xff]  ;;  %v501_v41 = vld [vmem:[%s5334_s11 + $0xf0] sm:$0xff] }
  0x49   : > { %7851 = vst [vmem:[#allocation28_spill] sm:$0xff] %v5427_v9  ;;  %7852 = vst [vmem:[#allocation29_spill] sm:$0xff] %v5431_v11  ;;  %v5440_v20 = vsub.f32 %v492_v50, %v575_v63  ;;  %4373 = vmatprep.subr.bf16.mxu1 %v5403_v53  ;;  %4565 = vmatprep.subr.bf16.mxu0 %v5403_v53  ;;  %v581_v26 = vand.u32 4294901760, %v493_v1  ;;  %v583_v27 = vand.u32 4294901760, %v496_v6  ;;  %v587_v29 = vand.u32 4294901760, %v498_v7  ;;  %v504_v50 = vld [vmem:[%s5334_s11 + $0x108] sm:$0xff] }
  0x4a   : > { %v585_v30 = vand.u32 4294901760, %v495_v8  ;;  %v5445_v32 = vpack.c.bf16 %v579_v19, %v575_v63  ;;  %v5447_v33 = vsub.f32 %v494_v59, %v579_v19  ;;  %v5449_v34 = vsub.f32 %v491_v0, %v577_v21  ;;  %v506_v56 = vld [vmem:[%s5334_s11 + $0x118] sm:$0xff]  ;;  %v503_v57 = vld [vmem:[%s5334_s11 + $0x100] sm:$0xff]  ;;  %v513_v24 = vld [vmem:[%s5334_s11 + $0x150] sm:$0xff] }
  0x4b   : > { %v589_v35 = vand.u32 4294901760, %v497_v13  ;;  %v5454_v42 = vpack.c.bf16 %v581_v26, %v577_v21  ;;  %v5456_v43 = vsub.f32 %v493_v1, %v581_v26  ;;  %v5458_v48 = vpack.c.bf16 %v587_v29, %v583_v27  ;;  %v508_v26 = vld [vmem:[%s5334_s11 + $0x128] sm:$0xff]  ;;  %v511_v37 = vld [vmem:[%s5334_s11 + $0x140] sm:$0xff] }
  0x4c   : > { %7853 = vst [vmem:[#allocation30_spill] sm:$0xff] %v5445_v32  ;;  %v5460_v49 = vsub.f32 %v496_v6, %v583_v27  ;;  %4375 = vmatpush1.bf16.msra.mxu1 %v5416_v2  ;;  %4567 = vmatpush1.bf16.msra.mxu0 %v5416_v2  ;;  %v5467_v58 = vsub.f32 %v498_v7, %v587_v29  ;;  %v591_v61 = vand.u32 4294901760, %v500_v31  ;;  %v595_v63 = vand.u32 4294901760, %v502_v36  ;;  %v505_v6 = vld [vmem:[%s5334_s11 + $0x110] sm:$0xff]  ;;  %v510_v27 = vld [vmem:[%s5334_s11 + $0x138] sm:$0xff]  ;;  %v516_v22 = vld [vmem:[%s5334_s11 + $0x168] sm:$0xff] }
  0x4d   : > { %7854 = vst [vmem:[#allocation31_spill] sm:$0xff] %v5454_v42  ;;  %7855 = vst [vmem:[#allocation32_spill] sm:$0xff] %v5458_v48  ;;  %v5469_v59 = vpack.c.bf16 %v589_v35, %v585_v30  ;;  %v5471_v60 = vsub.f32 %v495_v8, %v585_v30  ;;  %4377 = vmatprep.subr.bf16.mxu1 %v5427_v9  ;;  %4569 = vmatprep.subr.bf16.mxu0 %v5427_v9  ;;  %v593_v0 = vand.u32 4294901760, %v499_v40  ;;  %v509_v2 = vld [vmem:[%s5334_s11 + $0x130] sm:$0xff] }
  0x4e   : > { %7856 = vst [vmem:[#allocation33_spill] sm:$0xff] %v5460_v49  ;;  %7857 = vst [vmem:[#allocation34_spill] sm:$0xff] %v5467_v58  ;;  %v5475_v62 = vsub.f32 %v497_v13, %v589_v35  ;;  %v597_v1 = vand.u32 4294901760, %v501_v41  ;;  %v5478_v7 = vsub.f32 %v500_v31, %v591_v61  ;;  %v599_v19 = vand.u32 4294901760, %v504_v50  ;;  %v507_v35 = vld [vmem:[%s5334_s11 + $0x120] sm:$0xff] }
  0x4f   : > { %7858 = vst [vmem:[#allocation35_spill] sm:$0xff] %v5469_v59  ;;  %7859 = vst [vmem:[#allocation36_spill] sm:$0xff] %v5471_v60  ;;  %v603_v21 = vand.u32 4294901760, %v506_v56  ;;  %v601_v8 = vand.u32 4294901760, %v503_v57  ;;  %v5482_v29 = vpack.c.bf16 %v595_v63, %v591_v61  ;;  %v5484_v30 = vsub.f32 %v502_v36, %v595_v63  ;;  %v512_v63 = vld [vmem:[%s5334_s11 + $0x148] sm:$0xff] }
  0x50   : > { %7860 = vst [vmem:[#allocation37_spill] sm:$0xff] %v5475_v62  ;;  %7861 = vst [vmem:[#allocation38_spill] sm:$0xff] %v5478_v7  ;;  %v5486_v9 = vpack.c.bf16 %v597_v1, %v593_v0  ;;  %v5488_v13 = vsub.f32 %v499_v40, %v593_v0  ;;  %4379 = vmatpush1.bf16.msra.mxu1 %v5431_v11  ;;  %4571 = vmatpush1.bf16.msra.mxu0 %v5431_v11  ;;  %v605_v36 = vand.u32 4294901760, %v505_v6  ;;  %v514_v11 = vld [vmem:[%s5334_s11 + $0x158] sm:$0xff] }
  0x51   : > { %7862 = vst [vmem:[#allocation39_spill] sm:$0xff] %v5482_v29  ;;  %7863 = vst [vmem:[#allocation40_spill] sm:$0xff] %v5484_v30  ;;  %v5494_v31 = vsub.f32 %v501_v41, %v597_v1  ;;  %v5496_v53 = vpack.c.bf16 %v603_v21, %v599_v19  ;;  %v5498_v61 = vsub.f32 %v504_v50, %v599_v19  ;;  %4381 = vmatprep.subr.bf16.mxu1 %v5445_v32 }
  0x52   : > { %7864 = vst [vmem:[#allocation41_spill] sm:$0xff] %v5486_v9  ;;  %7865 = vst [vmem:[#allocation42_spill] sm:$0xff] %v5488_v13  ;;  %4573 = vmatprep.subr.bf16.mxu0 %v5445_v32  ;;  %v5503_v40 = vsub.f32 %v506_v56, %v603_v21  ;;  %v5505_v0 = vsub.f32 %v503_v57, %v601_v8  ;;  %v607_v41 = vand.u32 4294901760, %v508_v26  ;;  %v611_v1 = vand.u32 4294901760, %v510_v27  ;;  %v518_v32 = vld [vmem:[%s5334_s11 + $0x178] sm:$0xff]  ;;  %v527_v13 = vld [vmem:[%s5334_s11 + $0x1c0] sm:$0xff] }
  0x53   : > { %7866 = vst [vmem:[#allocation43_spill] sm:$0xff] %v5494_v31  ;;  %7867 = vst [vmem:[#allocation44_spill] sm:$0xff] %v5496_v53  ;;  %v5508_v47 = vpack.c.bf16 %v605_v36, %v601_v8  ;;  %v5510_v50 = vsub.f32 %v505_v6, %v605_v36  ;;  %v609_v19 = vand.u32 4294901760, %v507_v35  ;;  %v613_v44 = vand.u32 4294901760, %v509_v2  ;;  %v526_v31 = vld [vmem:[%s5334_s11 + $0x1b8] sm:$0xff] }
  0x54   : > { %7868 = vst [vmem:[#allocation45_spill] sm:$0xff] %v5498_v61  ;;  %7869 = vst [vmem:[#allocation46_spill] sm:$0xff] %v5503_v40  ;;  %v5515_v15 = vpack.c.bf16 %v611_v1, %v607_v41  ;;  %v5517_v56 = vsub.f32 %v508_v26, %v607_v41  ;;  %v5519_v21 = vsub.f32 %v510_v27, %v611_v1  ;;  %v615_v57 = vand.u32 4294901760, %v512_v63  ;;  %v524_v61 = vld [vmem:[%s5334_s11 + $0x1a8] sm:$0xff] }
  0x55   : > { %7870 = vst [vmem:[#allocation47_spill] sm:$0xff] %v5505_v0  ;;  %7871 = vst [vmem:[#allocation48_spill] sm:$0xff] %v5508_v47  ;;  %v515_v0 = vld [vmem:[%s5334_s11 + $0x160] sm:$0xff]  ;;  %4383 = vmatpush1.bf16.msra.mxu1 %v5454_v42  ;;  %4575 = vmatpush1.bf16.msra.mxu0 %v5454_v42  ;;  %v5525_v6 = vpack.c.bf16 %v613_v44, %v609_v19  ;;  %v5527_v8 = vsub.f32 %v507_v35, %v609_v19  ;;  %v619_v26 = vand.u32 4294901760, %v514_v11 }
  0x56   : > { %7872 = vst [vmem:[#allocation49_spill] sm:$0xff] %v5510_v50  ;;  %7873 = vst [vmem:[#allocation50_spill] sm:$0xff] %v5515_v15  ;;  %v5529_v36 = vsub.f32 %v509_v2, %v613_v44  ;;  %4385 = vmatprep.subr.bf16.mxu1 %v5458_v48  ;;  %4577 = vmatprep.subr.bf16.mxu0 %v5458_v48  ;;  %v5533_v27 = vsub.f32 %v512_v63, %v615_v57  ;;  %v617_v41 = vand.u32 4294901760, %v511_v37  ;;  %v521_v50 = vld [vmem:[%s5334_s11 + $0x190] sm:$0xff] }
  0x57   : > { %7874 = vst [vmem:[#allocation51_spill] sm:$0xff] %v5517_v56  ;;  %7875 = vst [vmem:[#allocation52_spill] sm:$0xff] %v5519_v21  ;;  %v621_v1 = vand.u32 4294901760, %v513_v24  ;;  %v623_v42 = vand.u32 4294901760, %v516_v22  ;;  %v517_v21 = vld [vmem:[%s5334_s11 + $0x170] sm:$0xff]  ;;  %v520_v56 = vld [vmem:[%s5334_s11 + $0x188] sm:$0xff]  ;;  %v5537_v35 = vpack.c.bf16 %v619_v26, %v615_v57  ;;  %v5539_v19 = vsub.f32 %v514_v11, %v619_v26 }
  0x58   : > { %7876 = vst [vmem:[#allocation53_spill] sm:$0xff] %v5525_v6  ;;  %7877 = vst [vmem:[#allocation54_spill] sm:$0xff] %v5527_v8  ;;  %v627_v44 = vand.u32 4294901760, %v518_v32  ;;  %v625_v2 = vand.u32 4294901760, %v515_v0  ;;  %v519_v8 = vld [vmem:[%s5334_s11 + $0x180] sm:$0xff]  ;;  %v5546_v63 = vsub.f32 %v511_v37, %v617_v41  ;;  %v629_v26 = vand.u32 4294901760, %v517_v21 }
  0x59   : > { %7878 = vst [vmem:[#allocation55_spill] sm:$0xff] %v5529_v36  ;;  %7879 = vst [vmem:[#allocation56_spill] sm:$0xff] %v5533_v27  ;;  %v522_v36 = vld [vmem:[%s5334_s11 + $0x198] sm:$0xff]  ;;  %v5544_v40 = vpack.c.bf16 %v621_v1, %v617_v41  ;;  %v5548_v48 = vsub.f32 %v513_v24, %v621_v1  ;;  %v5550_v27 = vsub.f32 %v516_v22, %v623_v42  ;;  %4387 = vmatpush1.bf16.msra.mxu1 %v5469_v59 }
  0x5a   : > { %7880 = vst [vmem:[#allocation57_spill] sm:$0xff] %v5537_v35  ;;  %7881 = vst [vmem:[#allocation58_spill] sm:$0xff] %v5539_v19  ;;  %4579 = vmatpush1.bf16.msra.mxu0 %v5469_v59  ;;  %v5556_v11 = vpack.c.bf16 %v627_v44, %v623_v42  ;;  %v5558_v57 = vsub.f32 %v518_v32, %v627_v44  ;;  %v5560_v37 = vsub.f32 %v515_v0, %v625_v2  ;;  %v523_v59 = vld [vmem:[%s5334_s11 + $0x1a0] sm:$0xff]  ;;  %v525_v0 = vld [vmem:[%s5334_s11 + $0x1b0] sm:$0xff] }
  0x5b   : > { %7882 = vst [vmem:[#allocation59_spill] sm:$0xff] %v5544_v40  ;;  %7883 = vst [vmem:[#allocation60_spill] sm:$0xff] %v5546_v63  ;;  %4389 = vmatprep.subr.bf16.mxu1 %v5482_v29  ;;  %4581 = vmatprep.subr.bf16.mxu0 %v5482_v29  ;;  %v631_v22 = vand.u32 4294901760, %v520_v56  ;;  %v635_v24 = vand.u32 4294901760, %v522_v36  ;;  %v633_v41 = vand.u32 4294901760, %v519_v8  ;;  %v637_v1 = vand.u32 4294901760, %v521_v50 }
  0x5c   : > { %7884 = vst [vmem:[#allocation61_spill] sm:$0xff] %v5548_v48  ;;  %7885 = vst [vmem:[#allocation62_spill] sm:$0xff] %v5550_v27  ;;  %v5565_v42 = vpack.c.bf16 %v629_v26, %v625_v2  ;;  %v5567_v27 = vsub.f32 %v517_v21, %v629_v26  ;;  %v639_v32 = vand.u32 4294901760, %v524_v61  ;;  %v643_v44 = vand.u32 4294901760, %v526_v31  ;;  %v530_v19 = vld [vmem:[%s5334_s11 + $0x1d8] sm:$0xff]  ;;  %v529_v2 = vld [vmem:[%s5334_s11 + $0x1d0] sm:$0xff] }
  0x5d   : > { %7886 = vst [vmem:[#allocation63_spill] sm:$0xff] %v5556_v11  ;;  %7887 = vst [vmem:[#allocation64_spill] sm:$0xff] %v5558_v57  ;;  %v5571_v57 = vpack.c.bf16 %v635_v24, %v631_v22  ;;  %v5573_v29 = vsub.f32 %v520_v56, %v631_v22  ;;  %v5575_v48 = vsub.f32 %v522_v36, %v635_v24  ;;  %4391 = vmatpush1.bf16.msra.mxu1 %v5486_v9  ;;  %v532_v36 = vld [vmem:[%s5334_s11 + $0x1e8] sm:$0xff] }
  0x5e   : > { %7888 = vst [vmem:[#allocation65_spill] sm:$0xff] %v5560_v37  ;;  %7889 = vst [vmem:[#allocation66_spill] sm:$0xff] %v5565_v42  ;;  %v528_v37 = vld [vmem:[%s5334_s11 + $0x1c8] sm:$0xff]  ;;  %v5577_v63 = vpack.c.bf16 %v637_v1, %v633_v41  ;;  %4583 = vmatpush1.bf16.msra.mxu0 %v5486_v9  ;;  %v5584_v21 = vsub.f32 %v519_v8, %v633_v41  ;;  %v5586_v26 = vsub.f32 %v521_v50, %v637_v1  ;;  %v534_v8 = vld [vmem:[%s5334_s11 + $0x1f8] sm:$0xff] }
  0x5f   : > { %7890 = vst [vmem:[#allocation67_spill] sm:$0xff] %v5567_v27  ;;  %7891 = vst [vmem:[#allocation68_spill] sm:$0xff] %v5571_v57  ;;  %v5588_v27 = vpack.c.bf16 %v643_v44, %v639_v32  ;;  %v641_v56 = vand.u32 4294901760, %v523_v59  ;;  %4393 = vmatprep.subr.bf16.mxu1 %v5496_v53  ;;  %4585 = vmatprep.subr.bf16.mxu0 %v5496_v53  ;;  %v5593_v22 = vsub.f32 %v524_v61, %v639_v32  ;;  %v533_v61 = vld [vmem:[%s5334_s11 + $0x1f0] sm:$0xff] }
  0x60   : > { %7892 = vst [vmem:[#allocation69_spill] sm:$0xff] %v5573_v29  ;;  %7893 = vst [vmem:[#allocation70_spill] sm:$0xff] %v5575_v48  ;;  %v5595_v24 = vsub.f32 %v526_v31, %v643_v44  ;;  %v645_v48 = vand.u32 4294901760, %v525_v0  ;;  %v647_v9 = vand.u32 4294901760, %v528_v37  ;;  %v651_v50 = vand.u32 4294901760, %v530_v19  ;;  %v408_v31 = vld [vmem:[%s7497_s0 + $0x8] sm:$0xff] }
  0x61   : > { %7894 = vst [vmem:[#allocation71_spill] sm:$0xff] %v5577_v63  ;;  %7895 = vst [vmem:[#allocation72_spill] sm:$0xff] %v5584_v21  ;;  %v5598_v41 = vsub.f32 %v523_v59, %v641_v56  ;;  %v649_v1 = vand.u32 4294901760, %v527_v13  ;;  %v531_v21 = vld [vmem:[%s5334_s11 + $0x1e0] sm:$0xff]  ;;  %v655_v53 = vand.u32 4294901760, %v532_v36  ;;  %4395 = vmatpush1.bf16.msra.mxu1 %v5508_v47 }
  0x62   : > { %7896 = vst [vmem:[#allocation73_spill] sm:$0xff] %v5586_v26  ;;  %7897 = vst [vmem:[#allocation74_spill] sm:$0xff] %v5588_v27  ;;  %v653_v26 = vand.u32 4294901760, %v529_v2  ;;  %v5601_v29 = vpack.c.bf16 %v645_v48, %v641_v56  ;;  %v5603_v30 = vsub.f32 %v525_v0, %v645_v48  ;;  %v5605_v7 = vsub.f32 %v528_v37, %v647_v9  ;;  %v407_v37 = vld [vmem:[%s7497_s0] sm:$0xff] }
  0x63   : > { %7898 = vst [vmem:[#allocation75_spill] sm:$0xff] %v5598_v41  ;;  %4587 = vmatpush1.bf16.msra.mxu0 %v5508_v47  ;;  %v5613_v59 = vpack.c.bf16 %v651_v50, %v647_v9  ;;  %v5615_v32 = vsub.f32 %v530_v19, %v651_v50  ;;  %v659_v48 = vand.u32 4294901760, %v534_v8  ;;  %4397 = vmatprep.subr.bf16.mxu1 %v5515_v15  ;;  %v657_v9 = vand.u32 4294901760, %v531_v21 }
  0x64   : > { %7899 = vst [vmem:[#allocation76_spill] sm:$0xff] %v5601_v29  ;;  %7900 = vst [vmem:[#allocation77_spill] sm:$0xff] %v5603_v30  ;;  %v5617_v44 = vpack.c.bf16 %v653_v26, %v649_v1  ;;  %4589 = vmatprep.subr.bf16.mxu0 %v5515_v15  ;;  %v5624_v0 = vsub.f32 %v527_v13, %v649_v1  ;;  %v5626_v56 = vsub.f32 %v529_v2, %v653_v26  ;;  %v410_v2 = vld [vmem:[%s7497_s0 + $0x18] sm:$0xff] }
  0x65   : > { %7901 = vst [vmem:[#allocation78_spill] sm:$0xff] %v5605_v7  ;;  %7902 = vst [vmem:[#allocation79_spill] sm:$0xff] %v5613_v59  ;;  %v5628_v47 = vsub.f32 %v532_v36, %v655_v53  ;;  %v5630_v19 = vpack.c.bf16 %v659_v48, %v655_v53  ;;  %v5632_v50 = vsub.f32 %v534_v8, %v659_v48  ;;  %v5634_v7 = vand.u32 4294901760, %v408_v31 }
  0x66   : > { %7903 = vst [vmem:[#allocation80_spill] sm:$0xff] %v5615_v32  ;;  %7904 = vst [vmem:[#allocation81_spill] sm:$0xff] %v5617_v44  ;;  %v661_v32 = vand.u32 4294901760, %v533_v61  ;;  %v5636_v30 = vsub.f32 %v531_v21, %v657_v9  ;;  %v5638_v41 = vand.u32 4294901760, %v407_v37  ;;  %v1178_v15 = vand.u32 4294901760, %v5351_v16  ;;  %4399 = vmatpush1.bf16.msra.mxu1 %v5525_v6 }
  0x67   : > { %7905 = vst [vmem:[#allocation82_spill] sm:$0xff] %v5624_v0  ;;  %7906 = vst [vmem:[#allocation83_spill] sm:$0xff] %v5626_v56  ;;  %v1190_v13 = vand.u32 4294901760, %v5353_v17  ;;  %4591 = vmatpush1.bf16.msra.mxu0 %v5525_v6  ;;  %v5652_v21 = vsub.f32 %v408_v31, %v5634_v7  ;;  %v1184_v36 = vand.u32 4294901760, %v5355_v18  ;;  %4401 = vmatprep.subr.bf16.mxu1 %v5537_v35  ;;  %v5667_v6 = vand.u32 4294901760, %v410_v2 }
  0x68   : > { %7907 = vst [vmem:[#allocation84_spill] sm:$0xff] %v5628_v47  ;;  %7908 = vst [vmem:[#allocation85_spill] sm:$0xff] %v5630_v19  ;;  %v5647_v53 = vpack.c.bf16 %v661_v32, %v657_v9  ;;  %v5649_v26 = vsub.f32 %v533_v61, %v661_v32  ;;  %4593 = vmatprep.subr.bf16.mxu0 %v5537_v35  ;;  %v5658_v8 = vsub.f32 %v407_v37, %v5638_v41  ;;  %v409_v35 = vld [vmem:[%s7497_s0 + $0x10] sm:$0xff] }
  0x69   : > { %7909 = vst [vmem:[#allocation86_spill] sm:$0xff] %v5632_v50  ;;  %7910 = vst [vmem:[#allocation87_spill] sm:$0xff] %v5634_v7  ;;  %v1179_v1 = vsub.f32 %v5351_v16, %v1178_v15  ;;  %v1191_v48 = vsub.f32 %v5353_v17, %v1190_v13  ;;  %v1196_v9 = vand.u32 4294901760, %v5362_v23  ;;  %v665_v61 = vand.u32 4294901760, %v5652_v21  ;;  %v412_v16 = vld [vmem:[%s7497_s0 + $0x28] sm:$0xff] }
  0x6a   : > { %7911 = vst [vmem:[#allocation88_spill] sm:$0xff] %v5636_v30  ;;  %7912 = vst [vmem:[#allocation89_spill] sm:$0xff] %v5638_v41  ;;  %v5664_v32 = vpack.c.bf16 %v1190_v13, %v1178_v15  ;;  %v1185_v31 = vsub.f32 %v5355_v18, %v1184_v36  ;;  %v411_v15 = vld [vmem:[%s7497_s0 + $0x20] sm:$0xff]  ;;  %4403 = vmatpush1.bf16.msra.mxu1 %v5544_v40  ;;  %v5697_v30 = vand.u32 4294901760, %v409_v35 }
  0x6b   : > { %7913 = vst [vmem:[#allocation90_spill] sm:$0xff] %v5647_v53  ;;  %7914 = vst [vmem:[#allocation91_spill] sm:$0xff] %v5649_v26  ;;  %v1180_v41 = vand.u32 4294901760, %v1179_v1  ;;  %v1192_v7 = vand.u32 4294901760, %v1191_v48  ;;  %v1197_v17 = vsub.f32 %v5362_v23, %v1196_v9  ;;  %4595 = vmatpush1.bf16.msra.mxu0 %v5544_v40  ;;  %v666_v13 = vsub.f32 %v5652_v21, %v665_v61 }
  0x6c   : > { %7915 = vst [vmem:[#allocation92_spill] sm:$0xff] %v5652_v21  ;;  %7916 = vst [vmem:[#allocation93_spill] sm:$0xff] %v5658_v8  ;;  %v1186_v18 = vand.u32 4294901760, %v1185_v31  ;;  %v5683_v37 = vpack.c.bf16 %v1196_v9, %v1184_v36  ;;  %v5686_v1 = vsub.f32 %v410_v2, %v5667_v6  ;;  %4405 = vmatprep.subr.bf16.mxu1 %v5556_v11  ;;  %4597 = vmatprep.subr.bf16.mxu0 %v5556_v11 }
  0x6d   : > { %7917 = vst [vmem:[#allocation94_spill] sm:$0xff] %v5667_v6  ;;  %v7919_v48 = vand.u32 4294901760, %v5658_v8  ;;  %v5695_v26 = vpack.c.bf16 %v1192_v7, %v1180_v41  ;;  %v1198_v40 = vand.u32 4294901760, %v1197_v17  ;;  %7920 = vst [vmem:[#allocation96_spill] sm:$0xff] %v5697_v30  ;;  %v667_v31 = vand.u32 4294901760, %v666_v13  ;;  %2461 = vmatprep.mubr.f32.mxu0 %v665_v61 }
  0x6e   : > { %7918 = vst [vmem:[#allocation95_spill] sm:$0xff] %v5686_v1  ;;  %v7563_v36 = vand.u32 4294901760, %v5686_v1  ;;  %v5700_v2 = vand.u32 4294901760, %v412_v16  ;;  %v5702_v9 = vand.u32 4294901760, %v411_v15  ;;  %v1202_v7 = vand.u32 4294901760, %v5366_v25  ;;  %4407 = vmatpush1.bf16.msra.mxu1 %v5565_v42 }
  0x6f   : > { %v5693_v23 = vsub.f32 %v5658_v8, %v7919_v48  ;;  %v5705_v11 = vpack.c.bf16 %v1198_v40, %v1186_v18  ;;  %v5708_v48 = vsub.f32 %v409_v35, %v5697_v30  ;;  %4599 = vmatpush1.bf16.msra.mxu0 %v5565_v42  ;;  %v1214_v40 = vand.u32 4294901760, %v5372_v28  ;;  %4409 = vmatprep.subr.bf16.mxu1 %v5571_v57 }
  0x70   : > { %7921 = vst [vmem:[#allocation97_spill] sm:$0xff] %v5700_v2  ;;  %7922 = vst [vmem:[#allocation98_spill] sm:$0xff] %v5702_v9  ;;  %v5716_v17 = vsub.f32 %v5686_v1, %v7563_v36  ;;  %v5719_v41 = vsub.f32 %v412_v16, %v5700_v2  ;;  %v5722_v18 = vsub.f32 %v411_v15, %v5702_v9  ;;  %4601 = vmatprep.subr.bf16.mxu0 %v5571_v57  ;;  %v414_v57 = vld [vmem:[%s7497_s0 + $0x38] sm:$0xff] }
  0x71   : > { %7923 = vst [vmem:[#allocation99_spill] sm:$0xff] %v5708_v48  ;;  %v7574_v35 = vand.u32 4294901760, %v5708_v48  ;;  %v1203_v61 = vsub.f32 %v5366_v25, %v1202_v7  ;;  %v1208_v13 = vand.u32 4294901760, %v5381_v38  ;;  %v1220_v36 = vand.u32 4294901760, %v5383_v39  ;;  %668 = vmatprep.mubr.f32.mxu1 %v667_v31 }
  0x72   : > { %7924 = vst [vmem:[#allocation100_spill] sm:$0xff] %v5719_v41  ;;  %7925 = vst [vmem:[#allocation101_spill] sm:$0xff] %v5722_v18  ;;  %v7575_v15 = vand.u32 4294901760, %v5719_v41  ;;  %v7576_v21 = vand.u32 4294901760, %v5722_v18  ;;  %v1215_v42 = vsub.f32 %v5372_v28, %v1214_v40  ;;  %v5743_v30 = vpack.c.bf16 %v1214_v40, %v1202_v7  ;;  %4411 = vmatpush1.bf16.msra.mxu1 %v5577_v63  ;;  %v413_v40 = vld [vmem:[%s7497_s0 + $0x30] sm:$0xff] }
  0x73   : > { %v5741_v9 = vsub.f32 %v5708_v48, %v7574_v35  ;;  %v1204_v2 = vand.u32 4294901760, %v1203_v61  ;;  %v1209_v31 = vsub.f32 %v5381_v38, %v1208_v13  ;;  %4603 = vmatpush1.bf16.msra.mxu0 %v5577_v63  ;;  %v1221_v7 = vsub.f32 %v5383_v39, %v1220_v36  ;;  %v416_v61 = vld [vmem:[%s7497_s0 + $0x48] sm:$0xff]  ;;  %4413 = vmatprep.subr.bf16.mxu1 %v5588_v27 }
  0x74   : > { %v5751_v16 = vsub.f32 %v5719_v41, %v7575_v15  ;;  %v5756_v6 = vsub.f32 %v5722_v18, %v7576_v21  ;;  %v1216_v35 = vand.u32 4294901760, %v1215_v42  ;;  %v415_v15 = vld [vmem:[%s7497_s0 + $0x40] sm:$0xff]  ;;  %4605 = vmatprep.subr.bf16.mxu0 %v5588_v27  ;;  %v5771_v63 = vpack.c.bf16 %v1220_v36, %v1208_v13 }
  0x75   : > { %v1210_v21 = vand.u32 4294901760, %v1209_v31  ;;  %v5773_v39 = vand.u32 4294901760, %v414_v57  ;;  %v1222_v50 = vand.u32 4294901760, %v1221_v7  ;;  %v5782_v56 = vand.u32 4294901760, %v413_v40 }
  0x76   : > { %v5777_v25 = vpack.c.bf16 %v1216_v35, %v1204_v2  ;;  %v5784_v27 = vand.u32 4294901760, %v416_v61  ;;  %v5786_v42 = vand.u32 4294901760, %v415_v15  ;;  %4415 = vmatpush1.bf16.msra.mxu1 %v5601_v29  ;;  %v1226_v13 = vand.u32 4294901760, %v5390_v45 }
  0x77   : > { %7926 = vst [vmem:[#allocation102_spill] sm:$0xff] %v5773_v39  ;;  %v5780_v47 = vsub.f32 %v414_v57, %v5773_v39  ;;  %7928 = vst [vmem:[#allocation104_spill] sm:$0xff] %v5782_v56  ;;  %4607 = vmatpush1.bf16.msra.mxu0 %v5601_v29  ;;  %v5790_v36 = vpack.c.bf16 %v1222_v50, %v1210_v21  ;;  %v1238_v2 = vand.u32 4294901760, %v5392_v46  ;;  %v1232_v35 = vand.u32 4294901760, %v5399_v51 }
  0x78   : > { %7929 = vst [vmem:[#allocation105_spill] sm:$0xff] %v5784_v27  ;;  %7930 = vst [vmem:[#allocation106_spill] sm:$0xff] %v5786_v42  ;;  %4417 = vmatprep.subr.bf16.mxu1 %v5613_v59  ;;  %4609 = vmatprep.subr.bf16.mxu0 %v5613_v59  ;;  %v5799_v31 = vsub.f32 %v413_v40, %v5782_v56  ;;  %v5802_v7 = vsub.f32 %v416_v61, %v5784_v27  ;;  %v417_v40 = vld [vmem:[%s7497_s0 + $0x50] sm:$0xff] }
  0x79   : > { %7927 = vst [vmem:[#allocation103_spill] sm:$0xff] %v5780_v47  ;;  %v7592_v57 = vand.u32 4294901760, %v5780_v47  ;;  %v5805_v50 = vsub.f32 %v415_v15, %v5786_v42  ;;  %v1227_v21 = vsub.f32 %v5390_v45, %v1226_v13  ;;  %v1239_v28 = vsub.f32 %v5392_v46, %v1238_v2  ;;  %v418_v42 = vld [vmem:[%s7497_s0 + $0x58] sm:$0xff]  ;;  %v419_v15 = vld [vmem:[%s7497_s0 + $0x60] sm:$0xff] }
  0x7a   : > { %7931 = vst [vmem:[#allocation107_spill] sm:$0xff] %v5799_v31  ;;  %7932 = vst [vmem:[#allocation108_spill] sm:$0xff] %v5802_v7  ;;  %v5809_v38 = vpack.c.bf16 %v1238_v2, %v1226_v13  ;;  %v1233_v29 = vsub.f32 %v5399_v51, %v1232_v35  ;;  %4419 = vmatpush1.bf16.msra.mxu1 %v5617_v44  ;;  %v7934_v61 = vand.u32 4294901760, %v5799_v31  ;;  %v5863_v0 = vand.u32 4294901760, %v417_v40 }
  0x7b   : > { %7933 = vst [vmem:[#allocation109_spill] sm:$0xff] %v5805_v50  ;;  %v5815_v59 = vsub.f32 %v5780_v47, %v7592_v57  ;;  %4611 = vmatpush1.bf16.msra.mxu0 %v5617_v44  ;;  %v1228_v13 = vand.u32 4294901760, %v1227_v21  ;;  %v1240_v2 = vand.u32 4294901760, %v1239_v28  ;;  %v1244_v57 = vand.u32 4294901760, %v5401_v52  ;;  %4421 = vmatprep.subr.bf16.mxu1 %v5630_v19 }
  0x7c   : > { %v1234_v27 = vand.u32 4294901760, %v1233_v29  ;;  %4613 = vmatprep.subr.bf16.mxu0 %v5630_v19  ;;  %v5835_v56 = vsub.f32 %v5799_v31, %v7934_v61  ;;  %v7935_v28 = vand.u32 4294901760, %v5802_v7  ;;  %v7936_v21 = vand.u32 4294901760, %v5805_v50  ;;  %v420_v19 = vld [vmem:[%s7497_s0 + $0x68] sm:$0xff]  ;;  %7938 = vst [vmem:[#allocation111_spill] sm:$0xff] %v5863_v0 }
  0x7d   : > { %v5853_v61 = vpack.c.bf16 %v1240_v2, %v1228_v13  ;;  %v1245_v39 = vsub.f32 %v5401_v52, %v1244_v57  ;;  %v5856_v51 = vpack.c.bf16 %v1244_v57, %v1232_v35  ;;  %v5870_v35 = vand.u32 4294901760, %v420_v19 }
  0x7e   : > { %v5840_v29 = vsub.f32 %v5802_v7, %v7935_v28  ;;  %v5845_v44 = vsub.f32 %v5805_v50, %v7936_v21  ;;  %v5858_v28 = vand.u32 4294901760, %v418_v42  ;;  %4423 = vmatpush1.bf16.msra.mxu1 %v5647_v53  ;;  %v5872_v57 = vand.u32 4294901760, %v419_v15 }
  0x7f   : > { %4615 = vmatpush1.bf16.msra.mxu0 %v5647_v53  ;;  %v1246_v13 = vand.u32 4294901760, %v1245_v39  ;;  %7940 = vst [vmem:[#allocation113_spill] sm:$0xff] %v5870_v35  ;;  %4425 = vmatprep.subr.bf16.mxu1 %v5695_v26  ;;  %v5877_v45 = vsub.f32 %v417_v40, %v5863_v0  ;;  %v1250_v21 = vand.u32 4294901760, %v5405_v54  ;;  %v1262_v46 = vand.u32 4294901760, %v5409_v55 }
  0x80   : > { %7937 = vst [vmem:[#allocation110_spill] sm:$0xff] %v5858_v28  ;;  %v5868_v2 = vsub.f32 %v418_v42, %v5858_v28  ;;  %7941 = vst [vmem:[#allocation114_spill] sm:$0xff] %v5872_v57  ;;  %4617 = vmatprep.subr.bf16.mxu0 %v5664_v32  ;;  %v1256_v39 = vand.u32 4294901760, %v5418_v3  ;;  %v5886_v28 = vsub.f32 %v420_v19, %v5870_v35  ;;  %v7945_v32 = vand.u32 4294901760, %v5693_v23 }
  0x81   : > { %7942 = vst [vmem:[#allocation115_spill] sm:$0xff] %v5877_v45  ;;  %v5882_v53 = vpack.c.bf16 %v1246_v13, %v1234_v27  ;;  %v5889_v26 = vsub.f32 %v419_v15, %v5872_v57  ;;  %v7946_v40 = vand.u32 4294901760, %v5658_v8  ;;  %v7610_v0 = vand.u32 4294901760, %v5877_v45  ;;  %v422_v15 = vld [vmem:[%s7497_s0 + $0x78] sm:$0xff] }
  0x82   : > { %7939 = vst [vmem:[#allocation112_spill] sm:$0xff] %v5868_v2  ;;  %v7609_v42 = vand.u32 4294901760, %v5868_v2  ;;  %7943 = vst [vmem:[#allocation116_spill] sm:$0xff] %v5886_v28  ;;  %674 = vmatmul.mubr.f32.vlgmr.msra.gmra.mrb[0].mxu1 %v7945_v32  ;;  %v1251_v52 = vsub.f32 %v5405_v54, %v1250_v21  ;;  %v1263_v27 = vsub.f32 %v5409_v55, %v1262_v46  ;;  %v7612_v19 = vand.u32 4294901760, %v5886_v28 }
  0x83   : > { %7944 = vst [vmem:[#allocation117_spill] sm:$0xff] %v5889_v26  ;;  %2465 = vmatmul.mubr.f32.vlgmr.msra.gmra.mrb[0].mxu0 %v7946_v40  ;;  %v5898_v13 = vpack.c.bf16 %v1262_v46, %v1250_v21  ;;  %4427 = vmatpush1.bf16.msra.mxu1 %v5705_v11  ;;  %v1257_v32 = vsub.f32 %v5418_v3, %v1256_v39  ;;  %v7947_v40 = vand.u32 4294901760, %v5716_v17  ;;  %v7948_v46 = vand.u32 4294901760, %v5686_v1  ;;  %v421_v17 = vld [vmem:[%s7497_s0 + $0x70] sm:$0xff]  ;;  %v424_v1 = vld [vmem:[%s7497_s0 + $0x88] sm:$0xff] }
  0x84   : > { %4619 = vmatpush1.bf16.msra.mxu0 %v5683_v37  ;;  %v5905_v23 = vsub.f32 %v5868_v2, %v7609_v42  ;;  %v5917_v11 = vsub.f32 %v5877_v45, %v7610_v0  ;;  %v1252_v37 = vand.u32 4294901760, %v1251_v52  ;;  %v1264_v21 = vand.u32 4294901760, %v1263_v27  ;;  %4429 = vmatprep.subr.bf16.mxu1 %v5777_v25  ;;  %v423_v25 = vld [vmem:[%s7497_s0 + $0x80] sm:$0xff] }
  0x85   : > { %684 = vmatprep.mubr.f32.mxu1 %v7947_v40  ;;  %2473 = vmatprep.mubr.f32.mxu0 %v7948_v46  ;;  %v1268_v42 = vand.u32 4294901760, %v5420_v4  ;;  %v5932_v52 = vsub.f32 %v5886_v28, %v7612_v19  ;;  %v7949_v27 = vand.u32 4294901760, %v5889_v26  ;;  %v1258_v0 = vand.u32 4294901760, %v1257_v32 }
  0x86   : > { %4621 = vmatprep.subr.bf16.mxu0 %v5743_v30  ;;  %v7950_v30 = vand.u32 4294901760, %v5741_v9  ;;  %v7951_v19 = vand.u32 4294901760, %v5708_v48  ;;  %v4436_v8 = vpack.c.bf16 %v1264_v21, %v1252_v37  ;;  %v7952_v57 = vand.u32 4294901760, %v5751_v16 }
  0x87   : > { %v5937_v46 = vsub.f32 %v5889_v26, %v7949_v27  ;;  %v1269_v27 = vsub.f32 %v5420_v4, %v1268_v42  ;;  %v4630_v32 = vpack.c.bf16 %v1268_v42, %v1256_v39  ;;  %v7953_v35 = vand.u32 4294901760, %v5719_v41  ;;  %4431 = vmatpush1.bf16.msra.mxu1 %v5790_v36 }
  0x88   : > { %690 = vmatmul.mubr.f32.gmra.mrb[2].mxu1 %v7950_v30  ;;  %2477 = vmatmul.mubr.f32.gmra.mrb[2].mxu0 %v7951_v19  ;;  %v5957_v30 = vand.u32 4294901760, %v422_v15  ;;  %v5959_v48 = vand.u32 4294901760, %v421_v17  ;;  %v5963_v39 = vand.u32 4294901760, %v424_v1  ;;  %v5965_v16 = vand.u32 4294901760, %v423_v25 }
  0x89   : > { %700 = vmatprep.mubr.f32.mxu1 %v7952_v57  ;;  %2485 = vmatprep.mubr.f32.mxu0 %v7953_v35  ;;  %v1270_v19 = vand.u32 4294901760, %v1269_v27  ;;  %v1274_v57 = vand.u32 4294901760, %v5422_v5  ;;  %v1286_v36 = vand.u32 4294901760, %v5429_v10  ;;  %v7960_v37 = vand.u32 4294901760, %v5756_v6 }
  0x8a   : > { %7954 = vst [vmem:[#allocation118_spill] sm:$0xff] %v5957_v30  ;;  %7955 = vst [vmem:[#allocation119_spill] sm:$0xff] %v5959_v48  ;;  %4623 = vmatpush1.bf16.msra.mxu0 %v5771_v63  ;;  %4433 = vmatprep.subr.bf16.mxu1 %v5853_v61  ;;  %v5971_v35 = vsub.f32 %v422_v15, %v5957_v30  ;;  %v5974_v42 = vsub.f32 %v421_v17, %v5959_v48  ;;  %v1280_v63 = vand.u32 4294901760, %v5433_v12 }
  0x8b   : > { %7956 = vst [vmem:[#allocation120_spill] sm:$0xff] %v5963_v39  ;;  %7957 = vst [vmem:[#allocation121_spill] sm:$0xff] %v5965_v16  ;;  %4625 = vmatprep.subr.bf16.mxu0 %v5809_v38  ;;  %v7961_v21 = vand.u32 4294901760, %v5722_v18  ;;  %v4438_v27 = vpack.c.bf16 %v1270_v19, %v1258_v0  ;;  %v5983_v61 = vsub.f32 %v424_v1, %v5963_v39  ;;  %v1292_v15 = vand.u32 4294901760, %v5438_v14 }
  0x8c   : > { %7958 = vst [vmem:[#allocation122_spill] sm:$0xff] %v5971_v35  ;;  %7959 = vst [vmem:[#allocation123_spill] sm:$0xff] %v5974_v42  ;;  %706 = vmatmul.mubr.f32.gmra.mrb[4].mxu1 %v7960_v37  ;;  %v5986_v38 = vsub.f32 %v423_v25, %v5965_v16  ;;  %v7964_v17 = vand.u32 4294901760, %v5815_v59  ;;  %v7965_v9 = vand.u32 4294901760, %v5780_v47  ;;  %v7623_v6 = vand.u32 4294901760, %v5971_v35 }
  0x8d   : > { %2489 = vmatmul.mubr.f32.gmra.mrb[4].mxu0 %v7961_v21  ;;  %7962 = vst [vmem:[#allocation124_spill] sm:$0xff] %v5983_v61  ;;  %v7620_v37 = vand.u32 4294901760, %v5974_v42  ;;  %v1275_v0 = vsub.f32 %v5422_v5, %v1274_v57  ;;  %v1287_v1 = vsub.f32 %v5429_v10, %v1286_v36  ;;  %4435 = vmatpush1.bf16.msra.mxu1 %v5882_v53  ;;  %v7621_v25 = vand.u32 4294901760, %v5983_v61 }
  0x8e   : > { %7963 = vst [vmem:[#allocation125_spill] sm:$0xff] %v5986_v38  ;;  %716 = vmatprep.mubr.f32.mxu1 %v7964_v17  ;;  %2497 = vmatprep.mubr.f32.mxu0 %v7965_v9  ;;  %v7622_v59 = vand.u32 4294901760, %v5986_v38  ;;  %v4632_v19 = vpack.c.bf16 %v1286_v36, %v1274_v57  ;;  %v1281_v21 = vsub.f32 %v5433_v12, %v1280_v63  ;;  %v426_v57 = vld [vmem:[%s7497_s0 + $0x98] sm:$0xff]  ;;  %v7982_v47 = vand.u32 4294901760, %v5917_v11 }
  0x8f   : > { %4627 = vmatpush1.bf16.msra.mxu0 %v5856_v51  ;;  %4437 = vmatprep.subr.bf16.mxu1 %v4436_v8  ;;  %v6006_v9 = vsub.f32 %v5971_v35, %v7623_v6  ;;  %v6011_v53 = vsub.f32 %v5974_v42, %v7620_v37  ;;  %v1276_v51 = vand.u32 4294901760, %v1275_v0  ;;  %v1288_v17 = vand.u32 4294901760, %v1287_v1  ;;  %v430_v6 = vld [vmem:[%s7497_s0 + $0xb8] sm:$0xff] }
  0x90   : > { %4629 = vmatprep.subr.bf16.mxu0 %v5898_v13  ;;  %v7966_v8 = vand.u32 4294901760, %v5835_v56  ;;  %v7967_v13 = vand.u32 4294901760, %v5799_v31  ;;  %v6023_v36 = vsub.f32 %v5983_v61, %v7621_v25  ;;  %v6028_v0 = vsub.f32 %v5986_v38, %v7622_v59  ;;  %v425_v56 = vld [vmem:[%s7497_s0 + $0x90] sm:$0xff] }
  0x91   : > { %v1282_v1 = vand.u32 4294901760, %v1281_v21  ;;  %v1293_v37 = vsub.f32 %v5438_v14, %v1292_v15  ;;  %v7968_v25 = vand.u32 4294901760, %v5840_v29  ;;  %v7969_v59 = vand.u32 4294901760, %v5802_v7  ;;  %4439 = vmatpush1.bf16.msra.mxu1 %v4438_v27 }
  0x92   : > { %722 = vmatmul.mubr.f32.gmra.mrb[6].mxu1 %v7966_v8  ;;  %2501 = vmatmul.mubr.f32.gmra.mrb[6].mxu0 %v7967_v13  ;;  %v428_v8 = vld [vmem:[%s7497_s0 + $0xa8] sm:$0xff]  ;;  %v427_v13 = vld [vmem:[%s7497_s0 + $0xa0] sm:$0xff]  ;;  %v4440_v3 = vpack.c.bf16 %v1288_v17, %v1276_v51  ;;  %v4634_v40 = vpack.c.bf16 %v1292_v15, %v1280_v63  ;;  %v6048_v41 = vand.u32 4294901760, %v426_v57  ;;  %v6050_v29 = vand.u32 4294901760, %v425_v56 }
  0x93   : > { %732 = vmatprep.mubr.f32.mxu1 %v7968_v25  ;;  %2509 = vmatprep.mubr.f32.mxu0 %v7969_v59  ;;  %v1294_v18 = vand.u32 4294901760, %v1293_v37  ;;  %v6052_v25 = vand.u32 4294901760, %v428_v8  ;;  %v6054_v59 = vand.u32 4294901760, %v427_v13  ;;  %v1298_v51 = vand.u32 4294901760, %v5440_v20 }
  0x94   : > { %4631 = vmatpush1.bf16.msra.mxu0 %v4630_v32  ;;  %7970 = vst [vmem:[#allocation126_spill] sm:$0xff] %v6048_v41  ;;  %4441 = vmatprep.subr.bf16.mxu1 %v4440_v3  ;;  %7971 = vst [vmem:[#allocation127_spill] sm:$0xff] %v6050_v29  ;;  %v7974_v63 = vand.u32 4294901760, %v5845_v44  ;;  %v7975_v32 = vand.u32 4294901760, %v5805_v50  ;;  %v6062_v15 = vsub.f32 %v426_v57, %v6048_v41  ;;  %v1310_v3 = vand.u32 4294901760, %v5447_v33 }
  0x95   : > { %4633 = vmatprep.subr.bf16.mxu0 %v4632_v19  ;;  %7972 = vst [vmem:[#allocation128_spill] sm:$0xff] %v6052_v25  ;;  %7973 = vst [vmem:[#allocation129_spill] sm:$0xff] %v6054_v59  ;;  %v4442_v27 = vpack.c.bf16 %v1294_v18, %v1282_v1  ;;  %v1304_v37 = vand.u32 4294901760, %v5449_v34  ;;  %v7977_v19 = vand.u32 4294901760, %v5905_v23  ;;  %v7978_v17 = vand.u32 4294901760, %v5868_v2 }
  0x96   : > { %738 = vmatmul.mubr.f32.gmra.mrb[8].mxu1 %v7974_v63  ;;  %2513 = vmatmul.mubr.f32.gmra.mrb[8].mxu0 %v7975_v32  ;;  %7976 = vst [vmem:[#allocation130_spill] sm:$0xff] %v6062_v15  ;;  %v6071_v44 = vsub.f32 %v425_v56, %v6050_v29  ;;  %v6074_v63 = vsub.f32 %v428_v8, %v6052_v25  ;;  %v1316_v57 = vand.u32 4294901760, %v5456_v43  ;;  %v7630_v1 = vand.u32 4294901760, %v6062_v15 }
  0x97   : > { %748 = vmatprep.mubr.f32.mxu1 %v7977_v19  ;;  %2521 = vmatprep.mubr.f32.mxu0 %v7978_v17  ;;  %v6077_v18 = vsub.f32 %v427_v13, %v6054_v59  ;;  %v1299_v23 = vsub.f32 %v5440_v20, %v1298_v51  ;;  %v1311_v32 = vsub.f32 %v5447_v33, %v1310_v3  ;;  %v7984_v21 = vand.u32 4294901760, %v5932_v52 }
  0x98   : > { %7979 = vst [vmem:[#allocation131_spill] sm:$0xff] %v6071_v44  ;;  %7980 = vst [vmem:[#allocation132_spill] sm:$0xff] %v6074_v63  ;;  %4443 = vmatpush1.bf16.msra.mxu1 %v4442_v27  ;;  %4635 = vmatpush1.bf16.msra.mxu0 %v4634_v40  ;;  %v4636_v19 = vpack.c.bf16 %v1310_v3, %v1298_v51  ;;  %v7629_v56 = vand.u32 4294901760, %v6071_v44  ;;  %v7628_v17 = vand.u32 4294901760, %v6074_v63  ;;  %v7983_v40 = vand.u32 4294901760, %v5877_v45 }
  0x99   : > { %7981 = vst [vmem:[#allocation133_spill] sm:$0xff] %v6077_v18  ;;  %v7631_v8 = vand.u32 4294901760, %v6077_v18  ;;  %v1305_v13 = vsub.f32 %v5449_v34, %v1304_v37  ;;  %v6094_v27 = vsub.f32 %v6062_v15, %v7630_v1  ;;  %v1300_v51 = vand.u32 4294901760, %v1299_v23 }
  0x9a   : > { %754 = vmatmul.mubr.f32.gmra.mrb[10].mxu1 %v7982_v47  ;;  %2525 = vmatmul.mubr.f32.gmra.mrb[10].mxu0 %v7983_v40  ;;  %v1312_v3 = vand.u32 4294901760, %v1311_v32  ;;  %v1317_v31 = vsub.f32 %v5456_v43, %v1316_v57  ;;  %v7985_v47 = vand.u32 4294901760, %v5886_v28  ;;  %v6107_v11 = vsub.f32 %v6071_v44, %v7629_v56  ;;  %v432_v40 = vld [vmem:[%s7497_s0 + $0xc8] sm:$0xff] }
  0x9b   : > { %764 = vmatprep.mubr.f32.mxu1 %v7984_v21  ;;  %v6112_v23 = vsub.f32 %v6074_v63, %v7628_v17  ;;  %v6117_v32 = vsub.f32 %v6077_v18, %v7631_v8  ;;  %v1306_v52 = vand.u32 4294901760, %v1305_v13  ;;  %v429_v21 = vld [vmem:[%s7497_s0 + $0xb0] sm:$0xff]  ;;  %v811_v17 = vand.u32 4294901760, %v6094_v27  ;;  %4637 = vmatprep.subr.bf16.mxu0 %v4636_v19 }
  0x9c   : > { %2533 = vmatprep.mubr.f32.mxu0 %v7985_v47  ;;  %v431_v47 = vld [vmem:[%s7497_s0 + $0xc0] sm:$0xff]  ;;  %v4444_v56 = vpack.c.bf16 %v1312_v3, %v1300_v51  ;;  %v1318_v1 = vand.u32 4294901760, %v1317_v31  ;;  %v4638_v8 = vpack.c.bf16 %v1316_v57, %v1304_v37  ;;  %v6132_v2 = vand.u32 4294901760, %v430_v6 }
  0x9d   : > { %v7987_v50 = vand.u32 4294901760, %v5937_v46  ;;  %v7988_v7 = vand.u32 4294901760, %v5889_v26  ;;  %v6138_v27 = vand.u32 4294901760, %v429_v21  ;;  %v6140_v19 = vand.u32 4294901760, %v432_v40 }
  0x9e   : > { %7986 = vst [vmem:[#allocation134_spill] sm:$0xff] %v6132_v2  ;;  %v4446_v59 = vpack.c.bf16 %v1318_v1, %v1306_v52  ;;  %v6142_v31 = vand.u32 4294901760, %v431_v47  ;;  %v7992_v37 = vand.u32 4294901760, %v6006_v9  ;;  %v7993_v57 = vand.u32 4294901760, %v5971_v35  ;;  %4445 = vmatprep.subr.bf16.mxu1 %v4444_v56  ;;  %4639 = vmatpush1.bf16.msra.mxu0 %v4638_v8 }
  0x9f   : > { %770 = vmatmul.mubr.f32.gmra.mrb[12].mxu1 %v7987_v50  ;;  %2537 = vmatmul.mubr.f32.gmra.mrb[12].mxu0 %v7988_v7  ;;  %7989 = vst [vmem:[#allocation135_spill] sm:$0xff] %v6138_v27  ;;  %7990 = vst [vmem:[#allocation136_spill] sm:$0xff] %v6140_v19  ;;  %v6149_v51 = vsub.f32 %v430_v6, %v6132_v2  ;;  %v1322_v50 = vand.u32 4294901760, %v5460_v49  ;;  %v1334_v7 = vand.u32 4294901760, %v5467_v58  ;;  %v1328_v46 = vand.u32 4294901760, %v5471_v60 }
  0xa0   : > { %7991 = vst [vmem:[#allocation137_spill] sm:$0xff] %v6142_v31  ;;  %780 = vmatprep.mubr.f32.mxu1 %v7992_v37  ;;  %2545 = vmatprep.mubr.f32.mxu0 %v7993_v57  ;;  %v6155_v1 = vsub.f32 %v429_v21, %v6138_v27  ;;  %v6158_v9 = vsub.f32 %v432_v40, %v6140_v19  ;;  %v1340_v6 = vand.u32 4294901760, %v5475_v62  ;;  %v7998_v8 = vand.u32 4294901760, %v6011_v53 }
  0xa1   : > { %7994 = vst [vmem:[#allocation138_spill] sm:$0xff] %v6149_v51  ;;  %v6161_v3 = vsub.f32 %v431_v47, %v6142_v31  ;;  %4447 = vmatpush1.bf16.msra.mxu1 %v4446_v59  ;;  %v7641_v52 = vand.u32 4294901760, %v6149_v51  ;;  %v1323_v37 = vsub.f32 %v5460_v49, %v1322_v50  ;;  %v1335_v57 = vsub.f32 %v5467_v58, %v1334_v7 }
  0xa2   : > { %7995 = vst [vmem:[#allocation139_spill] sm:$0xff] %v6155_v1  ;;  %7996 = vst [vmem:[#allocation140_spill] sm:$0xff] %v6158_v9  ;;  %v4640_v56 = vpack.c.bf16 %v1334_v7, %v1322_v50  ;;  %v7999_v21 = vand.u32 4294901760, %v5974_v42  ;;  %v7639_v40 = vand.u32 4294901760, %v6155_v1  ;;  %v7640_v47 = vand.u32 4294901760, %v6158_v9 }
  0xa3   : > { %7997 = vst [vmem:[#allocation141_spill] sm:$0xff] %v6161_v3  ;;  %786 = vmatmul.mubr.f32.gmra.mrb[14].mxu1 %v7998_v8  ;;  %v7644_v45 = vand.u32 4294901760, %v6161_v3  ;;  %v1329_v59 = vsub.f32 %v5471_v60, %v1328_v46  ;;  %v8000_v28 = vand.u32 4294901760, %v6023_v36  ;;  %v8001_v13 = vand.u32 4294901760, %v5983_v61 }
  0xa4   : > { %2549 = vmatmul.mubr.f32.gmra.mrb[14].mxu0 %v7999_v21  ;;  %v6182_v53 = vsub.f32 %v6149_v51, %v7641_v52  ;;  %v1324_v50 = vand.u32 4294901760, %v1323_v37  ;;  %v1336_v7 = vand.u32 4294901760, %v1335_v57  ;;  %v1341_v8 = vsub.f32 %v5475_v62, %v1340_v6  ;;  %v434_v21 = vld [vmem:[%s7497_s0 + $0xd8] sm:$0xff]  ;;  %4641 = vmatprep.subr.bf16.mxu0 %v4640_v56  ;;  %v433_v57 = vld [vmem:[%s7497_s0 + $0xd0] sm:$0xff] }
  0xa5   : > { %796 = vmatprep.mubr.f32.mxu1 %v8000_v28  ;;  %2557 = vmatprep.mubr.f32.mxu0 %v8001_v13  ;;  %v6191_v28 = vsub.f32 %v6155_v1, %v7639_v40  ;;  %v6196_v36 = vsub.f32 %v6158_v9, %v7640_v47  ;;  %v6201_v13 = vsub.f32 %v6161_v3, %v7644_v45  ;;  %v1330_v37 = vand.u32 4294901760, %v1329_v59  ;;  %v436_v40 = vld [vmem:[%s7497_s0 + $0xe8] sm:$0xff]  ;;  %v435_v47 = vld [vmem:[%s7497_s0 + $0xe0] sm:$0xff] }
  0xa6   : > { %v843_v52 = vand.u32 4294901760, %v6182_v53  ;;  %v4448_v61 = vpack.c.bf16 %v1336_v7, %v1324_v50  ;;  %v1342_v42 = vand.u32 4294901760, %v1341_v8  ;;  %v4642_v45 = vpack.c.bf16 %v1340_v6, %v1328_v46  ;;  %v8010_v8 = vld [vmem:[#allocation38_spill] sm:$0xff] }
  0xa7   : > { %v8002_v56 = vand.u32 4294901760, %v6028_v0  ;;  %v8003_v59 = vand.u32 4294901760, %v5986_v38  ;;  %v6220_v19 = vand.u32 4294901760, %v434_v21  ;;  %v8005_v53 = vand.u32 4294901760, %v6062_v15 }
  0xa8   : > { %v4450_v50 = vpack.c.bf16 %v1342_v42, %v1330_v37  ;;  %v6224_v46 = vand.u32 4294901760, %v433_v57  ;;  %v6226_v0 = vand.u32 4294901760, %v436_v40  ;;  %v6228_v6 = vand.u32 4294901760, %v435_v47  ;;  %4449 = vmatprep.subr.bf16.mxu1 %v4448_v61  ;;  %4643 = vmatpush1.bf16.msra.mxu0 %v4642_v45  ;;  %v8016_v45 = vld [vmem:[#allocation43_spill] sm:$0xff] }
  0xa9   : > { %802 = vmatmul.mubr.f32.gmra.mrb[16].mxu1 %v8002_v56  ;;  %2561 = vmatmul.mubr.f32.gmra.mrb[16].mxu0 %v8003_v59  ;;  %8004 = vst [vmem:[#allocation142_spill] sm:$0xff] %v6220_v19  ;;  %v6231_v7 = vsub.f32 %v434_v21, %v6220_v19  ;;  %v1346_v56 = vand.u32 4294901760, %v8010_v8  ;;  %v8011_v59 = vld [vmem:[#allocation40_spill] sm:$0xff]  ;;  %v1364_v61 = vand.u32 4294901760, %v8016_v45  ;;  %v8017_v21 = vand.u32 4294901760, %v6107_v11 }
  0xaa   : > { %812 = vmatprep.mubr.f32.mxu1 %v811_v17  ;;  %2569 = vmatprep.mubr.f32.mxu0 %v8005_v53  ;;  %8006 = vst [vmem:[#allocation143_spill] sm:$0xff] %v6224_v46  ;;  %8007 = vst [vmem:[#allocation144_spill] sm:$0xff] %v6226_v0  ;;  %v1358_v31 = vand.u32 4294901760, %v8011_v59  ;;  %v8012_v17 = vld [vmem:[#allocation42_spill] sm:$0xff]  ;;  %v6237_v42 = vsub.f32 %v433_v57, %v6224_v46  ;;  %v6240_v37 = vsub.f32 %v436_v40, %v6226_v0 }
  0xab   : > { %8008 = vst [vmem:[#allocation145_spill] sm:$0xff] %v6228_v6  ;;  %8009 = vst [vmem:[#allocation146_spill] sm:$0xff] %v6231_v7  ;;  %v1352_v26 = vand.u32 4294901760, %v8012_v17  ;;  %4451 = vmatpush1.bf16.msra.mxu1 %v4450_v50  ;;  %v6243_v53 = vsub.f32 %v435_v47, %v6228_v6  ;;  %v8018_v35 = vand.u32 4294901760, %v6071_v44  ;;  %v7656_v15 = vand.u32 4294901760, %v6231_v7 }
  0xac   : > { %8013 = vst [vmem:[#allocation147_spill] sm:$0xff] %v6237_v42  ;;  %8014 = vst [vmem:[#allocation148_spill] sm:$0xff] %v6240_v37  ;;  %v1347_v50 = vsub.f32 %v8010_v8, %v1346_v56  ;;  %v1359_v57 = vsub.f32 %v8011_v59, %v1358_v31  ;;  %v4644_v38 = vpack.c.bf16 %v1358_v31, %v1346_v56  ;;  %v8019_v40 = vand.u32 4294901760, %v6112_v23 }
  0xad   : > { %8015 = vst [vmem:[#allocation149_spill] sm:$0xff] %v6243_v53  ;;  %818 = vmatmul.mubr.f32.gmra.mrb[18].mxu1 %v8017_v21  ;;  %2573 = vmatmul.mubr.f32.gmra.mrb[18].mxu0 %v8018_v35  ;;  %v8020_v47 = vand.u32 4294901760, %v6074_v63  ;;  %v7657_v6 = vand.u32 4294901760, %v6237_v42  ;;  %v7659_v11 = vand.u32 4294901760, %v6240_v37  ;;  %v1353_v35 = vsub.f32 %v8012_v17, %v1352_v26  ;;  %v439_v63 = vld [vmem:[%s7497_s0 + $0x100] sm:$0xff] }
  0xae   : > { %828 = vmatprep.mubr.f32.mxu1 %v8019_v40  ;;  %v6264_v44 = vsub.f32 %v6231_v7, %v7656_v15  ;;  %v1348_v31 = vand.u32 4294901760, %v1347_v50  ;;  %v1360_v56 = vand.u32 4294901760, %v1359_v57  ;;  %4645 = vmatprep.subr.bf16.mxu0 %v4644_v38  ;;  %v1365_v23 = vsub.f32 %v8016_v45, %v1364_v61  ;;  %v438_v40 = vld [vmem:[%s7497_s0 + $0xf8] sm:$0xff]  ;;  %v437_v15 = vld [vmem:[%s7497_s0 + $0xf0] sm:$0xff] }
  0xaf   : > { %2581 = vmatprep.mubr.f32.mxu0 %v8020_v47  ;;  %v6273_v47 = vsub.f32 %v6237_v42, %v7657_v6  ;;  %v6278_v21 = vsub.f32 %v6240_v37, %v7659_v11  ;;  %v8021_v50 = vand.u32 4294901760, %v6243_v53  ;;  %v1354_v57 = vand.u32 4294901760, %v1353_v35  ;;  %v440_v6 = vld [vmem:[%s7497_s0 + $0x108] sm:$0xff] }
  0xb0   : > { %v8022_v11 = vand.u32 4294901760, %v6117_v32  ;;  %v8023_v0 = vand.u32 4294901760, %v6077_v18  ;;  %v875_v35 = vand.u32 4294901760, %v6264_v44  ;;  %v1366_v46 = vand.u32 4294901760, %v1365_v23  ;;  %v8032_v23 = vld [vmem:[#allocation47_spill] sm:$0xff] }
  0xb1   : > { %v6283_v38 = vsub.f32 %v6243_v53, %v8021_v50  ;;  %v4452_v50 = vpack.c.bf16 %v1360_v56, %v1348_v31  ;;  %v4646_v19 = vpack.c.bf16 %v1364_v61, %v1352_v26  ;;  %v8024_v27 = vand.u32 4294901760, %v6149_v51  ;;  %v8031_v31 = vld [vmem:[#allocation46_spill] sm:$0xff] }
  0xb2   : > { %834 = vmatmul.mubr.f32.gmra.mrb[20].mxu1 %v8022_v11  ;;  %2585 = vmatmul.mubr.f32.gmra.mrb[20].mxu0 %v8023_v0  ;;  %v881_v2 = vand.u32 4294901760, %v6273_v47  ;;  %v6304_v32 = vand.u32 4294901760, %v438_v40  ;;  %v4454_v11 = vpack.c.bf16 %v1366_v46, %v1354_v57  ;;  %v6306_v0 = vand.u32 4294901760, %v437_v15 }
  0xb3   : > { %844 = vmatprep.mubr.f32.mxu1 %v843_v52  ;;  %2593 = vmatprep.mubr.f32.mxu0 %v8024_v27  ;;  %v6308_v44 = vand.u32 4294901760, %v440_v6  ;;  %v6310_v26 = vand.u32 4294901760, %v439_v63  ;;  %v8030_v27 = vld [vmem:[#allocation45_spill] sm:$0xff]  ;;  %v1382_v56 = vand.u32 4294901760, %v8031_v31  ;;  %v1376_v47 = vand.u32 4294901760, %v8032_v23 }
  0xb4   : > { %8025 = vst [vmem:[#allocation150_spill] sm:$0xff] %v6304_v32  ;;  %4453 = vmatprep.subr.bf16.mxu1 %v4452_v50  ;;  %4647 = vmatpush1.bf16.msra.mxu0 %v4646_v19  ;;  %8026 = vst [vmem:[#allocation151_spill] sm:$0xff] %v6306_v0  ;;  %v6313_v52 = vsub.f32 %v438_v40, %v6304_v32  ;;  %v1370_v61 = vand.u32 4294901760, %v8030_v27  ;;  %v8033_v29 = vand.u32 4294901760, %v6191_v28  ;;  %v8034_v19 = vand.u32 4294901760, %v6155_v1  ;;  %v8038_v50 = vld [vmem:[#allocation49_spill] sm:$0xff] }
  0xb5   : > { %8027 = vst [vmem:[#allocation152_spill] sm:$0xff] %v6308_v44  ;;  %8028 = vst [vmem:[#allocation153_spill] sm:$0xff] %v6310_v26  ;;  %v6323_v46 = vsub.f32 %v437_v15, %v6306_v0  ;;  %v6326_v57 = vsub.f32 %v440_v6, %v6308_v44  ;;  %v6329_v40 = vsub.f32 %v439_v63, %v6310_v26  ;;  %v1388_v25 = vand.u32 4294901760, %v8038_v50 }
  0xb6   : > { %8029 = vst [vmem:[#allocation154_spill] sm:$0xff] %v6313_v52  ;;  %850 = vmatmul.mubr.f32.gmra.mrb[22].mxu1 %v8033_v29  ;;  %2597 = vmatmul.mubr.f32.gmra.mrb[22].mxu0 %v8034_v19  ;;  %v8039_v51 = vand.u32 4294901760, %v6196_v36  ;;  %v8040_v28 = vand.u32 4294901760, %v6158_v9  ;;  %v7682_v29 = vand.u32 4294901760, %v6313_v52  ;;  %v1371_v19 = vsub.f32 %v8030_v27, %v1370_v61 }
  0xb7   : > { %8035 = vst [vmem:[#allocation155_spill] sm:$0xff] %v6323_v46  ;;  %8036 = vst [vmem:[#allocation156_spill] sm:$0xff] %v6326_v57  ;;  %v1383_v15 = vsub.f32 %v8031_v31, %v1382_v56  ;;  %v4648_v1 = vpack.c.bf16 %v1382_v56, %v1370_v61  ;;  %4455 = vmatpush1.bf16.msra.mxu1 %v4454_v11  ;;  %v7680_v6 = vand.u32 4294901760, %v6323_v46  ;;  %v7681_v63 = vand.u32 4294901760, %v6326_v57  ;;  %v442_v11 = vld [vmem:[%s7497_s0 + $0x118] sm:$0xff] }
  0xb8   : > { %8037 = vst [vmem:[#allocation157_spill] sm:$0xff] %v6329_v40  ;;  %860 = vmatprep.mubr.f32.mxu1 %v8039_v51  ;;  %2605 = vmatprep.mubr.f32.mxu0 %v8040_v28  ;;  %v1377_v36 = vsub.f32 %v8032_v23, %v1376_v47  ;;  %v906_v51 = vsub.f32 %v6313_v52, %v7682_v29  ;;  %v1372_v28 = vand.u32 4294901760, %v1371_v19  ;;  %v8041_v61 = vand.u32 4294901760, %v6201_v13 }
  0xb9   : > { %v1384_v9 = vand.u32 4294901760, %v1383_v15  ;;  %4649 = vmatprep.subr.bf16.mxu0 %v4648_v1  ;;  %v1389_v26 = vsub.f32 %v8038_v50, %v1388_v25  ;;  %v8042_v56 = vand.u32 4294901760, %v6161_v3  ;;  %v6357_v18 = vsub.f32 %v6323_v46, %v7680_v6  ;;  %v443_v6 = vld [vmem:[%s7497_s0 + $0x120] sm:$0xff] }
  0xba   : > { %866 = vmatmul.mubr.f32.gmra.mrb[24].mxu1 %v8041_v61  ;;  %v6362_v1 = vsub.f32 %v6326_v57, %v7681_v63  ;;  %v8043_v19 = vand.u32 4294901760, %v6329_v40  ;;  %v1378_v13 = vand.u32 4294901760, %v1377_v36  ;;  %v441_v61 = vld [vmem:[%s7497_s0 + $0x110] sm:$0xff]  ;;  %v8044_v63 = vand.u32 4294901760, %v6231_v7 }
  0xbb   : > { %2609 = vmatmul.mubr.f32.gmra.mrb[24].mxu0 %v8042_v56  ;;  %v444_v56 = vld [vmem:[%s7497_s0 + $0x128] sm:$0xff]  ;;  %876 = vmatprep.mubr.f32.mxu1 %v875_v35  ;;  %v907_v29 = vand.u32 4294901760, %v906_v51  ;;  %v1390_v3 = vand.u32 4294901760, %v1389_v26  ;;  %v4650_v36 = vpack.c.bf16 %v1388_v25, %v1376_v47  ;;  %v913_v44 = vand.u32 4294901760, %v6357_v18 }
  0xbc   : > { %v6367_v15 = vsub.f32 %v6329_v40, %v8043_v19  ;;  %2617 = vmatprep.mubr.f32.mxu0 %v8044_v63  ;;  %v4456_v19 = vpack.c.bf16 %v1384_v9, %v1372_v28  ;;  %v923_v0 = vand.u32 4294901760, %v6362_v1  ;;  %v6383_v41 = vand.u32 4294901760, %v442_v11  ;;  %v8051_v9 = vld [vmem:[#allocation51_spill] sm:$0xff]  ;;  %v8052_v47 = vld [vmem:[#allocation52_spill] sm:$0xff]  ;;  %v8053_v28 = vld [vmem:[#allocation54_spill] sm:$0xff] }
  0xbd   : > { %v4458_v16 = vpack.c.bf16 %v1390_v3, %v1378_v13  ;;  %4651 = vmatpush1.bf16.msra.mxu0 %v4650_v36  ;;  %v6385_v50 = vand.u32 4294901760, %v441_v61  ;;  %v6387_v35 = vand.u32 4294901760, %v444_v56  ;;  %v6389_v63 = vand.u32 4294901760, %v443_v6  ;;  %v8059_v36 = vld [vmem:[#allocation55_spill] sm:$0xff] }
  0xbe   : > { %8045 = vst [vmem:[#allocation158_spill] sm:$0xff] %v6383_v41  ;;  %4457 = vmatprep.subr.bf16.mxu1 %v4456_v19  ;;  %882 = vmatmul.mubr.f32.gmra.mrb[26].mxu1 %v881_v2  ;;  %v8049_v25 = vand.u32 4294901760, %v6237_v42  ;;  %v6394_v18 = vsub.f32 %v442_v11, %v6383_v41  ;;  %v1394_v26 = vand.u32 4294901760, %v8051_v9  ;;  %v1406_v51 = vand.u32 4294901760, %v8052_v47 }
  0xbf   : > { %8046 = vst [vmem:[#allocation159_spill] sm:$0xff] %v6385_v50  ;;  %8047 = vst [vmem:[#allocation160_spill] sm:$0xff] %v6387_v35  ;;  %v1400_v3 = vand.u32 4294901760, %v8053_v28  ;;  %v8054_v1 = vand.u32 4294901760, %v6278_v21  ;;  %v8055_v13 = vand.u32 4294901760, %v6240_v37  ;;  %v6404_v2 = vsub.f32 %v441_v61, %v6385_v50  ;;  %4459 = vmatpush1.bf16.msra.mxu1 %v4458_v16 }
  0xc0   : > { %8048 = vst [vmem:[#allocation161_spill] sm:$0xff] %v6389_v63  ;;  %2621 = vmatmul.mubr.f32.gmra.mrb[26].mxu0 %v8049_v25  ;;  %8050 = vst [vmem:[#allocation162_spill] sm:$0xff] %v6394_v18  ;;  %v6407_v19 = vsub.f32 %v444_v56, %v6387_v35  ;;  %v6410_v11 = vsub.f32 %v443_v6, %v6389_v63  ;;  %v1412_v25 = vand.u32 4294901760, %v8059_v36  ;;  %v937_v32 = vand.u32 4294901760, %v6394_v18 }
  0xc1   : > { %892 = vmatprep.mubr.f32.mxu1 %v8054_v1  ;;  %2629 = vmatprep.mubr.f32.mxu0 %v8055_v13  ;;  %8056 = vst [vmem:[#allocation163_spill] sm:$0xff] %v6404_v2  ;;  %v1395_v21 = vsub.f32 %v8051_v9, %v1394_v26  ;;  %v1407_v1 = vsub.f32 %v8052_v47, %v1406_v51  ;;  %v7702_v13 = vand.u32 4294901760, %v6404_v2  ;;  %v8060_v6 = vand.u32 4294901760, %v6283_v38 }
  0xc2   : > { %8057 = vst [vmem:[#allocation164_spill] sm:$0xff] %v6407_v19  ;;  %8058 = vst [vmem:[#allocation165_spill] sm:$0xff] %v6410_v11  ;;  %v4652_v37 = vpack.c.bf16 %v1406_v51, %v1394_v26  ;;  %v7703_v61 = vand.u32 4294901760, %v6407_v19  ;;  %v1401_v42 = vsub.f32 %v8053_v28, %v1400_v3  ;;  %v8061_v16 = vand.u32 4294901760, %v6243_v53  ;;  %v446_v51 = vld [vmem:[%s7497_s0 + $0x138] sm:$0xff] }
  0xc3   : > { %898 = vmatmul.mubr.f32.gmra.mrb[28].mxu1 %v8060_v6  ;;  %v938_v7 = vsub.f32 %v6394_v18, %v937_v32  ;;  %v1396_v63 = vand.u32 4294901760, %v1395_v21  ;;  %v1408_v35 = vand.u32 4294901760, %v1407_v1  ;;  %v1413_v26 = vsub.f32 %v8059_v36, %v1412_v25 }
  0xc4   : > { %2633 = vmatmul.mubr.f32.gmra.mrb[28].mxu0 %v8061_v16  ;;  %908 = vmatprep.mubr.f32.mxu1 %v907_v29  ;;  %v8062_v56 = vand.u32 4294901760, %v6313_v52  ;;  %v6434_v38 = vsub.f32 %v6404_v2, %v7702_v13  ;;  %v6439_v21 = vsub.f32 %v6407_v19, %v7703_v61  ;;  %v8063_v1 = vand.u32 4294901760, %v6410_v11  ;;  %v445_v29 = vld [vmem:[%s7497_s0 + $0x130] sm:$0xff]  ;;  %v447_v13 = vld [vmem:[%s7497_s0 + $0x140] sm:$0xff] }
  0xc5   : > { %v1402_v16 = vand.u32 4294901760, %v1401_v42  ;;  %v939_v61 = vand.u32 4294901760, %v938_v7  ;;  %v4460_v18 = vpack.c.bf16 %v1408_v35, %v1396_v63  ;;  %4653 = vmatprep.subr.bf16.mxu0 %v4652_v37  ;;  %v1414_v52 = vand.u32 4294901760, %v1413_v26 }
  0xc6   : > { %2641 = vmatprep.mubr.f32.mxu0 %v8062_v56  ;;  %v6444_v6 = vsub.f32 %v6410_v11, %v8063_v1  ;;  %v448_v56 = vld [vmem:[%s7497_s0 + $0x148] sm:$0xff]  ;;  %v4654_v53 = vpack.c.bf16 %v1412_v25, %v1400_v3  ;;  %v945_v1 = vand.u32 4294901760, %v6434_v38  ;;  %v955_v42 = vand.u32 4294901760, %v6439_v21 }
  0xc7   : > { %v6458_v41 = vand.u32 4294901760, %v446_v51  ;;  %914 = vmatmul.mubr.f32.gmra.mrb[30].mxu1 %v913_v44  ;;  %v8065_v36 = vand.u32 4294901760, %v6323_v46  ;;  %v4462_v28 = vpack.c.bf16 %v1414_v52, %v1402_v16  ;;  %v6462_v47 = vand.u32 4294901760, %v445_v29  ;;  %v8071_v3 = vld [vmem:[#allocation56_spill] sm:$0xff]  ;;  %v8072_v44 = vld [vmem:[#allocation58_spill] sm:$0xff]  ;;  %4461 = vmatprep.subr.bf16.mxu1 %v4460_v18  ;;  %v8077_v16 = vld [vmem:[#allocation61_spill] sm:$0xff] }
  0xc8   : > { %v6464_v7 = vand.u32 4294901760, %v448_v56  ;;  %v6466_v37 = vand.u32 4294901760, %v447_v13  ;;  %924 = vmatprep.mubr.f32.mxu1 %v923_v0  ;;  %v8069_v35 = vand.u32 4294901760, %v6326_v57  ;;  %v1418_v25 = vand.u32 4294901760, %v8071_v3  ;;  %v8073_v38 = vld [vmem:[#allocation60_spill] sm:$0xff]  ;;  %4655 = vmatpush1.bf16.msra.mxu0 %v4654_v53 }
  0xc9   : > { %8064 = vst [vmem:[#allocation166_spill] sm:$0xff] %v6458_v41  ;;  %2645 = vmatmul.mubr.f32.gmra.mrb[30].mxu0 %v8065_v36  ;;  %8066 = vst [vmem:[#allocation167_spill] sm:$0xff] %v6462_v47  ;;  %v6471_v63 = vsub.f32 %v446_v51, %v6458_v41  ;;  %v1430_v26 = vand.u32 4294901760, %v8072_v44  ;;  %v1424_v36 = vand.u32 4294901760, %v8073_v38  ;;  %v6477_v52 = vsub.f32 %v445_v29, %v6462_v47 }
  0xca   : > { %8067 = vst [vmem:[#allocation168_spill] sm:$0xff] %v6464_v7  ;;  %8068 = vst [vmem:[#allocation169_spill] sm:$0xff] %v6466_v37  ;;  %2653 = vmatprep.mubr.f32.mxu0 %v8069_v35  ;;  %v6480_v21 = vsub.f32 %v448_v56, %v6464_v7  ;;  %v6483_v0 = vsub.f32 %v447_v13, %v6466_v37  ;;  %v1436_v51 = vand.u32 4294901760, %v8077_v16  ;;  %4463 = vmatpush1.bf16.msra.mxu1 %v4462_v28 }
  0xcb   : > { %8070 = vst [vmem:[#allocation170_spill] sm:$0xff] %v6471_v63  ;;  %8074 = vst [vmem:[#allocation56_spill] sm:$0xff] %v6477_v52  ;;  %v969_v35 = vand.u32 4294901760, %v6471_v63  ;;  %v1419_v50 = vsub.f32 %v8071_v3, %v1418_v25  ;;  %v1431_v57 = vsub.f32 %v8072_v44, %v1430_v26  ;;  %v4656_v18 = vpack.c.bf16 %v1430_v26, %v1418_v25  ;;  %v450_v26 = vld [vmem:[%s7497_s0 + $0x158] sm:$0xff] }
  0xcc   : > { %8075 = vst [vmem:[#allocation58_spill] sm:$0xff] %v6480_v21  ;;  %8076 = vst [vmem:[#allocation60_spill] sm:$0xff] %v6483_v0  ;;  %v8078_v53 = vand.u32 4294901760, %v6367_v15  ;;  %v8079_v29 = vand.u32 4294901760, %v6329_v40  ;;  %v7721_v56 = vand.u32 4294901760, %v6477_v52  ;;  %v7720_v13 = vand.u32 4294901760, %v6480_v21 }
  0xcd   : > { %v7726_v46 = vand.u32 4294901760, %v6483_v0  ;;  %v1425_v28 = vsub.f32 %v8073_v38, %v1424_v36  ;;  %v970_v37 = vsub.f32 %v6471_v63, %v969_v35  ;;  %v1420_v7 = vand.u32 4294901760, %v1419_v50  ;;  %4657 = vmatprep.subr.bf16.mxu0 %v4656_v18  ;;  %v449_v50 = vld [vmem:[%s7497_s0 + $0x150] sm:$0xff] }
  0xce   : > { %930 = vmatmul.mubr.f32.gmra.mrb[32].mxu1 %v8078_v53  ;;  %2657 = vmatmul.mubr.f32.gmra.mrb[32].mxu0 %v8079_v29  ;;  %v1432_v25 = vand.u32 4294901760, %v1431_v57  ;;  %v1437_v15 = vsub.f32 %v8077_v16, %v1436_v51  ;;  %v976_v53 = vsub.f32 %v6477_v52, %v7721_v56  ;;  %v6508_v29 = vsub.f32 %v6480_v21, %v7720_v13  ;;  %v451_v13 = vld [vmem:[%s7497_s0 + $0x160] sm:$0xff] }
  0xcf   : > { %940 = vmatprep.mubr.f32.mxu1 %v939_v61  ;;  %2665 = vmatprep.mubr.f32.mxu0 %v937_v32  ;;  %v6513_v32 = vsub.f32 %v6483_v0, %v7726_v46  ;;  %v1426_v57 = vand.u32 4294901760, %v1425_v28  ;;  %v452_v61 = vld [vmem:[%s7497_s0 + $0x168] sm:$0xff]  ;;  %v971_v56 = vand.u32 4294901760, %v970_v37  ;;  %v4658_v47 = vpack.c.bf16 %v1436_v51, %v1424_v36  ;;  %v8087_v51 = vld [vmem:[#allocation62_spill] sm:$0xff] }
  0xd0   : > { %v4464_v63 = vpack.c.bf16 %v1432_v25, %v1420_v7  ;;  %v1438_v40 = vand.u32 4294901760, %v1437_v15  ;;  %v8080_v18 = vand.u32 4294901760, %v6404_v2  ;;  %v977_v28 = vand.u32 4294901760, %v976_v53  ;;  %v8088_v15 = vld [vmem:[#allocation64_spill] sm:$0xff] }
  0xd1   : > { %v987_v46 = vand.u32 4294901760, %v6508_v29  ;;  %v6528_v9 = vand.u32 4294901760, %v450_v26  ;;  %v8082_v23 = vand.u32 4294901760, %v6407_v19  ;;  %v6532_v37 = vand.u32 4294901760, %v449_v50  ;;  %4659 = vmatpush1.bf16.msra.mxu0 %v4658_v47  ;;  %v8093_v47 = vld [vmem:[#allocation67_spill] sm:$0xff] }
  0xd2   : > { %946 = vmatmul.mubr.f32.gmra.mrb[34].mxu1 %v945_v1  ;;  %2669 = vmatmul.mubr.f32.gmra.mrb[34].mxu0 %v8080_v18  ;;  %v4466_v39 = vpack.c.bf16 %v1438_v40, %v1426_v57  ;;  %v6534_v7 = vand.u32 4294901760, %v452_v61  ;;  %v6536_v1 = vand.u32 4294901760, %v451_v13  ;;  %v1442_v25 = vand.u32 4294901760, %v8087_v51 }
  0xd3   : > { %8081 = vst [vmem:[#allocation61_spill] sm:$0xff] %v6528_v9  ;;  %956 = vmatprep.mubr.f32.mxu1 %v955_v42  ;;  %2677 = vmatprep.mubr.f32.mxu0 %v8082_v23  ;;  %8083 = vst [vmem:[#allocation171_spill] sm:$0xff] %v6532_v37  ;;  %v6539_v36 = vsub.f32 %v450_v26, %v6528_v9  ;;  %v1454_v53 = vand.u32 4294901760, %v8088_v15  ;;  %v8089_v42 = vld [vmem:[#allocation65_spill] sm:$0xff]  ;;  %v6545_v23 = vsub.f32 %v449_v50, %v6532_v37 }
  0xd4   : > { %8084 = vst [vmem:[#allocation172_spill] sm:$0xff] %v6534_v7  ;;  %8085 = vst [vmem:[#allocation173_spill] sm:$0xff] %v6536_v1  ;;  %4465 = vmatprep.subr.bf16.mxu1 %v4464_v63  ;;  %v1448_v29 = vand.u32 4294901760, %v8089_v42  ;;  %v6548_v40 = vsub.f32 %v452_v61, %v6534_v7  ;;  %v6551_v57 = vsub.f32 %v451_v13, %v6536_v1  ;;  %v1460_v63 = vand.u32 4294901760, %v8093_v47 }
  0xd5   : > { %8086 = vst [vmem:[#allocation174_spill] sm:$0xff] %v6539_v36  ;;  %4467 = vmatpush1.bf16.msra.mxu1 %v4466_v39  ;;  %8090 = vst [vmem:[#allocation62_spill] sm:$0xff] %v6545_v23  ;;  %v8094_v26 = vand.u32 4294901760, %v6444_v6  ;;  %v8095_v18 = vand.u32 4294901760, %v6410_v11  ;;  %v1001_v41 = vand.u32 4294901760, %v6539_v36  ;;  %v1443_v39 = vsub.f32 %v8087_v51, %v1442_v25 }
  0xd6   : > { %8091 = vst [vmem:[#allocation64_spill] sm:$0xff] %v6548_v40  ;;  %8092 = vst [vmem:[#allocation65_spill] sm:$0xff] %v6551_v57  ;;  %v1455_v50 = vsub.f32 %v8088_v15, %v1454_v53  ;;  %v4660_v19 = vpack.c.bf16 %v1454_v53, %v1442_v25  ;;  %v1007_v13 = vand.u32 4294901760, %v6545_v23  ;;  %v7739_v61 = vand.u32 4294901760, %v6548_v40 }
  0xd7   : > { %962 = vmatmul.mubr.f32.gmra.mrb[36].mxu1 %v8094_v26  ;;  %2681 = vmatmul.mubr.f32.gmra.mrb[36].mxu0 %v8095_v18  ;;  %v7741_v2 = vand.u32 4294901760, %v6551_v57  ;;  %v1449_v6 = vsub.f32 %v8089_v42, %v1448_v29  ;;  %v1002_v26 = vsub.f32 %v6539_v36, %v1001_v41  ;;  %v1444_v18 = vand.u32 4294901760, %v1443_v39 }
  0xd8   : > { %972 = vmatprep.mubr.f32.mxu1 %v971_v56  ;;  %2689 = vmatprep.mubr.f32.mxu0 %v969_v35  ;;  %v1456_v11 = vand.u32 4294901760, %v1455_v50  ;;  %v1461_v1 = vsub.f32 %v8093_v47, %v1460_v63  ;;  %v454_v56 = vld [vmem:[%s7497_s0 + $0x178] sm:$0xff]  ;;  %v1008_v35 = vsub.f32 %v6545_v23, %v1007_v13  ;;  %v1018_v25 = vsub.f32 %v6548_v40, %v7739_v61  ;;  %v456_v50 = vld [vmem:[%s7497_s0 + $0x188] sm:$0xff]  ;;  %v455_v23 = vld [vmem:[%s7497_s0 + $0x180] sm:$0xff] }
  0xd9   : > { %4661 = vmatprep.subr.bf16.mxu0 %v4660_v19  ;;  %v6577_v53 = vsub.f32 %v6551_v57, %v7741_v2  ;;  %v1450_v39 = vand.u32 4294901760, %v1449_v6  ;;  %v453_v19 = vld [vmem:[%s7497_s0 + $0x170] sm:$0xff]  ;;  %v8096_v61 = vand.u32 4294901760, %v6477_v52  ;;  %v1003_v36 = vand.u32 4294901760, %v1002_v26  ;;  %v8105_v26 = vld [vmem:[#allocation72_spill] sm:$0xff] }
  0xda   : > { %v4468_v2 = vpack.c.bf16 %v1456_v11, %v1444_v18  ;;  %v1462_v7 = vand.u32 4294901760, %v1461_v1  ;;  %v4662_v6 = vpack.c.bf16 %v1460_v63, %v1448_v29  ;;  %v8097_v37 = vand.u32 4294901760, %v6480_v21  ;;  %v8103_v1 = vld [vmem:[#allocation69_spill] sm:$0xff]  ;;  %v8104_v29 = vld [vmem:[#allocation70_spill] sm:$0xff] }
  0xdb   : > { %978 = vmatmul.mubr.f32.gmra.mrb[38].mxu1 %v977_v28  ;;  %2693 = vmatmul.mubr.f32.gmra.mrb[38].mxu0 %v8096_v61  ;;  %v1009_v9 = vand.u32 4294901760, %v1008_v35  ;;  %v1019_v48 = vand.u32 4294901760, %v1018_v25  ;;  %v1025_v31 = vand.u32 4294901760, %v6577_v53  ;;  %v6593_v27 = vand.u32 4294901760, %v454_v56  ;;  %v8111_v53 = vld [vmem:[#allocation73_spill] sm:$0xff] }
  0xdc   : > { %988 = vmatprep.mubr.f32.mxu1 %v987_v46  ;;  %2701 = vmatprep.mubr.f32.mxu0 %v8097_v37  ;;  %v4470_v45 = vpack.c.bf16 %v1462_v7, %v1450_v39  ;;  %v6595_v28 = vand.u32 4294901760, %v453_v19  ;;  %v6597_v61 = vand.u32 4294901760, %v456_v50  ;;  %v6599_v11 = vand.u32 4294901760, %v455_v23 }
  0xdd   : > { %8098 = vst [vmem:[#allocation67_spill] sm:$0xff] %v6593_v27  ;;  %4469 = vmatprep.subr.bf16.mxu1 %v4468_v2  ;;  %4663 = vmatpush1.bf16.msra.mxu0 %v4662_v6  ;;  %v6602_v46 = vsub.f32 %v454_v56, %v6593_v27  ;;  %v1466_v37 = vand.u32 4294901760, %v8103_v1  ;;  %v1478_v63 = vand.u32 4294901760, %v8104_v29  ;;  %v1472_v18 = vand.u32 4294901760, %v8105_v26 }
  0xde   : > { %8099 = vst [vmem:[#allocation175_spill] sm:$0xff] %v6595_v28  ;;  %8100 = vst [vmem:[#allocation176_spill] sm:$0xff] %v6597_v61  ;;  %v8106_v35 = vand.u32 4294901760, %v6513_v32  ;;  %v8107_v2 = vand.u32 4294901760, %v6483_v0  ;;  %v6612_v7 = vsub.f32 %v453_v19, %v6595_v28  ;;  %v6615_v25 = vsub.f32 %v456_v50, %v6597_v61  ;;  %4471 = vmatpush1.bf16.msra.mxu1 %v4470_v45 }
  0xdf   : > { %8101 = vst [vmem:[#allocation177_spill] sm:$0xff] %v6599_v11  ;;  %8102 = vst [vmem:[#allocation178_spill] sm:$0xff] %v6602_v46  ;;  %v6618_v56 = vsub.f32 %v455_v23, %v6599_v11  ;;  %v1484_v39 = vand.u32 4294901760, %v8111_v53  ;;  %v1033_v6 = vand.u32 4294901760, %v6602_v46  ;;  %v1467_v32 = vsub.f32 %v8103_v1, %v1466_v37 }
  0xe0   : > { %994 = vmatmul.mubr.f32.gmra.mrb[40].mxu1 %v8106_v35  ;;  %2705 = vmatmul.mubr.f32.gmra.mrb[40].mxu0 %v8107_v2  ;;  %8108 = vst [vmem:[#allocation69_spill] sm:$0xff] %v6612_v7  ;;  %8109 = vst [vmem:[#allocation70_spill] sm:$0xff] %v6615_v25  ;;  %v1479_v35 = vsub.f32 %v8104_v29, %v1478_v63  ;;  %v4664_v2 = vpack.c.bf16 %v1478_v63, %v1466_v37  ;;  %v1039_v19 = vand.u32 4294901760, %v6612_v7  ;;  %v458_v37 = vld [vmem:[%s7497_s0 + $0x198] sm:$0xff] }
  0xe1   : > { %8110 = vst [vmem:[#allocation72_spill] sm:$0xff] %v6618_v56  ;;  %1004 = vmatprep.mubr.f32.mxu1 %v1003_v36  ;;  %2713 = vmatprep.mubr.f32.mxu0 %v1001_v41  ;;  %v1049_v50 = vand.u32 4294901760, %v6615_v25  ;;  %v7759_v0 = vand.u32 4294901760, %v6618_v56  ;;  %v1473_v23 = vsub.f32 %v8105_v26, %v1472_v18  ;;  %v1034_v21 = vsub.f32 %v6602_v46, %v1033_v6 }
  0xe2   : > { %v1468_v36 = vand.u32 4294901760, %v1467_v32  ;;  %v1480_v41 = vand.u32 4294901760, %v1479_v35  ;;  %4665 = vmatprep.subr.bf16.mxu0 %v4664_v2  ;;  %v1485_v52 = vsub.f32 %v8111_v53, %v1484_v39  ;;  %v1040_v45 = vsub.f32 %v6612_v7, %v1039_v19  ;;  %v457_v35 = vld [vmem:[%s7497_s0 + $0x190] sm:$0xff]  ;;  %v460_v2 = vld [vmem:[%s7497_s0 + $0x1a8] sm:$0xff] }
  0xe3   : > { %v1050_v63 = vsub.f32 %v6615_v25, %v1049_v50  ;;  %v6638_v11 = vsub.f32 %v6618_v56, %v7759_v0  ;;  %v1474_v32 = vand.u32 4294901760, %v1473_v23  ;;  %v1035_v25 = vand.u32 4294901760, %v1034_v21 }
  0xe4   : > { %1010 = vmatmul.mubr.f32.gmra.mrb[42].mxu1 %v1009_v9  ;;  %2717 = vmatmul.mubr.f32.gmra.mrb[42].mxu0 %v1007_v13  ;;  %v459_v9 = vld [vmem:[%s7497_s0 + $0x1a0] sm:$0xff]  ;;  %v8112_v13 = vand.u32 4294901760, %v6548_v40  ;;  %v4472_v0 = vpack.c.bf16 %v1480_v41, %v1468_v36  ;;  %v1486_v7 = vand.u32 4294901760, %v1485_v52  ;;  %v4666_v23 = vpack.c.bf16 %v1484_v39, %v1472_v18  ;;  %v8123_v41 = vld [vmem:[#allocation77_spill] sm:$0xff] }
  0xe5   : > { %1020 = vmatprep.mubr.f32.mxu1 %v1019_v48  ;;  %v1041_v46 = vand.u32 4294901760, %v1040_v45  ;;  %v1051_v61 = vand.u32 4294901760, %v1050_v63  ;;  %v1057_v28 = vand.u32 4294901760, %v6638_v11  ;;  %v6652_v27 = vand.u32 4294901760, %v458_v37 }
  0xe6   : > { %2725 = vmatprep.mubr.f32.mxu0 %v8112_v13  ;;  %4473 = vmatprep.subr.bf16.mxu1 %v4472_v0  ;;  %v4474_v17 = vpack.c.bf16 %v1486_v7, %v1474_v32  ;;  %v6654_v30 = vand.u32 4294901760, %v457_v35  ;;  %v6656_v59 = vand.u32 4294901760, %v460_v2  ;;  %v6658_v48 = vand.u32 4294901760, %v459_v9  ;;  %v8119_v0 = vld [vmem:[#allocation75_spill] sm:$0xff] }
  0xe7   : > { %8113 = vst [vmem:[#allocation73_spill] sm:$0xff] %v6652_v27  ;;  %4667 = vmatpush1.bf16.msra.mxu0 %v4666_v23  ;;  %v8117_v21 = vand.u32 4294901760, %v6551_v57  ;;  %v6663_v52 = vsub.f32 %v458_v37, %v6652_v27  ;;  %v1490_v11 = vand.u32 4294901760, %v5593_v22  ;;  %v1502_v18 = vand.u32 4294901760, %v5595_v24 }
  0xe8   : > { %8114 = vst [vmem:[#allocation179_spill] sm:$0xff] %v6654_v30  ;;  %8115 = vst [vmem:[#allocation180_spill] sm:$0xff] %v6656_v59  ;;  %1026 = vmatmul.mubr.f32.gmra.mrb[44].mxu1 %v1025_v31  ;;  %v1496_v7 = vand.u32 4294901760, %v8119_v0  ;;  %v6669_v39 = vsub.f32 %v457_v35, %v6654_v30  ;;  %v6672_v36 = vsub.f32 %v460_v2, %v6656_v59  ;;  %v1508_v37 = vand.u32 4294901760, %v8123_v41 }
  0xe9   : > { %8116 = vst [vmem:[#allocation181_spill] sm:$0xff] %v6658_v48  ;;  %2729 = vmatmul.mubr.f32.gmra.mrb[44].mxu0 %v8117_v21  ;;  %8118 = vst [vmem:[#allocation182_spill] sm:$0xff] %v6663_v52  ;;  %1036 = vmatprep.mubr.f32.mxu1 %v1035_v25  ;;  %v6675_v31 = vsub.f32 %v459_v9, %v6658_v48  ;;  %v1065_v45 = vand.u32 4294901760, %v6663_v52  ;;  %v1491_v63 = vsub.f32 %v5593_v22, %v1490_v11 }
  0xea   : > { %2737 = vmatprep.mubr.f32.mxu0 %v1033_v6  ;;  %8120 = vst [vmem:[#allocation75_spill] sm:$0xff] %v6669_v39  ;;  %8121 = vst [vmem:[#allocation183_spill] sm:$0xff] %v6672_v36  ;;  %4475 = vmatpush1.bf16.msra.mxu1 %v4474_v17  ;;  %v1503_v32 = vsub.f32 %v5595_v24, %v1502_v18  ;;  %v4668_v25 = vpack.c.bf16 %v1502_v18, %v1490_v11  ;;  %v1071_v6 = vand.u32 4294901760, %v6669_v39  ;;  %v462_v11 = vld [vmem:[%s7497_s0 + $0x1b8] sm:$0xff] }
  0xeb   : > { %8122 = vst [vmem:[#allocation184_spill] sm:$0xff] %v6675_v31  ;;  %v1081_v35 = vand.u32 4294901760, %v6672_v36  ;;  %v1497_v13 = vsub.f32 %v8119_v0, %v1496_v7  ;;  %v1066_v9 = vsub.f32 %v6663_v52, %v1065_v45  ;;  %v1492_v17 = vand.u32 4294901760, %v1491_v63  ;;  %v461_v63 = vld [vmem:[%s7497_s0 + $0x1b0] sm:$0xff] }
  0xec   : > { %1042 = vmatmul.mubr.f32.gmra.mrb[46].mxu1 %v1041_v46  ;;  %v1504_v23 = vand.u32 4294901760, %v1503_v32  ;;  %v1509_v21 = vsub.f32 %v8123_v41, %v1508_v37  ;;  %v1072_v18 = vsub.f32 %v6669_v39, %v1071_v6  ;;  %v8124_v57 = vand.u32 4294901760, %v6675_v31  ;;  %v464_v32 = vld [vmem:[%s7497_s0 + $0x1c8] sm:$0xff]  ;;  %4669 = vmatprep.subr.bf16.mxu0 %v4668_v25 }
  0xed   : > { %2741 = vmatmul.mubr.f32.gmra.mrb[46].mxu0 %v1039_v19  ;;  %1052 = vmatprep.mubr.f32.mxu1 %v1051_v61  ;;  %v1082_v2 = vsub.f32 %v6672_v36, %v1081_v35  ;;  %v1498_v19 = vand.u32 4294901760, %v1497_v13  ;;  %v463_v61 = vld [vmem:[%s7497_s0 + $0x1c0] sm:$0xff]  ;;  %v4670_v52 = vpack.c.bf16 %v1508_v37, %v1496_v7  ;;  %v6704_v48 = vand.u32 4294901760, %v462_v11  ;;  %v8131_v37 = vld [vmem:[#allocation78_spill] sm:$0xff] }
  0xee   : > { %2749 = vmatprep.mubr.f32.mxu0 %v1049_v50  ;;  %v1088_v46 = vsub.f32 %v6675_v31, %v8124_v57  ;;  %v1067_v50 = vand.u32 4294901760, %v1066_v9  ;;  %v4476_v39 = vpack.c.bf16 %v1504_v23, %v1492_v17  ;;  %v1510_v36 = vand.u32 4294901760, %v1509_v21 }
  0xef   : > { %v1073_v40 = vand.u32 4294901760, %v1072_v18  ;;  %v1083_v57 = vand.u32 4294901760, %v1082_v2  ;;  %8125 = vst [vmem:[#allocation77_spill] sm:$0xff] %v6704_v48  ;;  %v8126_v59 = vand.u32 4294901760, %v6618_v56  ;;  %v6708_v27 = vand.u32 4294901760, %v461_v63  ;;  %v8132_v2 = vld [vmem:[#allocation80_spill] sm:$0xff]  ;;  %4671 = vmatpush1.bf16.msra.mxu0 %v4670_v52 }
  0xf0   : > { %v1089_v13 = vand.u32 4294901760, %v1088_v46  ;;  %1058 = vmatmul.mubr.f32.gmra.mrb[48].mxu1 %v1057_v28  ;;  %v4478_v30 = vpack.c.bf16 %v1510_v36, %v1498_v19  ;;  %v6710_v8 = vand.u32 4294901760, %v464_v32  ;;  %v6712_v62 = vand.u32 4294901760, %v463_v61  ;;  %v8133_v28 = vld [vmem:[#allocation82_spill] sm:$0xff]  ;;  %4477 = vmatprep.subr.bf16.mxu1 %v4476_v39 }
  0xf1   : > { %2753 = vmatmul.mubr.f32.gmra.mrb[48].mxu0 %v8126_v59  ;;  %8127 = vst [vmem:[#allocation185_spill] sm:$0xff] %v6708_v27  ;;  %1068 = vmatprep.mubr.f32.mxu1 %v1067_v50  ;;  %v6715_v7 = vsub.f32 %v462_v11, %v6704_v48  ;;  %v1514_v25 = vand.u32 4294901760, %v8131_v37  ;;  %v1526_v9 = vand.u32 4294901760, %v8132_v2  ;;  %v1520_v17 = vand.u32 4294901760, %v8133_v28 }
  0xf2   : > { %8128 = vst [vmem:[#allocation186_spill] sm:$0xff] %v6710_v8  ;;  %8129 = vst [vmem:[#allocation187_spill] sm:$0xff] %v6712_v62  ;;  %2761 = vmatprep.mubr.f32.mxu0 %v1065_v45  ;;  %v6721_v59 = vsub.f32 %v461_v63, %v6708_v27  ;;  %v6724_v36 = vsub.f32 %v464_v32, %v6710_v8  ;;  %v6727_v23 = vsub.f32 %v463_v61, %v6712_v62  ;;  %v8137_v45 = vld [vmem:[#allocation83_spill] sm:$0xff] }
  0xf3   : > { %8130 = vst [vmem:[#allocation188_spill] sm:$0xff] %v6715_v7  ;;  %v1532_v21 = vand.u32 4294901760, %v8137_v45  ;;  %4479 = vmatpush1.bf16.msra.mxu1 %v4478_v30  ;;  %v1097_v11 = vand.u32 4294901760, %v6715_v7  ;;  %v1515_v18 = vsub.f32 %v8131_v37, %v1514_v25  ;;  %v1527_v46 = vsub.f32 %v8132_v2, %v1526_v9 }
  0xf4   : > { %8134 = vst [vmem:[#allocation78_spill] sm:$0xff] %v6721_v59  ;;  %8135 = vst [vmem:[#allocation80_spill] sm:$0xff] %v6724_v36  ;;  %v4672_v39 = vpack.c.bf16 %v1526_v9, %v1514_v25  ;;  %1074 = vmatmul.mubr.f32.gmra.mrb[50].mxu1 %v1073_v40  ;;  %v1103_v52 = vand.u32 4294901760, %v6721_v59  ;;  %v1113_v19 = vand.u32 4294901760, %v6724_v36  ;;  %v7793_v63 = vand.u32 4294901760, %v6727_v23  ;;  %v466_v40 = vld [vmem:[%s7497_s0 + $0x1d8] sm:$0xff] }
  0xf5   : > { %8136 = vst [vmem:[#allocation82_spill] sm:$0xff] %v6727_v23  ;;  %2765 = vmatmul.mubr.f32.gmra.mrb[50].mxu0 %v1071_v6  ;;  %v1521_v32 = vsub.f32 %v8133_v28, %v1520_v17  ;;  %1084 = vmatprep.mubr.f32.mxu1 %v1083_v57  ;;  %v1098_v30 = vsub.f32 %v6715_v7, %v1097_v11  ;;  %v1516_v61 = vand.u32 4294901760, %v1515_v18  ;;  %v1528_v50 = vand.u32 4294901760, %v1527_v46  ;;  %v465_v57 = vld [vmem:[%s7497_s0 + $0x1d0] sm:$0xff]  ;;  %v468_v18 = vld [vmem:[%s7497_s0 + $0x1e8] sm:$0xff]  ;;  %v467_v46 = vld [vmem:[%s7497_s0 + $0x1e0] sm:$0xff] }
  0xf6   : > { %2773 = vmatprep.mubr.f32.mxu0 %v1081_v35  ;;  %v1533_v56 = vsub.f32 %v8137_v45, %v1532_v21  ;;  %v1104_v6 = vsub.f32 %v6721_v59, %v1103_v52  ;;  %v1114_v25 = vsub.f32 %v6724_v36, %v1113_v19  ;;  %v1120_v9 = vsub.f32 %v6727_v23, %v7793_v63 }
  0xf7   : > { %4673 = vmatprep.subr.bf16.mxu0 %v4672_v39  ;;  %v1522_v35 = vand.u32 4294901760, %v1521_v32  ;;  %v1099_v59 = vand.u32 4294901760, %v1098_v30  ;;  %v4480_v36 = vpack.c.bf16 %v1528_v50, %v1516_v61  ;;  %v4674_v62 = vpack.c.bf16 %v1532_v21, %v1520_v17  ;;  %v8145_v21 = vld [vmem:[#allocation86_spill] sm:$0xff]  ;;  %v8146_v50 = vld [vmem:[#allocation88_spill] sm:$0xff] }
  0xf8   : > { %v1534_v7 = vand.u32 4294901760, %v1533_v56  ;;  %1090 = vmatmul.mubr.f32.gmra.mrb[52].mxu1 %v1089_v13  ;;  %v8138_v39 = vand.u32 4294901760, %v6675_v31  ;;  %v1105_v32 = vand.u32 4294901760, %v1104_v6  ;;  %v1115_v63 = vand.u32 4294901760, %v1114_v25  ;;  %v8144_v13 = vld [vmem:[#allocation84_spill] sm:$0xff] }
  0xf9   : > { %v1121_v8 = vand.u32 4294901760, %v1120_v9  ;;  %v6758_v27 = vand.u32 4294901760, %v466_v40  ;;  %1100 = vmatprep.mubr.f32.mxu1 %v1099_v59  ;;  %v6760_v60 = vand.u32 4294901760, %v465_v57  ;;  %v6762_v58 = vand.u32 4294901760, %v468_v18  ;;  %4481 = vmatprep.subr.bf16.mxu1 %v4480_v36 }
  0xfa   : > { %2777 = vmatmul.mubr.f32.gmra.mrb[52].mxu0 %v8138_v39  ;;  %v4482_v48 = vpack.c.bf16 %v1534_v7, %v1522_v35  ;;  %v6764_v30 = vand.u32 4294901760, %v467_v46  ;;  %v1538_v17 = vand.u32 4294901760, %v8144_v13  ;;  %v1550_v61 = vand.u32 4294901760, %v8145_v21 }
  0xfb   : > { %8139 = vst [vmem:[#allocation83_spill] sm:$0xff] %v6758_v27  ;;  %2785 = vmatprep.mubr.f32.mxu0 %v1097_v11  ;;  %8140 = vst [vmem:[#allocation189_spill] sm:$0xff] %v6760_v60  ;;  %4675 = vmatpush1.bf16.msra.mxu0 %v4674_v62  ;;  %v6767_v56 = vsub.f32 %v466_v40, %v6758_v27  ;;  %v1544_v6 = vand.u32 4294901760, %v8146_v50  ;;  %v6773_v7 = vsub.f32 %v465_v57, %v6760_v60  ;;  %v8150_v62 = vld [vmem:[#allocation91_spill] sm:$0xff] }
  0xfc   : > { %8141 = vst [vmem:[#allocation190_spill] sm:$0xff] %v6762_v58  ;;  %8142 = vst [vmem:[#allocation191_spill] sm:$0xff] %v6764_v30  ;;  %4483 = vmatpush1.bf16.msra.mxu1 %v4482_v48  ;;  %v6776_v59 = vsub.f32 %v468_v18, %v6762_v58  ;;  %v6779_v11 = vsub.f32 %v467_v46, %v6764_v30  ;;  %v1556_v36 = vand.u32 4294901760, %v8150_v62 }
  0xfd   : > { %8143 = vst [vmem:[#allocation192_spill] sm:$0xff] %v6767_v56  ;;  %8147 = vst [vmem:[#allocation84_spill] sm:$0xff] %v6773_v7  ;;  %1106 = vmatmul.mubr.f32.gmra.mrb[54].mxu1 %v1105_v32  ;;  %v1129_v40 = vand.u32 4294901760, %v6767_v56  ;;  %v1539_v25 = vsub.f32 %v8144_v13, %v1538_v17  ;;  %v1551_v9 = vsub.f32 %v8145_v21, %v1550_v61  ;;  %v1135_v35 = vand.u32 4294901760, %v6773_v7 }
  0xfe   : > { %8148 = vst [vmem:[#allocation86_spill] sm:$0xff] %v6776_v59  ;;  %8149 = vst [vmem:[#allocation88_spill] sm:$0xff] %v6779_v11  ;;  %2789 = vmatmul.mubr.f32.gmra.mrb[54].mxu0 %v1103_v52  ;;  %v4676_v48 = vpack.c.bf16 %v1550_v61, %v1538_v17  ;;  %1116 = vmatprep.mubr.f32.mxu1 %v1115_v63  ;;  %v1145_v57 = vand.u32 4294901760, %v6776_v59  ;;  %v1151_v18 = vand.u32 4294901760, %v6779_v11  ;;  %v470_v63 = vld [vmem:[%s7497_s0 + $0x1f8] sm:$0xff] }
  0xff   : > { %2797 = vmatprep.mubr.f32.mxu0 %v1113_v19  ;;  %v1545_v46 = vsub.f32 %v8146_v50, %v1544_v6  ;;  %v1130_v39 = vsub.f32 %v6767_v56, %v1129_v40  ;;  %v1540_v52 = vand.u32 4294901760, %v1539_v25  ;;  %v1552_v32 = vand.u32 4294901760, %v1551_v9  ;;  %v469_v56 = vld [vmem:[%s7497_s0 + $0x1f0] sm:$0xff] }
 0x100   : > { %4677 = vmatprep.subr.bf16.mxu0 %v4676_v48  ;;  %v1557_v31 = vsub.f32 %v8150_v62, %v1556_v36  ;;  %v1136_v19 = vsub.f32 %v6773_v7, %v1135_v35  ;;  %v1146_v17 = vsub.f32 %v6776_v59, %v1145_v57  ;;  %v1152_v61 = vsub.f32 %v6779_v11, %v1151_v18  ;;  %v8155_v59 = vld [vmem:[#allocation8_spill] sm:$0xff] }
 0x101   : > { %v1546_v30 = vand.u32 4294901760, %v1545_v46  ;;  %1122 = vmatmul.mubr.f32.gmra.mrb[56].mxu1 %v1121_v8  ;;  %v8151_v25 = vand.u32 4294901760, %v6727_v23  ;;  %v1131_v9 = vand.u32 4294901760, %v1130_v39  ;;  %v4484_v48 = vpack.c.bf16 %v1552_v32, %v1540_v52  ;;  %v8218_v32 = vld [vmem:[#allocation126_spill] sm:$0xff]  ;;  %v8221_v52 = vld [vmem:[#allocation55_spill] sm:$0xff] }
 0x102   : > { %v1558_v58 = vand.u32 4294901760, %v1557_v31  ;;  %v4678_v60 = vpack.c.bf16 %v1556_v36, %v1544_v6  ;;  %v1137_v27 = vand.u32 4294901760, %v1136_v19  ;;  %v1147_v7 = vand.u32 4294901760, %v1146_v17  ;;  %v8175_v17 = vld [vmem:[#allocation23_spill] sm:$0xff]  ;;  %v8176_v19 = vld [vmem:[#allocation24_spill] sm:$0xff] }
 0x103   : > { %2801 = vmatmul.mubr.f32.gmra.mrb[56].mxu0 %v8151_v25  ;;  %v6802_v49 = vand.u32 4294901760, %v470_v63  ;;  %1132 = vmatprep.mubr.f32.mxu1 %v1131_v9  ;;  %v6804_v11 = vand.u32 4294901760, %v469_v56  ;;  %v8156_v25 = vld [vmem:[#allocation9_spill] sm:$0xff]  ;;  %v1153_v31 = vand.u32 4294901760, %v1152_v61  ;;  %v8159_v9 = vld [vmem:[#allocation87_spill] sm:$0xff] }
 0x104   : > { %2809 = vmatprep.mubr.f32.mxu0 %v1129_v40  ;;  %4485 = vmatprep.subr.bf16.mxu1 %v4484_v48  ;;  %v4486_v46 = vpack.c.bf16 %v1558_v58, %v1546_v30  ;;  %v4488_v39 = vpack.c.bf16 %v8156_v25, %v8155_v59  ;;  %v4530_v40 = vpack.c.bf16 %v8077_v16, %v8073_v38  ;;  %v8160_v48 = vld [vmem:[#allocation10_spill] sm:$0xff]  ;;  %v8171_v61 = vld [vmem:[#allocation21_spill] sm:$0xff]  ;;  %v8234_v16 = vld [vmem:[#allocation68_spill] sm:$0xff] }
 0x105   : > { %8152 = vst [vmem:[#allocation91_spill] sm:$0xff] %v6802_v49  ;;  %8153 = vst [vmem:[#allocation193_spill] sm:$0xff] %v6804_v11  ;;  %4679 = vmatpush1.bf16.msra.mxu0 %v4678_v60  ;;  %v6807_v8 = vsub.f32 %v470_v63, %v6802_v49  ;;  %1138 = vmatmul.mubr.f32.gmra.mrb[58].mxu1 %v1137_v27  ;;  %v6812_v6 = vsub.f32 %v469_v56, %v6804_v11  ;;  %v8158_v60 = vld [vmem:[#allocation7_spill] sm:$0xff]  ;;  %v8213_v63 = vld [vmem:[#allocation49_spill] sm:$0xff] }
 0x106   : > { %1148 = vmatprep.mubr.f32.mxu1 %v1147_v7  ;;  %4487 = vmatpush1.bf16.msra.mxu1 %v4486_v46  ;;  %v4528_v56 = vpack.c.bf16 %v8072_v44, %v8071_v3  ;;  %v8161_v46 = vld [vmem:[#allocation12_spill] sm:$0xff]  ;;  %v8230_v3 = vld [vmem:[#allocation63_spill] sm:$0xff]  ;;  %v8233_v38 = vld [vmem:[#allocation66_spill] sm:$0xff] }
 0x107   : > { %8154 = vst [vmem:[#allocation194_spill] sm:$0xff] %v6807_v8  ;;  %2813 = vmatmul.mubr.f32.gmra.mrb[58].mxu0 %v1135_v35  ;;  %8157 = vst [vmem:[#allocation8_spill] sm:$0xff] %v6812_v6  ;;  %v1161_v36 = vand.u32 4294901760, %v6807_v8  ;;  %v1167_v58 = vand.u32 4294901760, %v6812_v6  ;;  %4681 = vmatprep.subr.bf16.mxu0 %v8158_v60  ;;  %v4532_v35 = vpack.c.bf16 %v8088_v15, %v8087_v51  ;;  %v8164_v60 = vld [vmem:[#allocation89_spill] sm:$0xff]  ;;  %v8231_v44 = vld [vmem:[#allocation135_spill] sm:$0xff] }
 0x108   : > { %2821 = vmatprep.mubr.f32.mxu0 %v1145_v57  ;;  %4489 = vmatprep.subr.bf16.mxu1 %v4488_v39  ;;  %v4534_v57 = vpack.c.bf16 %v8093_v47, %v8089_v42  ;;  %v4490_v25 = vpack.c.bf16 %v8161_v46, %v8160_v48  ;;  %v8169_v46 = vld [vmem:[#allocation13_spill] sm:$0xff]  ;;  %v8170_v39 = vld [vmem:[#allocation20_spill] sm:$0xff]  ;;  %v8236_v15 = vld [vmem:[#allocation142_spill] sm:$0xff]  ;;  %v8237_v42 = vpack.c.bf16 %v8111_v53, %v8105_v26 }
 0x109   : > { %v1162_v30 = vsub.f32 %v6807_v8, %v1161_v36  ;;  %1154 = vmatmul.mubr.f32.gmra.mrb[60].mxu1 %v1153_v31  ;;  %v1168_v27 = vsub.f32 %v6812_v6, %v1167_v58  ;;  %v8162_v31 = vld [vmem:[#allocation14_spill] sm:$0xff]  ;;  %v8235_v51 = vld [vmem:[#allocation137_spill] sm:$0xff]  ;;  %v8238_v47 = vld [vmem:[#allocation71_spill] sm:$0xff]  ;;  %v8243_v26 = vpack.c.bf16 %v8123_v41, %v8119_v0  ;;  %v8249_v0 = vpack.c.bf16 %v8137_v45, %v8133_v28 }
 0x10a   : > { %v8244_v53 = vld [vmem:[#allocation76_spill] sm:$0xff]  ;;  %v8250_v41 = vld [vmem:[#allocation81_spill] sm:$0xff]  ;;  %v8255_v28 = vpack.c.bf16 %v8150_v62, %v8146_v50  ;;  %v8256_v45 = vld [vmem:[#allocation90_spill] sm:$0xff] }
 0x10b   : > { %2825 = vmatmul.mubr.f32.gmra.mrb[60].mxu0 %v1151_v18  ;;  %v1163_v59 = vand.u32 4294901760, %v1162_v30  ;;  %v1169_v7 = vand.u32 4294901760, %v1168_v27  ;;  %v4536_v18 = vpack.c.bf16 %v8104_v29, %v8103_v1  ;;  %v8165_v30 = vld [vmem:[#allocation11_spill] sm:$0xff]  ;;  %v8166_v27 = vld [vmem:[#allocation94_spill] sm:$0xff]  ;;  %v8239_v1 = vpack.c.bf16 %v5595_v24, %v5593_v22  ;;  %v8261_v50 = vld [vmem:[#allocation161_spill] sm:$0xff] }
 0x10c   : > { %2833 = vmatprep.mubr.f32.mxu0 %v1161_v36  ;;  %v8163_v36 = vld [vmem:[#allocation15_spill] sm:$0xff]  ;;  %v8240_v29 = vld [vmem:[#allocation74_spill] sm:$0xff]  ;;  %v8245_v22 = vpack.c.bf16 %v8132_v2, %v8131_v37  ;;  %v8251_v37 = vpack.c.bf16 %v8145_v21, %v8144_v13  ;;  %v8252_v2 = vld [vmem:[#allocation85_spill] sm:$0xff] }
 0x10d   : > { %1164 = vmatprep.mubr.f32.mxu1 %v1163_v59  ;;  %v8167_v59 = vld [vmem:[#allocation17_spill] sm:$0xff]  ;;  %v8246_v24 = vld [vmem:[#allocation79_spill] sm:$0xff]  ;;  %v8258_v13 = vld [vmem:[#allocation158_spill] sm:$0xff] }
 0x10e   : > { %1170 = vmatmul.mubr.f32.gmra.mrb[62].mxu1 %v1169_v7  ;;  %v8168_v7 = vld [vmem:[#allocation18_spill] sm:$0xff]  ;;  %v8259_v21 = vld [vmem:[#allocation159_spill] sm:$0xff]  ;;  %v8283_v6 = vld [vmem:[#allocation189_spill] sm:$0xff] }
 0x10f   : > { %2837 = vmatmul.mubr.f32.gmra.mrb[62].mxu0 %v1167_v58  ;;  %1561 = vmatprep.mubr.f32.mxu1 %v8159_v9  ;;  %v4492_v58 = vpack.c.bf16 %v8163_v36, %v8162_v31  ;;  %v4494_v48 = vpack.c.bf16 %v8168_v7, %v8167_v59  ;;  %v4496_v31 = vpack.c.bf16 %v8171_v61, %v8170_v39  ;;  %v8172_v36 = vld [vmem:[#allocation96_spill] sm:$0xff]  ;;  %v8178_v39 = vld [vmem:[#allocation98_spill] sm:$0xff]  ;;  %v8285_v23 = vld [vmem:[#allocation191_spill] sm:$0xff] }
 0x110   : > { %3100 = vmatprep.mubr.f32.mxu0 %v8159_v9  ;;  %v4498_v59 = vpack.c.bf16 %v8176_v19, %v8175_v17  ;;  %v4500_v61 = vpack.c.bf16 %v5409_v55, %v5405_v54  ;;  %v8179_v7 = vld [vmem:[#allocation102_spill] sm:$0xff]  ;;  %v8182_v17 = vld [vmem:[#allocation25_spill] sm:$0xff]  ;;  %v4504_v54 = vpack.c.bf16 %v5429_v10, %v5422_v5  ;;  %v8183_v55 = vld [vmem:[#allocation104_spill] sm:$0xff]  ;;  %v4508_v5 = vpack.c.bf16 %v5447_v33, %v5440_v20 }
 0x111   : > { %v8187_v10 = vld [vmem:[#allocation106_spill] sm:$0xff]  ;;  %v8193_v33 = vld [vmem:[#allocation111_spill] sm:$0xff] }
 0x112   : > { %1563 = vmatmul.mubr.f32.vlgmr.msra.gmra.mrb[0].mxu1 %v8164_v60  ;;  %v8262_v62 = vld [vmem:[#allocation166_spill] sm:$0xff] }
 0x113   : > { %3102 = vmatmul.mubr.f32.vlgmr.msra.gmra.mrb[0].mxu0 %v8164_v60  ;;  %4491 = vmatpush1.bf16.msra.mxu1 %v4490_v25  ;;  %v8173_v25 = vld [vmem:[#allocation97_spill] sm:$0xff]  ;;  %v8284_v8 = vld [vmem:[#allocation190_spill] sm:$0xff] }
 0x114   : > { %4683 = vmatpush1.bf16.msra.mxu0 %v8165_v30  ;;  %1569 = vmatprep.mubr.f32.mxu1 %v8166_v27  ;;  %v8174_v30 = vld [vmem:[#allocation16_spill] sm:$0xff] }
 0x115   : > { %3108 = vmatprep.mubr.f32.mxu0 %v8166_v27  ;;  %4493 = vmatprep.subr.bf16.mxu1 %v4492_v58  ;;  %v8177_v58 = vld [vmem:[#allocation19_spill] sm:$0xff] }
 0x116   : > { %4685 = vmatprep.subr.bf16.mxu0 %v8169_v46  ;;  %1571 = vmatmul.mubr.f32.gmra.mrb[2].mxu1 %v8172_v36  ;;  %v8181_v46 = vld [vmem:[#allocation27_spill] sm:$0xff] }
 0x117   : > { %3110 = vmatmul.mubr.f32.gmra.mrb[2].mxu0 %v8172_v36  ;;  %1577 = vmatprep.mubr.f32.mxu1 %v8173_v25  ;;  %v4502_v19 = vpack.c.bf16 %v5420_v4, %v8181_v46  ;;  %v4506_v4 = vpack.c.bf16 %v5438_v14, %v5433_v12  ;;  %v4510_v12 = vpack.c.bf16 %v5456_v43, %v5449_v34  ;;  %v8190_v14 = vld [vmem:[#allocation30_spill] sm:$0xff]  ;;  %v8198_v43 = vld [vmem:[#allocation32_spill] sm:$0xff] }
 0x118   : > { %3116 = vmatprep.mubr.f32.mxu0 %v8173_v25  ;;  %4495 = vmatpush1.bf16.msra.mxu1 %v4494_v48  ;;  %v8180_v48 = vld [vmem:[#allocation22_spill] sm:$0xff] }
 0x119   : > { %4687 = vmatpush1.bf16.msra.mxu0 %v8174_v30  ;;  %4497 = vmatprep.subr.bf16.mxu1 %v4496_v31  ;;  %v8184_v31 = vld [vmem:[#allocation105_spill] sm:$0xff]  ;;  %v8185_v30 = vld [vmem:[#allocation26_spill] sm:$0xff] }
 0x11a   : > { %4689 = vmatprep.subr.bf16.mxu0 %v8177_v58  ;;  %1579 = vmatmul.mubr.f32.gmra.mrb[4].mxu1 %v8178_v39  ;;  %v8188_v58 = vld [vmem:[#allocation110_spill] sm:$0xff] }
 0x11b   : > { %3118 = vmatmul.mubr.f32.gmra.mrb[4].mxu0 %v8178_v39  ;;  %1585 = vmatprep.mubr.f32.mxu1 %v8179_v7  ;;  %v8192_v46 = vld [vmem:[#allocation34_spill] sm:$0xff] }
 0x11c   : > { %3124 = vmatprep.mubr.f32.mxu0 %v8179_v7  ;;  %4499 = vmatpush1.bf16.msra.mxu1 %v4498_v59  ;;  %v8186_v59 = vld [vmem:[#allocation28_spill] sm:$0xff] }
 0x11d   : > { %4691 = vmatpush1.bf16.msra.mxu0 %v8180_v48  ;;  %4501 = vmatprep.subr.bf16.mxu1 %v4500_v61  ;;  %v8189_v61 = vld [vmem:[#allocation29_spill] sm:$0xff] }
 0x11e   : > { %4693 = vmatprep.subr.bf16.mxu0 %v8182_v17  ;;  %1587 = vmatmul.mubr.f32.gmra.mrb[6].mxu1 %v8183_v55  ;;  %v8191_v48 = vld [vmem:[#allocation33_spill] sm:$0xff]  ;;  %v8195_v17 = vld [vmem:[#allocation31_spill] sm:$0xff] }
 0x11f   : > { %3126 = vmatmul.mubr.f32.gmra.mrb[6].mxu0 %v8183_v55  ;;  %1593 = vmatprep.mubr.f32.mxu1 %v8184_v31  ;;  %v4512_v20 = vpack.c.bf16 %v8192_v46, %v8191_v48  ;;  %v8204_v48 = vld [vmem:[#allocation42_spill] sm:$0xff]  ;;  %v8205_v46 = vld [vmem:[#allocation43_spill] sm:$0xff] }
 0x120   : > { %3132 = vmatprep.mubr.f32.mxu0 %v8184_v31  ;;  %4503 = vmatpush1.bf16.msra.mxu1 %v4502_v19  ;;  %v8194_v19 = vld [vmem:[#allocation113_spill] sm:$0xff] }
 0x121   : > { %4695 = vmatpush1.bf16.msra.mxu0 %v8185_v30  ;;  %4505 = vmatprep.subr.bf16.mxu1 %v4504_v54  ;;  %v8196_v54 = vld [vmem:[#allocation36_spill] sm:$0xff]  ;;  %v8197_v30 = vld [vmem:[#allocation37_spill] sm:$0xff] }
 0x122   : > { %4697 = vmatprep.subr.bf16.mxu0 %v8186_v59  ;;  %1595 = vmatmul.mubr.f32.gmra.mrb[8].mxu1 %v8187_v10  ;;  %v4514_v34 = vpack.c.bf16 %v8197_v30, %v8196_v54  ;;  %v8200_v59 = vld [vmem:[#allocation40_spill] sm:$0xff]  ;;  %v8207_v54 = vld [vmem:[#allocation45_spill] sm:$0xff]  ;;  %v8208_v30 = vld [vmem:[#allocation46_spill] sm:$0xff] }
 0x123   : > { %3134 = vmatmul.mubr.f32.gmra.mrb[8].mxu0 %v8187_v10  ;;  %1601 = vmatprep.mubr.f32.mxu1 %v8188_v58 }
 0x124   : > { %3140 = vmatprep.mubr.f32.mxu0 %v8188_v58  ;;  %4507 = vmatpush1.bf16.msra.mxu1 %v4506_v4  ;;  %v8199_v4 = vld [vmem:[#allocation38_spill] sm:$0xff] }
 0x125   : > { %4699 = vmatpush1.bf16.msra.mxu0 %v8189_v61  ;;  %4509 = vmatprep.subr.bf16.mxu1 %v4508_v5  ;;  %v4516_v5 = vpack.c.bf16 %v8200_v59, %v8199_v4  ;;  %v8201_v61 = vld [vmem:[#allocation114_spill] sm:$0xff]  ;;  %v8209_v4 = vld [vmem:[#allocation119_spill] sm:$0xff]  ;;  %v8210_v59 = vld [vmem:[#allocation120_spill] sm:$0xff] }
 0x126   : > { %4701 = vmatprep.subr.bf16.mxu0 %v8190_v14  ;;  %1603 = vmatmul.mubr.f32.gmra.mrb[10].mxu1 %v8193_v33  ;;  %v8202_v14 = vld [vmem:[#allocation118_spill] sm:$0xff] }
 0x127   : > { %3142 = vmatmul.mubr.f32.gmra.mrb[10].mxu0 %v8193_v33  ;;  %1609 = vmatprep.mubr.f32.mxu1 %v8194_v19 }
 0x128   : > { %3148 = vmatprep.mubr.f32.mxu0 %v8194_v19  ;;  %4511 = vmatpush1.bf16.msra.mxu1 %v4510_v12  ;;  %v8203_v12 = vld [vmem:[#allocation35_spill] sm:$0xff] }
 0x129   : > { %4703 = vmatpush1.bf16.msra.mxu0 %v8195_v17  ;;  %4513 = vmatprep.subr.bf16.mxu1 %v4512_v20  ;;  %v4518_v17 = vpack.c.bf16 %v8205_v46, %v8204_v48  ;;  %v8206_v20 = vld [vmem:[#allocation39_spill] sm:$0xff] }
 0x12a   : > { %4705 = vmatprep.subr.bf16.mxu0 %v8198_v43  ;;  %1611 = vmatmul.mubr.f32.gmra.mrb[12].mxu1 %v8201_v61  ;;  %v4520_v43 = vpack.c.bf16 %v8208_v30, %v8207_v54  ;;  %v8215_v46 = vld [vmem:[#allocation51_spill] sm:$0xff]  ;;  %v8217_v30 = vld [vmem:[#allocation121_spill] sm:$0xff] }
 0x12b   : > { %3150 = vmatmul.mubr.f32.gmra.mrb[12].mxu0 %v8201_v61  ;;  %1617 = vmatprep.mubr.f32.mxu1 %v8202_v14 }
 0x12c   : > { %3156 = vmatprep.mubr.f32.mxu0 %v8202_v14  ;;  %4515 = vmatpush1.bf16.msra.mxu1 %v4514_v34  ;;  %v8211_v34 = vld [vmem:[#allocation41_spill] sm:$0xff] }
 0x12d   : > { %4707 = vmatpush1.bf16.msra.mxu0 %v8203_v12  ;;  %4517 = vmatprep.subr.bf16.mxu1 %v4516_v5  ;;  %v8212_v12 = vld [vmem:[#allocation47_spill] sm:$0xff]  ;;  %v8214_v5 = vld [vmem:[#allocation44_spill] sm:$0xff] }
 0x12e   : > { %4709 = vmatprep.subr.bf16.mxu0 %v8206_v20  ;;  %1619 = vmatmul.mubr.f32.gmra.mrb[14].mxu1 %v8209_v4  ;;  %v4522_v48 = vpack.c.bf16 %v8213_v63, %v8212_v12  ;;  %v8216_v20 = vld [vmem:[#allocation52_spill] sm:$0xff]  ;;  %v8223_v12 = vld [vmem:[#allocation127_spill] sm:$0xff] }
 0x12f   : > { %3158 = vmatmul.mubr.f32.gmra.mrb[14].mxu0 %v8209_v4  ;;  %1625 = vmatprep.mubr.f32.mxu1 %v8210_v59  ;;  %v4524_v54 = vpack.c.bf16 %v8216_v20, %v8215_v46  ;;  %v8225_v46 = vld [vmem:[#allocation53_spill] sm:$0xff]  ;;  %v8228_v20 = vld [vmem:[#allocation134_spill] sm:$0xff] }
 0x130   : > { %3164 = vmatprep.mubr.f32.mxu0 %v8210_v59  ;;  %4519 = vmatpush1.bf16.msra.mxu1 %v4518_v17  ;;  %v8219_v17 = vld [vmem:[#allocation48_spill] sm:$0xff] }
 0x131   : > { %4711 = vmatpush1.bf16.msra.mxu0 %v8211_v34  ;;  %4521 = vmatprep.subr.bf16.mxu1 %v4520_v43  ;;  %v8220_v34 = vld [vmem:[#allocation54_spill] sm:$0xff] }
 0x132   : > { %4713 = vmatprep.subr.bf16.mxu0 %v8214_v5  ;;  %1627 = vmatmul.mubr.f32.gmra.mrb[16].mxu1 %v8217_v30  ;;  %v4526_v63 = vpack.c.bf16 %v8221_v52, %v8220_v34  ;;  %v8222_v43 = vld [vmem:[#allocation50_spill] sm:$0xff]  ;;  %v8224_v5 = vld [vmem:[#allocation128_spill] sm:$0xff]  ;;  %v8227_v52 = vld [vmem:[#allocation129_spill] sm:$0xff] }
 0x133   : > { %3166 = vmatmul.mubr.f32.gmra.mrb[16].mxu0 %v8217_v30  ;;  %1633 = vmatprep.mubr.f32.mxu1 %v8218_v32  ;;  %v8254_v34 = vld [vmem:[#allocation152_spill] sm:$0xff] }
 0x134   : > { %3172 = vmatprep.mubr.f32.mxu0 %v8218_v32  ;;  %4523 = vmatpush1.bf16.msra.mxu1 %v4522_v48  ;;  %v8226_v48 = vld [vmem:[#allocation57_spill] sm:$0xff] }
 0x135   : > { %4715 = vmatpush1.bf16.msra.mxu0 %v8219_v17  ;;  %4525 = vmatprep.subr.bf16.mxu1 %v4524_v54  ;;  %v8229_v54 = vld [vmem:[#allocation59_spill] sm:$0xff] }
 0x136   : > { %4717 = vmatprep.subr.bf16.mxu0 %v8222_v43  ;;  %1635 = vmatmul.mubr.f32.gmra.mrb[18].mxu1 %v8223_v12  ;;  %v8253_v17 = vld [vmem:[#allocation151_spill] sm:$0xff]  ;;  %v8260_v43 = vld [vmem:[#allocation160_spill] sm:$0xff] }
 0x137   : > { %3174 = vmatmul.mubr.f32.gmra.mrb[18].mxu0 %v8223_v12  ;;  %1641 = vmatprep.mubr.f32.mxu1 %v8224_v5 }
 0x138   : > { %3180 = vmatprep.mubr.f32.mxu0 %v8224_v5  ;;  %4527 = vmatpush1.bf16.msra.mxu1 %v4526_v63  ;;  %v8257_v63 = vld [vmem:[#allocation153_spill] sm:$0xff] }
 0x139   : > { %4719 = vmatpush1.bf16.msra.mxu0 %v8225_v46  ;;  %4529 = vmatprep.subr.bf16.mxu1 %v4528_v56  ;;  %v8232_v56 = vld [vmem:[#allocation136_spill] sm:$0xff]  ;;  %v8263_v46 = vld [vmem:[#allocation167_spill] sm:$0xff] }
 0x13a   : > { %4721 = vmatprep.subr.bf16.mxu0 %v8226_v48  ;;  %1643 = vmatmul.mubr.f32.gmra.mrb[20].mxu1 %v8227_v52  ;;  %v8264_v48 = vld [vmem:[#allocation168_spill] sm:$0xff] }
 0x13b   : > { %3182 = vmatmul.mubr.f32.gmra.mrb[20].mxu0 %v8227_v52  ;;  %1649 = vmatprep.mubr.f32.mxu1 %v8228_v20 }
 0x13c   : > { %3188 = vmatprep.mubr.f32.mxu0 %v8228_v20  ;;  %4531 = vmatpush1.bf16.msra.mxu1 %v4530_v40  ;;  %v8241_v40 = vld [vmem:[#allocation143_spill] sm:$0xff] }
 0x13d   : > { %4723 = vmatpush1.bf16.msra.mxu0 %v8229_v54  ;;  %4533 = vmatprep.subr.bf16.mxu1 %v4532_v35  ;;  %v8242_v35 = vld [vmem:[#allocation144_spill] sm:$0xff]  ;;  %v8265_v54 = vld [vmem:[#allocation169_spill] sm:$0xff] }
 0x13e   : > { %4725 = vmatprep.subr.bf16.mxu0 %v8230_v3  ;;  %1651 = vmatmul.mubr.f32.gmra.mrb[22].mxu1 %v8231_v44  ;;  %v8266_v3 = vld [vmem:[#allocation61_spill] sm:$0xff] }
 0x13f   : > { %3190 = vmatmul.mubr.f32.gmra.mrb[22].mxu0 %v8231_v44  ;;  %1657 = vmatprep.mubr.f32.mxu1 %v8232_v56 }
 0x140   : > { %3196 = vmatprep.mubr.f32.mxu0 %v8232_v56  ;;  %4535 = vmatpush1.bf16.msra.mxu1 %v4534_v57  ;;  %v8247_v57 = vld [vmem:[#allocation145_spill] sm:$0xff] }
 0x141   : > { %4727 = vmatpush1.bf16.msra.mxu0 %v8233_v38  ;;  %4537 = vmatprep.subr.bf16.mxu1 %v4536_v18  ;;  %v8248_v18 = vld [vmem:[#allocation150_spill] sm:$0xff]  ;;  %v8267_v38 = vld [vmem:[#allocation171_spill] sm:$0xff] }
 0x142   : > { %4729 = vmatprep.subr.bf16.mxu0 %v8234_v16  ;;  %1659 = vmatmul.mubr.f32.gmra.mrb[24].mxu1 %v8235_v51  ;;  %v8268_v16 = vld [vmem:[#allocation172_spill] sm:$0xff] }
 0x143   : > { %3198 = vmatmul.mubr.f32.gmra.mrb[24].mxu0 %v8235_v51  ;;  %1665 = vmatprep.mubr.f32.mxu1 %v8236_v15 }
 0x144   : > { %3204 = vmatprep.mubr.f32.mxu0 %v8236_v15  ;;  %4539 = vmatpush1.bf16.msra.mxu1 %v8237_v42  ;;  %v8269_v42 = vld [vmem:[#allocation173_spill] sm:$0xff] }
 0x145   : > { %4731 = vmatpush1.bf16.msra.mxu0 %v8238_v47  ;;  %4541 = vmatprep.subr.bf16.mxu1 %v8239_v1  ;;  %v8270_v47 = vld [vmem:[#allocation67_spill] sm:$0xff] }
 0x146   : > { %4733 = vmatprep.subr.bf16.mxu0 %v8240_v29  ;;  %1667 = vmatmul.mubr.f32.gmra.mrb[26].mxu1 %v8241_v40  ;;  %v8271_v1 = vld [vmem:[#allocation175_spill] sm:$0xff]  ;;  %v8272_v29 = vld [vmem:[#allocation176_spill] sm:$0xff] }
 0x147   : > { %3206 = vmatmul.mubr.f32.gmra.mrb[26].mxu0 %v8241_v40  ;;  %1673 = vmatprep.mubr.f32.mxu1 %v8242_v35 }
 0x148   : > { %3212 = vmatprep.mubr.f32.mxu0 %v8242_v35  ;;  %4543 = vmatpush1.bf16.msra.mxu1 %v8243_v26  ;;  %v8273_v26 = vld [vmem:[#allocation177_spill] sm:$0xff] }
 0x149   : > { %4735 = vmatpush1.bf16.msra.mxu0 %v8244_v53  ;;  %4545 = vmatprep.subr.bf16.mxu1 %v8245_v22  ;;  %v8274_v53 = vld [vmem:[#allocation73_spill] sm:$0xff]  ;;  %v8275_v22 = vld [vmem:[#allocation179_spill] sm:$0xff] }
 0x14a   : > { %4737 = vmatprep.subr.bf16.mxu0 %v8246_v24  ;;  %1675 = vmatmul.mubr.f32.gmra.mrb[28].mxu1 %v8247_v57  ;;  %v8276_v24 = vld [vmem:[#allocation180_spill] sm:$0xff] }
 0x14b   : > { %3214 = vmatmul.mubr.f32.gmra.mrb[28].mxu0 %v8247_v57  ;;  %1681 = vmatprep.mubr.f32.mxu1 %v8248_v18 }
 0x14c   : > { %3220 = vmatprep.mubr.f32.mxu0 %v8248_v18  ;;  %4547 = vmatpush1.bf16.msra.mxu1 %v8249_v0  ;;  %v8277_v0 = vld [vmem:[#allocation181_spill] sm:$0xff] }
 0x14d   : > { %4739 = vmatpush1.bf16.msra.mxu0 %v8250_v41  ;;  %4549 = vmatprep.subr.bf16.mxu1 %v8251_v37  ;;  %v8278_v41 = vld [vmem:[#allocation77_spill] sm:$0xff] }
 0x14e   : > { %4741 = vmatprep.subr.bf16.mxu0 %v8252_v2  ;;  %1683 = vmatmul.mubr.f32.gmra.mrb[30].mxu1 %v8253_v17  ;;  %v8279_v37 = vld [vmem:[#allocation185_spill] sm:$0xff]  ;;  %v8280_v2 = vld [vmem:[#allocation186_spill] sm:$0xff] }
 0x14f   : > { %3222 = vmatmul.mubr.f32.gmra.mrb[30].mxu0 %v8253_v17  ;;  %1689 = vmatprep.mubr.f32.mxu1 %v8254_v34 }
 0x150   : > { %3228 = vmatprep.mubr.f32.mxu0 %v8254_v34  ;;  %4551 = vmatpush1.bf16.msra.mxu1 %v8255_v28  ;;  %v8281_v28 = vld [vmem:[#allocation187_spill] sm:$0xff] }
 0x151   : > { %4743 = vmatpush1.bf16.msra.mxu0 %v8256_v45  ;;  %v8282_v45 = vld [vmem:[#allocation83_spill] sm:$0xff] }
 0x152   : > { %1691 = vmatmul.mubr.f32.gmra.mrb[32].mxu1 %v8257_v63 }
 0x153   : > { %3230 = vmatmul.mubr.f32.gmra.mrb[32].mxu0 %v8257_v63  ;;  %1697 = vmatprep.mubr.f32.mxu1 %v8258_v13 }
 0x154   : > { %3236 = vmatprep.mubr.f32.mxu0 %v8258_v13 }
 0x156   : > { %1699 = vmatmul.mubr.f32.gmra.mrb[34].mxu1 %v8259_v21 }
 0x157   : > { %3238 = vmatmul.mubr.f32.gmra.mrb[34].mxu0 %v8259_v21  ;;  %1705 = vmatprep.mubr.f32.mxu1 %v8260_v43 }
 0x158   : > { %3244 = vmatprep.mubr.f32.mxu0 %v8260_v43 }
 0x15a   : > { %1707 = vmatmul.mubr.f32.gmra.mrb[36].mxu1 %v8261_v50 }
 0x15b   : > { %3246 = vmatmul.mubr.f32.gmra.mrb[36].mxu0 %v8261_v50  ;;  %1713 = vmatprep.mubr.f32.mxu1 %v8262_v62 }
 0x15c   : > { %3252 = vmatprep.mubr.f32.mxu0 %v8262_v62 }
 0x15e   : > { %1715 = vmatmul.mubr.f32.gmra.mrb[38].mxu1 %v8263_v46 }
 0x15f   : > { %3254 = vmatmul.mubr.f32.gmra.mrb[38].mxu0 %v8263_v46  ;;  %1721 = vmatprep.mubr.f32.mxu1 %v8264_v48 }
 0x160   : > { %3260 = vmatprep.mubr.f32.mxu0 %v8264_v48 }
 0x162   : > { %1723 = vmatmul.mubr.f32.gmra.mrb[40].mxu1 %v8265_v54 }
 0x163   : > { %3262 = vmatmul.mubr.f32.gmra.mrb[40].mxu0 %v8265_v54  ;;  %1729 = vmatprep.mubr.f32.mxu1 %v8266_v3 }
 0x164   : > { %3268 = vmatprep.mubr.f32.mxu0 %v8266_v3 }
 0x166   : > { %1731 = vmatmul.mubr.f32.gmra.mrb[42].mxu1 %v8267_v38 }
 0x167   : > { %3270 = vmatmul.mubr.f32.gmra.mrb[42].mxu0 %v8267_v38  ;;  %1737 = vmatprep.mubr.f32.mxu1 %v8268_v16 }
 0x168   : > { %3276 = vmatprep.mubr.f32.mxu0 %v8268_v16 }
 0x16a   : > { %1739 = vmatmul.mubr.f32.gmra.mrb[44].mxu1 %v8269_v42 }
 0x16b   : > { %3278 = vmatmul.mubr.f32.gmra.mrb[44].mxu0 %v8269_v42  ;;  %1745 = vmatprep.mubr.f32.mxu1 %v8270_v47 }
 0x16c   : > { %3284 = vmatprep.mubr.f32.mxu0 %v8270_v47 }
 0x16e   : > { %1747 = vmatmul.mubr.f32.gmra.mrb[46].mxu1 %v8271_v1 }
 0x16f   : > { %3286 = vmatmul.mubr.f32.gmra.mrb[46].mxu0 %v8271_v1  ;;  %1753 = vmatprep.mubr.f32.mxu1 %v8272_v29 }
 0x170   : > { %3292 = vmatprep.mubr.f32.mxu0 %v8272_v29 }
 0x172   : > { %1755 = vmatmul.mubr.f32.gmra.mrb[48].mxu1 %v8273_v26 }
 0x173   : > { %3294 = vmatmul.mubr.f32.gmra.mrb[48].mxu0 %v8273_v26  ;;  %1761 = vmatprep.mubr.f32.mxu1 %v8274_v53 }
 0x174   : > { %3300 = vmatprep.mubr.f32.mxu0 %v8274_v53 }
 0x176   : > { %1763 = vmatmul.mubr.f32.gmra.mrb[50].mxu1 %v8275_v22 }
 0x177   : > { %3302 = vmatmul.mubr.f32.gmra.mrb[50].mxu0 %v8275_v22  ;;  %1769 = vmatprep.mubr.f32.mxu1 %v8276_v24 }
 0x178   : > { %3308 = vmatprep.mubr.f32.mxu0 %v8276_v24 }
 0x17a   : > { %1771 = vmatmul.mubr.f32.gmra.mrb[52].mxu1 %v8277_v0 }
 0x17b   : > { %3310 = vmatmul.mubr.f32.gmra.mrb[52].mxu0 %v8277_v0  ;;  %1777 = vmatprep.mubr.f32.mxu1 %v8278_v41 }
 0x17c   : > { %3316 = vmatprep.mubr.f32.mxu0 %v8278_v41 }
 0x17e   : > { %1779 = vmatmul.mubr.f32.gmra.mrb[54].mxu1 %v8279_v37 }
 0x17f   : > { %3318 = vmatmul.mubr.f32.gmra.mrb[54].mxu0 %v8279_v37  ;;  %1785 = vmatprep.mubr.f32.mxu1 %v8280_v2 }
 0x180   : > { %3324 = vmatprep.mubr.f32.mxu0 %v8280_v2 }
 0x182   : > { %1787 = vmatmul.mubr.f32.gmra.mrb[56].mxu1 %v8281_v28 }
 0x183   : > { %3326 = vmatmul.mubr.f32.gmra.mrb[56].mxu0 %v8281_v28  ;;  %1793 = vmatprep.mubr.f32.mxu1 %v8282_v45 }
 0x184   : > { %3332 = vmatprep.mubr.f32.mxu0 %v8282_v45  ;;  %v8286_v45 = vld [vmem:[#allocation92_spill] sm:$0xff] }
 0x186   : > { %1795 = vmatmul.mubr.f32.gmra.mrb[58].mxu1 %v8283_v6 }
 0x187   : > { %3334 = vmatmul.mubr.f32.gmra.mrb[58].mxu0 %v8283_v6  ;;  %1801 = vmatprep.mubr.f32.mxu1 %v8284_v8  ;;  %v8287_v6 = vld [vmem:[#allocation93_spill] sm:$0xff] }
 0x188   : > { %3340 = vmatprep.mubr.f32.mxu0 %v8284_v8  ;;  %v8288_v8 = vld [vmem:[#allocation95_spill] sm:$0xff] }
 0x18a   : > { %1803 = vmatmul.mubr.f32.gmra.mrb[60].mxu1 %v8285_v23 }
 0x18b   : > { %3342 = vmatmul.mubr.f32.gmra.mrb[60].mxu0 %v8285_v23  ;;  %1809 = vmatprep.mubr.f32.mxu1 %v6802_v49  ;;  %v8289_v23 = vld [vmem:[#allocation99_spill] sm:$0xff] }
 0x18c   : > { %3348 = vmatprep.mubr.f32.mxu0 %v6802_v49  ;;  %v8290_v49 = vld [vmem:[#allocation100_spill] sm:$0xff] }
 0x18e   : > { %1811 = vmatmul.mubr.f32.gmra.mrb[62].mxu1 %v6804_v11 }
 0x18f   : > { %3350 = vmatmul.mubr.f32.gmra.mrb[62].mxu0 %v6804_v11  ;;  %2011 = vmatprep.mubr.f32.mxu1 %v8286_v45  ;;  %v8291_v11 = vld [vmem:[#allocation101_spill] sm:$0xff] }
 0x190   : > { %3485 = vmatprep.mubr.f32.mxu0 %v8159_v9  ;;  %v8292_v9 = vld [vmem:[#allocation103_spill] sm:$0xff]  ;;  %v8355_v45 = vld [vmem:[#allocation193_spill] sm:$0xff] }
 0x192   : > { %2014 = vmatmul.mubr.f32.vlgmr.msra.gmra.mrb[0].mxu1 %v8287_v6  ;;  %v8293_v6 = vld [vmem:[#allocation107_spill] sm:$0xff] }
 0x193   : > { %3487 = vmatmul.mubr.f32.vlgmr.msra.gmra.mrb[0].mxu0 %v8164_v60  ;;  %2021 = vmatprep.mubr.f32.mxu1 %v8288_v8  ;;  %v8294_v8 = vld [vmem:[#allocation108_spill] sm:$0xff] }
 0x194   : > { %3493 = vmatprep.mubr.f32.mxu0 %v8166_v27  ;;  %v8298_v60 = vld [vmem:[#allocation116_spill] sm:$0xff]  ;;  %v8299_v27 = vld [vmem:[#allocation117_spill] sm:$0xff] }
 0x196   : > { %2024 = vmatmul.mubr.f32.gmra.mrb[2].mxu1 %v8289_v23  ;;  %v8295_v23 = vld [vmem:[#allocation109_spill] sm:$0xff] }
 0x197   : > { %3495 = vmatmul.mubr.f32.gmra.mrb[2].mxu0 %v8172_v36  ;;  %2031 = vmatprep.mubr.f32.mxu1 %v8290_v49  ;;  %v8296_v49 = vld [vmem:[#allocation112_spill] sm:$0xff]  ;;  %v8300_v36 = vld [vmem:[#allocation122_spill] sm:$0xff] }
 0x198   : > { %3501 = vmatprep.mubr.f32.mxu0 %v8173_v25  ;;  %v8301_v25 = vld [vmem:[#allocation123_spill] sm:$0xff] }
 0x19a   : > { %2034 = vmatmul.mubr.f32.gmra.mrb[4].mxu1 %v8291_v11  ;;  %v8297_v11 = vld [vmem:[#allocation115_spill] sm:$0xff] }
 0x19b   : > { %3503 = vmatmul.mubr.f32.gmra.mrb[4].mxu0 %v8178_v39  ;;  %2041 = vmatprep.mubr.f32.mxu1 %v8292_v9  ;;  %v8302_v39 = vld [vmem:[#allocation124_spill] sm:$0xff]  ;;  %v3938_v9 = vlaneseq }
 0x19c   : > { %3509 = vmatprep.mubr.f32.mxu0 %v8179_v7  ;;  %v8303_v7 = vld [vmem:[#allocation125_spill] sm:$0xff] }
 0x19e   : > { %2044 = vmatmul.mubr.f32.gmra.mrb[6].mxu1 %v8293_v6  ;;  %v3939_v6 = vshrl.u32 %v3938_v9, 7 }
 0x19f   : > { %3511 = vmatmul.mubr.f32.gmra.mrb[6].mxu0 %v8183_v55  ;;  %2051 = vmatprep.mubr.f32.mxu1 %v8294_v8  ;;  %v8304_v55 = vld [vmem:[#allocation130_spill] sm:$0xff] }
 0x1a0   : > { %3517 = vmatprep.mubr.f32.mxu0 %v8184_v31  ;;  %v8305_v31 = vld [vmem:[#allocation131_spill] sm:$0xff]  ;;  %v3940_v8 = vsub.s32 0, %v3939_v6 }
 0x1a2   : > { %2054 = vmatmul.mubr.f32.gmra.mrb[8].mxu1 %v8295_v23  ;;  %v3936_v23 = vld [vmem:[%s271_s12] sm:$0x3] }
 0x1a3   : > { %3519 = vmatmul.mubr.f32.gmra.mrb[8].mxu0 %v8187_v10  ;;  %2061 = vmatprep.mubr.f32.mxu1 %v8296_v49  ;;  %v8306_v10 = vld [vmem:[#allocation132_spill] sm:$0xff]  ;;  %v3944_v49 = vsub.s32 1, %v3939_v6 }
 0x1a4   : > { %3525 = vmatprep.mubr.f32.mxu0 %v8188_v58  ;;  %v8307_v58 = vld [vmem:[#allocation133_spill] sm:$0xff] }
 0x1a6   : > { %2064 = vmatmul.mubr.f32.gmra.mrb[10].mxu1 %v8297_v11  ;;  %v7208_v11 = vrot.slane %v3936_v23, %v3940_v8 }
 0x1a7   : > { %3527 = vmatmul.mubr.f32.gmra.mrb[10].mxu0 %v8193_v33  ;;  %2071 = vmatprep.mubr.f32.mxu1 %v8298_v60  ;;  %v8308_v33 = vld [vmem:[#allocation138_spill] sm:$0xff] }
 0x1a8   : > { %3533 = vmatprep.mubr.f32.mxu0 %v8194_v19  ;;  %v8309_v19 = vld [vmem:[#allocation139_spill] sm:$0xff] }
 0x1aa   : > { %2074 = vmatmul.mubr.f32.gmra.mrb[12].mxu1 %v8299_v27 }
 0x1ab   : > { %3535 = vmatmul.mubr.f32.gmra.mrb[12].mxu0 %v8201_v61  ;;  %2081 = vmatprep.mubr.f32.mxu1 %v8300_v36  ;;  %v8311_v61 = vld [vmem:[#allocation141_spill] sm:$0xff]  ;;  %v7210_v36 = vrot.slane %v3936_v23, %v3944_v49 }
 0x1ac   : > { %3541 = vmatprep.mubr.f32.mxu0 %v8202_v14  ;;  %v8312_v14 = vld [vmem:[#allocation146_spill] sm:$0xff] }
 0x1ae   : > { %2084 = vmatmul.mubr.f32.gmra.mrb[14].mxu1 %v8301_v25 }
 0x1af   : > { %3543 = vmatmul.mubr.f32.gmra.mrb[14].mxu0 %v8209_v4  ;;  %2091 = vmatprep.mubr.f32.mxu1 %v8302_v39  ;;  %v8313_v4 = vld [vmem:[#allocation147_spill] sm:$0xff] }
 0x1b0   : > { %3549 = vmatprep.mubr.f32.mxu0 %v8210_v59  ;;  %v8314_v59 = vld [vmem:[#allocation148_spill] sm:$0xff] }
 0x1b2   : > { %2094 = vmatmul.mubr.f32.gmra.mrb[16].mxu1 %v8303_v7 }
 0x1b3   : > { %3551 = vmatmul.mubr.f32.gmra.mrb[16].mxu0 %v8217_v30  ;;  %2101 = vmatprep.mubr.f32.mxu1 %v8304_v55  ;;  %v8315_v30 = vld [vmem:[#allocation149_spill] sm:$0xff] }
 0x1b4   : > { %3557 = vmatprep.mubr.f32.mxu0 %v8218_v32  ;;  %v8310_v32 = vld [vmem:[#allocation140_spill] sm:$0xff] }
 0x1b6   : > { %2104 = vmatmul.mubr.f32.gmra.mrb[18].mxu1 %v8305_v31 }
 0x1b7   : > { %3559 = vmatmul.mubr.f32.gmra.mrb[18].mxu0 %v8223_v12  ;;  %2111 = vmatprep.mubr.f32.mxu1 %v8306_v10  ;;  %v8316_v12 = vld [vmem:[#allocation154_spill] sm:$0xff] }
 0x1b8   : > { %3565 = vmatprep.mubr.f32.mxu0 %v8224_v5  ;;  %v8317_v5 = vld [vmem:[#allocation155_spill] sm:$0xff] }
 0x1ba   : > { %2114 = vmatmul.mubr.f32.gmra.mrb[20].mxu1 %v8307_v58 }
 0x1bb   : > { %3567 = vmatmul.mubr.f32.gmra.mrb[20].mxu0 %v8227_v52  ;;  %2121 = vmatprep.mubr.f32.mxu1 %v8308_v33  ;;  %v8318_v52 = vld [vmem:[#allocation156_spill] sm:$0xff] }
 0x1bc   : > { %3573 = vmatprep.mubr.f32.mxu0 %v8228_v20  ;;  %v8319_v20 = vld [vmem:[#allocation157_spill] sm:$0xff] }
 0x1be   : > { %2124 = vmatmul.mubr.f32.gmra.mrb[22].mxu1 %v8309_v19 }
 0x1bf   : > { %3575 = vmatmul.mubr.f32.gmra.mrb[22].mxu0 %v8231_v44  ;;  %2131 = vmatprep.mubr.f32.mxu1 %v8310_v32  ;;  %v8320_v44 = vld [vmem:[#allocation162_spill] sm:$0xff] }
 0x1c0   : > { %3581 = vmatprep.mubr.f32.mxu0 %v8232_v56  ;;  %v8321_v56 = vld [vmem:[#allocation163_spill] sm:$0xff] }
 0x1c2   : > { %2134 = vmatmul.mubr.f32.gmra.mrb[24].mxu1 %v8311_v61 }
 0x1c3   : > { %3583 = vmatmul.mubr.f32.gmra.mrb[24].mxu0 %v8235_v51  ;;  %2141 = vmatprep.mubr.f32.mxu1 %v8312_v14  ;;  %v8322_v51 = vld [vmem:[#allocation164_spill] sm:$0xff] }
 0x1c4   : > { %3589 = vmatprep.mubr.f32.mxu0 %v8236_v15  ;;  %v8323_v15 = vld [vmem:[#allocation165_spill] sm:$0xff] }
 0x1c6   : > { %2144 = vmatmul.mubr.f32.gmra.mrb[26].mxu1 %v8313_v4 }
 0x1c7   : > { %3591 = vmatmul.mubr.f32.gmra.mrb[26].mxu0 %v8241_v40  ;;  %2151 = vmatprep.mubr.f32.mxu1 %v8314_v59  ;;  %v8324_v40 = vld [vmem:[#allocation170_spill] sm:$0xff] }
 0x1c8   : > { %3597 = vmatprep.mubr.f32.mxu0 %v8242_v35  ;;  %v8325_v35 = vld [vmem:[#allocation56_spill] sm:$0xff] }
 0x1ca   : > { %2154 = vmatmul.mubr.f32.gmra.mrb[28].mxu1 %v8315_v30 }
 0x1cb   : > { %3599 = vmatmul.mubr.f32.gmra.mrb[28].mxu0 %v8247_v57  ;;  %2161 = vmatprep.mubr.f32.mxu1 %v8316_v12  ;;  %v8326_v57 = vld [vmem:[#allocation58_spill] sm:$0xff] }
 0x1cc   : > { %3605 = vmatprep.mubr.f32.mxu0 %v8248_v18  ;;  %v8327_v18 = vld [vmem:[#allocation60_spill] sm:$0xff] }
 0x1ce   : > { %2164 = vmatmul.mubr.f32.gmra.mrb[30].mxu1 %v8317_v5 }
 0x1cf   : > { %3607 = vmatmul.mubr.f32.gmra.mrb[30].mxu0 %v8253_v17  ;;  %2171 = vmatprep.mubr.f32.mxu1 %v8318_v52  ;;  %v8328_v17 = vld [vmem:[#allocation174_spill] sm:$0xff] }
 0x1d0   : > { %3613 = vmatprep.mubr.f32.mxu0 %v8254_v34  ;;  %v8329_v34 = vld [vmem:[#allocation62_spill] sm:$0xff] }
 0x1d2   : > { %2174 = vmatmul.mubr.f32.gmra.mrb[32].mxu1 %v8319_v20 }
 0x1d3   : > { %3615 = vmatmul.mubr.f32.gmra.mrb[32].mxu0 %v8257_v63  ;;  %2181 = vmatprep.mubr.f32.mxu1 %v8320_v44  ;;  %v8330_v63 = vld [vmem:[#allocation64_spill] sm:$0xff] }
 0x1d4   : > { %3621 = vmatprep.mubr.f32.mxu0 %v8258_v13  ;;  %v8331_v13 = vld [vmem:[#allocation65_spill] sm:$0xff] }
 0x1d6   : > { %2184 = vmatmul.mubr.f32.gmra.mrb[34].mxu1 %v8321_v56 }
 0x1d7   : > { %3623 = vmatmul.mubr.f32.gmra.mrb[34].mxu0 %v8259_v21  ;;  %2191 = vmatprep.mubr.f32.mxu1 %v8322_v51  ;;  %v8332_v21 = vld [vmem:[#allocation178_spill] sm:$0xff] }
 0x1d8   : > { %3629 = vmatprep.mubr.f32.mxu0 %v8260_v43  ;;  %v8333_v43 = vld [vmem:[#allocation69_spill] sm:$0xff] }
 0x1da   : > { %2194 = vmatmul.mubr.f32.gmra.mrb[36].mxu1 %v8323_v15 }
 0x1db   : > { %3631 = vmatmul.mubr.f32.gmra.mrb[36].mxu0 %v8261_v50  ;;  %2201 = vmatprep.mubr.f32.mxu1 %v8324_v40  ;;  %v8334_v50 = vld [vmem:[#allocation70_spill] sm:$0xff] }
 0x1dc   : > { %3637 = vmatprep.mubr.f32.mxu0 %v8262_v62  ;;  %v8335_v62 = vld [vmem:[#allocation72_spill] sm:$0xff] }
 0x1de   : > { %2204 = vmatmul.mubr.f32.gmra.mrb[38].mxu1 %v8325_v35 }
 0x1df   : > { %3639 = vmatmul.mubr.f32.gmra.mrb[38].mxu0 %v8263_v46  ;;  %2211 = vmatprep.mubr.f32.mxu1 %v8326_v57  ;;  %v8336_v46 = vld [vmem:[#allocation182_spill] sm:$0xff] }
 0x1e0   : > { %3645 = vmatprep.mubr.f32.mxu0 %v8264_v48  ;;  %v8337_v48 = vld [vmem:[#allocation75_spill] sm:$0xff] }
 0x1e2   : > { %2214 = vmatmul.mubr.f32.gmra.mrb[40].mxu1 %v8327_v18 }
 0x1e3   : > { %3647 = vmatmul.mubr.f32.gmra.mrb[40].mxu0 %v8265_v54  ;;  %2221 = vmatprep.mubr.f32.mxu1 %v8328_v17  ;;  %v8338_v54 = vld [vmem:[#allocation183_spill] sm:$0xff] }
 0x1e4   : > { %3653 = vmatprep.mubr.f32.mxu0 %v8266_v3  ;;  %v8339_v3 = vld [vmem:[#allocation184_spill] sm:$0xff] }
 0x1e6   : > { %2224 = vmatmul.mubr.f32.gmra.mrb[42].mxu1 %v8329_v34 }
 0x1e7   : > { %3655 = vmatmul.mubr.f32.gmra.mrb[42].mxu0 %v8267_v38  ;;  %2231 = vmatprep.mubr.f32.mxu1 %v8330_v63  ;;  %v8340_v38 = vld [vmem:[#allocation188_spill] sm:$0xff] }
 0x1e8   : > { %3661 = vmatprep.mubr.f32.mxu0 %v8268_v16  ;;  %v8341_v16 = vld [vmem:[#allocation78_spill] sm:$0xff] }
 0x1ea   : > { %2234 = vmatmul.mubr.f32.gmra.mrb[44].mxu1 %v8331_v13 }
 0x1eb   : > { %3663 = vmatmul.mubr.f32.gmra.mrb[44].mxu0 %v8269_v42  ;;  %2241 = vmatprep.mubr.f32.mxu1 %v8332_v21  ;;  %v8342_v42 = vld [vmem:[#allocation80_spill] sm:$0xff] }
 0x1ec   : > { %3669 = vmatprep.mubr.f32.mxu0 %v8270_v47  ;;  %v8343_v47 = vld [vmem:[#allocation82_spill] sm:$0xff] }
 0x1ee   : > { %2244 = vmatmul.mubr.f32.gmra.mrb[46].mxu1 %v8333_v43 }
 0x1ef   : > { %3671 = vmatmul.mubr.f32.gmra.mrb[46].mxu0 %v8271_v1  ;;  %2251 = vmatprep.mubr.f32.mxu1 %v8334_v50  ;;  %v8344_v1 = vld [vmem:[#allocation192_spill] sm:$0xff] }
 0x1f0   : > { %3677 = vmatprep.mubr.f32.mxu0 %v8272_v29  ;;  %v8345_v29 = vld [vmem:[#allocation83_spill] sm:$0xff] }
 0x1f2   : > { %2254 = vmatmul.mubr.f32.gmra.mrb[48].mxu1 %v8335_v62 }
 0x1f3   : > { %3679 = vmatmul.mubr.f32.gmra.mrb[48].mxu0 %v8273_v26  ;;  %2261 = vmatprep.mubr.f32.mxu1 %v8336_v46  ;;  %v8346_v26 = vld [vmem:[#allocation84_spill] sm:$0xff] }
 0x1f4   : > { %3685 = vmatprep.mubr.f32.mxu0 %v8274_v53  ;;  %v8347_v53 = vld [vmem:[#allocation189_spill] sm:$0xff] }
 0x1f6   : > { %2264 = vmatmul.mubr.f32.gmra.mrb[50].mxu1 %v8337_v48 }
 0x1f7   : > { %3687 = vmatmul.mubr.f32.gmra.mrb[50].mxu0 %v8275_v22  ;;  %2271 = vmatprep.mubr.f32.mxu1 %v8338_v54  ;;  %v8348_v22 = vld [vmem:[#allocation86_spill] sm:$0xff] }
 0x1f8   : > { %3693 = vmatprep.mubr.f32.mxu0 %v8276_v24  ;;  %v8349_v24 = vld [vmem:[#allocation190_spill] sm:$0xff] }
 0x1fa   : > { %2274 = vmatmul.mubr.f32.gmra.mrb[52].mxu1 %v8339_v3 }
 0x1fb   : > { %3695 = vmatmul.mubr.f32.gmra.mrb[52].mxu0 %v8277_v0  ;;  %2281 = vmatprep.mubr.f32.mxu1 %v8340_v38  ;;  %v8350_v0 = vld [vmem:[#allocation88_spill] sm:$0xff] }
 0x1fc   : > { %3701 = vmatprep.mubr.f32.mxu0 %v8278_v41  ;;  %v8351_v41 = vld [vmem:[#allocation191_spill] sm:$0xff] }
 0x1fe   : > { %2284 = vmatmul.mubr.f32.gmra.mrb[54].mxu1 %v8341_v16 }
 0x1ff   : > { %3703 = vmatmul.mubr.f32.gmra.mrb[54].mxu0 %v8279_v37  ;;  %2291 = vmatprep.mubr.f32.mxu1 %v8342_v42  ;;  %v8352_v37 = vld [vmem:[#allocation194_spill] sm:$0xff] }
 0x200   : > { %3709 = vmatprep.mubr.f32.mxu0 %v8280_v2  ;;  %v8353_v2 = vld [vmem:[#allocation91_spill] sm:$0xff] }
 0x202   : > { %2294 = vmatmul.mubr.f32.gmra.mrb[56].mxu1 %v8343_v47 }
 0x203   : > { %3711 = vmatmul.mubr.f32.gmra.mrb[56].mxu0 %v8281_v28  ;;  %2301 = vmatprep.mubr.f32.mxu1 %v8344_v1  ;;  %v8354_v28 = vld [vmem:[#allocation8_spill] sm:$0xff] }
 0x204   : > { %3717 = vmatprep.mubr.f32.mxu0 %v8345_v29 }
 0x206   : > { %2304 = vmatmul.mubr.f32.gmra.mrb[58].mxu1 %v8346_v26 }
 0x207   : > { %3719 = vmatmul.mubr.f32.gmra.mrb[58].mxu0 %v8347_v53  ;;  %2311 = vmatprep.mubr.f32.mxu1 %v8348_v22 }
 0x208   : > { %3725 = vmatprep.mubr.f32.mxu0 %v8349_v24 }
 0x20a   : > { %2314 = vmatmul.mubr.f32.gmra.mrb[60].mxu1 %v8350_v0 }
 0x20b   : > { %3727 = vmatmul.mubr.f32.gmra.mrb[60].mxu0 %v8351_v41  ;;  %2321 = vmatprep.mubr.f32.mxu1 %v8352_v37 }
 0x20c   : > { %3733 = vmatprep.mubr.f32.mxu0 %v8353_v2 }
 0x20e   : > { %2324 = vmatmul.mubr.f32.gmra.mrb[62].mxu1 %v8354_v28 }
 0x20f   : > { %3735 = vmatmul.mubr.f32.gmra.mrb[62].mxu0 %v8355_v45 }
 0x265   : > { %v2015_v60 = vpop.f32.mrb[0].mxu1 }
 0x266   : > { %v3488_v27 = vpop.f32.mrb[0].mxu0  ;;  %v2017_v39 = vpop.f32.mrb[1].mxu1 }
 0x267   : > { %v4744_v25 = vadd.f32 %v3488_v27, %v2015_v60  ;;  %v3490_v7 = vpop.f32.mrb[1].mxu0 }
 0x268   : > { %v4745_v55 = vadd.f32 %v3490_v7, %v2017_v39 }
 0x269   : > { %v3948_v31 = vadd.f32 %v4744_v25, %v7208_v11  ;;  %v2025_v58 = vpop.f32.mrb[2].mxu1 }
 0x26a   : > { %v3949_v10 = vadd.f32 %v4745_v55, %v7210_v36  ;;  %v3496_v33 = vpop.f32.mrb[2].mxu0  ;;  %v2027_v32 = vpop.f32.mrb[3].mxu1 }
 0x26b   : > { %4012 = vst [vmem:[%s7215_s18] sm:$0xff] %v3948_v31  ;;  %v4746_v19 = vadd.f32 %v3496_v33, %v2025_v58  ;;  %v3498_v61 = vpop.f32.mrb[3].mxu0 }
 0x26c   : > { %4013 = vst [vmem:[%s7215_s18 + $0x8] sm:$0xff] %v3949_v10  ;;  %v4747_v14 = vadd.f32 %v3498_v61, %v2027_v32 }
 0x26d   : > { %v3950_v4 = vadd.f32 %v4746_v19, %v7208_v11  ;;  %v2035_v30 = vpop.f32.mrb[4].mxu1 }
 0x26e   : > { %v3951_v59 = vadd.f32 %v4747_v14, %v7210_v36  ;;  %v3504_v12 = vpop.f32.mrb[4].mxu0  ;;  %v2037_v52 = vpop.f32.mrb[5].mxu1 }
 0x26f   : > { %4014 = vst [vmem:[%s7215_s18 + $0x10] sm:$0xff] %v3950_v4  ;;  %v4748_v5 = vadd.f32 %v3504_v12, %v2035_v30  ;;  %v3506_v20 = vpop.f32.mrb[5].mxu0 }
 0x270   : > { %4015 = vst [vmem:[%s7215_s18 + $0x18] sm:$0xff] %v3951_v59  ;;  %v4749_v44 = vadd.f32 %v3506_v20, %v2037_v52 }
 0x271   : > { %v3952_v56 = vadd.f32 %v4748_v5, %v7208_v11  ;;  %v2045_v15 = vpop.f32.mrb[6].mxu1 }
 0x272   : > { %v3953_v51 = vadd.f32 %v4749_v44, %v7210_v36  ;;  %v3512_v40 = vpop.f32.mrb[6].mxu0  ;;  %v2047_v57 = vpop.f32.mrb[7].mxu1 }
 0x273   : > { %4016 = vst [vmem:[%s7215_s18 + $0x20] sm:$0xff] %v3952_v56  ;;  %v4750_v35 = vadd.f32 %v3512_v40, %v2045_v15  ;;  %v3514_v18 = vpop.f32.mrb[7].mxu0 }
 0x274   : > { %4017 = vst [vmem:[%s7215_s18 + $0x28] sm:$0xff] %v3953_v51  ;;  %v4751_v17 = vadd.f32 %v3514_v18, %v2047_v57 }
 0x275   : > { %v3954_v34 = vadd.f32 %v4750_v35, %v7208_v11  ;;  %v2055_v13 = vpop.f32.mrb[8].mxu1 }
 0x276   : > { %v3955_v63 = vadd.f32 %v4751_v17, %v7210_v36  ;;  %v3520_v21 = vpop.f32.mrb[8].mxu0  ;;  %v2057_v50 = vpop.f32.mrb[9].mxu1 }
 0x277   : > { %4018 = vst [vmem:[%s7215_s18 + $0x30] sm:$0xff] %v3954_v34  ;;  %v4752_v43 = vadd.f32 %v3520_v21, %v2055_v13  ;;  %v3522_v62 = vpop.f32.mrb[9].mxu0 }
 0x278   : > { %4019 = vst [vmem:[%s7215_s18 + $0x38] sm:$0xff] %v3955_v63  ;;  %v4753_v46 = vadd.f32 %v3522_v62, %v2057_v50 }
 0x279   : > { %v3956_v48 = vadd.f32 %v4752_v43, %v7208_v11  ;;  %v2065_v3 = vpop.f32.mrb[10].mxu1 }
 0x27a   : > { %v3957_v54 = vadd.f32 %v4753_v46, %v7210_v36  ;;  %v3528_v38 = vpop.f32.mrb[10].mxu0  ;;  %v2067_v42 = vpop.f32.mrb[11].mxu1 }
 0x27b   : > { %4020 = vst [vmem:[%s7215_s18 + $0x40] sm:$0xff] %v3956_v48  ;;  %v4754_v16 = vadd.f32 %v3528_v38, %v2065_v3  ;;  %v3530_v47 = vpop.f32.mrb[11].mxu0 }
 0x27c   : > { %4021 = vst [vmem:[%s7215_s18 + $0x48] sm:$0xff] %v3957_v54  ;;  %v4755_v1 = vadd.f32 %v3530_v47, %v2067_v42 }
 0x27d   : > { %v3958_v29 = vadd.f32 %v4754_v16, %v7208_v11  ;;  %v2075_v53 = vpop.f32.mrb[12].mxu1 }
 0x27e   : > { %v3959_v26 = vadd.f32 %v4755_v1, %v7210_v36  ;;  %v3536_v22 = vpop.f32.mrb[12].mxu0  ;;  %v2077_v0 = vpop.f32.mrb[13].mxu1 }
 0x27f   : > { %4022 = vst [vmem:[%s7215_s18 + $0x50] sm:$0xff] %v3958_v29  ;;  %v4756_v24 = vadd.f32 %v3536_v22, %v2075_v53  ;;  %v3538_v41 = vpop.f32.mrb[13].mxu0 }
 0x280   : > { %4023 = vst [vmem:[%s7215_s18 + $0x58] sm:$0xff] %v3959_v26  ;;  %v4757_v37 = vadd.f32 %v3538_v41, %v2077_v0 }
 0x281   : > { %v3960_v2 = vadd.f32 %v4756_v24, %v7208_v11  ;;  %v2085_v45 = vpop.f32.mrb[14].mxu1 }
 0x282   : > { %v3961_v28 = vadd.f32 %v4757_v37, %v7210_v36  ;;  %v3544_v9 = vpop.f32.mrb[14].mxu0  ;;  %v2087_v8 = vpop.f32.mrb[15].mxu1 }
 0x283   : > { %4024 = vst [vmem:[%s7215_s18 + $0x60] sm:$0xff] %v3960_v2  ;;  %v4758_v6 = vadd.f32 %v3544_v9, %v2085_v45  ;;  %v3546_v23 = vpop.f32.mrb[15].mxu0 }
 0x284   : > { %4025 = vst [vmem:[%s7215_s18 + $0x68] sm:$0xff] %v3961_v28  ;;  %v4759_v49 = vadd.f32 %v3546_v23, %v2087_v8 }
 0x285   : > { %v3962_v60 = vadd.f32 %v4758_v6, %v7208_v11  ;;  %v2095_v25 = vpop.f32.mrb[16].mxu1 }
 0x286   : > { %v3963_v27 = vadd.f32 %v4759_v49, %v7210_v36  ;;  %v3552_v39 = vpop.f32.mrb[16].mxu0  ;;  %v2097_v55 = vpop.f32.mrb[17].mxu1 }
 0x287   : > { %4026 = vst [vmem:[%s7215_s18 + $0x70] sm:$0xff] %v3962_v60  ;;  %v4760_v7 = vadd.f32 %v3552_v39, %v2095_v25  ;;  %v3554_v31 = vpop.f32.mrb[17].mxu0 }
 0x288   : > { %4027 = vst [vmem:[%s7215_s18 + $0x78] sm:$0xff] %v3963_v27  ;;  %v4761_v10 = vadd.f32 %v3554_v31, %v2097_v55 }
 0x289   : > { %v3964_v58 = vadd.f32 %v4760_v7, %v7208_v11  ;;  %v2105_v19 = vpop.f32.mrb[18].mxu1 }
 0x28a   : > { %v3965_v33 = vadd.f32 %v4761_v10, %v7210_v36  ;;  %v3560_v32 = vpop.f32.mrb[18].mxu0  ;;  %v2107_v14 = vpop.f32.mrb[19].mxu1 }
 0x28b   : > { %4028 = vst [vmem:[%s7215_s18 + $0x80] sm:$0xff] %v3964_v58  ;;  %v4762_v61 = vadd.f32 %v3560_v32, %v2105_v19  ;;  %v3562_v4 = vpop.f32.mrb[19].mxu0 }
 0x28c   : > { %4029 = vst [vmem:[%s7215_s18 + $0x88] sm:$0xff] %v3965_v33  ;;  %v4763_v59 = vadd.f32 %v3562_v4, %v2107_v14 }
 0x28d   : > { %v3966_v30 = vadd.f32 %v4762_v61, %v7208_v11  ;;  %v2115_v5 = vpop.f32.mrb[20].mxu1 }
 0x28e   : > { %v3967_v12 = vadd.f32 %v4763_v59, %v7210_v36  ;;  %v3568_v52 = vpop.f32.mrb[20].mxu0  ;;  %v2117_v44 = vpop.f32.mrb[21].mxu1 }
 0x28f   : > { %4030 = vst [vmem:[%s7215_s18 + $0x90] sm:$0xff] %v3966_v30  ;;  %v4764_v20 = vadd.f32 %v3568_v52, %v2115_v5  ;;  %v3570_v56 = vpop.f32.mrb[21].mxu0 }
 0x290   : > { %4031 = vst [vmem:[%s7215_s18 + $0x98] sm:$0xff] %v3967_v12  ;;  %v4765_v51 = vadd.f32 %v3570_v56, %v2117_v44 }
 0x291   : > { %v3968_v15 = vadd.f32 %v4764_v20, %v7208_v11  ;;  %v2125_v35 = vpop.f32.mrb[22].mxu1 }
 0x292   : > { %v3969_v40 = vadd.f32 %v4765_v51, %v7210_v36  ;;  %v3576_v57 = vpop.f32.mrb[22].mxu0  ;;  %v2127_v17 = vpop.f32.mrb[23].mxu1 }
 0x293   : > { %4032 = vst [vmem:[%s7215_s18 + $0xa0] sm:$0xff] %v3968_v15  ;;  %v4766_v18 = vadd.f32 %v3576_v57, %v2125_v35  ;;  %v3578_v34 = vpop.f32.mrb[23].mxu0 }
 0x294   : > { %4033 = vst [vmem:[%s7215_s18 + $0xa8] sm:$0xff] %v3969_v40  ;;  %v4767_v63 = vadd.f32 %v3578_v34, %v2127_v17 }
 0x295   : > { %v3970_v13 = vadd.f32 %v4766_v18, %v7208_v11  ;;  %v2135_v43 = vpop.f32.mrb[24].mxu1 }
 0x296   : > { %v3971_v21 = vadd.f32 %v4767_v63, %v7210_v36  ;;  %v3584_v50 = vpop.f32.mrb[24].mxu0  ;;  %v2137_v46 = vpop.f32.mrb[25].mxu1 }
 0x297   : > { %4034 = vst [vmem:[%s7215_s18 + $0xb0] sm:$0xff] %v3970_v13  ;;  %v4768_v62 = vadd.f32 %v3584_v50, %v2135_v43  ;;  %v3586_v48 = vpop.f32.mrb[25].mxu0 }
 0x298   : > { %4035 = vst [vmem:[%s7215_s18 + $0xb8] sm:$0xff] %v3971_v21  ;;  %v4769_v54 = vadd.f32 %v3586_v48, %v2137_v46 }
 0x299   : > { %v3972_v3 = vadd.f32 %v4768_v62, %v7208_v11  ;;  %v2145_v16 = vpop.f32.mrb[26].mxu1 }
 0x29a   : > { %v3973_v38 = vadd.f32 %v4769_v54, %v7210_v36  ;;  %v3592_v42 = vpop.f32.mrb[26].mxu0  ;;  %v2147_v1 = vpop.f32.mrb[27].mxu1 }
 0x29b   : > { %4036 = vst [vmem:[%s7215_s18 + $0xc0] sm:$0xff] %v3972_v3  ;;  %v4770_v47 = vadd.f32 %v3592_v42, %v2145_v16  ;;  %v3594_v29 = vpop.f32.mrb[27].mxu0 }
 0x29c   : > { %4037 = vst [vmem:[%s7215_s18 + $0xc8] sm:$0xff] %v3973_v38  ;;  %v4771_v26 = vadd.f32 %v3594_v29, %v2147_v1 }
 0x29d   : > { %v3974_v53 = vadd.f32 %v4770_v47, %v7208_v11  ;;  %v2155_v24 = vpop.f32.mrb[28].mxu1 }
 0x29e   : > { %v3975_v22 = vadd.f32 %v4771_v26, %v7210_v36  ;;  %v3600_v0 = vpop.f32.mrb[28].mxu0  ;;  %v2157_v37 = vpop.f32.mrb[29].mxu1 }
 0x29f   : > { %4038 = vst [vmem:[%s7215_s18 + $0xd0] sm:$0xff] %v3974_v53  ;;  %v4772_v41 = vadd.f32 %v3600_v0, %v2155_v24  ;;  %v3602_v2 = vpop.f32.mrb[29].mxu0 }
 0x2a0   : > { %4039 = vst [vmem:[%s7215_s18 + $0xd8] sm:$0xff] %v3975_v22  ;;  %v4773_v28 = vadd.f32 %v3602_v2, %v2157_v37 }
 0x2a1   : > { %v3976_v45 = vadd.f32 %v4772_v41, %v7208_v11  ;;  %v2165_v6 = vpop.f32.mrb[30].mxu1 }
 0x2a2   : > { %v3977_v9 = vadd.f32 %v4773_v28, %v7210_v36  ;;  %v3608_v8 = vpop.f32.mrb[30].mxu0  ;;  %v2167_v49 = vpop.f32.mrb[31].mxu1 }
 0x2a3   : > { %4040 = vst [vmem:[%s7215_s18 + $0xe0] sm:$0xff] %v3976_v45  ;;  %v4774_v23 = vadd.f32 %v3608_v8, %v2165_v6  ;;  %v3610_v60 = vpop.f32.mrb[31].mxu0 }
 0x2a4   : > { %4041 = vst [vmem:[%s7215_s18 + $0xe8] sm:$0xff] %v3977_v9  ;;  %v4775_v27 = vadd.f32 %v3610_v60, %v2167_v49 }
 0x2a5   : > { %v3978_v25 = vadd.f32 %v4774_v23, %v7208_v11  ;;  %v2175_v7 = vpop.f32.mrb[32].mxu1 }
 0x2a6   : > { %v3979_v39 = vadd.f32 %v4775_v27, %v7210_v36  ;;  %v3616_v55 = vpop.f32.mrb[32].mxu0  ;;  %v2177_v10 = vpop.f32.mrb[33].mxu1 }
 0x2a7   : > { %4042 = vst [vmem:[%s7215_s18 + $0xf0] sm:$0xff] %v3978_v25  ;;  %v4776_v31 = vadd.f32 %v3616_v55, %v2175_v7  ;;  %v3618_v58 = vpop.f32.mrb[33].mxu0 }
 0x2a8   : > { %4043 = vst [vmem:[%s7215_s18 + $0xf8] sm:$0xff] %v3979_v39  ;;  %v4777_v33 = vadd.f32 %v3618_v58, %v2177_v10 }
 0x2a9   : > { %v3980_v19 = vadd.f32 %v4776_v31, %v7208_v11  ;;  %v2185_v61 = vpop.f32.mrb[34].mxu1 }
 0x2aa   : > { %v3981_v32 = vadd.f32 %v4777_v33, %v7210_v36  ;;  %v3624_v14 = vpop.f32.mrb[34].mxu0  ;;  %v2187_v59 = vpop.f32.mrb[35].mxu1 }
 0x2ab   : > { %4044 = vst [vmem:[%s7215_s18 + $0x100] sm:$0xff] %v3980_v19  ;;  %v4778_v4 = vadd.f32 %v3624_v14, %v2185_v61  ;;  %v3626_v30 = vpop.f32.mrb[35].mxu0 }
 0x2ac   : > { %4045 = vst [vmem:[%s7215_s18 + $0x108] sm:$0xff] %v3981_v32  ;;  %v4779_v12 = vadd.f32 %v3626_v30, %v2187_v59 }
 0x2ad   : > { %v3982_v5 = vadd.f32 %v4778_v4, %v7208_v11  ;;  %v2195_v20 = vpop.f32.mrb[36].mxu1 }
 0x2ae   : > { %v3983_v52 = vadd.f32 %v4779_v12, %v7210_v36  ;;  %v3632_v44 = vpop.f32.mrb[36].mxu0  ;;  %v2197_v51 = vpop.f32.mrb[37].mxu1 }
 0x2af   : > { %4046 = vst [vmem:[%s7215_s18 + $0x110] sm:$0xff] %v3982_v5  ;;  %v4780_v56 = vadd.f32 %v3632_v44, %v2195_v20  ;;  %v3634_v15 = vpop.f32.mrb[37].mxu0 }
 0x2b0   : > { %4047 = vst [vmem:[%s7215_s18 + $0x118] sm:$0xff] %v3983_v52  ;;  %v4781_v40 = vadd.f32 %v3634_v15, %v2197_v51 }
 0x2b1   : > { %v3984_v35 = vadd.f32 %v4780_v56, %v7208_v11  ;;  %v2205_v18 = vpop.f32.mrb[38].mxu1 }
 0x2b2   : > { %v3985_v57 = vadd.f32 %v4781_v40, %v7210_v36  ;;  %v3640_v17 = vpop.f32.mrb[38].mxu0  ;;  %v2207_v63 = vpop.f32.mrb[39].mxu1 }
 0x2b3   : > { %4048 = vst [vmem:[%s7215_s18 + $0x120] sm:$0xff] %v3984_v35  ;;  %v4782_v34 = vadd.f32 %v3640_v17, %v2205_v18  ;;  %v3642_v13 = vpop.f32.mrb[39].mxu0 }
 0x2b4   : > { %4049 = vst [vmem:[%s7215_s18 + $0x128] sm:$0xff] %v3985_v57  ;;  %v4783_v21 = vadd.f32 %v3642_v13, %v2207_v63 }
 0x2b5   : > { %v3986_v43 = vadd.f32 %v4782_v34, %v7208_v11  ;;  %v2215_v62 = vpop.f32.mrb[40].mxu1 }
 0x2b6   : > { %v3987_v50 = vadd.f32 %v4783_v21, %v7210_v36  ;;  %v3648_v46 = vpop.f32.mrb[40].mxu0  ;;  %v2217_v54 = vpop.f32.mrb[41].mxu1 }
 0x2b7   : > { %4050 = vst [vmem:[%s7215_s18 + $0x130] sm:$0xff] %v3986_v43  ;;  %v4784_v48 = vadd.f32 %v3648_v46, %v2215_v62  ;;  %v3650_v3 = vpop.f32.mrb[41].mxu0 }
 0x2b8   : > { %4051 = vst [vmem:[%s7215_s18 + $0x138] sm:$0xff] %v3987_v50  ;;  %v4785_v38 = vadd.f32 %v3650_v3, %v2217_v54 }
 0x2b9   : > { %v3988_v16 = vadd.f32 %v4784_v48, %v7208_v11  ;;  %v2225_v47 = vpop.f32.mrb[42].mxu1 }
 0x2ba   : > { %v3989_v42 = vadd.f32 %v4785_v38, %v7210_v36  ;;  %v3656_v1 = vpop.f32.mrb[42].mxu0  ;;  %v2227_v26 = vpop.f32.mrb[43].mxu1 }
 0x2bb   : > { %4052 = vst [vmem:[%s7215_s18 + $0x140] sm:$0xff] %v3988_v16  ;;  %v4786_v29 = vadd.f32 %v3656_v1, %v2225_v47  ;;  %v3658_v53 = vpop.f32.mrb[43].mxu0 }
 0x2bc   : > { %4053 = vst [vmem:[%s7215_s18 + $0x148] sm:$0xff] %v3989_v42  ;;  %v4787_v22 = vadd.f32 %v3658_v53, %v2227_v26 }
 0x2bd   : > { %v3990_v24 = vadd.f32 %v4786_v29, %v7208_v11  ;;  %v2235_v41 = vpop.f32.mrb[44].mxu1 }
 0x2be   : > { %v3991_v0 = vadd.f32 %v4787_v22, %v7210_v36  ;;  %v3664_v37 = vpop.f32.mrb[44].mxu0  ;;  %v2237_v28 = vpop.f32.mrb[45].mxu1 }
 0x2bf   : > { %4054 = vst [vmem:[%s7215_s18 + $0x150] sm:$0xff] %v3990_v24  ;;  %v4788_v2 = vadd.f32 %v3664_v37, %v2235_v41  ;;  %v3666_v45 = vpop.f32.mrb[45].mxu0 }
 0x2c0   : > { %4055 = vst [vmem:[%s7215_s18 + $0x158] sm:$0xff] %v3991_v0  ;;  %v4789_v9 = vadd.f32 %v3666_v45, %v2237_v28 }
 0x2c1   : > { %v3992_v6 = vadd.f32 %v4788_v2, %v7208_v11  ;;  %v2245_v23 = vpop.f32.mrb[46].mxu1 }
 0x2c2   : > { %v3993_v8 = vadd.f32 %v4789_v9, %v7210_v36  ;;  %v3672_v49 = vpop.f32.mrb[46].mxu0  ;;  %v2247_v27 = vpop.f32.mrb[47].mxu1 }
 0x2c3   : > { %4056 = vst [vmem:[%s7215_s18 + $0x160] sm:$0xff] %v3992_v6  ;;  %v4790_v60 = vadd.f32 %v3672_v49, %v2245_v23  ;;  %v3674_v25 = vpop.f32.mrb[47].mxu0 }
 0x2c4   : > { %4057 = vst [vmem:[%s7215_s18 + $0x168] sm:$0xff] %v3993_v8  ;;  %v4791_v39 = vadd.f32 %v3674_v25, %v2247_v27 }
 0x2c5   : > { %v3994_v7 = vadd.f32 %v4790_v60, %v7208_v11  ;;  %v2255_v31 = vpop.f32.mrb[48].mxu1 }
 0x2c6   : > { %v3995_v55 = vadd.f32 %v4791_v39, %v7210_v36  ;;  %v3680_v10 = vpop.f32.mrb[48].mxu0  ;;  %v2257_v33 = vpop.f32.mrb[49].mxu1 }
 0x2c7   : > { %4058 = vst [vmem:[%s7215_s18 + $0x170] sm:$0xff] %v3994_v7  ;;  %v4792_v58 = vadd.f32 %v3680_v10, %v2255_v31  ;;  %v3682_v19 = vpop.f32.mrb[49].mxu0 }
 0x2c8   : > { %4059 = vst [vmem:[%s7215_s18 + $0x178] sm:$0xff] %v3995_v55  ;;  %v4793_v32 = vadd.f32 %v3682_v19, %v2257_v33  ;;  %v4105_v33 = vld [vmem:[%s7215_s18 + $0x10] sm:$0xff] (%p8356_p9)  ;;  %v4109_v19 = vld [vmem:[%s7215_s18 + $0x20] sm:$0xff] (%p8356_p9) }
 0x2c9   : > { %v3996_v61 = vadd.f32 %v4792_v58, %v7208_v11  ;;  %v2265_v4 = vpop.f32.mrb[50].mxu1  ;;  %v4101_v58 = vld [vmem:[%s7215_s18] sm:$0xff] (%p8356_p9)  ;;  %4106 = vst [vmem:[%s7352_s22 + $0x30] sm:$0xff] (%p8356_p9), %v4105_v33  ;;  %4110 = vst [vmem:[%s7352_s22 + $0x60] sm:$0xff] (%p8356_p9), %v4109_v19 }
 0x2ca   : > { %v3997_v14 = vadd.f32 %v4793_v32, %v7210_v36  ;;  %v3688_v59 = vpop.f32.mrb[50].mxu0  ;;  %v2267_v12 = vpop.f32.mrb[51].mxu1  ;;  %v4111_v32 = vld [vmem:[%s7215_s18 + $0x28] sm:$0xff] (%p8356_p9)  ;;  %4102 = vst [vmem:[%s7352_s22] sm:$0xff] (%p8356_p9), %v4101_v58 }
 0x2cb   : > { %4060 = vst [vmem:[%s7215_s18 + $0x180] sm:$0xff] %v3996_v61  ;;  %v4794_v30 = vadd.f32 %v3688_v59, %v2265_v4  ;;  %v3690_v5 = vpop.f32.mrb[51].mxu0  ;;  %4112 = vst [vmem:[%s7352_s22 + $0x68] sm:$0xff] (%p8356_p9), %v4111_v32  ;;  %v4113_v61 = vld [vmem:[%s7215_s18 + $0x30] sm:$0xff] (%p8356_p9)  ;;  %v4117_v4 = vld [vmem:[%s7215_s18 + $0x40] sm:$0xff] (%p8356_p9) }
 0x2cc   : > { %4061 = vst [vmem:[%s7215_s18 + $0x188] sm:$0xff] %v3997_v14  ;;  %v4795_v52 = vadd.f32 %v3690_v5, %v2267_v12  ;;  %v4115_v14 = vld [vmem:[%s7215_s18 + $0x38] sm:$0xff] (%p8356_p9)  ;;  %4114 = vst [vmem:[%s7352_s22 + $0x90] sm:$0xff] (%p8356_p9), %v4113_v61  ;;  %v4119_v59 = vld [vmem:[%s7215_s18 + $0x48] sm:$0xff] (%p8356_p9) }
 0x2cd   : > { %v3998_v20 = vadd.f32 %v4794_v30, %v7208_v11  ;;  %v2275_v56 = vpop.f32.mrb[52].mxu1  ;;  %4116 = vst [vmem:[%s7352_s22 + $0x98] sm:$0xff] (%p8356_p9), %v4115_v14  ;;  %4118 = vst [vmem:[%s7352_s22 + $0xc0] sm:$0xff] (%p8356_p9), %v4117_v4  ;;  %v4121_v30 = vld [vmem:[%s7215_s18 + $0x50] sm:$0xff] (%p8356_p9)  ;;  %v4123_v12 = vld [vmem:[%s7215_s18 + $0x58] sm:$0xff] (%p8356_p9) }
 0x2ce   : > { %v3999_v44 = vadd.f32 %v4795_v52, %v7210_v36  ;;  %v3696_v51 = vpop.f32.mrb[52].mxu0  ;;  %v2277_v40 = vpop.f32.mrb[53].mxu1  ;;  %4120 = vst [vmem:[%s7352_s22 + $0xc8] sm:$0xff] (%p8356_p9), %v4119_v59  ;;  %4122 = vst [vmem:[%s7352_s22 + $0xf0] sm:$0xff] (%p8356_p9), %v4121_v30  ;;  %v4125_v5 = vld [vmem:[%s7215_s18 + $0x60] sm:$0xff] (%p8356_p9)  ;;  %v4127_v52 = vld [vmem:[%s7215_s18 + $0x68] sm:$0xff] (%p8356_p9) }
 0x2cf   : > { %4062 = vst [vmem:[%s7215_s18 + $0x190] sm:$0xff] %v3998_v20  ;;  %v4796_v15 = vadd.f32 %v3696_v51, %v2275_v56  ;;  %v3698_v35 = vpop.f32.mrb[53].mxu0  ;;  %4124 = vst [vmem:[%s7352_s22 + $0xf8] sm:$0xff] (%p8356_p9), %v4123_v12  ;;  %v4129_v20 = vld [vmem:[%s7215_s18 + $0x70] sm:$0xff] (%p8356_p9)  ;;  %v4133_v56 = vld [vmem:[%s7215_s18 + $0x80] sm:$0xff] (%p8356_p9) }
 0x2d0   : > { %4063 = vst [vmem:[%s7215_s18 + $0x198] sm:$0xff] %v3999_v44  ;;  %v4797_v57 = vadd.f32 %v3698_v35, %v2277_v40  ;;  %4126 = vst [vmem:[%s7352_s22 + $0x120] sm:$0xff] (%p8356_p9), %v4125_v5  ;;  %v4131_v44 = vld [vmem:[%s7215_s18 + $0x78] sm:$0xff] (%p8356_p9)  ;;  %v4135_v51 = vld [vmem:[%s7215_s18 + $0x88] sm:$0xff] (%p8356_p9) }
 0x2d1   : > { %v4000_v18 = vadd.f32 %v4796_v15, %v7208_v11  ;;  %v2285_v34 = vpop.f32.mrb[54].mxu1  ;;  %4128 = vst [vmem:[%s7352_s22 + $0x128] sm:$0xff] (%p8356_p9), %v4127_v52  ;;  %4130 = vst [vmem:[%s7352_s22 + $0x150] sm:$0xff] (%p8356_p9), %v4129_v20  ;;  %v4137_v15 = vld [vmem:[%s7215_s18 + $0x90] sm:$0xff] (%p8356_p9)  ;;  %v4139_v40 = vld [vmem:[%s7215_s18 + $0x98] sm:$0xff] (%p8356_p9) }
 0x2d2   : > { %v4001_v17 = vadd.f32 %v4797_v57, %v7210_v36  ;;  %v3704_v63 = vpop.f32.mrb[54].mxu0  ;;  %v2287_v21 = vpop.f32.mrb[55].mxu1  ;;  %4132 = vst [vmem:[%s7352_s22 + $0x158] sm:$0xff] (%p8356_p9), %v4131_v44  ;;  %4134 = vst [vmem:[%s7352_s22 + $0x180] sm:$0xff] (%p8356_p9), %v4133_v56  ;;  %v4141_v35 = vld [vmem:[%s7215_s18 + $0xa0] sm:$0xff] (%p8356_p9)  ;;  %v4143_v57 = vld [vmem:[%s7215_s18 + $0xa8] sm:$0xff] (%p8356_p9) }
 0x2d3   : > { %4064 = vst [vmem:[%s7215_s18 + $0x1a0] sm:$0xff] %v4000_v18  ;;  %v4798_v13 = vadd.f32 %v3704_v63, %v2285_v34  ;;  %v3706_v43 = vpop.f32.mrb[55].mxu0  ;;  %4136 = vst [vmem:[%s7352_s22 + $0x188] sm:$0xff] (%p8356_p9), %v4135_v51  ;;  %v4145_v18 = vld [vmem:[%s7215_s18 + $0xb0] sm:$0xff] (%p8356_p9)  ;;  %v4149_v34 = vld [vmem:[%s7215_s18 + $0xc0] sm:$0xff] (%p8356_p9) }
 0x2d4   : > { %4065 = vst [vmem:[%s7215_s18 + $0x1a8] sm:$0xff] %v4001_v17  ;;  %v4799_v50 = vadd.f32 %v3706_v43, %v2287_v21  ;;  %4138 = vst [vmem:[%s7352_s22 + $0x1b0] sm:$0xff] (%p8356_p9), %v4137_v15  ;;  %v4147_v17 = vld [vmem:[%s7215_s18 + $0xb8] sm:$0xff] (%p8356_p9)  ;;  %v4151_v63 = vld [vmem:[%s7215_s18 + $0xc8] sm:$0xff] (%p8356_p9) }
 0x2d5   : > { %v4002_v62 = vadd.f32 %v4798_v13, %v7208_v11  ;;  %v2295_v48 = vpop.f32.mrb[56].mxu1  ;;  %4140 = vst [vmem:[%s7352_s22 + $0x1b8] sm:$0xff] (%p8356_p9), %v4139_v40  ;;  %4142 = vst [vmem:[%s7352_s22 + $0x1e0] sm:$0xff] (%p8356_p9), %v4141_v35  ;;  %v4153_v13 = vld [vmem:[%s7215_s18 + $0xd0] sm:$0xff] (%p8356_p9)  ;;  %v4155_v21 = vld [vmem:[%s7215_s18 + $0xd8] sm:$0xff] (%p8356_p9) }
 0x2d6   : > { %v4003_v46 = vadd.f32 %v4799_v50, %v7210_v36  ;;  %v3712_v54 = vpop.f32.mrb[56].mxu0  ;;  %v2297_v38 = vpop.f32.mrb[57].mxu1  ;;  %4144 = vst [vmem:[%s7352_s22 + $0x1e8] sm:$0xff] (%p8356_p9), %v4143_v57  ;;  %4146 = vst [vmem:[%s7352_s22 + $0x210] sm:$0xff] (%p8356_p9), %v4145_v18  ;;  %v4157_v43 = vld [vmem:[%s7215_s18 + $0xe0] sm:$0xff] (%p8356_p9)  ;;  %v4159_v50 = vld [vmem:[%s7215_s18 + $0xe8] sm:$0xff] (%p8356_p9) }
 0x2d7   : > { %4066 = vst [vmem:[%s7215_s18 + $0x1b0] sm:$0xff] %v4002_v62  ;;  %v4800_v3 = vadd.f32 %v3712_v54, %v2295_v48  ;;  %v3714_v16 = vpop.f32.mrb[57].mxu0  ;;  %4148 = vst [vmem:[%s7352_s22 + $0x218] sm:$0xff] (%p8356_p9), %v4147_v17  ;;  %v4161_v62 = vld [vmem:[%s7215_s18 + $0xf0] sm:$0xff] (%p8356_p9)  ;;  %v4165_v48 = vld [vmem:[%s7215_s18 + $0x100] sm:$0xff] (%p8356_p9) }
 0x2d8   : > { %4067 = vst [vmem:[%s7215_s18 + $0x1b8] sm:$0xff] %v4003_v46  ;;  %v4801_v42 = vadd.f32 %v3714_v16, %v2297_v38  ;;  %4150 = vst [vmem:[%s7352_s22 + $0x240] sm:$0xff] (%p8356_p9), %v4149_v34  ;;  %v4163_v46 = vld [vmem:[%s7215_s18 + $0xf8] sm:$0xff] (%p8356_p9)  ;;  %v4167_v54 = vld [vmem:[%s7215_s18 + $0x108] sm:$0xff] (%p8356_p9) }
 0x2d9   : > { %v4004_v47 = vadd.f32 %v4800_v3, %v7208_v11  ;;  %v2305_v29 = vpop.f32.mrb[58].mxu1  ;;  %4152 = vst [vmem:[%s7352_s22 + $0x248] sm:$0xff] (%p8356_p9), %v4151_v63  ;;  %4154 = vst [vmem:[%s7352_s22 + $0x270] sm:$0xff] (%p8356_p9), %v4153_v13  ;;  %v4169_v3 = vld [vmem:[%s7215_s18 + $0x110] sm:$0xff] (%p8356_p9)  ;;  %v4171_v38 = vld [vmem:[%s7215_s18 + $0x118] sm:$0xff] (%p8356_p9) }
 0x2da   : > { %v4005_v1 = vadd.f32 %v4801_v42, %v7210_v36  ;;  %v3720_v26 = vpop.f32.mrb[58].mxu0  ;;  %v2307_v22 = vpop.f32.mrb[59].mxu1  ;;  %4156 = vst [vmem:[%s7352_s22 + $0x278] sm:$0xff] (%p8356_p9), %v4155_v21  ;;  %4158 = vst [vmem:[%s7352_s22 + $0x2a0] sm:$0xff] (%p8356_p9), %v4157_v43  ;;  %v4173_v16 = vld [vmem:[%s7215_s18 + $0x120] sm:$0xff] (%p8356_p9)  ;;  %v4175_v42 = vld [vmem:[%s7215_s18 + $0x128] sm:$0xff] (%p8356_p9) }
 0x2db   : > { %4068 = vst [vmem:[%s7215_s18 + $0x1c0] sm:$0xff] %v4004_v47  ;;  %v4802_v53 = vadd.f32 %v3720_v26, %v2305_v29  ;;  %v3722_v24 = vpop.f32.mrb[59].mxu0  ;;  %4160 = vst [vmem:[%s7352_s22 + $0x2a8] sm:$0xff] (%p8356_p9), %v4159_v50  ;;  %v4177_v47 = vld [vmem:[%s7215_s18 + $0x130] sm:$0xff] (%p8356_p9)  ;;  %v4181_v29 = vld [vmem:[%s7215_s18 + $0x140] sm:$0xff] (%p8356_p9) }
 0x2dc   : > { %4069 = vst [vmem:[%s7215_s18 + $0x1c8] sm:$0xff] %v4005_v1  ;;  %v4803_v0 = vadd.f32 %v3722_v24, %v2307_v22  ;;  %4162 = vst [vmem:[%s7352_s22 + $0x2d0] sm:$0xff] (%p8356_p9), %v4161_v62  ;;  %v4179_v1 = vld [vmem:[%s7215_s18 + $0x138] sm:$0xff] (%p8356_p9)  ;;  %v4183_v26 = vld [vmem:[%s7215_s18 + $0x148] sm:$0xff] (%p8356_p9) }
 0x2dd   : > { %v4006_v41 = vadd.f32 %v4802_v53, %v7208_v11  ;;  %v2315_v2 = vpop.f32.mrb[60].mxu1  ;;  %4164 = vst [vmem:[%s7352_s22 + $0x2d8] sm:$0xff] (%p8356_p9), %v4163_v46  ;;  %4166 = vst [vmem:[%s7352_s22 + $0x300] sm:$0xff] (%p8356_p9), %v4165_v48  ;;  %v4185_v53 = vld [vmem:[%s7215_s18 + $0x150] sm:$0xff] (%p8356_p9)  ;;  %v4187_v22 = vld [vmem:[%s7215_s18 + $0x158] sm:$0xff] (%p8356_p9) }
 0x2de   : > { %v4007_v37 = vadd.f32 %v4803_v0, %v7210_v36  ;;  %v3728_v28 = vpop.f32.mrb[60].mxu0  ;;  %v2317_v9 = vpop.f32.mrb[61].mxu1  ;;  %4168 = vst [vmem:[%s7352_s22 + $0x308] sm:$0xff] (%p8356_p9), %v4167_v54  ;;  %4170 = vst [vmem:[%s7352_s22 + $0x330] sm:$0xff] (%p8356_p9), %v4169_v3  ;;  %v4189_v24 = vld [vmem:[%s7215_s18 + $0x160] sm:$0xff] (%p8356_p9)  ;;  %v4191_v0 = vld [vmem:[%s7215_s18 + $0x168] sm:$0xff] (%p8356_p9) }
 0x2df   : > { %4070 = vst [vmem:[%s7215_s18 + $0x1d0] sm:$0xff] %v4006_v41  ;;  %v4804_v45 = vadd.f32 %v3728_v28, %v2315_v2  ;;  %v3730_v6 = vpop.f32.mrb[61].mxu0  ;;  %4172 = vst [vmem:[%s7352_s22 + $0x338] sm:$0xff] (%p8356_p9), %v4171_v38  ;;  %v4193_v41 = vld [vmem:[%s7215_s18 + $0x170] sm:$0xff] (%p8356_p9)  ;;  %v4197_v2 = vld [vmem:[%s7215_s18 + $0x180] sm:$0xff] (%p8356_p9) }
 0x2e0   : > { %4071 = vst [vmem:[%s7215_s18 + $0x1d8] sm:$0xff] %v4007_v37  ;;  %v4805_v8 = vadd.f32 %v3730_v6, %v2317_v9  ;;  %4174 = vst [vmem:[%s7352_s22 + $0x360] sm:$0xff] (%p8356_p9), %v4173_v16  ;;  %v4195_v37 = vld [vmem:[%s7215_s18 + $0x178] sm:$0xff] (%p8356_p9)  ;;  %v4199_v28 = vld [vmem:[%s7215_s18 + $0x188] sm:$0xff] (%p8356_p9) }
 0x2e1   : > { %v4008_v23 = vadd.f32 %v4804_v45, %v7208_v11  ;;  %v2325_v60 = vpop.f32.mrb[62].mxu1  ;;  %4176 = vst [vmem:[%s7352_s22 + $0x368] sm:$0xff] (%p8356_p9), %v4175_v42  ;;  %4178 = vst [vmem:[%s7352_s22 + $0x390] sm:$0xff] (%p8356_p9), %v4177_v47  ;;  %v4201_v45 = vld [vmem:[%s7215_s18 + $0x190] sm:$0xff] (%p8356_p9)  ;;  %v4203_v9 = vld [vmem:[%s7215_s18 + $0x198] sm:$0xff] (%p8356_p9) }
 0x2e2   : > { %v4009_v49 = vadd.f32 %v4805_v8, %v7210_v36  ;;  %v3736_v27 = vpop.f32.mrb[62].mxu0  ;;  %v2327_v39 = vpop.f32.mrb[63].mxu1  ;;  %4082 = sbr.rel (!%p8356_p9) target bundleno = 754 (0x2f2), region = 48  ;;  %4180 = vst [vmem:[%s7352_s22 + $0x398] sm:$0xff] (%p8356_p9), %v4179_v1  ;;  %4182 = vst [vmem:[%s7352_s22 + $0x3c0] sm:$0xff] (%p8356_p9), %v4181_v29  ;;  %v4205_v6 = vld [vmem:[%s7215_s18 + $0x1a0] sm:$0xff] (%p8356_p9) }
 0x2e3   : > { %4072 = vst [vmem:[%s7215_s18 + $0x1e0] sm:$0xff] %v4008_v23  ;;  %v4806_v25 = vadd.f32 %v3736_v27, %v2325_v60  ;;  %v3738_v7 = vpop.f32.mrb[63].mxu0  ;;  %4184 = vst [vmem:[%s7352_s22 + $0x3c8] sm:$0xff] (%p8356_p9), %v4183_v26  ;;  %v4207_v8 = vld [vmem:[%s7215_s18 + $0x1a8] sm:$0xff] (%p8356_p9)  ;;  %v4209_v23 = vld [vmem:[%s7215_s18 + $0x1b0] sm:$0xff] (%p8356_p9) }
 0x2e4   : > { %4073 = vst [vmem:[%s7215_s18 + $0x1e8] sm:$0xff] %v4009_v49  ;;  %v4807_v55 = vadd.f32 %v3738_v7, %v2327_v39  ;;  %4186 = vst [vmem:[%s7352_s22 + $0x3f0] sm:$0xff] (%p8356_p9), %v4185_v53  ;;  %v4211_v49 = vld [vmem:[%s7215_s18 + $0x1b8] sm:$0xff] (%p8356_p9)  ;;  %v4213_v60 = vld [vmem:[%s7215_s18 + $0x1c0] sm:$0xff] (%p8356_p9) }
 0x2e5   : > { %v4010_v31 = vadd.f32 %v4806_v25, %v7208_v11  ;;  %v4103_v11 = vld [vmem:[%s7215_s18 + $0x8] sm:$0xff] (%p8356_p9)  ;;  %4188 = vst [vmem:[%s7352_s22 + $0x3f8] sm:$0xff] (%p8356_p9), %v4187_v22  ;;  %4190 = vst [vmem:[%s7352_s22 + $0x420] sm:$0xff] (%p8356_p9), %v4189_v24 }
 0x2e6   : > { %v4011_v10 = vadd.f32 %v4807_v55, %v7210_v36  ;;  %v4107_v36 = vld [vmem:[%s7215_s18 + $0x18] sm:$0xff] (%p8356_p9)  ;;  %4104 = vst [vmem:[%s7352_s22 + $0x8] sm:$0xff] (%p8356_p9), %v4103_v11  ;;  %4192 = vst [vmem:[%s7352_s22 + $0x428] sm:$0xff] (%p8356_p9), %v4191_v0  ;;  %v4215_v27 = vld [vmem:[%s7215_s18 + $0x1c8] sm:$0xff] (%p8356_p9) }
 0x2e7   : > { %4074 = vst [vmem:[%s7215_s18 + $0x1f0] sm:$0xff] %v4010_v31  ;;  %4108 = vst [vmem:[%s7352_s22 + $0x38] sm:$0xff] (%p8356_p9), %v4107_v36  ;;  %v4217_v25 = vld [vmem:[%s7215_s18 + $0x1d0] sm:$0xff] (%p8356_p9)  ;;  %v4219_v39 = vld [vmem:[%s7215_s18 + $0x1d8] sm:$0xff] (%p8356_p9) }
 0x2e8   : > { %4075 = vst [vmem:[%s7215_s18 + $0x1f8] sm:$0xff] %v4011_v10  ;;  %4194 = vst [vmem:[%s7352_s22 + $0x450] sm:$0xff] (%p8356_p9), %v4193_v41 }
 0x2e9   : > { %4196 = vst [vmem:[%s7352_s22 + $0x458] sm:$0xff] %v4195_v37  ;;  %4198 = vst [vmem:[%s7352_s22 + $0x480] sm:$0xff] %v4197_v2 }
 0x2ea   : > { %4200 = vst [vmem:[%s7352_s22 + $0x488] sm:$0xff] %v4199_v28  ;;  %4202 = vst [vmem:[%s7352_s22 + $0x4b0] sm:$0xff] %v4201_v45  ;;  %v4221_v7 = vld [vmem:[%s7215_s18 + $0x1e0] sm:$0xff] }
 0x2eb   : > { %4204 = vst [vmem:[%s7352_s22 + $0x4b8] sm:$0xff] %v4203_v9  ;;  %4206 = vst [vmem:[%s7352_s22 + $0x4e0] sm:$0xff] %v4205_v6  ;;  %v4223_v55 = vld [vmem:[%s7215_s18 + $0x1e8] sm:$0xff] }
 0x2ec   : > { %4208 = vst [vmem:[%s7352_s22 + $0x4e8] sm:$0xff] %v4207_v8  ;;  %4210 = vst [vmem:[%s7352_s22 + $0x510] sm:$0xff] %v4209_v23 }
 0x2ed   : > { %4212 = vst [vmem:[%s7352_s22 + $0x518] sm:$0xff] %v4211_v49  ;;  %4214 = vst [vmem:[%s7352_s22 + $0x540] sm:$0xff] %v4213_v60 }
 0x2ee   : > { %4216 = vst [vmem:[%s7352_s22 + $0x548] sm:$0xff] %v4215_v27  ;;  %4218 = vst [vmem:[%s7352_s22 + $0x570] sm:$0xff] %v4217_v25  ;;  %v4225_v31 = vld [vmem:[%s7215_s18 + $0x1f0] sm:$0xff] }
 0x2ef   : > { %4220 = vst [vmem:[%s7352_s22 + $0x578] sm:$0xff] %v4219_v39  ;;  %4222 = vst [vmem:[%s7352_s22 + $0x5a0] sm:$0xff] %v4221_v7  ;;  %v4227_v10 = vld [vmem:[%s7215_s18 + $0x1f8] sm:$0xff] }
 0x2f0   : > { %4224 = vst [vmem:[%s7352_s22 + $0x5a8] sm:$0xff] %v4223_v55  ;;  %4226 = vst [vmem:[%s7352_s22 + $0x5d0] sm:$0xff] %v4225_v31 }
 0x2f1   : > { %4228 = vst [vmem:[%s7352_s22 + $0x5d8] sm:$0xff] %v4227_v10 }
 0x2f2 PF: > { %s16_s17 = sadd.s32 1, %s5202_s17   ;;  %s8357_s12 = smov %s5186_s13 }
 0x2f3   : > { %p13_p11 = scmp.ge.s32.totalorder %s16_s17, 5   ;;  %s8358_s13 = smov %s5190_s14 }
 0x2f4   : > { %s8359_s14 = smov %s5276_s24  ;;  %s8360_s15 = smov %s5198_s16 }
 0x2f5   : > { %s8361_s16 = smov %s8363_s19  ;;  %15 = sbr.rel (!%p13_p11) target bundleno = 4 (0x4), region = 109 }
 0x2fc   :  { %4244 = vsyncpa [#allocation4], 1 }
 0x2fd   :  { %4246 = vsyncpa [#allocation4 + $0x1], 1 }

// kernel: multihead_attention.3
= control target key start
LH: loop header
LB: loop body
LE: loop exit
PB: predicated region body
PF: predicated region fallthrough
CT: control target
= control target key end

     0   :  { %s16924_s0 = inlined_call_operand.vmem [shape: f32[2,128,768], index: 0, kind: input, shape index: {}, may-alias: {0,1,2}]   ;;  %s16925_s1 = inlined_call_operand.vmem [shape: f32[2,128,768], index: 1, kind: input, shape index: {}, may-alias: {0,1,2}]   ;;  %s16926_s2 = inlined_call_operand.vmem [shape: f32[2,128,768], index: 2, kind: input, shape index: {}, may-alias: {0,1,2}]   ;;  %s16927_s3 = inlined_call_operand.vmem [shape: f32[256,256], index: 3, kind: input, shape index: {}]   ;;  %s16928_s4 = inlined_call_operand.vmem [shape: f32[1,256], index: 4, kind: input, shape index: {}]   ;;  %s16929_s5 = inlined_call_operand.vmem [shape: f32[2,128,256], index: 5, kind: output, shape index: {0}]   ;;  %s16930_s6 = inlined_call_operand.hbm [shape: f32[2,128,128], index: 6, kind: output, shape index: {1}]  }
   0x1   :  { %17269 = sst [smem:[#allocation71_spill]] %s16924_s0 }
   0x2   :  { %17270 = sst [smem:[#allocation72_spill]] %s16925_s1 }
   0x3   :  { %17271 = sst [smem:[#allocation73_spill]] %s16926_s2 }
   0x4   :  { %17272 = sst [smem:[#allocation74_spill]] %s16927_s3 }
   0x5   :  { %17273 = sst [smem:[#allocation75_spill]] %s16928_s4 }
   0x6   :  { %17274 = sst [smem:[#allocation76_spill]] %s16929_s5 }
   0x7   :  { %17275 = sst [smem:[#allocation77_spill]] %s16930_s6 }
   0x8   :  { %12 = vsyncpa [#allocation9], 0 }
   0x9   :  { %14 = vsyncpa [#allocation9 + $0x1], 0  ;;  %s12958_s21 = smov 0   ;;  %s12960_s22 = smov 0  }
   0xa   :  { %s12962_s23 = smov 0   ;;  %s12964_s24 = smov 0  }
   0xb   :  { %s12966_s25 = smov 0   ;;  %s12968_s26 = smov 0  }
   0xc   :  { %s12970_s27 = smov 0   ;;  %s12972_s28 = smov 0  }
   0xd   :  { %s12974_s29 = smov 0   ;;  %s12976_s30 = smov 0  }
   0xe   :  { %s12978_s7 = smov 0   ;;  %s12980_s8 = smov 0  }
   0xf   :  { %s12982_s9 = smov 0   ;;  %s12984_s10 = smov 0  }
  0x10 LB: > { %17276 = sst [smem:[#allocation11_spill]] %s12895_s29  ;;  %s32_s13 = sadd.s32 1, %s12907_s8  ;;  %s12915_s10 = sphi %s12984_s10, %s20_s10   ;;  %s12911_s9 = sphi %s12982_s9, %s17757_s9   ;;  %s12907_s8 = sphi %s12980_s8, %s17756_s8   ;;  %s12903_s7 = sphi %s12978_s7, %s17755_s7   ;;  %s12899_s30 = sphi %s12976_s30, %s17765_s30   ;;  %s12895_s29 = sphi %s12974_s29, %s17753_s29   ;;  %s12891_s28 = sphi %s12972_s28, %s17752_s28   ;;  %s12887_s27 = sphi %s12970_s27, %s17764_s27   ;;  %s12883_s26 = sphi %s12968_s26, %s17763_s26   ;;  %s12879_s25 = sphi %s12966_s25, %s17762_s25   ;;  %s12875_s24 = sphi %s12964_s24, %s17761_s24   ;;  %s12871_s23 = sphi %s12962_s23, %s17760_s23   ;;  %s12867_s22 = sphi %s12960_s22, %s17759_s22   ;;  %s12863_s21 = sphi %s12958_s21, %s17758_s21  }
  0x11   : > { %17277 = sst [smem:[#allocation12_spill]] %s12899_s30  ;;  %s39_s14 = sadd.s32 1, %s12911_s9 }
  0x12   : > { %17278 = sst [smem:[#allocation13_spill]] %s12903_s7  ;;  %p33_p0 = scmp.ge.s32.totalorder %s32_s13, 2 }
  0x13   : > { %17279 = sst [smem:[#allocation14_spill]] %s12907_s8  ;;  %s50_s15 = sadd.s32 1, %s12895_s29 }
  0x14   : > { %17280 = sst [smem:[#allocation15_spill]] %s12911_s9  ;;  %p57_p1 = scmp.ne.s32.totalorder %s12895_s29, %s12891_s28 }
  0x15   : > { %p58_p2 = scmp.eq.s32.totalorder %s12915_s10, 0  ;;  %s17767_s13 = smov (%p33_p0, %s32_s13), 0 }
  0x16   : > { %17281 = sst [smem:[#allocation16_spill]] %s17767_s13  ;;  %s17769_s14 = smov (!%p33_p0, %s39_s14), %s12911_s9 }
  0x17   : > { %s46_s16 = ssub.s32 %s12907_s8, %s17767_s13  ;;  %p13043_p3 = por %p58_p2, %p57_p1 }
  0x18   : > { %p41_p4 = scmp.ge.s32.totalorder %s17769_s14, 2  ;;  %s73_s18 = sadd.s32 2, %s12907_s8 }
  0x19   : > { %s74_s19 = sadd.s32 2, %s17767_s13  ;;  %s80_s20 = sadd.s32 1, %s12887_s27 }
  0x1a   : > { %s17771_s14 = smov (%p41_p4, %s17769_s14), 0  ;;  %s76_s12 = ssub.s32 %s73_s18, %s74_s19 }
  0x1b   : > { %17283 = sst [smem:[#allocation17_spill]] %s17771_s14  ;;  %p87_p5 = scmp.ne.s32.totalorder %s12887_s27, %s12883_s26 }
  0x1c   : > { %s43_s11 = ssub.s32 %s12911_s9, %s17771_s14  ;;  %s103_s6 = sadd.s32 4, %s12907_s8 }
  0x1d   : > { %s47_s4 = sor.u32 %s46_s16, %s43_s11  ;;  %s77_s3 = sor.u32 %s76_s12, %s43_s11 }
  0x1e   : > { %p48_p6 = scmp.eq.s32.totalorder %s47_s4, 0  ;;  %p78_p7 = scmp.eq.s32.totalorder %s77_s3, 0 }
  0x1f   : > { %p13059_p8 = por %p87_p5, %p58_p2  ;;  %s104_s18 = sadd.s32 4, %s17767_s13 }
  0x20   : > { %s13065_s19 = scalar_select %p48_p6, %s12895_s29, %s50_s15  }
  0x21   : > { %s13068_s16 = scalar_select %p78_p7, %s12887_s27, %s80_s20  }
  0x22   : > { %17285 = sst [smem:[#allocation18_spill]] %s13065_s19  ;;  %s106_s12 = ssub.s32 %s103_s6, %s104_s18 }
  0x23   : > { %17286 = sst [smem:[#allocation19_spill]] %s13068_s16  ;;  %s110_s14 = sadd.s32 1, %s12879_s25 }
  0x24   : > { %s107_s4 = sor.u32 %s106_s12, %s43_s11  ;;  %p117_p9 = scmp.ne.s32.totalorder %s12879_s25, %s12875_s24 }
  0x25   : > { %p108_p10 = scmp.eq.s32.totalorder %s107_s4, 0  ;;  %p211_p11 = scmp.eq.s32.totalorder %s43_s11, 0 }
  0x26   : > { %p13075_p12 = por %p117_p9, %p58_p2  ;;  %s213_s7 = sadd.s32 1, %s12871_s23 }
  0x27   : > { %s13081_s30 = scalar_select %p108_p10, %s12879_s25, %s110_s14  }
  0x28   : > { %s13084_s13 = scalar_select %p211_p11, %s12871_s23, %s213_s7  }
  0x29   : > { %p223_p13 = scmp.ne.s32.totalorder %s12871_s23, %s12867_s22  ;;  %s17288_s15 = sadd.s32 4294967295, %s12915_s10  }
  0x2a   : > { %p224_p0 = scmp.eq.s32.totalorder %s17288_s15, 3  ;;  %p229_p1 = scmp.ne.s32.totalorder %s12867_s22, %s12863_s21 }
  0x2b   : > { %s17289_s6 = sadd.s32 4294967294, %s12915_s10   ;;  %p8909_p2 = scmp.ge.s32.totalorder %s12915_s10, 4 }
  0x2c   : > { %p230_p4 = scmp.eq.s32.totalorder %s17289_s6, 3  ;;  %p13094_p5 = por %p224_p0, %p223_p13 }
  0x2d   : > { %249 = sbr.rel (%p8909_p2) target bundleno = 106 (0x6a), region = 20 }
  0x2e   : > { %p13098_p6 = por %p230_p4, %p229_p1 }
  0x34   : > { %252 = sbr.rel (!%p13043_p3) target bundleno = 70 (0x46), region = 24  ;;  %s254_s7 = sand.u32 (%p13043_p3), 1, %s12895_s29  }
  0x35   : > { %s12520_s14 = smul.u32 (%p13043_p3), 96, %s12911_s9  ;;  %s8910_s18 = sshll.u32 (%p13043_p3), %s254_s7, 7 }
  0x36   : > { %s17292_s0 = sld [smem:[#allocation71_spill]] (%p13043_p3)  ;;  %s256_s17 = scalar_lea.vmem (%p13043_p3), [#allocation5], %s8910_s18 }
  0x37   : > { %s261_s12 = sadd.s32 (%p13043_p3), %s12907_s8, %s12520_s14 }
  0x38   : > { %s8911_s4 = sshll.u32 (%p13043_p3), %s261_s12, 3 }
  0x3c   : > { %s13111_s19 = scalar_lea.vmem %s17292_s0, %s8911_s4 }
  0x3d   : > { %v321_v0 = vld [vmem:[%s13111_s19] sm:$0xff]  ;;  %v323_v1 = vld [vmem:[%s13111_s19 + $0x30] sm:$0xff] }
  0x3e   : > { %v325_v2 = vld [vmem:[%s13111_s19 + $0x60] sm:$0xff]  ;;  %322 = vst [vmem:[%s256_s17] sm:$0xff] %v321_v0  ;;  %324 = vst [vmem:[%s256_s17 + $0x8] sm:$0xff] %v323_v1  ;;  %v327_v3 = vld [vmem:[%s13111_s19 + $0x90] sm:$0xff] }
  0x3f   : > { %326 = vst [vmem:[%s256_s17 + $0x10] sm:$0xff] %v325_v2  ;;  %v329_v4 = vld [vmem:[%s13111_s19 + $0xc0] sm:$0xff]  ;;  %v331_v5 = vld [vmem:[%s13111_s19 + $0xf0] sm:$0xff]  ;;  %328 = vst [vmem:[%s256_s17 + $0x18] sm:$0xff] %v327_v3 }
  0x40   : > { %330 = vst [vmem:[%s256_s17 + $0x20] sm:$0xff] %v329_v4  ;;  %332 = vst [vmem:[%s256_s17 + $0x28] sm:$0xff] %v331_v5  ;;  %v333_v6 = vld [vmem:[%s13111_s19 + $0x120] sm:$0xff]  ;;  %v335_v7 = vld [vmem:[%s13111_s19 + $0x150] sm:$0xff] }
  0x41   : > { %v337_v8 = vld [vmem:[%s13111_s19 + $0x180] sm:$0xff]  ;;  %334 = vst [vmem:[%s256_s17 + $0x30] sm:$0xff] %v333_v6  ;;  %336 = vst [vmem:[%s256_s17 + $0x38] sm:$0xff] %v335_v7  ;;  %v339_v9 = vld [vmem:[%s13111_s19 + $0x1b0] sm:$0xff] }
  0x42   : > { %338 = vst [vmem:[%s256_s17 + $0x40] sm:$0xff] %v337_v8  ;;  %v341_v10 = vld [vmem:[%s13111_s19 + $0x1e0] sm:$0xff]  ;;  %v343_v11 = vld [vmem:[%s13111_s19 + $0x210] sm:$0xff]  ;;  %340 = vst [vmem:[%s256_s17 + $0x48] sm:$0xff] %v339_v9 }
  0x43   : > { %342 = vst [vmem:[%s256_s17 + $0x50] sm:$0xff] %v341_v10  ;;  %344 = vst [vmem:[%s256_s17 + $0x58] sm:$0xff] %v343_v11  ;;  %v345_v12 = vld [vmem:[%s13111_s19 + $0x240] sm:$0xff]  ;;  %v347_v13 = vld [vmem:[%s13111_s19 + $0x270] sm:$0xff] }
  0x44   : > { %v349_v14 = vld [vmem:[%s13111_s19 + $0x2a0] sm:$0xff]  ;;  %346 = vst [vmem:[%s256_s17 + $0x60] sm:$0xff] %v345_v12  ;;  %348 = vst [vmem:[%s256_s17 + $0x68] sm:$0xff] %v347_v13  ;;  %v351_v15 = vld [vmem:[%s13111_s19 + $0x2d0] sm:$0xff] }
  0x45   : > { %350 = vst [vmem:[%s256_s17 + $0x70] sm:$0xff] %v349_v14  ;;  %352 = vst [vmem:[%s256_s17 + $0x78] sm:$0xff] %v351_v15 }
  0x46 PF: > { %358 = sbr.rel (!%p13059_p8) target bundleno = 88 (0x58), region = 62  ;;  %s360_s7 = sand.u32 (%p13059_p8), 1, %s12887_s27  }
  0x47   : > { %s8768_s14 = smul.u32 (%p13059_p8), 96, %s12911_s9  ;;  %s8912_s18 = sshll.u32 (%p13059_p8), %s360_s7, 7 }
  0x48   : > { %s17293_s1 = sld [smem:[#allocation72_spill]] (%p13059_p8)  ;;  %s362_s5 = scalar_lea.vmem (%p13059_p8), [#allocation6], %s8912_s18 }
  0x49   : > { %s8769_s12 = sadd.s32 (%p13059_p8), %s12907_s8, %s8768_s14 }
  0x4a   : > { %s8913_s4 = sshll.u32 (%p13059_p8), %s8769_s12, 3 }
  0x4e   : > { %s13137_s0 = scalar_lea.vmem %s17293_s1, %s8913_s4 }
  0x4f   : > { %v8914_v16 = vld [vmem:[%s13137_s0 + $0x10] sm:$0xff]  ;;  %v8915_v17 = vld [vmem:[%s13137_s0 + $0x40] sm:$0xff] }
  0x50   : > { %v8916_v18 = vld [vmem:[%s13137_s0 + $0x70] sm:$0xff]  ;;  %426 = vst [vmem:[%s362_s5] sm:$0xff] %v8914_v16  ;;  %428 = vst [vmem:[%s362_s5 + $0x8] sm:$0xff] %v8915_v17  ;;  %v8917_v19 = vld [vmem:[%s13137_s0 + $0xa0] sm:$0xff] }
  0x51   : > { %430 = vst [vmem:[%s362_s5 + $0x10] sm:$0xff] %v8916_v18  ;;  %v8918_v20 = vld [vmem:[%s13137_s0 + $0xd0] sm:$0xff]  ;;  %v8919_v21 = vld [vmem:[%s13137_s0 + $0x100] sm:$0xff]  ;;  %432 = vst [vmem:[%s362_s5 + $0x18] sm:$0xff] %v8917_v19 }
  0x52   : > { %434 = vst [vmem:[%s362_s5 + $0x20] sm:$0xff] %v8918_v20  ;;  %436 = vst [vmem:[%s362_s5 + $0x28] sm:$0xff] %v8919_v21  ;;  %v8920_v22 = vld [vmem:[%s13137_s0 + $0x130] sm:$0xff]  ;;  %v8921_v23 = vld [vmem:[%s13137_s0 + $0x160] sm:$0xff] }
  0x53   : > { %v8922_v24 = vld [vmem:[%s13137_s0 + $0x190] sm:$0xff]  ;;  %438 = vst [vmem:[%s362_s5 + $0x30] sm:$0xff] %v8920_v22  ;;  %440 = vst [vmem:[%s362_s5 + $0x38] sm:$0xff] %v8921_v23  ;;  %v8923_v25 = vld [vmem:[%s13137_s0 + $0x1c0] sm:$0xff] }
  0x54   : > { %442 = vst [vmem:[%s362_s5 + $0x40] sm:$0xff] %v8922_v24  ;;  %v8924_v26 = vld [vmem:[%s13137_s0 + $0x1f0] sm:$0xff]  ;;  %v8925_v27 = vld [vmem:[%s13137_s0 + $0x220] sm:$0xff]  ;;  %444 = vst [vmem:[%s362_s5 + $0x48] sm:$0xff] %v8923_v25 }
  0x55   : > { %446 = vst [vmem:[%s362_s5 + $0x50] sm:$0xff] %v8924_v26  ;;  %448 = vst [vmem:[%s362_s5 + $0x58] sm:$0xff] %v8925_v27  ;;  %v8926_v28 = vld [vmem:[%s13137_s0 + $0x250] sm:$0xff]  ;;  %v8927_v29 = vld [vmem:[%s13137_s0 + $0x280] sm:$0xff] }
  0x56   : > { %v8928_v30 = vld [vmem:[%s13137_s0 + $0x2b0] sm:$0xff]  ;;  %450 = vst [vmem:[%s362_s5 + $0x60] sm:$0xff] %v8926_v28  ;;  %452 = vst [vmem:[%s362_s5 + $0x68] sm:$0xff] %v8927_v29  ;;  %v8929_v31 = vld [vmem:[%s13137_s0 + $0x2e0] sm:$0xff] }
  0x57   : > { %454 = vst [vmem:[%s362_s5 + $0x70] sm:$0xff] %v8928_v30  ;;  %456 = vst [vmem:[%s362_s5 + $0x78] sm:$0xff] %v8929_v31 }
  0x58 PF: > { %462 = sbr.rel (!%p13075_p12) target bundleno = 106 (0x6a), region = 100  ;;  %s464_s19 = sand.u32 (%p13075_p12), 1, %s12879_s25  }
  0x59   : > { %s8775_s17 = smul.u32 (%p13075_p12), 96, %s12911_s9  ;;  %s8930_s7 = sshll.u32 (%p13075_p12), %s464_s19, 7 }
  0x5a   : > { %s17294_s2 = sld [smem:[#allocation73_spill]] (%p13075_p12)  ;;  %s466_s0 = scalar_lea.vmem (%p13075_p12), [#allocation7], %s8930_s7 }
  0x5b   : > { %s8776_s14 = sadd.s32 (%p13075_p12), %s12907_s8, %s8775_s17 }
  0x5c   : > { %s8931_s18 = sshll.u32 (%p13075_p12), %s8776_s14, 3 }
  0x60   : > { %s13163_s15 = scalar_lea.vmem %s17294_s2, %s8931_s18 }
  0x61   : > { %v8932_v32 = vld [vmem:[%s13163_s15 + $0x20] sm:$0xff]  ;;  %v8933_v33 = vld [vmem:[%s13163_s15 + $0x50] sm:$0xff] }
  0x62   : > { %v8934_v34 = vld [vmem:[%s13163_s15 + $0x80] sm:$0xff]  ;;  %530 = vst [vmem:[%s466_s0] sm:$0xff] %v8932_v32  ;;  %532 = vst [vmem:[%s466_s0 + $0x8] sm:$0xff] %v8933_v33  ;;  %v8935_v35 = vld [vmem:[%s13163_s15 + $0xb0] sm:$0xff] }
  0x63   : > { %534 = vst [vmem:[%s466_s0 + $0x10] sm:$0xff] %v8934_v34  ;;  %v8936_v36 = vld [vmem:[%s13163_s15 + $0xe0] sm:$0xff]  ;;  %v8937_v37 = vld [vmem:[%s13163_s15 + $0x110] sm:$0xff]  ;;  %536 = vst [vmem:[%s466_s0 + $0x18] sm:$0xff] %v8935_v35 }
  0x64   : > { %538 = vst [vmem:[%s466_s0 + $0x20] sm:$0xff] %v8936_v36  ;;  %540 = vst [vmem:[%s466_s0 + $0x28] sm:$0xff] %v8937_v37  ;;  %v8938_v38 = vld [vmem:[%s13163_s15 + $0x140] sm:$0xff]  ;;  %v8939_v39 = vld [vmem:[%s13163_s15 + $0x170] sm:$0xff] }
  0x65   : > { %v8940_v40 = vld [vmem:[%s13163_s15 + $0x1a0] sm:$0xff]  ;;  %542 = vst [vmem:[%s466_s0 + $0x30] sm:$0xff] %v8938_v38  ;;  %544 = vst [vmem:[%s466_s0 + $0x38] sm:$0xff] %v8939_v39  ;;  %v8941_v41 = vld [vmem:[%s13163_s15 + $0x1d0] sm:$0xff] }
  0x66   : > { %546 = vst [vmem:[%s466_s0 + $0x40] sm:$0xff] %v8940_v40  ;;  %v8942_v42 = vld [vmem:[%s13163_s15 + $0x200] sm:$0xff]  ;;  %v8943_v43 = vld [vmem:[%s13163_s15 + $0x230] sm:$0xff]  ;;  %548 = vst [vmem:[%s466_s0 + $0x48] sm:$0xff] %v8941_v41 }
  0x67   : > { %550 = vst [vmem:[%s466_s0 + $0x50] sm:$0xff] %v8942_v42  ;;  %552 = vst [vmem:[%s466_s0 + $0x58] sm:$0xff] %v8943_v43  ;;  %v8944_v44 = vld [vmem:[%s13163_s15 + $0x260] sm:$0xff]  ;;  %v8945_v45 = vld [vmem:[%s13163_s15 + $0x290] sm:$0xff] }
  0x68   : > { %v8946_v46 = vld [vmem:[%s13163_s15 + $0x2c0] sm:$0xff]  ;;  %554 = vst [vmem:[%s466_s0 + $0x60] sm:$0xff] %v8944_v44  ;;  %556 = vst [vmem:[%s466_s0 + $0x68] sm:$0xff] %v8945_v45  ;;  %v8947_v47 = vld [vmem:[%s13163_s15 + $0x2f0] sm:$0xff] }
  0x69   : > { %558 = vst [vmem:[%s466_s0 + $0x70] sm:$0xff] %v8946_v46  ;;  %560 = vst [vmem:[%s466_s0 + $0x78] sm:$0xff] %v8947_v47 }
  0x6a PF: > { %p8948_p3 = scmp.ge.s32.totalorder %s12915_s10, 1  ;;  %p575_p7 = scmp.lt.s32.totalorder %s12915_s10, 5 }
  0x6c   : > { %p576_p8 = pnand %p8948_p3, %p575_p7 }
  0x6e   : > { %579 = sbr.rel (%p576_p8) target bundleno = 3141 (0xc45), region = 142 }
  0x75   : > { %s17295_s3 = sld [smem:[#allocation12_spill]]  ;;  %s17296_s6 = sld [smem:[#allocation13_spill]] }
  0x76   : > { %s582_s5 = sand.u32 1, %s12891_s28   ;;  %s589_s19 = sand.u32 1, %s12883_s26  }
  0x77   : > { %s8949_s17 = sshll.u32 %s582_s5, 7  ;;  %s8950_s7 = sshll.u32 %s589_s19, 7 }
  0x78   : > { %s596_s14 = sand.u32 1, %s12875_s24   ;;  %s16939_s18 = sand.u32 1, %s12867_s22  }
  0x79   : > { %s8951_s12 = sshll.u32 %s596_s14, 7  ;;  %s8952_s4 = sshll.u32 %s16939_s18, 7 }
  0x7a   : > { %s17297_s8 = sld [smem:[#allocation76_spill]]  ;;  %s17298_s5 = sld [smem:[#allocation74_spill]] }
  0x7b   : > { %s8953_s15 = sshll.u32 %s17295_s3, 4  ;;  %p660_p9 = scmp.lt.s32.totalorder %s17296_s6, 1 }
  0x7c   : > { %p653_p10 = scmp.lt.s32.totalorder %s8953_s15, 31  ;;  %s13202_s19 = scalar_lea.vmem [#allocation5], %s8949_s17 }
  0x7d   : > { %s17773_s6 = smov (!%p660_p9, %s17296_s6), 1  ;;  %s13204_s14 = scalar_lea.vmem [#allocation6], %s8950_s7 }
  0x7e   : > { %s17775_s15 = smov (!%p653_p10, %s8953_s15), 31  ;;  %s8966_s0 = sshll.u32 %s17773_s6, 8 }
  0x7f   : > { %s8965_s1 = sshll.u32 %s17775_s15, 4  ;;  %s13206_s18 = scalar_lea.vmem [#allocation7], %s8951_s12 }
  0x80   : > { %s13195_s29 = scalar_lea.vmem %s17297_s8, %s8966_s0  ;;  %s13200_s24 = scalar_lea.vmem %s17298_s5, %s8965_s1 }
  0x81   : > { %s13208_s16 = scalar_lea.vmem [#allocation8], %s8952_s4  ;;  %p8958_p11 = scmp.ne.s32.totalorder %s17295_s3, 0 }
  0x82   : > { %v12917_v48 = vmov (!%p8958_p11), 0.0  }
  0x83   : > { %674 = sbr.rel (%p8958_p11) target bundleno = 155 (0x9b), region = 158  ;;  %675 = vst [vmem:[#allocation2] sm:$0xff] (!%p8958_p11), %v12917_v48  ;;  %676 = vst [vmem:[#allocation2 + $0x8] sm:$0xff] (!%p8958_p11), %v12917_v48 }
  0x84   : > { %677 = vst [vmem:[#allocation2 + $0x10] sm:$0xff] (!%p8958_p11), %v12917_v48  ;;  %678 = vst [vmem:[#allocation2 + $0x18] sm:$0xff] (!%p8958_p11), %v12917_v48 }
  0x85   : > { %679 = vst [vmem:[#allocation2 + $0x20] sm:$0xff] (!%p8958_p11), %v12917_v48  ;;  %680 = vst [vmem:[#allocation2 + $0x28] sm:$0xff] (!%p8958_p11), %v12917_v48 }
  0x86   : > { %681 = vst [vmem:[#allocation2 + $0x30] sm:$0xff] (!%p8958_p11), %v12917_v48  ;;  %682 = vst [vmem:[#allocation2 + $0x38] sm:$0xff] (!%p8958_p11), %v12917_v48 }
  0x87   : > { %683 = vst [vmem:[#allocation2 + $0x40] sm:$0xff] (!%p8958_p11), %v12917_v48  ;;  %684 = vst [vmem:[#allocation2 + $0x48] sm:$0xff] (!%p8958_p11), %v12917_v48 }
  0x88   : > { %685 = vst [vmem:[#allocation2 + $0x50] sm:$0xff] (!%p8958_p11), %v12917_v48  ;;  %686 = vst [vmem:[#allocation2 + $0x58] sm:$0xff] (!%p8958_p11), %v12917_v48 }
  0x89   : > { %687 = vst [vmem:[#allocation2 + $0x60] sm:$0xff] (!%p8958_p11), %v12917_v48  ;;  %688 = vst [vmem:[#allocation2 + $0x68] sm:$0xff] (!%p8958_p11), %v12917_v48 }
  0x8a   : > { %689 = vst [vmem:[#allocation2 + $0x70] sm:$0xff] %v12917_v48  ;;  %690 = vst [vmem:[#allocation2 + $0x78] sm:$0xff] %v12917_v48 }
  0x8b   : > { %691 = vst [vmem:[#allocation3] sm:$0xff] %v12917_v48  ;;  %692 = vst [vmem:[#allocation3 + $0x8] sm:$0xff] %v12917_v48 }
  0x8c   : > { %693 = vst [vmem:[#allocation3 + $0x10] sm:$0xff] %v12917_v48  ;;  %694 = vst [vmem:[#allocation3 + $0x18] sm:$0xff] %v12917_v48 }
  0x8d   : > { %695 = vst [vmem:[#allocation3 + $0x20] sm:$0xff] %v12917_v48  ;;  %696 = vst [vmem:[#allocation3 + $0x28] sm:$0xff] %v12917_v48 }
  0x8e   : > { %697 = vst [vmem:[#allocation3 + $0x30] sm:$0xff] %v12917_v48  ;;  %698 = vst [vmem:[#allocation3 + $0x38] sm:$0xff] %v12917_v48 }
  0x8f   : > { %699 = vst [vmem:[#allocation3 + $0x40] sm:$0xff] %v12917_v48  ;;  %700 = vst [vmem:[#allocation3 + $0x48] sm:$0xff] %v12917_v48 }
  0x90   : > { %701 = vst [vmem:[#allocation3 + $0x50] sm:$0xff] %v12917_v48  ;;  %702 = vst [vmem:[#allocation3 + $0x58] sm:$0xff] %v12917_v48 }
  0x91   : > { %703 = vst [vmem:[#allocation3 + $0x60] sm:$0xff] %v12917_v48  ;;  %704 = vst [vmem:[#allocation3 + $0x68] sm:$0xff] %v12917_v48 }
  0x92   : > { %705 = vst [vmem:[#allocation3 + $0x70] sm:$0xff] %v12917_v48  ;;  %706 = vst [vmem:[#allocation3 + $0x78] sm:$0xff] %v12917_v48 }
  0x93   : > { %707 = vst [vmem:[#allocation3 + $0x80] sm:$0xff] %v12917_v48  ;;  %708 = vst [vmem:[#allocation3 + $0x88] sm:$0xff] %v12917_v48 }
  0x94   : > { %709 = vst [vmem:[#allocation3 + $0x90] sm:$0xff] %v12917_v48  ;;  %710 = vst [vmem:[#allocation3 + $0x98] sm:$0xff] %v12917_v48 }
  0x95   : > { %711 = vst [vmem:[#allocation3 + $0xa0] sm:$0xff] %v12917_v48  ;;  %712 = vst [vmem:[#allocation3 + $0xa8] sm:$0xff] %v12917_v48 }
  0x96   : > { %713 = vst [vmem:[#allocation3 + $0xb0] sm:$0xff] %v12917_v48  ;;  %714 = vst [vmem:[#allocation3 + $0xb8] sm:$0xff] %v12917_v48 }
  0x97   : > { %715 = vst [vmem:[#allocation3 + $0xc0] sm:$0xff] %v12917_v48  ;;  %716 = vst [vmem:[#allocation3 + $0xc8] sm:$0xff] %v12917_v48 }
  0x98   : > { %717 = vst [vmem:[#allocation3 + $0xd0] sm:$0xff] %v12917_v48  ;;  %718 = vst [vmem:[#allocation3 + $0xd8] sm:$0xff] %v12917_v48 }
  0x99   : > { %719 = vst [vmem:[#allocation3 + $0xe0] sm:$0xff] %v12917_v48  ;;  %720 = vst [vmem:[#allocation3 + $0xe8] sm:$0xff] %v12917_v48 }
  0x9a   : > { %721 = vst [vmem:[#allocation3 + $0xf0] sm:$0xff] %v12917_v48  ;;  %722 = vst [vmem:[#allocation3 + $0xf8] sm:$0xff] %v12917_v48 }
  0x9b PF: > { %v755_v49 = vld [vmem:[%s13204_s14] sm:$0xff]  ;;  %v756_v50 = vld [vmem:[%s13204_s14 + $0x8] sm:$0xff]  ;;  %vm787_vm0 = vcmask 523264   ;;  %v757_v51 = vld [vmem:[%s13204_s14 + $0x10] sm:$0xff]  ;;  %s12918_s1 = smov 64   ;;  %vm6780_vm1 = vcmask 1048064  }
  0x9c   : > { %v13215_v52 = vsel %vm787_vm0, %v755_v49, 0  ;;  %v13218_v53 = vsel %vm787_vm0, %v756_v50, 0  ;;  %v758_v54 = vld [vmem:[%s13204_s14 + $0x18] sm:$0xff]  ;;  %v13222_v55 = vsel %vm787_vm0, %v757_v51, 0  ;;  %v759_v60 = vld [vmem:[%s13204_s14 + $0x20] sm:$0xff]  ;;  %v760_v61 = vld [vmem:[%s13204_s14 + $0x28] sm:$0xff] }
  0x9d   : > { %v885_v56 = vand.u32 4294901760, %v13215_v52  ;;  %v888_v57 = vand.u32 4294901760, %v13218_v53  ;;  %v13227_v58 = vsel %vm787_vm0, %v758_v54, 0  ;;  %v891_v59 = vand.u32 4294901760, %v13222_v55  ;;  %v723_v3 = vld [vmem:[%s13202_s19] sm:$0xff]  ;;  %v761_v6 = vld [vmem:[%s13204_s14 + $0x30] sm:$0xff] }
  0x9e   : > { %v894_v62 = vand.u32 4294901760, %v13227_v58  ;;  %v13246_v1 = vsel %vm787_vm0, %v759_v60, 0  ;;  %v13249_v2 = vsel %vm787_vm0, %v760_v61, 0  ;;  %v762_v7 = vld [vmem:[%s13204_s14 + $0x38] sm:$0xff]  ;;  %v739_v8 = vmul.f32 0.125, %v723_v3  ;;  %v763_v18 = vld [vmem:[%s13204_s14 + $0x40] sm:$0xff] }
  0x9f   : > { %v13237_v63 = vpack.c.bf16 %v888_v57, %v885_v56  ;;  %v897_v4 = vand.u32 4294901760, %v13246_v1  ;;  %v900_v5 = vand.u32 4294901760, %v13249_v2  ;;  %v13270_v11 = vsel %vm787_vm0, %v761_v6, 0  ;;  %v764_v19 = vld [vmem:[%s13204_s14 + $0x48] sm:$0xff]  ;;  %v765_v27 = vld [vmem:[%s13204_s14 + $0x50] sm:$0xff]  ;;  %v766_v28 = vld [vmem:[%s13204_s14 + $0x58] sm:$0xff] }
  0xa0   : > { %v13243_v0 = vpack.c.bf16 %v894_v62, %v891_v59  ;;  %v789_v10 = vsel %vm787_vm0, %v739_v8, 0  ;;  %v13273_v12 = vsel %vm787_vm0, %v762_v7, 0  ;;  %v903_v15 = vand.u32 4294901760, %v13270_v11  ;;  %v767_v34 = vld [vmem:[%s13204_s14 + $0x60] sm:$0xff]  ;;  %v768_v35 = vld [vmem:[%s13204_s14 + $0x68] sm:$0xff]  ;;  %v769_v40 = vld [vmem:[%s13204_s14 + $0x70] sm:$0xff] }
  0xa1   : > { %11081 = vmatprep.subr.bf16.mxu1 %v13237_v63  ;;  %11177 = vmatprep.subr.bf16.mxu0 %v13237_v63  ;;  %v13266_v9 = vpack.c.bf16 %v900_v5, %v897_v4  ;;  %v13275_v13 = vand.u32 4294901760, %v789_v10  ;;  %v906_v16 = vand.u32 4294901760, %v13273_v12  ;;  %v13297_v22 = vsel %vm787_vm0, %v763_v18, 0  ;;  %v724_v36 = vld [vmem:[%s13202_s19 + $0x8] sm:$0xff]  ;;  %v770_v41 = vld [vmem:[%s13204_s14 + $0x78] sm:$0xff]  ;;  %v725_v44 = vld [vmem:[%s13202_s19 + $0x10] sm:$0xff] }
  0xa2   : > { %11083 = vmatpush3.bf16.xpose.msra.mxu1 %v13237_v63  ;;  %11179 = vmatpush3.bf16.xpose.msra.mxu0 %v13237_v63  ;;  %v13300_v23 = vsel %vm787_vm0, %v764_v19, 0  ;;  %v909_v25 = vand.u32 4294901760, %v13297_v22  ;;  %v13317_v30 = vsel %vm787_vm0, %v765_v27, 0  ;;  %v13320_v31 = vsel %vm787_vm0, %v766_v28, 0  ;;  %v726_v48 = vld [vmem:[%s13202_s19 + $0x18] sm:$0xff]  ;;  %v727_v60 = vld [vmem:[%s13202_s19 + $0x20] sm:$0xff] }
  0xa3   : > { %11085 = vmatprep.subr.bf16.mxu1 %v13243_v0  ;;  %11181 = vmatprep.subr.bf16.mxu0 %v13243_v0  ;;  %v13280_v14 = vsub.f32 %v789_v10, %v13275_v13  ;;  %v13294_v21 = vpack.c.bf16 %v906_v16, %v903_v15  ;;  %v912_v26 = vand.u32 4294901760, %v13300_v23  ;;  %v915_v32 = vand.u32 4294901760, %v13317_v30  ;;  %s17745_s2 = sld [smem:[#allocation12_spill]] }
  0xa4   : > { %v918_v33 = vand.u32 4294901760, %v13320_v31  ;;  %v13338_v38 = vsel %vm787_vm0, %v767_v34, 0  ;;  %v13341_v39 = vsel %vm787_vm0, %v768_v35, 0  ;;  %v13348_v42 = vsub.f32 %v13215_v52, %v885_v56 }
  0xa5   : > { %17299 = vst [vmem:[#allocation20_spill] sm:$0xff] %v13280_v14  ;;  %v967_v17 = vand.u32 4294901760, %v13280_v14  ;;  %17300 = vst [vmem:[#allocation21_spill] sm:$0xff] %v13294_v21  ;;  %v13314_v29 = vpack.c.bf16 %v912_v26, %v909_v25  ;;  %v740_v43 = vmul.f32 0.125, %v724_v36  ;;  %v13356_v45 = vsub.f32 %v13218_v53, %v888_v57 }
  0xa6   : > { %v13335_v37 = vpack.c.bf16 %v918_v33, %v915_v32  ;;  %v921_v46 = vand.u32 4294901760, %v13338_v38  ;;  %v924_v47 = vand.u32 4294901760, %v13341_v39  ;;  %v879_v49 = vsel %vm787_vm0, %v769_v40, 0 }
  0xa7   : > { %v968_v20 = vsub.f32 %v13280_v14, %v967_v17  ;;  %9936 = vmatprep.mubr.f32.mxu0 %v967_v17  ;;  %17301 = vst [vmem:[#allocation22_spill] sm:$0xff] %v13314_v29  ;;  %v882_v50 = vsel %vm787_vm0, %v770_v41, 0  ;;  %v13368_v51 = vsub.f32 %v13222_v55, %v891_v59  ;;  %v741_v52 = vmul.f32 0.125, %v725_v44  ;;  %v730_v44 = vld [vmem:[%s13202_s19 + $0x38] sm:$0xff]  ;;  %v737_v14 = vld [vmem:[%s13202_s19 + $0x70] sm:$0xff] }
  0xa8   : > { %17302 = vst [vmem:[#allocation23_spill] sm:$0xff] %v13335_v37  ;;  %v1128_v53 = vand.u32 4294901760, %v13348_v42  ;;  %v792_v54 = vsel %vm787_vm0, %v740_v43, 0  ;;  %v1135_v56 = vand.u32 4294901760, %v13356_v45  ;;  %v742_v57 = vmul.f32 0.125, %v726_v48  ;;  %v729_v43 = vld [vmem:[%s13202_s19 + $0x30] sm:$0xff] }
  0xa9   : > { %v969_v24 = vand.u32 4294901760, %v968_v20  ;;  %v13374_v61 = vpack.c.bf16 %v924_v47, %v921_v46  ;;  %v927_v3 = vand.u32 4294901760, %v879_v49  ;;  %v930_v6 = vand.u32 4294901760, %v882_v50  ;;  %p8959_p12 = scmp.ne.s32.totalorder %s17745_s2, 1 }
  0xaa   : > { %11087 = vmatpush3.bf16.xpose.msra.mxu1 %v13243_v0  ;;  %11183 = vmatpush3.bf16.xpose.msra.mxu0 %v13243_v0  ;;  %v13376_v7 = vand.u32 4294901760, %v792_v54  ;;  %v16940_v8 = vand.u32 4294901760, %v13368_v51  ;;  %v13382_v55 = vsub.f32 %v13227_v58, %v894_v62  ;;  %v795_v59 = vsel %vm787_vm0, %v741_v52, 0  ;;  %v728_v62 = vld [vmem:[%s13202_s19 + $0x28] sm:$0xff]  ;;  %s17746_s3 = sld [smem:[#allocation75_spill]] (!%p8959_p12) }
  0xab   : > { %11089 = vmatprep.subr.bf16.mxu1 %v13266_v9  ;;  %11185 = vmatprep.subr.bf16.mxu0 %v13266_v9  ;;  %17303 = vst [vmem:[#allocation24_spill] sm:$0xff] %v13374_v61  ;;  %v13388_v10 = vsub.f32 %v13348_v42, %v1128_v53  ;;  %v743_v17 = vmul.f32 0.125, %v727_v60  ;;  %v1136_v18 = vsub.f32 %v13356_v45, %v1135_v56  ;;  %v798_v58 = vsel %vm787_vm0, %v742_v57, 0 }
  0xac   : > { %9768 = vmatprep.mubr.f32.mxu1 %v969_v24  ;;  %v13399_v19 = vpack.c.bf16 %v930_v6, %v927_v3  ;;  %v13401_v20 = vand.u32 4294901760, %v795_v59  ;;  %v13404_v24 = vsub.f32 %v792_v54, %v13376_v7  ;;  %v13409_v27 = vsub.f32 %v13368_v51, %v16940_v8 }
  0xad   : > { %v1149_v28 = vand.u32 4294901760, %v13382_v55  ;;  %v13415_v34 = vsub.f32 %v13246_v1, %v897_v4  ;;  %v1130_v35 = vand.u32 4294901760, %v13388_v10  ;;  %v13418_v36 = vand.u32 4294901760, %v798_v58 }
  0xae   : > { %17304 = vst [vmem:[#allocation25_spill] sm:$0xff] %v13399_v19  ;;  %17305 = vst [vmem:[#allocation26_spill] sm:$0xff] %v13404_v24  ;;  %v801_v40 = vsel %vm787_vm0, %v743_v17, 0  ;;  %v744_v41 = vmul.f32 0.125, %v728_v62  ;;  %v1137_v48 = vand.u32 4294901760, %v1136_v18  ;;  %v13426_v52 = vsub.f32 %v13249_v2, %v900_v5 }
  0xaf   : > { %v13431_v1 = vsub.f32 %v13270_v11, %v903_v15  ;;  %v13436_v4 = vsub.f32 %v13273_v12, %v906_v16  ;;  %v13441_v54 = vsub.f32 %v13297_v22, %v909_v25  ;;  %v13446_v2 = vsub.f32 %v13300_v23, %v912_v26  ;;  %v731_v23 = vld [vmem:[%s13202_s19 + $0x40] sm:$0xff] }
  0xb0   : > { %v13449_v5 = vsub.f32 %v795_v59, %v13401_v20  ;;  %v13454_v11 = vsub.f32 %v13317_v30, %v915_v32  ;;  %v13456_v12 = vand.u32 4294901760, %v801_v40  ;;  %v13461_v15 = vsub.f32 %v13320_v31, %v918_v33  ;;  %v734_v31 = vld [vmem:[%s13202_s19 + $0x58] sm:$0xff] }
  0xb1   : > { %v745_v16 = vmul.f32 0.125, %v729_v43  ;;  %v746_v22 = vmul.f32 0.125, %v730_v44  ;;  %v13465_v25 = vsub.f32 %v798_v58, %v13418_v36  ;;  %v804_v26 = vsel %vm787_vm0, %v744_v41, 0  ;;  %v733_v44 = vld [vmem:[%s13202_s19 + $0x50] sm:$0xff] }
  0xb2   : > { %11091 = vmatpush3.bf16.xpose.msra.mxu1 %v13266_v9  ;;  %11187 = vmatpush3.bf16.xpose.msra.mxu0 %v13266_v9  ;;  %17306 = vst [vmem:[#allocation27_spill] sm:$0xff] %v13449_v5  ;;  %v13469_v57 = vsub.f32 %v13338_v38, %v921_v46  ;;  %v13473_v30 = vpack.c.bf16 %v13356_v45, %v13348_v42  ;;  %v747_v38 = vmul.f32 0.125, %v731_v23  ;;  %v732_v46 = vld [vmem:[%s13202_s19 + $0x48] sm:$0xff] }
  0xb3   : > { %11093 = vmatprep.subr.bf16.mxu1 %v13294_v21  ;;  %11189 = vmatprep.subr.bf16.mxu0 %v13294_v21  ;;  %17307 = vst [vmem:[#allocation28_spill] sm:$0xff] %v13465_v25  ;;  %v13479_v32 = vsub.f32 %v13341_v39, %v924_v47  ;;  %v13481_v33 = vsub.f32 %v879_v49, %v927_v3  ;;  %v13503_v49 = vand.u32 4294901760, %v804_v26  ;;  %v810_v3 = vsel %vm787_vm0, %v746_v22, 0 }
  0xb4   : > { %v13483_v60 = vsub.f32 %v882_v50, %v930_v6  ;;  %v13490_v59 = vpack.c.bf16 %v13382_v55, %v13368_v51  ;;  %v13494_v10 = vpack.c.bf16 %v13426_v52, %v13415_v34  ;;  %v13498_v39 = vpack.c.bf16 %v13436_v4, %v13431_v1 }
  0xb5   : > { %v13501_v47 = vsub.f32 %v801_v40, %v13456_v12  ;;  %v807_v50 = vsel %vm787_vm0, %v745_v16, 0  ;;  %v13509_v6 = vpack.c.bf16 %v13446_v2, %v13441_v54  ;;  %v13513_v17 = vpack.c.bf16 %v13461_v15, %v13454_v11 }
  0xb6   : > { %17308 = vst [vmem:[#allocation29_spill] sm:$0xff] %v13498_v39  ;;  %v13517_v18 = vpack.c.bf16 %v13479_v32, %v13469_v57  ;;  %v13521_v58 = vpack.c.bf16 %v13483_v60, %v13481_v33  ;;  %v11208_v62 = vpack.c.bf16 %v1135_v56, %v1128_v53  ;;  %v1150_v40 = vsub.f32 %v13382_v55, %v1149_v28  ;;  %v735_v56 = vld [vmem:[%s13202_s19 + $0x60] sm:$0xff] }
  0xb7   : > { %17309 = vst [vmem:[#allocation30_spill] sm:$0xff] %v13501_v47  ;;  %17310 = vst [vmem:[#allocation31_spill] sm:$0xff] %v13509_v6  ;;  %v748_v43 = vmul.f32 0.125, %v732_v46  ;;  %v11112_v16 = vpack.c.bf16 %v1137_v48, %v1130_v35  ;;  %v813_v8 = vsel %vm787_vm0, %v747_v38, 0  ;;  %v13536_v42 = vsub.f32 %v804_v26, %v13503_v49 }
  0xb8   : > { %17311 = vst [vmem:[#allocation32_spill] sm:$0xff] %v13513_v17  ;;  %17312 = vst [vmem:[#allocation33_spill] sm:$0xff] %v13517_v18  ;;  %v13538_v45 = vand.u32 4294901760, %v807_v50  ;;  %v13540_v53 = vand.u32 4294901760, %v810_v3  ;;  %v17314_v55 = vand.u32 4294901760, %v13404_v24  ;;  %v17315_v48 = vand.u32 4294901760, %v13368_v51 }
  0xb9   : > { %17313 = vst [vmem:[#allocation34_spill] sm:$0xff] %v13521_v58  ;;  %v1144_v58 = vand.u32 4294901760, %v13409_v27  ;;  %v749_v27 = vmul.f32 0.125, %v733_v44  ;;  %v1151_v26 = vand.u32 4294901760, %v1150_v40  ;;  %v13553_v41 = vand.u32 4294901760, %v813_v8  ;;  %v736_v40 = vld [vmem:[%s13202_s19 + $0x68] sm:$0xff] }
  0xba   : > { %11095 = vmatpush3.bf16.xpose.msra.mxu1 %v13294_v21  ;;  %11191 = vmatpush3.bf16.xpose.msra.mxu0 %v13294_v21  ;;  %v978_v35 = vsub.f32 %v13404_v24, %v17314_v55  ;;  %v13548_v46 = vpack.c.bf16 %v1149_v28, %v17315_v48  ;;  %v816_v23 = vsel %vm787_vm0, %v748_v43, 0  ;;  %v750_v22 = vmul.f32 0.125, %v734_v31  ;;  %v738_v21 = vld [vmem:[%s13202_s19 + $0x78] sm:$0xff] }
  0xbb   : > { %11097 = vmatprep.subr.bf16.mxu1 %v13314_v29  ;;  %11193 = vmatprep.subr.bf16.mxu0 %v13314_v29  ;;  %17316 = vst [vmem:[#allocation35_spill] sm:$0xff] %v13553_v41  ;;  %v17317_v28 = vand.u32 4294901760, %v13449_v5  ;;  %v17318_v44 = vand.u32 4294901760, %v13465_v25  ;;  %v751_v38 = vmul.f32 0.125, %v735_v56  ;;  %v13569_v51 = vsub.f32 %v807_v50, %v13538_v45 }
  0xbc   : > { %v17321_v18 = vand.u32 4294901760, %v13501_v47  ;;  %v13577_v56 = vand.u32 4294901760, %v816_v23  ;;  %v11116_v17 = vpack.c.bf16 %v1151_v26, %v1144_v58  ;;  %v822_v31 = vsel %vm787_vm0, %v750_v22, 0 }
  0xbd   : > { %v988_v55 = vsub.f32 %v13449_v5, %v17317_v28  ;;  %v998_v48 = vsub.f32 %v13465_v25, %v17318_v44  ;;  %17320 = vst [vmem:[#allocation36_spill] sm:$0xff] %v13569_v51  ;;  %v979_v28 = vand.u32 4294901760, %v978_v35  ;;  %v752_v50 = vmul.f32 0.125, %v736_v40 }
  0xbe   : > { %v1008_v44 = vsub.f32 %v13501_v47, %v17321_v18  ;;  %v825_v18 = vsel %vm787_vm0, %v751_v38, 0  ;;  %v17324_v39 = vand.u32 4294901760, %v13536_v42  ;;  %v17325_v26 = vand.u32 4294901760, %v13404_v24 }
  0xbf   : > { %v999_v6 = vand.u32 4294901760, %v998_v48  ;;  %v13602_v38 = vand.u32 4294901760, %v822_v31  ;;  %v753_v48 = vmul.f32 0.125, %v737_v14  ;;  %v17327_v14 = vand.u32 4294901760, %v13449_v5 }
  0xc0   : > { %v1018_v58 = vsub.f32 %v13536_v42, %v17324_v39  ;;  %v1009_v40 = vand.u32 4294901760, %v1008_v44 }
  0xc1   : > { %17326 = vst [vmem:[#allocation38_spill] sm:$0xff] %v13602_v38 }
  0xc2   : > { %11099 = vmatpush3.bf16.xpose.msra.mxu1 %v13314_v29  ;;  %11195 = vmatpush3.bf16.xpose.msra.mxu0 %v13314_v29  ;;  %v989_v29 = vand.u32 4294901760, %v988_v55  ;;  %v13600_v55 = vsub.f32 %v816_v23, %v13577_v56  ;;  %v1170_v23 = vand.u32 4294901760, %v13431_v1 }
  0xc3   : > { %11101 = vmatprep.subr.bf16.mxu1 %v13335_v37  ;;  %11197 = vmatprep.subr.bf16.mxu0 %v13335_v37 }
  0xca   : > { %11103 = vmatpush3.bf16.xpose.msra.mxu1 %v13335_v37  ;;  %11199 = vmatpush3.bf16.xpose.msra.mxu0 %v13335_v37  ;;  %v819_v37 = vsel %vm787_vm0, %v749_v27, 0  ;;  %v828_v27 = vsel %vm787_vm0, %v752_v50, 0 }
  0xcb   : > { %11105 = vmatprep.subr.bf16.mxu1 %v13374_v61  ;;  %11201 = vmatprep.subr.bf16.mxu0 %v13374_v61  ;;  %v13595_v22 = vand.u32 4294901760, %v819_v37 }
  0xcd   : > { %v13618_v50 = vsub.f32 %v819_v37, %v13595_v22 }
  0xd2   : > { %11107 = vmatpush3.bf16.xpose.msra.mxu1 %v13374_v61  ;;  %11203 = vmatpush3.bf16.xpose.msra.mxu0 %v13374_v61  ;;  %v13572_v61 = vsub.f32 %v810_v3, %v13540_v53  ;;  %v17323_v3 = vand.u32 4294901760, %v13426_v52 }
  0xd3   : > { %11109 = vmatprep.subr.bf16.mxu1 %v13399_v19  ;;  %11205 = vmatprep.subr.bf16.mxu0 %v13399_v19 }
  0xd4   : > { %v1164_v35 = vsub.f32 %v13426_v52, %v17323_v3  ;;  %v13605_v3 = vand.u32 4294901760, %v825_v18  ;;  %v17328_v24 = vand.u32 4294901760, %v13572_v61 }
  0xd6   : > { %v1165_v44 = vand.u32 4294901760, %v1164_v35  ;;  %v1057_v35 = vand.u32 4294901760, %v13600_v55 }
  0xda   : > { %11111 = vmatpush3.bf16.xpose.msra.mxu1 %v13399_v19  ;;  %11207 = vmatpush3.bf16.xpose.msra.mxu0 %v13399_v19  ;;  %v17319_v19 = vand.u32 4294901760, %v13415_v34 }
  0xdb   : > { %11113 = vmatprep.subr.bf16.mxu1 %v11112_v16  ;;  %11209 = vmatprep.subr.bf16.mxu0 %v11208_v62 }
  0xdc   : > { %v1157_v43 = vsub.f32 %v13415_v34, %v17319_v19  ;;  %v13581_v19 = vsub.f32 %v813_v8, %v13553_v41  ;;  %v1027_v8 = vand.u32 4294901760, %v13569_v51  ;;  %v754_v41 = vmul.f32 0.125, %v738_v21 }
  0xdd   : > { %v1038_v21 = vsub.f32 %v13572_v61, %v17328_v24  ;;  %v13633_v24 = vsub.f32 %v825_v18, %v13605_v3  ;;  %v17334_v18 = vand.u32 4294901760, %v13536_v42 }
  0xde   : > { %17322 = vst [vmem:[#allocation37_spill] sm:$0xff] %v13581_v19  ;;  %v1047_v39 = vand.u32 4294901760, %v13581_v19 }
  0xe0   : > { %v1048_v37 = vsub.f32 %v13581_v19, %v1047_v39 }
  0xe1   : > { %9769 = vmatmul.mubr.f32.vlgmr.msra.gmra.mrb[0].mxu1 %v979_v28  ;;  %9937 = vmatmul.mubr.f32.vlgmr.msra.gmra.mrb[0].mxu0 %v17325_v26  ;;  %v1158_v28 = vand.u32 4294901760, %v1157_v43  ;;  %v1177_v26 = vand.u32 4294901760, %v13436_v4  ;;  %v17329_v43 = vand.u32 4294901760, %v13465_v25  ;;  %v17332_v25 = vand.u32 4294901760, %v13415_v34 }
  0xe2   : > { %11115 = vmatpush3.bf16.xpose.msra.mxu1 %v11112_v16  ;;  %11211 = vmatpush3.bf16.xpose.msra.mxu0 %v11208_v62  ;;  %v1019_v62 = vand.u32 4294901760, %v1018_v58  ;;  %v1028_v16 = vsub.f32 %v13569_v51, %v1027_v8  ;;  %v831_v58 = vsel %vm787_vm0, %v753_v48, 0  ;;  %v17331_v51 = vand.u32 4294901760, %v13501_v47 }
  0xe3   : > { %11117 = vmatprep.subr.bf16.mxu1 %v11116_v17  ;;  %11213 = vmatprep.subr.bf16.mxu0 %v13548_v46  ;;  %v1039_v47 = vand.u32 4294901760, %v1038_v21  ;;  %v13643_v19 = vand.u32 4294901760, %v831_v58 }
  0xe4   : > { %9771 = vmatprep.mubr.f32.mxu1 %v989_v29  ;;  %9939 = vmatprep.mubr.f32.mxu0 %v17327_v14  ;;  %v13624_v29 = vsub.f32 %v822_v31, %v13602_v38  ;;  %v13626_v14 = vand.u32 4294901760, %v828_v27  ;;  %v17333_v31 = vand.u32 4294901760, %v13426_v52  ;;  %v1171_v38 = vsub.f32 %v13431_v1, %v1170_v23 }
  0xe5   : > { %9772 = vmatmul.mubr.f32.gmra.mrb[2].mxu1 %v999_v6  ;;  %9940 = vmatmul.mubr.f32.gmra.mrb[2].mxu0 %v17329_v43  ;;  %v834_v6 = vsel %vm787_vm0, %v754_v41, 0  ;;  %v11120_v43 = vpack.c.bf16 %v1165_v44, %v1158_v28  ;;  %v1029_v48 = vand.u32 4294901760, %v1028_v16  ;;  %v1058_v41 = vsub.f32 %v13600_v55, %v1057_v35 }
  0xe6   : > { %17330 = vst [vmem:[#allocation39_spill] sm:$0xff] %v13624_v29  ;;  %9774 = vmatprep.mubr.f32.mxu1 %v1009_v40  ;;  %9942 = vmatprep.mubr.f32.mxu0 %v17331_v51  ;;  %v11216_v5 = vpack.c.bf16 %v17333_v31, %v17332_v25  ;;  %v1178_v40 = vsub.f32 %v13436_v4, %v1177_v26  ;;  %v1067_v51 = vand.u32 4294901760, %v13618_v50  ;;  %v1077_v34 = vand.u32 4294901760, %v13624_v29 }
  0xe7   : > { %v13650_v52 = vsub.f32 %v828_v27, %v13626_v14  ;;  %v13652_v1 = vand.u32 4294901760, %v834_v6  ;;  %v1049_v4 = vand.u32 4294901760, %v1048_v37  ;;  %v1087_v25 = vand.u32 4294901760, %v13633_v24 }
  0xe8   : > { %v1172_v28 = vand.u32 4294901760, %v1171_v38  ;;  %v1179_v44 = vand.u32 4294901760, %v1178_v40  ;;  %v1191_v16 = vand.u32 4294901760, %v13446_v2  ;;  %v1068_v27 = vsub.f32 %v13618_v50, %v1067_v51 }
  0xe9   : > { %9775 = vmatmul.mubr.f32.gmra.mrb[4].mxu1 %v1019_v62  ;;  %9943 = vmatmul.mubr.f32.gmra.mrb[4].mxu0 %v17334_v18  ;;  %v1184_v62 = vand.u32 4294901760, %v13441_v54  ;;  %v13660_v21 = vsub.f32 %v831_v58, %v13643_v19  ;;  %v1078_v37 = vsub.f32 %v13624_v29, %v1077_v34  ;;  %v1097_v38 = vand.u32 4294901760, %v13650_v52 }
  0xea   : > { %11119 = vmatpush3.bf16.xpose.msra.mxu1 %v11116_v17  ;;  %11215 = vmatpush3.bf16.xpose.msra.mxu0 %v13548_v46  ;;  %v17335_v17 = vand.u32 4294901760, %v13572_v61  ;;  %v1059_v46 = vand.u32 4294901760, %v1058_v41  ;;  %v13667_v31 = vsub.f32 %v834_v6, %v13652_v1  ;;  %v11124_v40 = vpack.c.bf16 %v1179_v44, %v1172_v28 }
  0xeb   : > { %11121 = vmatprep.subr.bf16.mxu1 %v11120_v43  ;;  %11217 = vmatprep.subr.bf16.mxu0 %v11216_v5  ;;  %v1185_v58 = vsub.f32 %v13441_v54, %v1184_v62  ;;  %v1069_v18 = vand.u32 4294901760, %v1068_v27  ;;  %v1107_v41 = vand.u32 4294901760, %v13660_v21  ;;  %v1098_v29 = vsub.f32 %v13650_v52, %v1097_v38 }
  0xec   : > { %9777 = vmatprep.mubr.f32.mxu1 %v1029_v48  ;;  %9945 = vmatprep.mubr.f32.mxu0 %v1027_v8  ;;  %v1088_v8 = vsub.f32 %v13633_v24, %v1087_v25  ;;  %v11220_v48 = vpack.c.bf16 %v1177_v26, %v1170_v23  ;;  %v1117_v6 = vand.u32 4294901760, %v13667_v31  ;;  %v1198_v54 = vand.u32 4294901760, %v13454_v11 }
  0xed   : > { %9778 = vmatmul.mubr.f32.gmra.mrb[6].mxu1 %v1039_v47  ;;  %9946 = vmatmul.mubr.f32.gmra.mrb[6].mxu0 %v17335_v17  ;;  %v1192_v47 = vsub.f32 %v13446_v2, %v1191_v16  ;;  %v1079_v17 = vand.u32 4294901760, %v1078_v37  ;;  %v1186_v23 = vand.u32 4294901760, %v1185_v58  ;;  %v1205_v2 = vand.u32 4294901760, %v13461_v15 }
  0xee   : > { %9780 = vmatprep.mubr.f32.mxu1 %v1049_v4  ;;  %9948 = vmatprep.mubr.f32.mxu0 %v1047_v39  ;;  %v1089_v39 = vand.u32 4294901760, %v1088_v8  ;;  %v1099_v4 = vand.u32 4294901760, %v1098_v29  ;;  %v1118_v28 = vsub.f32 %v13667_v31, %v1117_v6  ;;  %v1199_v44 = vsub.f32 %v13454_v11, %v1198_v54 }
  0xef   : > { %v1193_v26 = vand.u32 4294901760, %v1192_v47  ;;  %v1206_v27 = vsub.f32 %v13461_v15, %v1205_v2  ;;  %v11228_v15 = vpack.c.bf16 %v1205_v2, %v1198_v54  ;;  %v17348_v54 = vld [vmem:[#allocation25_spill] sm:$0xff]  ;;  %v17349_v2 = vld [vmem:[#allocation26_spill] sm:$0xff] }
  0xf0   : > { %v1119_v37 = vand.u32 4294901760, %v1118_v28  ;;  %v17352_v28 = vld [vmem:[#allocation30_spill] sm:$0xff] }
  0xf1   : > { %9781 = vmatmul.mubr.f32.gmra.mrb[8].mxu1 %v1059_v46  ;;  %9949 = vmatmul.mubr.f32.gmra.mrb[8].mxu0 %v1057_v35  ;;  %v1108_v35 = vsub.f32 %v13660_v21, %v1107_v41  ;;  %v1207_v29 = vand.u32 4294901760, %v1206_v27 }
  0xf2   : > { %11123 = vmatpush3.bf16.xpose.msra.mxu1 %v11120_v43  ;;  %11219 = vmatpush3.bf16.xpose.msra.mxu0 %v11216_v5  ;;  %v11128_v5 = vpack.c.bf16 %v1193_v26, %v1186_v23  ;;  %v11224_v43 = vpack.c.bf16 %v1191_v16, %v1184_v62  ;;  %v17345_v23 = vld [vmem:[#allocation33_spill] sm:$0xff]  ;;  %v17346_v26 = vld [vmem:[#allocation24_spill] sm:$0xff] }
  0xf3   : > { %11125 = vmatprep.subr.bf16.mxu1 %v11124_v40  ;;  %11221 = vmatprep.subr.bf16.mxu0 %v11220_v48  ;;  %v1109_v46 = vand.u32 4294901760, %v1108_v35  ;;  %v17350_v35 = vld [vmem:[#allocation27_spill] sm:$0xff] }
  0xf4   : > { %9783 = vmatprep.mubr.f32.mxu1 %v1069_v18  ;;  %9951 = vmatprep.mubr.f32.mxu0 %v1067_v51  ;;  %v1200_v51 = vand.u32 4294901760, %v1199_v44 }
  0xf5   : > { %9784 = vmatmul.mubr.f32.gmra.mrb[10].mxu1 %v1079_v17  ;;  %9952 = vmatmul.mubr.f32.gmra.mrb[10].mxu0 %v1077_v34  ;;  %v1212_v34 = vand.u32 4294901760, %v13469_v57 }
  0xf6   : > { %9786 = vmatprep.mubr.f32.mxu1 %v1089_v39  ;;  %9954 = vmatprep.mubr.f32.mxu0 %v1087_v25  ;;  %v1219_v25 = vand.u32 4294901760, %v13479_v32  ;;  %v11132_v11 = vpack.c.bf16 %v1207_v29, %v1200_v51  ;;  %v17344_v39 = vld [vmem:[#allocation23_spill] sm:$0xff] }
  0xf7   : > { %v1213_v62 = vsub.f32 %v13469_v57, %v1212_v34 }
  0xf8   : > { %v1220_v16 = vsub.f32 %v13479_v32, %v1219_v25  ;;  %v11232_v47 = vpack.c.bf16 %v1219_v25, %v1212_v34 }
  0xf9   : > { %9787 = vmatmul.mubr.f32.gmra.mrb[12].mxu1 %v1099_v4  ;;  %9955 = vmatmul.mubr.f32.gmra.mrb[12].mxu0 %v1097_v38  ;;  %v1214_v38 = vand.u32 4294901760, %v1213_v62  ;;  %v17351_v4 = vld [vmem:[#allocation28_spill] sm:$0xff] }
  0xfa   : > { %11127 = vmatpush3.bf16.xpose.msra.mxu1 %v11124_v40  ;;  %11223 = vmatpush3.bf16.xpose.msra.mxu0 %v11220_v48  ;;  %v1221_v8 = vand.u32 4294901760, %v1220_v16  ;;  %v1226_v40 = vand.u32 4294901760, %v13481_v33  ;;  %v1233_v48 = vand.u32 4294901760, %v13483_v60 }
  0xfb   : > { %11129 = vmatprep.subr.bf16.mxu1 %v11128_v5  ;;  %11225 = vmatprep.subr.bf16.mxu0 %v11224_v43 }
  0xfc   : > { %9789 = vmatprep.mubr.f32.mxu1 %v1109_v46  ;;  %9957 = vmatprep.mubr.f32.mxu0 %v1107_v41  ;;  %v11136_v58 = vpack.c.bf16 %v1221_v8, %v1214_v38  ;;  %v1227_v18 = vsub.f32 %v13481_v33, %v1226_v40  ;;  %v1234_v41 = vsub.f32 %v13483_v60, %v1233_v48  ;;  %v17339_v33 = vld [vmem:[#allocation38_spill] sm:$0xff] }
  0xfd   : > { %9790 = vmatmul.mubr.f32.gmra.mrb[14].mxu1 %v1119_v37  ;;  %9958 = vmatmul.mubr.f32.gmra.mrb[14].mxu0 %v1117_v6  ;;  %v11236_v6 = vpack.c.bf16 %v1233_v48, %v1226_v40  ;;  %v17341_v60 = vld [vmem:[#allocation22_spill] sm:$0xff] }
  0xfe   : > { %9824 = vmatprep.mubr.f32.mxu1 %v13275_v13  ;;  %9992 = vmatprep.mubr.f32.mxu0 %v13275_v13  ;;  %v1228_v57 = vand.u32 4294901760, %v1227_v18  ;;  %v1235_v32 = vand.u32 4294901760, %v1234_v41 }
 0x100   : > { %v11140_v17 = vpack.c.bf16 %v1235_v32, %v1228_v57 }
 0x102   : > { %11131 = vmatpush3.bf16.xpose.msra.mxu1 %v11128_v5  ;;  %11227 = vmatpush3.bf16.xpose.msra.mxu0 %v11224_v43  ;;  %v17353_v5 = vld [vmem:[#allocation36_spill] sm:$0xff] }
 0x103   : > { %11133 = vmatprep.subr.bf16.mxu1 %v11132_v11  ;;  %11229 = vmatprep.subr.bf16.mxu0 %v11228_v15 }
 0x10a   : > { %11135 = vmatpush3.bf16.xpose.msra.mxu1 %v11132_v11  ;;  %11231 = vmatpush3.bf16.xpose.msra.mxu0 %v11228_v15 }
 0x10b   : > { %11137 = vmatprep.subr.bf16.mxu1 %v11136_v58  ;;  %11233 = vmatprep.subr.bf16.mxu0 %v11232_v47 }
 0x112   : > { %11139 = vmatpush3.bf16.xpose.msra.mxu1 %v11136_v58  ;;  %11235 = vmatpush3.bf16.xpose.msra.mxu0 %v11232_v47 }
 0x113   : > { %11141 = vmatprep.subr.bf16.mxu1 %v11140_v17  ;;  %11237 = vmatprep.subr.bf16.mxu0 %v11236_v6 }
 0x11a   : > { %11143 = vmatpush3.bf16.xpose.msra.mxu1 %v11140_v17  ;;  %11239 = vmatpush3.bf16.xpose.msra.mxu0 %v11236_v6 }
 0x11b   : > { %11145 = vmatprep.subr.bf16.mxu1 %v13473_v30  ;;  %11241 = vmatprep.subr.bf16.mxu0 %v13237_v63 }
 0x121   : > { %9825 = vmatmul.mubr.f32.vlgmr.msra.gmra.mrb[0].mxu1 %v13376_v7  ;;  %9993 = vmatmul.mubr.f32.vlgmr.msra.gmra.mrb[0].mxu0 %v13376_v7 }
 0x122   : > { %11147 = vmatpush3.bf16.xpose.msra.mxu1 %v13473_v30  ;;  %11243 = vmatpush3.bf16.xpose.msra.mxu0 %v13237_v63  ;;  %v17336_v63 = vld [vmem:[#allocation35_spill] sm:$0xff]  ;;  %v17338_v30 = vld [vmem:[#allocation21_spill] sm:$0xff] }
 0x123   : > { %11149 = vmatprep.subr.bf16.mxu1 %v13490_v59  ;;  %11245 = vmatprep.subr.bf16.mxu0 %v13243_v0 }
 0x124   : > { %9827 = vmatprep.mubr.f32.mxu1 %v13401_v20  ;;  %9995 = vmatprep.mubr.f32.mxu0 %v13401_v20 }
 0x125   : > { %9828 = vmatmul.mubr.f32.gmra.mrb[2].mxu1 %v13418_v36  ;;  %9996 = vmatmul.mubr.f32.gmra.mrb[2].mxu0 %v13418_v36 }
 0x126   : > { %9830 = vmatprep.mubr.f32.mxu1 %v13456_v12  ;;  %9998 = vmatprep.mubr.f32.mxu0 %v13456_v12 }
 0x129   : > { %9831 = vmatmul.mubr.f32.gmra.mrb[4].mxu1 %v13503_v49  ;;  %9999 = vmatmul.mubr.f32.gmra.mrb[4].mxu0 %v13503_v49 }
 0x12a   : > { %11151 = vmatpush3.bf16.xpose.msra.mxu1 %v13490_v59  ;;  %11247 = vmatpush3.bf16.xpose.msra.mxu0 %v13243_v0  ;;  %v17337_v0 = vld [vmem:[#allocation29_spill] sm:$0xff]  ;;  %v17342_v59 = vld [vmem:[#allocation20_spill] sm:$0xff] }
 0x12b   : > { %11153 = vmatprep.subr.bf16.mxu1 %v13494_v10  ;;  %11249 = vmatprep.subr.bf16.mxu0 %v13266_v9 }
 0x12c   : > { %9833 = vmatprep.mubr.f32.mxu1 %v13538_v45  ;;  %10001 = vmatprep.mubr.f32.mxu0 %v13538_v45 }
 0x12d   : > { %9834 = vmatmul.mubr.f32.gmra.mrb[6].mxu1 %v13540_v53  ;;  %10002 = vmatmul.mubr.f32.gmra.mrb[6].mxu0 %v13540_v53 }
 0x12e   : > { %9836 = vmatprep.mubr.f32.mxu1 %v17336_v63  ;;  %10004 = vmatprep.mubr.f32.mxu0 %v17336_v63 }
 0x131   : > { %9837 = vmatmul.mubr.f32.gmra.mrb[8].mxu1 %v13577_v56  ;;  %10005 = vmatmul.mubr.f32.gmra.mrb[8].mxu0 %v13577_v56 }
 0x132   : > { %11155 = vmatpush3.bf16.xpose.msra.mxu1 %v13494_v10  ;;  %11251 = vmatpush3.bf16.xpose.msra.mxu0 %v13266_v9  ;;  %v17340_v9 = vld [vmem:[#allocation31_spill] sm:$0xff]  ;;  %v17343_v10 = vld [vmem:[#allocation32_spill] sm:$0xff] }
 0x133   : > { %11157 = vmatprep.subr.bf16.mxu1 %v17337_v0  ;;  %11253 = vmatprep.subr.bf16.mxu0 %v17338_v30 }
 0x134   : > { %9839 = vmatprep.mubr.f32.mxu1 %v13595_v22  ;;  %10007 = vmatprep.mubr.f32.mxu0 %v13595_v22 }
 0x135   : > { %9840 = vmatmul.mubr.f32.gmra.mrb[10].mxu1 %v17339_v33  ;;  %10008 = vmatmul.mubr.f32.gmra.mrb[10].mxu0 %v17339_v33 }
 0x136   : > { %9842 = vmatprep.mubr.f32.mxu1 %v13605_v3  ;;  %10010 = vmatprep.mubr.f32.mxu0 %v13605_v3 }
 0x139   : > { %9843 = vmatmul.mubr.f32.gmra.mrb[12].mxu1 %v13626_v14  ;;  %10011 = vmatmul.mubr.f32.gmra.mrb[12].mxu0 %v13626_v14 }
 0x13a   : > { %11159 = vmatpush3.bf16.xpose.msra.mxu1 %v17337_v0  ;;  %11255 = vmatpush3.bf16.xpose.msra.mxu0 %v17338_v30 }
 0x13b   : > { %11161 = vmatprep.subr.bf16.mxu1 %v17340_v9  ;;  %11257 = vmatprep.subr.bf16.mxu0 %v17341_v60 }
 0x13c   : > { %9845 = vmatprep.mubr.f32.mxu1 %v13643_v19  ;;  %10013 = vmatprep.mubr.f32.mxu0 %v13643_v19 }
 0x13d   : > { %9846 = vmatmul.mubr.f32.gmra.mrb[14].mxu1 %v13652_v1  ;;  %10014 = vmatmul.mubr.f32.gmra.mrb[14].mxu0 %v13652_v1 }
 0x13e   : > { %9880 = vmatprep.mubr.f32.mxu1 %v17342_v59  ;;  %10048 = vmatprep.mubr.f32.mxu0 %v13275_v13  ;;  %v17347_v13 = vld [vmem:[#allocation34_spill] sm:$0xff] }
 0x13f   : > { %v13840_v59 = vld [vmem:[%s13206_s18 + $0x10] sm:$0xff] }
 0x142   : > { %11163 = vmatpush3.bf16.xpose.msra.mxu1 %v17340_v9  ;;  %11259 = vmatpush3.bf16.xpose.msra.mxu0 %v17341_v60  ;;  %v13834_v9 = vld [vmem:[%s13206_s18] sm:$0xff]  ;;  %v13837_v60 = vld [vmem:[%s13206_s18 + $0x8] sm:$0xff] }
 0x143   : > { %11165 = vmatprep.subr.bf16.mxu1 %v17343_v10  ;;  %11261 = vmatprep.subr.bf16.mxu0 %v17344_v39 }
 0x14a   : > { %11167 = vmatpush3.bf16.xpose.msra.mxu1 %v17343_v10  ;;  %11263 = vmatpush3.bf16.xpose.msra.mxu0 %v17344_v39  ;;  %v2363_v10 = vand.u32 4294901760, %v13834_v9  ;;  %v2366_v39 = vand.u32 4294901760, %v13837_v60 }
 0x14b   : > { %11169 = vmatprep.subr.bf16.mxu1 %v17345_v23  ;;  %11265 = vmatprep.subr.bf16.mxu0 %v17346_v26 }
 0x152   : > { %11171 = vmatpush3.bf16.xpose.msra.mxu1 %v17345_v23  ;;  %11267 = vmatpush3.bf16.xpose.msra.mxu0 %v17346_v26  ;;  %v13845_v23 = vld [vmem:[%s13206_s18 + $0x18] sm:$0xff]  ;;  %v16983_v26 = vand.u32 4294901760, %v13840_v59 }
 0x153   : > { %11173 = vmatprep.subr.bf16.mxu1 %v17347_v13  ;;  %11269 = vmatprep.subr.bf16.mxu0 %v17348_v54 }
 0x15a   : > { %11175 = vmatpush3.bf16.xpose.msra.mxu1 %v17347_v13  ;;  %11271 = vmatpush3.bf16.xpose.msra.mxu0 %v17348_v54  ;;  %v16982_v13 = vand.u32 4294901760, %v13845_v23  ;;  %v13853_v54 = vpack.c.bf16 %v2366_v39, %v2363_v10 }
 0x15c   : > { %11273 = vmatprep.subr.bf16.mxu1 %v13853_v54 }
 0x161   : > { %9881 = vmatmul.mubr.f32.vlgmr.msra.gmra.mrb[0].mxu1 %v17349_v2  ;;  %10049 = vmatmul.mubr.f32.vlgmr.msra.gmra.mrb[0].mxu0 %v13376_v7  ;;  %v17354_v7 = vld [vmem:[#allocation37_spill] sm:$0xff]  ;;  %v13859_v2 = vpack.c.bf16 %v16982_v13, %v16983_v26 }
 0x162   : > { %9883 = vmatprep.mubr.f32.mxu1 %v17350_v35  ;;  %10051 = vmatprep.mubr.f32.mxu0 %v13401_v20  ;;  %v17355_v20 = vld [vmem:[#allocation39_spill] sm:$0xff]  ;;  %v3665_v13 = vld [vmem:[%s13202_s19 + $0x8] sm:$0xff] }
 0x163   : > { %11275 = vmatpush3.bf16.msra.mxu1 %v13853_v54 }
 0x164   : > { %11277 = vmatprep.subr.bf16.mxu1 %v13859_v2 }
 0x165   : > { %9884 = vmatmul.mubr.f32.gmra.mrb[2].mxu1 %v17351_v4  ;;  %10052 = vmatmul.mubr.f32.gmra.mrb[2].mxu0 %v13418_v36 }
 0x166   : > { %9886 = vmatprep.mubr.f32.mxu1 %v17352_v28  ;;  %10054 = vmatprep.mubr.f32.mxu0 %v13456_v12 }
 0x167   : > { %11279 = vmatpush3.bf16.msra.mxu1 %v13859_v2 }
 0x169   : > { %9887 = vmatmul.mubr.f32.gmra.mrb[4].mxu1 %v13536_v42  ;;  %10055 = vmatmul.mubr.f32.gmra.mrb[4].mxu0 %v13503_v49 }
 0x16a   : > { %9889 = vmatprep.mubr.f32.mxu1 %v17353_v5  ;;  %10057 = vmatprep.mubr.f32.mxu0 %v13538_v45 }
 0x16d   : > { %9890 = vmatmul.mubr.f32.gmra.mrb[6].mxu1 %v13572_v61  ;;  %10058 = vmatmul.mubr.f32.gmra.mrb[6].mxu0 %v13540_v53 }
 0x16e   : > { %9892 = vmatprep.mubr.f32.mxu1 %v17354_v7  ;;  %10060 = vmatprep.mubr.f32.mxu0 %v17336_v63 }
 0x171   : > { %9893 = vmatmul.mubr.f32.gmra.mrb[8].mxu1 %v13600_v55  ;;  %10061 = vmatmul.mubr.f32.gmra.mrb[8].mxu0 %v13577_v56 }
 0x172   : > { %9895 = vmatprep.mubr.f32.mxu1 %v13618_v50  ;;  %10063 = vmatprep.mubr.f32.mxu0 %v13595_v22 }
 0x175   : > { %9896 = vmatmul.mubr.f32.gmra.mrb[10].mxu1 %v17355_v20  ;;  %10064 = vmatmul.mubr.f32.gmra.mrb[10].mxu0 %v17339_v33 }
 0x176   : > { %9898 = vmatprep.mubr.f32.mxu1 %v13633_v24  ;;  %10066 = vmatprep.mubr.f32.mxu0 %v13605_v3 }
 0x179   : > { %9899 = vmatmul.mubr.f32.gmra.mrb[12].mxu1 %v13650_v52  ;;  %10067 = vmatmul.mubr.f32.gmra.mrb[12].mxu0 %v13626_v14 }
 0x17a   : > { %9901 = vmatprep.mubr.f32.mxu1 %v13660_v21  ;;  %10069 = vmatprep.mubr.f32.mxu0 %v13643_v19 }
 0x17d   : > { %9902 = vmatmul.mubr.f32.gmra.mrb[14].mxu1 %v13667_v31  ;;  %10070 = vmatmul.mubr.f32.gmra.mrb[14].mxu0 %v13652_v1 }
 0x234   : > { %v9882_v61 = vpop.f32.mrb[0].mxu1  ;;  %v10050_v36 = vpop.f32.mrb[0].mxu0 }
 0x235   : > { %v13785_v12 = vadd.f32 %v10050_v36, %v9882_v61  ;;  %v1466_v49 = vpop.f32.mrb[1].mxu1  ;;  %v2076_v42 = vpop.f32.mrb[1].mxu0 }
 0x236   : > { %v13787_v45 = vadd.f32 %v2076_v42, %v1466_v49 }
 0x238   : > { %v10053_v53 = vpop.f32.mrb[2].mxu0  ;;  %2170 = vmax.xlane.f32.xlu0 %v13787_v45  ;;  %v9885_v56 = vpop.f32.mrb[2].mxu1 }
 0x239   : > { %v13790_v22 = vadd.f32 %v10053_v53, %v9885_v56  ;;  %v1480_v55 = vpop.f32.mrb[3].mxu1  ;;  %v2088_v19 = vpop.f32.mrb[3].mxu0 }
 0x23a   : > { %v13792_v3 = vadd.f32 %v2088_v19, %v1480_v55 }
 0x23c   : > { %v10056_v50 = vpop.f32.mrb[4].mxu0  ;;  %2172 = vmax.xlane.f32.xlu0 %v13785_v12  ;;  %2174 = vmax.xlane.f32.xlu1 %v13792_v3  ;;  %v9888_v14 = vpop.f32.mrb[4].mxu1 }
 0x23d   : > { %v13796_v24 = vadd.f32 %v10056_v50, %v9888_v14  ;;  %v1494_v52 = vpop.f32.mrb[5].mxu1  ;;  %v2100_v1 = vpop.f32.mrb[5].mxu0 }
 0x23e   : > { %v13798_v21 = vadd.f32 %v2100_v1, %v1494_v52 }
 0x240   : > { %v10059_v31 = vpop.f32.mrb[6].mxu0  ;;  %2176 = vmax.xlane.f32.xlu1 %v13790_v22  ;;  %2178 = vmax.xlane.f32.xlu0 %v13798_v21  ;;  %v9891_v43 = vpop.f32.mrb[6].mxu1 }
 0x241   : > { %v13802_v44 = vadd.f32 %v10059_v31, %v9891_v43  ;;  %v1508_v27 = vpop.f32.mrb[7].mxu1  ;;  %v2112_v46 = vpop.f32.mrb[7].mxu0 }
 0x242   : > { %v13804_v37 = vadd.f32 %v2112_v46, %v1508_v27 }
 0x244   : > { %v10062_v51 = vpop.f32.mrb[8].mxu0  ;;  %2180 = vmax.xlane.f32.xlu1 %v13796_v24  ;;  %2182 = vmax.xlane.f32.xlu0 %v13804_v37  ;;  %v9894_v29 = vpop.f32.mrb[8].mxu1 }
 0x245   : > { %v13808_v34 = vadd.f32 %v10062_v51, %v9894_v29  ;;  %v1522_v25 = vpop.f32.mrb[9].mxu1  ;;  %v2124_v11 = vpop.f32.mrb[9].mxu0 }
 0x246   : > { %v13810_v15 = vadd.f32 %v2124_v11, %v1522_v25 }
 0x248   : > { %v10065_v62 = vpop.f32.mrb[10].mxu0  ;;  %2184 = vmax.xlane.f32.xlu1 %v13802_v44  ;;  %2186 = vmax.xlane.f32.xlu0 %v13810_v15  ;;  %v9897_v16 = vpop.f32.mrb[10].mxu1 }
 0x249   : > { %v13814_v38 = vadd.f32 %v10065_v62, %v9897_v16  ;;  %v1536_v8 = vpop.f32.mrb[11].mxu1  ;;  %v2136_v40 = vpop.f32.mrb[11].mxu0 }
 0x24a   : > { %v13816_v48 = vadd.f32 %v2136_v40, %v1536_v8 }
 0x24c   : > { %v10068_v58 = vpop.f32.mrb[12].mxu0  ;;  %2188 = vmax.xlane.f32.xlu1 %v13808_v34  ;;  %2190 = vmax.xlane.f32.xlu0 %v13816_v48  ;;  %v9900_v47 = vpop.f32.mrb[12].mxu1 }
 0x24d   : > { %v13820_v18 = vadd.f32 %v10068_v58, %v9900_v47  ;;  %v1550_v41 = vpop.f32.mrb[13].mxu1  ;;  %v2148_v57 = vpop.f32.mrb[13].mxu0 }
 0x24e   : > { %v13822_v32 = vadd.f32 %v2148_v57, %v1550_v41 }
 0x250   : > { %v10071_v17 = vpop.f32.mrb[14].mxu0  ;;  %2192 = vmax.xlane.f32.xlu1 %v13814_v38  ;;  %2194 = vmax.xlane.f32.xlu0 %v13822_v32  ;;  %v9903_v6 = vpop.f32.mrb[14].mxu1 }
 0x251   : > { %v13826_v63 = vadd.f32 %v10071_v17, %v9903_v6  ;;  %v1564_v0 = vpop.f32.mrb[15].mxu1  ;;  %v2160_v30 = vpop.f32.mrb[15].mxu0 }
 0x252   : > { %v13828_v33 = vadd.f32 %v2160_v30, %v1564_v0  ;;  %v13899_v30 = vld [vmem:[%s13206_s18 + $0x20] sm:$0xff] }
 0x254   : > { %2196 = vmax.xlane.f32.xlu1 %v13820_v18  ;;  %2198 = vmax.xlane.f32.xlu0 %v13828_v33 }
 0x258   : > { %2200 = vmax.xlane.f32.xlu1 %v13826_v63 }
 0x2c5   : > { %v2171_v35 = vpop.xlane.xlu0 %2170 }
 0x2c6   : > { %v2202_v4 = vsub.f32 %v13787_v45, %v2171_v35  ;;  %v13902_v35 = vld [vmem:[%s13206_s18 + $0x28] sm:$0xff] }
 0x2c8   : > { %v2218_v28 = vmul.f32 1.442695, %v2202_v4  ;;  %v2375_v4 = vand.u32 4294901760, %v13899_v30 }
 0x2c9   : > { %v2173_v5 = vpop.xlane.xlu0 %2172  ;;  %v2175_v7 = vpop.xlane.xlu1 %2174 }
 0x2ca   : > { %12645 = vpow2.f32 %v2218_v28  ;;  %v2203_v20 = vsub.f32 %v13785_v12, %v2173_v5  ;;  %v2204_v61 = vsub.f32 %v13792_v3, %v2175_v7  ;;  %v2378_v28 = vand.u32 4294901760, %v13902_v35 }
 0x2cc   : > { %v2220_v36 = vmul.f32 1.442695, %v2203_v20  ;;  %v2222_v49 = vmul.f32 1.442695, %v2204_v61 }
 0x2cd   : > { %v2177_v42 = vpop.xlane.xlu1 %2176  ;;  %v2179_v53 = vpop.xlane.xlu0 %2178 }
 0x2ce   : > { %12647 = vpow2.f32 %v2220_v36  ;;  %v2205_v56 = vsub.f32 %v13790_v22, %v2177_v42  ;;  %v2206_v55 = vsub.f32 %v13798_v21, %v2179_v53 }
 0x2cf   : > { %12649 = vpow2.f32 %v2222_v49  ;;  %v13924_v49 = vld [vmem:[%s13206_s18 + $0x38] sm:$0xff] }
 0x2d0   : > { %v2224_v19 = vmul.f32 1.442695, %v2205_v56  ;;  %v2226_v45 = vmul.f32 1.442695, %v2206_v55  ;;  %v2384_v56 = vand.u32 4294901760, %v13924_v49 }
 0x2d1   : > { %v2181_v50 = vpop.xlane.xlu1 %2180  ;;  %v2183_v14 = vpop.xlane.xlu0 %2182 }
 0x2d2   : > { %12651 = vpow2.f32 %v2224_v19  ;;  %v2207_v52 = vsub.f32 %v13796_v24, %v2181_v50  ;;  %v2208_v12 = vsub.f32 %v13804_v37, %v2183_v14  ;;  %v13944_v50 = vld [vmem:[%s13206_s18 + $0x40] sm:$0xff]  ;;  %v13947_v14 = vld [vmem:[%s13206_s18 + $0x48] sm:$0xff] }
 0x2d3   : > { %12653 = vpow2.f32 %v2226_v45 }
 0x2d4   : > { %v13872_v3 = vpop.eup %12645  ;;  %v2228_v1 = vmul.f32 1.442695, %v2207_v52  ;;  %v2230_v31 = vmul.f32 1.442695, %v2208_v12  ;;  %v2387_v52 = vand.u32 4294901760, %v13944_v50  ;;  %v2390_v12 = vand.u32 4294901760, %v13947_v14 }
 0x2d5   : > { %v2185_v43 = vpop.xlane.xlu1 %2184  ;;  %v2187_v27 = vpop.xlane.xlu0 %2186  ;;  %2250 = vadd.xlane.f32.xlu0 %v13872_v3 }
 0x2d6   : > { %12655 = vpow2.f32 %v2228_v1  ;;  %v2209_v22 = vsub.f32 %v13802_v44, %v2185_v43  ;;  %v2210_v21 = vsub.f32 %v13810_v15, %v2187_v27  ;;  %v13962_v27 = vld [vmem:[%s13206_s18 + $0x50] sm:$0xff] }
 0x2d7   : > { %12657 = vpow2.f32 %v2230_v31  ;;  %v13956_v31 = vpack.c.bf16 %v2390_v12, %v2387_v52 }
 0x2d8   : > { %v13877_v46 = vpop.eup %12647  ;;  %v2232_v24 = vmul.f32 1.442695, %v2209_v22  ;;  %v2234_v51 = vmul.f32 1.442695, %v2210_v21  ;;  %v13965_v22 = vld [vmem:[%s13206_s18 + $0x58] sm:$0xff]  ;;  %v2393_v21 = vand.u32 4294901760, %v13962_v27 }
 0x2d9   : > { %v13879_v37 = vpop.eup %12649  ;;  %v2189_v29 = vpop.xlane.xlu1 %2188  ;;  %2252 = vadd.xlane.f32.xlu1 %v13877_v46  ;;  %17356 = vst [vmem:[#allocation35_spill] sm:$0xff] %v13956_v31 }
 0x2da   : > { %v2191_v25 = vpop.xlane.xlu0 %2190  ;;  %12659 = vpow2.f32 %v2232_v24  ;;  %v2211_v11 = vsub.f32 %v13808_v34, %v2189_v29  ;;  %2254 = vadd.xlane.f32.xlu0 %v13879_v37  ;;  %v2396_v24 = vand.u32 4294901760, %v13965_v22 }
 0x2db   : > { %v2212_v62 = vsub.f32 %v13816_v48, %v2191_v25  ;;  %12661 = vpow2.f32 %v2234_v51 }
 0x2dc   : > { %v13885_v44 = vpop.eup %12651  ;;  %v2236_v15 = vmul.f32 1.442695, %v2211_v11  ;;  %v13974_v29 = vpack.c.bf16 %v2396_v24, %v2393_v21  ;;  %v783_v11 = vld [vmem:[%s13206_s18 + $0x60] sm:$0xff] }
 0x2dd   : > { %v2238_v16 = vmul.f32 1.442695, %v2212_v62  ;;  %v13887_v8 = vpop.eup %12653  ;;  %v2193_v40 = vpop.xlane.xlu1 %2192  ;;  %2256 = vadd.xlane.f32.xlu1 %v13885_v44  ;;  %v784_v62 = vld [vmem:[%s13206_s18 + $0x68] sm:$0xff] }
 0x2de   : > { %v2195_v58 = vpop.xlane.xlu0 %2194  ;;  %12663 = vpow2.f32 %v2236_v15  ;;  %v2213_v34 = vsub.f32 %v13814_v38, %v2193_v40  ;;  %2258 = vadd.xlane.f32.xlu0 %v13887_v8  ;;  %17357 = vst [vmem:[#allocation29_spill] sm:$0xff] %v13974_v29  ;;  %v2399_v15 = vand.u32 4294901760, %v783_v11 }
 0x2df   : > { %v2214_v48 = vsub.f32 %v13822_v32, %v2195_v58  ;;  %12665 = vpow2.f32 %v2238_v16  ;;  %v2402_v16 = vand.u32 4294901760, %v784_v62 }
 0x2e0   : > { %v13893_v47 = vpop.eup %12655  ;;  %v2240_v41 = vmul.f32 1.442695, %v2213_v34  ;;  %v13991_v34 = vsub.f32 %v13834_v9, %v2363_v10 }
 0x2e1   : > { %v2242_v57 = vmul.f32 1.442695, %v2214_v48  ;;  %v13895_v17 = vpop.eup %12657  ;;  %v2197_v6 = vpop.xlane.xlu1 %2196  ;;  %2260 = vadd.xlane.f32.xlu1 %v13893_v47  ;;  %v13986_v58 = vpack.c.bf16 %v2402_v16, %v2399_v15  ;;  %v13996_v48 = vsub.f32 %v13837_v60, %v2366_v39 }
 0x2e2   : > { %v2199_v0 = vpop.xlane.xlu0 %2198  ;;  %12667 = vpow2.f32 %v2240_v41  ;;  %v2215_v38 = vsub.f32 %v13820_v18, %v2197_v6  ;;  %2262 = vadd.xlane.f32.xlu0 %v13895_v17  ;;  %v13918_v18 = vpack.c.bf16 %v2378_v28, %v2375_v4  ;;  %17359 = vst [vmem:[#allocation38_spill] sm:$0xff] %v13991_v34  ;;  %v785_v41 = vld [vmem:[%s13206_s18 + $0x70] sm:$0xff] }
 0x2e3   : > { %v2216_v32 = vsub.f32 %v13828_v33, %v2199_v0  ;;  %12669 = vpow2.f32 %v2242_v57  ;;  %v13921_v33 = vld [vmem:[%s13206_s18 + $0x30] sm:$0xff]  ;;  %17358 = vst [vmem:[#allocation21_spill] sm:$0xff] %v13986_v58  ;;  %17360 = vst [vmem:[#allocation31_spill] sm:$0xff] %v13996_v48  ;;  %v786_v57 = vld [vmem:[%s13206_s18 + $0x78] sm:$0xff]  ;;  %v2405_v6 = vand.u32 4294901760, %v785_v41 }
 0x2e4   : > { %v13909_v5 = vpop.eup %12659  ;;  %v2244_v7 = vmul.f32 1.442695, %v2215_v38  ;;  %v2381_v53 = vand.u32 4294901760, %v13921_v33  ;;  %11281 = vmatprep.subr.bf16.mxu1 %v13918_v18  ;;  %v2408_v0 = vand.u32 4294901760, %v786_v57  ;;  %v16973_v38 = vand.u32 4294901760, %v13991_v34 }
 0x2e5   : > { %v2246_v20 = vmul.f32 1.442695, %v2216_v32  ;;  %v13911_v61 = vpop.eup %12661  ;;  %2264 = vadd.xlane.f32.xlu1 %v13909_v5  ;;  %v2201_v36 = vpop.xlane.xlu1 %2200  ;;  %11283 = vmatpush3.bf16.msra.mxu1 %v13918_v18  ;;  %v16969_v32 = vand.u32 4294901760, %v13996_v48 }
 0x2e6   : > { %12671 = vpow2.f32 %v2244_v7  ;;  %v2217_v42 = vsub.f32 %v13826_v63, %v2201_v36  ;;  %2266 = vadd.xlane.f32.xlu0 %v13911_v61  ;;  %v13938_v63 = vpack.c.bf16 %v2384_v56, %v2381_v53  ;;  %v14005_v9 = vpack.c.bf16 %v2408_v0, %v2405_v6 }
 0x2e7   : > { %12673 = vpow2.f32 %v2246_v20  ;;  %v2607_v60 = vsub.f32 %v13991_v34, %v16973_v38  ;;  %v2614_v10 = vsub.f32 %v13996_v48, %v16969_v32  ;;  %v14020_v36 = vsub.f32 %v13899_v30, %v2375_v4 }
 0x2e8   : > { %v13931_v55 = vpop.eup %12663  ;;  %v2248_v19 = vmul.f32 1.442695, %v2217_v42  ;;  %11285 = vmatprep.subr.bf16.mxu1 %v13938_v63  ;;  %17361 = vst [vmem:[#allocation22_spill] sm:$0xff] %v14005_v9  ;;  %v14025_v42 = vsub.f32 %v13902_v35, %v2378_v28  ;;  %v14039_v4 = vsub.f32 %v13921_v33, %v2381_v53  ;;  %v14044_v35 = vsub.f32 %v13924_v49, %v2384_v56 }
 0x2e9   : > { %v13940_v45 = vpop.eup %12665  ;;  %2268 = vadd.xlane.f32.xlu1 %v13931_v55  ;;  %11287 = vmatpush3.bf16.msra.mxu1 %v13938_v63  ;;  %v2608_v39 = vand.u32 4294901760, %v2607_v60  ;;  %v2615_v7 = vand.u32 4294901760, %v2614_v10  ;;  %17362 = vst [vmem:[#allocation20_spill] sm:$0xff] %v14020_v36  ;;  %v14054_v33 = vsub.f32 %v13944_v50, %v2387_v52  ;;  %v14057_v53 = vsub.f32 %v13947_v14, %v2390_v12 }
 0x2ea   : > { %12675 = vpow2.f32 %v2248_v19  ;;  %2270 = vadd.xlane.f32.xlu0 %v13940_v45  ;;  %11289 = vmatprep.subr.bf16.mxu1 %v13956_v31  ;;  %17363 = vst [vmem:[#allocation32_spill] sm:$0xff] %v14025_v42  ;;  %v16968_v19 = vand.u32 4294901760, %v14020_v36  ;;  %v16970_v60 = vand.u32 4294901760, %v14025_v42  ;;  %17364 = vst [vmem:[#allocation23_spill] sm:$0xff] %v14039_v4  ;;  %v14071_v14 = vsub.f32 %v13962_v27, %v2393_v21 }
 0x2eb   : > { %v14015_v20 = vpack.c.bf16 %v2615_v7, %v2608_v39  ;;  %17365 = vst [vmem:[#allocation33_spill] sm:$0xff] %v14044_v35  ;;  %v16972_v7 = vand.u32 4294901760, %v14039_v4  ;;  %17366 = vst [vmem:[#allocation24_spill] sm:$0xff] %v14054_v33  ;;  %v14074_v52 = vsub.f32 %v13965_v22, %v2396_v24  ;;  %v14088_v22 = vsub.f32 %v783_v11, %v2399_v15 }
 0x2ec   : > { %v13953_v1 = vpop.eup %12667  ;;  %v2635_v10 = vsub.f32 %v14020_v36, %v16968_v19  ;;  %v2642_v30 = vsub.f32 %v14025_v42, %v16970_v60  ;;  %v16971_v19 = vand.u32 4294901760, %v14044_v35  ;;  %17367 = vst [vmem:[#allocation34_spill] sm:$0xff] %v14057_v53  ;;  %17368 = vst [vmem:[#allocation25_spill] sm:$0xff] %v14071_v14  ;;  %v14090_v21 = vsub.f32 %v784_v62, %v2402_v16 }
 0x2ed   : > { %v13958_v43 = vpop.eup %12669  ;;  %2272 = vadd.xlane.f32.xlu1 %v13953_v1  ;;  %11291 = vmatpush3.bf16.msra.mxu1 %v13956_v31  ;;  %v2649_v60 = vsub.f32 %v14039_v4, %v16972_v7  ;;  %17369 = vst [vmem:[#allocation26_spill] sm:$0xff] %v14074_v52  ;;  %v16975_v7 = vand.u32 4294901760, %v14074_v52  ;;  %17370 = vst [vmem:[#allocation27_spill] sm:$0xff] %v14088_v22 }
 0x2ee   : > { %2274 = vadd.xlane.f32.xlu0 %v13958_v43  ;;  %11293 = vmatprep.subr.bf16.mxu1 %v13974_v29  ;;  %v2636_v28 = vand.u32 4294901760, %v2635_v10  ;;  %v2643_v39 = vand.u32 4294901760, %v2642_v30  ;;  %v2656_v49 = vsub.f32 %v14044_v35, %v16971_v19  ;;  %v16981_v10 = vand.u32 4294901760, %v14054_v33  ;;  %17371 = vst [vmem:[#allocation28_spill] sm:$0xff] %v14090_v21 }
 0x2ef   : > { %v2650_v56 = vand.u32 4294901760, %v2649_v60  ;;  %v16974_v30 = vand.u32 4294901760, %v14057_v53  ;;  %v2684_v27 = vsub.f32 %v14074_v52, %v16975_v7  ;;  %v14101_v7 = vsub.f32 %v786_v57, %v2408_v0 }
 0x2f0   : > { %v13971_v51 = vpop.eup %12671  ;;  %v14048_v32 = vpack.c.bf16 %v2643_v39, %v2636_v28  ;;  %v2657_v28 = vand.u32 4294901760, %v2656_v49  ;;  %v2663_v39 = vsub.f32 %v14054_v33, %v16981_v10  ;;  %v16980_v49 = vand.u32 4294901760, %v14071_v14  ;;  %v3708_v10 = vld [vmem:[%s13204_s14 + $0x60] sm:$0xff] }
 0x2f1   : > { %v13976_v25 = vpop.eup %12673  ;;  %2276 = vadd.xlane.f32.xlu1 %v13971_v51  ;;  %11295 = vmatpush3.bf16.msra.mxu1 %v13974_v29  ;;  %v2670_v50 = vsub.f32 %v14057_v53, %v16974_v30  ;;  %17373 = vst [vmem:[#allocation36_spill] sm:$0xff] %v14101_v7  ;;  %v16976_v16 = vand.u32 4294901760, %v14101_v7 }
 0x2f2   : > { %2278 = vadd.xlane.f32.xlu0 %v13976_v25  ;;  %11297 = vmatprep.subr.bf16.mxu1 %v13986_v58  ;;  %v14076_v12 = vpack.c.bf16 %v2657_v28, %v2650_v56  ;;  %v2664_v60 = vand.u32 4294901760, %v2663_v39  ;;  %v2677_v30 = vsub.f32 %v14071_v14, %v16980_v49  ;;  %v2685_v56 = vand.u32 4294901760, %v2684_v27  ;;  %v3709_v49 = vld [vmem:[%s13204_s14 + $0x68] sm:$0xff] }
 0x2f3   : > { %v2671_v19 = vand.u32 4294901760, %v2670_v50  ;;  %v16979_v28 = vand.u32 4294901760, %v14088_v22  ;;  %v16978_v39 = vand.u32 4294901760, %v14090_v21 }
 0x2f4   : > { %v13983_v40 = vpop.eup %12675  ;;  %v2678_v24 = vand.u32 4294901760, %v2677_v30 }
 0x2f5   : > { %2280 = vadd.xlane.f32.xlu1 %v13983_v40  ;;  %11299 = vmatpush3.bf16.msra.mxu1 %v13986_v58  ;;  %v14080_v38 = vpack.c.bf16 %v2671_v19, %v2664_v60  ;;  %v2691_v50 = vsub.f32 %v14088_v22, %v16979_v28  ;;  %v14099_v60 = vsub.f32 %v785_v41, %v2405_v6  ;;  %v3704_v28 = vld [vmem:[%s13204_s14 + $0x40] sm:$0xff] }
 0x2f6   : > { %11301 = vmatprep.subr.bf16.mxu1 %v14005_v9  ;;  %v14094_v19 = vpack.c.bf16 %v2685_v56, %v2678_v24  ;;  %v2698_v11 = vsub.f32 %v14090_v21, %v16978_v39  ;;  %v2712_v41 = vsub.f32 %v14101_v7, %v16976_v16  ;;  %v14120_v56 = vpack.c.bf16 %v13996_v48, %v13991_v34  ;;  %v3703_v16 = vld [vmem:[%s13204_s14 + $0x38] sm:$0xff]  ;;  %v3705_v39 = vld [vmem:[%s13204_s14 + $0x48] sm:$0xff] }
 0x2f7   : > { %17372 = vst [vmem:[#allocation30_spill] sm:$0xff] %v14099_v60  ;;  %v2692_v62 = vand.u32 4294901760, %v2691_v50  ;;  %v16977_v15 = vand.u32 4294901760, %v14099_v60  ;;  %v3697_v50 = vld [vmem:[%s13204_s14 + $0x8] sm:$0xff] }
 0x2f8   : > { %v2699_v30 = vand.u32 4294901760, %v2698_v11  ;;  %v2713_v0 = vand.u32 4294901760, %v2712_v41  ;;  %v14126_v11 = vpack.c.bf16 %v14025_v42, %v14020_v36  ;;  %v3699_v41 = vld [vmem:[%s13204_s14 + $0x18] sm:$0xff]  ;;  %v3674_v36 = vld [vmem:[%s13202_s19 + $0x50] sm:$0xff]  ;;  %v2319_v34 = vld [vmem:[#allocation2 + $0x28] sm:$0xff] }
 0x2f9   : > { %11303 = vmatpush3.bf16.msra.mxu1 %v14005_v9  ;;  %v2705_v27 = vsub.f32 %v14099_v60, %v16977_v15  ;;  %v3702_v15 = vld [vmem:[%s13204_s14 + $0x30] sm:$0xff] }
 0x2fa   : > { %11305 = vmatprep.subr.bf16.mxu1 %v14015_v20  ;;  %v14114_v57 = vpack.c.bf16 %v2699_v30, %v2692_v62  ;;  %v3698_v62 = vld [vmem:[%s13204_s14 + $0x10] sm:$0xff]  ;;  %v3696_v30 = vld [vmem:[%s13204_s14] sm:$0xff] }
 0x2fb   : > { %v2706_v6 = vand.u32 4294901760, %v2705_v27  ;;  %v14134_v27 = vpack.c.bf16 %v14044_v35, %v14039_v4  ;;  %v2317_v4 = vld [vmem:[#allocation2 + $0x18] sm:$0xff] }
 0x2fd   : > { %v14116_v24 = vpack.c.bf16 %v2713_v0, %v2706_v6  ;;  %v14140_v6 = vpack.c.bf16 %v14057_v53, %v14054_v33  ;;  %v14144_v0 = vpack.c.bf16 %v14074_v52, %v14071_v14  ;;  %v3672_v14 = vld [vmem:[%s13202_s19 + $0x40] sm:$0xff] }
 0x2fe   : > { %v3688_v53 = vmul.f32 0.125, %v3672_v14 }
 0x306   : > { %3794 = vrot.lane.b32.xlu1 %v3697_v50, %s12918_s1  ;;  %v14148_v50 = vpack.c.bf16 %v14090_v21, %v14088_v22  ;;  %v3671_v22 = vld [vmem:[%s13202_s19 + $0x38] sm:$0xff] }
 0x308   : > { %3792 = vrot.lane.b32.xlu0 %v3696_v30, %s12918_s1  ;;  %v3700_v30 = vld [vmem:[%s13204_s14 + $0x20] sm:$0xff] }
 0x30a   : > { %3796 = vrot.lane.b32.xlu1 %v3698_v62, %s12918_s1  ;;  %v3701_v62 = vld [vmem:[%s13204_s14 + $0x28] sm:$0xff] }
 0x30c   : > { %3800 = vrot.lane.b32.xlu0 %v3700_v30, %s12918_s1  ;;  %v3706_v30 = vld [vmem:[%s13204_s14 + $0x50] sm:$0xff] }
 0x30e   : > { %3798 = vrot.lane.b32.xlu1 %v3699_v41, %s12918_s1  ;;  %v14156_v41 = vpack.c.bf16 %v14101_v7, %v14099_v60  ;;  %v2314_v60 = vld [vmem:[#allocation2] sm:$0xff] }
 0x310   : > { %3804 = vrot.lane.b32.xlu0 %v3702_v15, %s12918_s1  ;;  %v3711_v15 = vld [vmem:[%s13204_s14 + $0x78] sm:$0xff] }
 0x312   : > { %3802 = vrot.lane.b32.xlu1 %v3701_v62, %s12918_s1  ;;  %v3707_v62 = vld [vmem:[%s13204_s14 + $0x58] sm:$0xff] }
 0x314   : > { %3808 = vrot.lane.b32.xlu0 %v3704_v28, %s12918_s1  ;;  %v3664_v28 = vld [vmem:[%s13202_s19] sm:$0xff] }
 0x316   : > { %3806 = vrot.lane.b32.xlu1 %v3703_v16, %s12918_s1  ;;  %v3710_v16 = vld [vmem:[%s13204_s14 + $0x70] sm:$0xff] }
 0x318   : > { %3812 = vrot.lane.b32.xlu0 %v3706_v30, %s12918_s1 }
 0x31a   : > { %3810 = vrot.lane.b32.xlu1 %v3705_v39, %s12918_s1  ;;  %v3680_v39 = vmul.f32 0.125, %v3664_v28  ;;  %v17374_v28 = vand.u32 4294901760, %v13840_v59 }
 0x31c   : > { %3816 = vrot.lane.b32.xlu0 %v3708_v10, %s12918_s1  ;;  %v3666_v10 = vld [vmem:[%s13202_s19 + $0x10] sm:$0xff] }
 0x31d   : > { %v3682_v7 = vmul.f32 0.125, %v3666_v10 }
 0x31e   : > { %3814 = vrot.lane.b32.xlu1 %v3707_v62, %s12918_s1  ;;  %v3681_v62 = vmul.f32 0.125, %v3665_v13  ;;  %v14187_v13 = vsub.f32 %v13840_v59, %v17374_v28 }
 0x320   : > { %3820 = vrot.lane.b32.xlu0 %v3710_v16, %s12918_s1 }
 0x322   : > { %3818 = vrot.lane.b32.xlu1 %v3709_v49, %s12918_s1 }
 0x324   : > { %3744 = vrot.lane.b32.xlu0 %v3680_v39, %s12918_s1 }
 0x326   : > { %3822 = vrot.lane.b32.xlu1 %v3711_v15, %s12918_s1  ;;  %v3667_v15 = vld [vmem:[%s13202_s19 + $0x18] sm:$0xff] }
 0x327   : > { %v3683_v16 = vmul.f32 0.125, %v3667_v15  ;;  %v3669_v15 = vld [vmem:[%s13202_s19 + $0x28] sm:$0xff] }
 0x328   : > { %3748 = vrot.lane.b32.xlu0 %v3682_v7, %s12918_s1  ;;  %v3685_v59 = vmul.f32 0.125, %v3669_v15  ;;  %v3687_v7 = vmul.f32 0.125, %v3671_v22 }
 0x32a   : > { %3746 = vrot.lane.b32.xlu1 %v3681_v62, %s12918_s1 }
 0x32e   : > { %3750 = vrot.lane.b32.xlu1 %v3683_v16, %s12918_s1 }
 0x332   : > { %3754 = vrot.lane.b32.xlu1 %v3685_v59, %s12918_s1 }
 0x336   : > { %3758 = vrot.lane.b32.xlu1 %v3687_v7, %s12918_s1 }
 0x362   : > { %v2251_v26 = vpop.xlane.xlu0 %2250 }
 0x363   : > { %12677 = vrcp.f32 %v2251_v26  ;;  %v17375_v26 = vand.u32 4294901760, %v13845_v23 }
 0x365   : > { %v14193_v62 = vsub.f32 %v13845_v23, %v17375_v26 }
 0x366   : > { %v2253_v49 = vpop.xlane.xlu1 %2252 }
 0x367   : > { %12679 = vrcp.f32 %v2253_v49  ;;  %v2255_v30 = vpop.xlane.xlu0 %2254  ;;  %v3668_v49 = vld [vmem:[%s13202_s19 + $0x20] sm:$0xff]  ;;  %v16994_v16 = vand.u32 4294901760, %v14193_v62 }
 0x368   : > { %12681 = vrcp.f32 %v2255_v30  ;;  %v3684_v30 = vmul.f32 0.125, %v3668_v49 }
 0x369   : > { %v2628_v22 = vsub.f32 %v14193_v62, %v16994_v16 }
 0x36a   : > { %v2257_v39 = vpop.xlane.xlu1 %2256  ;;  %3752 = vrot.lane.b32.xlu0 %v3684_v30, %s12918_s1  ;;  %v2315_v30 = vld [vmem:[#allocation2 + $0x8] sm:$0xff] }
 0x36b   : > { %12683 = vrcp.f32 %v2257_v39  ;;  %v2259_v10 = vpop.xlane.xlu0 %2258  ;;  %v3670_v39 = vld [vmem:[%s13202_s19 + $0x30] sm:$0xff]  ;;  %v2629_v42 = vand.u32 4294901760, %v2628_v22 }
 0x36c   : > { %12685 = vrcp.f32 %v2259_v10  ;;  %v3686_v21 = vmul.f32 0.125, %v3670_v39 }
 0x36d   : > { %v12678_v28 = vpop.eup %12677 }
 0x36e   : > { %v2283_v23 = vmul.f32 %v12678_v28, %v13872_v3  ;;  %v2261_v26 = vpop.xlane.xlu1 %2260  ;;  %v17376_v3 = vand.u32 4294901760, %v14187_v13  ;;  %3756 = vrot.lane.b32.xlu0 %v3686_v21, %s12918_s1 }
 0x36f   : > { %12687 = vrcp.f32 %v2261_v26  ;;  %v2263_v49 = vpop.xlane.xlu0 %2262 }
 0x370   : > { %v2330_v10 = vadd.f32 %v2314_v60, %v2283_v23  ;;  %12689 = vrcp.f32 %v2263_v49  ;;  %v14205_v15 = vand.u32 4294901760, %v2283_v23  ;;  %v14210_v28 = vsub.f32 %v14187_v13, %v17376_v3  ;;  %v2316_v60 = vld [vmem:[#allocation2 + $0x10] sm:$0xff] }
 0x371   : > { %v12680_v52 = vpop.eup %12679 }
 0x372   : > { %v12682_v59 = vpop.eup %12681  ;;  %2346 = vst [vmem:[#allocation2] sm:$0xff] %v2330_v10  ;;  %v2285_v26 = vmul.f32 %v12680_v52, %v13877_v46  ;;  %v2265_v39 = vpop.xlane.xlu1 %2264  ;;  %v14215_v49 = vsub.f32 %v2283_v23, %v14205_v15  ;;  %v3673_v10 = vld [vmem:[%s13202_s19 + $0x48] sm:$0xff]  ;;  %v2622_v7 = vand.u32 4294901760, %v14210_v28  ;;  %3760 = vrot.lane.b32.xlu0 %v3688_v53, %s12918_s1 }
 0x373   : > { %v2287_v3 = vmul.f32 %v12682_v59, %v13879_v37  ;;  %12691 = vrcp.f32 %v2265_v39  ;;  %v2267_v21 = vpop.xlane.xlu0 %2266  ;;  %v3689_v37 = vmul.f32 0.125, %v3673_v10  ;;  %v3675_v10 = vld [vmem:[%s13202_s19 + $0x58] sm:$0xff] }
 0x374   : > { %v2331_v33 = vadd.f32 %v2315_v30, %v2285_v26  ;;  %v14224_v46 = vand.u32 4294901760, %v2285_v26  ;;  %12693 = vrcp.f32 %v2267_v21  ;;  %v16997_v52 = vand.u32 4294901760, %v14215_v49  ;;  %v2318_v30 = vld [vmem:[#allocation2 + $0x20] sm:$0xff] }
 0x375   : > { %v12684_v23 = vpop.eup %12683  ;;  %v2332_v35 = vadd.f32 %v2316_v60, %v2287_v3  ;;  %v14227_v16 = vand.u32 4294901760, %v2287_v3  ;;  %3762 = vrot.lane.b32.xlu1 %v3689_v37, %s12918_s1 }
 0x376   : > { %v12686_v59 = vpop.eup %12685  ;;  %2347 = vst [vmem:[#allocation2 + $0x8] sm:$0xff] %v2331_v33  ;;  %v2289_v14 = vmul.f32 %v12684_v23, %v13885_v44  ;;  %v2269_v39 = vpop.xlane.xlu1 %2268  ;;  %v2446_v21 = vsub.f32 %v14215_v49, %v16997_v52  ;;  %v14236_v60 = vsub.f32 %v2285_v26, %v14224_v46  ;;  %v3690_v44 = vmul.f32 0.125, %v3674_v36 }
 0x377   : > { %2348 = vst [vmem:[#allocation2 + $0x10] sm:$0xff] %v2332_v35  ;;  %v2291_v53 = vmul.f32 %v12686_v59, %v13887_v8  ;;  %12695 = vrcp.f32 %v2269_v39  ;;  %v2271_v28 = vpop.xlane.xlu0 %2270  ;;  %v14241_v33 = vsub.f32 %v2287_v3, %v14227_v16  ;;  %v14256_v39 = vpack.c.bf16 %v2629_v42, %v2622_v7 }
 0x378   : > { %v2333_v23 = vadd.f32 %v2317_v4, %v2289_v14  ;;  %12697 = vrcp.f32 %v2271_v28  ;;  %v2447_v52 = vand.u32 4294901760, %v2446_v21  ;;  %v17005_v26 = vand.u32 4294901760, %v14236_v60  ;;  %3764 = vrot.lane.b32.xlu0 %v3690_v44, %s12918_s1  ;;  %v2320_v4 = vld [vmem:[#allocation2 + $0x30] sm:$0xff] }
 0x379   : > { %v12688_v48 = vpop.eup %12687  ;;  %v2334_v22 = vadd.f32 %v2318_v30, %v2291_v53  ;;  %v17002_v35 = vand.u32 4294901760, %v14241_v33  ;;  %v14247_v8 = vand.u32 4294901760, %v2289_v14  ;;  %v14249_v59 = vand.u32 4294901760, %v2291_v53 }
 0x37a   : > { %v12690_v3 = vpop.eup %12689  ;;  %2349 = vst [vmem:[#allocation2 + $0x18] sm:$0xff] %v2333_v23  ;;  %v2293_v36 = vmul.f32 %v12688_v48, %v13893_v47  ;;  %v2273_v37 = vpop.xlane.xlu1 %2272  ;;  %10104 = vmatprep.mubr.f32.mxu1 %v2447_v52  ;;  %v2456_v30 = vsub.f32 %v14236_v60, %v17005_v26  ;;  %v3691_v21 = vmul.f32 0.125, %v3675_v10  ;;  %v3676_v48 = vld [vmem:[%s13202_s19 + $0x60] sm:$0xff]  ;;  %v2321_v10 = vld [vmem:[#allocation2 + $0x38] sm:$0xff] }
 0x37b   : > { %2350 = vst [vmem:[#allocation2 + $0x20] sm:$0xff] %v2334_v22  ;;  %v2295_v28 = vmul.f32 %v12690_v3, %v13895_v17  ;;  %12699 = vrcp.f32 %v2273_v37  ;;  %v2275_v44 = vpop.xlane.xlu0 %2274  ;;  %v2466_v23 = vsub.f32 %v14241_v33, %v17002_v35  ;;  %v14263_v47 = vsub.f32 %v2289_v14, %v14247_v8 }
 0x37c   : > { %v2335_v52 = vadd.f32 %v2319_v34, %v2293_v36  ;;  %12701 = vrcp.f32 %v2275_v44  ;;  %v2457_v9 = vand.u32 4294901760, %v2456_v30  ;;  %v14267_v42 = vsub.f32 %v2291_v53, %v14249_v59  ;;  %3766 = vrot.lane.b32.xlu1 %v3691_v21, %s12918_s1  ;;  %v2322_v34 = vld [vmem:[#allocation2 + $0x40] sm:$0xff] }
 0x37d   : > { %v12692_v7 = vpop.eup %12691  ;;  %v2336_v17 = vadd.f32 %v2320_v4, %v2295_v28  ;;  %v2467_v22 = vand.u32 4294901760, %v2466_v23  ;;  %v17003_v3 = vand.u32 4294901760, %v14263_v47  ;;  %v14271_v37 = vand.u32 4294901760, %v2293_v36 }
 0x37e   : > { %v12694_v35 = vpop.eup %12693  ;;  %2351 = vst [vmem:[#allocation2 + $0x28] sm:$0xff] %v2335_v52  ;;  %v2297_v14 = vmul.f32 %v12692_v7, %v13909_v5  ;;  %v2277_v44 = vpop.xlane.xlu1 %2276  ;;  %10105 = vmatmul.mubr.f32.vlgmr.msra.gmra.mrb[16].mxu1 %v2457_v9  ;;  %v17004_v53 = vand.u32 4294901760, %v14267_v42  ;;  %v14275_v30 = vand.u32 4294901760, %v2295_v28  ;;  %v3692_v21 = vmul.f32 0.125, %v3676_v48  ;;  %v2323_v7 = vld [vmem:[#allocation2 + $0x48] sm:$0xff] }
 0x37f   : > { %2352 = vst [vmem:[#allocation2 + $0x30] sm:$0xff] %v2336_v17  ;;  %v2299_v4 = vmul.f32 %v12694_v35, %v13911_v61  ;;  %12703 = vrcp.f32 %v2277_v44  ;;  %11307 = vmatpush3.bf16.msra.mxu1 %v14015_v20  ;;  %v2279_v23 = vpop.xlane.xlu0 %2278  ;;  %10107 = vmatprep.mubr.f32.mxu1 %v2467_v22  ;;  %v2476_v5 = vsub.f32 %v14263_v47, %v17003_v3 }
 0x380   : > { %v14283_v52 = vsub.f32 %v2293_v36, %v14271_v37  ;;  %v2337_v9 = vadd.f32 %v2321_v10, %v2297_v14  ;;  %12705 = vrcp.f32 %v2279_v23  ;;  %11309 = vmatprep.subr.bf16.mxu1 %v14256_v39  ;;  %v2486_v61 = vsub.f32 %v14267_v42, %v17004_v53  ;;  %3768 = vrot.lane.b32.xlu0 %v3692_v21, %s12918_s1  ;;  %v2324_v23 = vld [vmem:[#allocation2 + $0x50] sm:$0xff] }
 0x381   : > { %v14290_v35 = vsub.f32 %v2295_v28, %v14275_v30  ;;  %v12696_v20 = vpop.eup %12695  ;;  %v2338_v48 = vadd.f32 %v2322_v34, %v2299_v4  ;;  %v2477_v17 = vand.u32 4294901760, %v2476_v5  ;;  %v14294_v22 = vand.u32 4294901760, %v2297_v14 }
 0x382   : > { %v17007_v36 = vand.u32 4294901760, %v14283_v52  ;;  %v12698_v10 = vpop.eup %12697  ;;  %2353 = vst [vmem:[#allocation2 + $0x38] sm:$0xff] %v2337_v9  ;;  %v2301_v44 = vmul.f32 %v12696_v20, %v13931_v55  ;;  %v2281_v3 = vpop.xlane.xlu1 %2280  ;;  %v2487_v53 = vand.u32 4294901760, %v2486_v61  ;;  %v14298_v26 = vand.u32 4294901760, %v2299_v4 }
 0x383   : > { %v17006_v28 = vand.u32 4294901760, %v14290_v35  ;;  %2354 = vst [vmem:[#allocation2 + $0x40] sm:$0xff] %v2338_v48  ;;  %v2303_v34 = vmul.f32 %v12698_v10, %v13940_v45  ;;  %12707 = vrcp.f32 %v2281_v3  ;;  %10108 = vmatmul.mubr.f32.gmra.mrb[18].mxu1 %v2477_v17  ;;  %v14305_v5 = vsub.f32 %v2297_v14, %v14294_v22  ;;  %v3677_v3 = vld [vmem:[%s13202_s19 + $0x68] sm:$0xff]  ;;  %v2325_v17 = vld [vmem:[#allocation2 + $0x58] sm:$0xff] }
 0x384   : > { %v2496_v21 = vsub.f32 %v14283_v52, %v17007_v36  ;;  %v2339_v55 = vadd.f32 %v2323_v7, %v2301_v44  ;;  %11311 = vmatpush3.bf16.msra.mxu1 %v14256_v39  ;;  %10110 = vmatprep.mubr.f32.mxu1 %v2487_v53  ;;  %v14312_v61 = vsub.f32 %v2299_v4, %v14298_v26  ;;  %v14314_v45 = vand.u32 4294901760, %v2301_v44 }
 0x385   : > { %v2506_v9 = vsub.f32 %v14290_v35, %v17006_v28  ;;  %v12700_v20 = vpop.eup %12699  ;;  %v2340_v48 = vadd.f32 %v2324_v23, %v2303_v34  ;;  %11313 = vmatprep.subr.bf16.mxu1 %v14048_v32  ;;  %v17010_v7 = vand.u32 4294901760, %v14305_v5  ;;  %v14319_v39 = vand.u32 4294901760, %v2303_v34  ;;  %v2326_v28 = vld [vmem:[#allocation2 + $0x60] sm:$0xff] }
 0x386   : > { %v2497_v14 = vand.u32 4294901760, %v2496_v21  ;;  %v12702_v53 = vpop.eup %12701  ;;  %2355 = vst [vmem:[#allocation2 + $0x48] sm:$0xff] %v2339_v55  ;;  %v2305_v10 = vmul.f32 %v12700_v20, %v13953_v1  ;;  %v17011_v36 = vand.u32 4294901760, %v14312_v61  ;;  %v14324_v58 = vsub.f32 %v2301_v44, %v14314_v45 }
 0x387   : > { %v2507_v4 = vand.u32 4294901760, %v2506_v9  ;;  %2356 = vst [vmem:[#allocation2 + $0x50] sm:$0xff] %v2340_v48  ;;  %v2307_v23 = vmul.f32 %v12702_v53, %v13958_v43  ;;  %v2516_v21 = vsub.f32 %v14305_v5, %v17010_v7  ;;  %v14331_v55 = vsub.f32 %v2303_v34, %v14319_v39  ;;  %v3678_v48 = vld [vmem:[%s13202_s19 + $0x70] sm:$0xff]  ;;  %v2327_v34 = vld [vmem:[#allocation2 + $0x68] sm:$0xff] }
 0x388   : > { %17377 = vst [vmem:[#allocation37_spill] sm:$0xff] %v14324_v58  ;;  %10111 = vmatmul.mubr.f32.gmra.mrb[20].mxu1 %v2497_v14  ;;  %v3693_v1 = vmul.f32 0.125, %v3677_v3  ;;  %v2341_v20 = vadd.f32 %v2325_v17, %v2305_v10  ;;  %v2526_v44 = vsub.f32 %v14312_v61, %v17011_v36  ;;  %v14338_v43 = vand.u32 4294901760, %v2305_v10  ;;  %v2328_v36 = vld [vmem:[#allocation2 + $0x70] sm:$0xff] }
 0x389   : > { %11315 = vmatpush3.bf16.msra.mxu1 %v14048_v32  ;;  %10113 = vmatprep.mubr.f32.mxu1 %v2507_v4  ;;  %v12704_v14 = vpop.eup %12703  ;;  %v2342_v53 = vadd.f32 %v2326_v28, %v2307_v23  ;;  %v14341_v7 = vand.u32 4294901760, %v2307_v23  ;;  %v2517_v3 = vand.u32 4294901760, %v2516_v21  ;;  %v17033_v32 = vand.u32 4294901760, %v14331_v55 }
 0x38a   : > { %11317 = vmatprep.subr.bf16.mxu1 %v14076_v12  ;;  %3770 = vrot.lane.b32.xlu1 %v3693_v1, %s12918_s1  ;;  %v12706_v17 = vpop.eup %12705  ;;  %2357 = vst [vmem:[#allocation2 + $0x58] sm:$0xff] %v2341_v20  ;;  %v2309_v4 = vmul.f32 %v12704_v14, %v13971_v51  ;;  %v2527_v9 = vand.u32 4294901760, %v2526_v44  ;;  %v17378_v29 = vand.u32 4294901760, %v14324_v58  ;;  %v14351_v31 = vsub.f32 %v2305_v10, %v14338_v43  ;;  %v3679_v44 = vld [vmem:[%s13202_s19 + $0x78] sm:$0xff] }
 0x38b   : > { %2358 = vst [vmem:[#allocation2 + $0x60] sm:$0xff] %v2342_v53  ;;  %v2311_v21 = vmul.f32 %v12706_v17, %v13976_v25  ;;  %v2546_v1 = vsub.f32 %v14331_v55, %v17033_v32  ;;  %v14358_v20 = vsub.f32 %v2307_v23, %v14341_v7  ;;  %v3694_v51 = vmul.f32 0.125, %v3678_v48 }
 0x38c   : > { %v2536_v28 = vsub.f32 %v14324_v58, %v17378_v29  ;;  %10114 = vmatmul.mubr.f32.gmra.mrb[22].mxu1 %v2517_v3  ;;  %v2343_v14 = vadd.f32 %v2327_v34, %v2309_v4  ;;  %v17030_v10 = vand.u32 4294901760, %v14351_v31  ;;  %v14363_v53 = vand.u32 4294901760, %v2309_v4  ;;  %v2329_v58 = vld [vmem:[#allocation2 + $0x78] sm:$0xff] }
 0x38d   : > { %11319 = vmatpush3.bf16.msra.mxu1 %v14076_v12  ;;  %10116 = vmatprep.mubr.f32.mxu1 %v2527_v9  ;;  %v12708_v25 = vpop.eup %12707  ;;  %v2344_v3 = vadd.f32 %v2328_v36, %v2311_v21  ;;  %v14365_v17 = vand.u32 4294901760, %v2311_v21  ;;  %v2547_v23 = vand.u32 4294901760, %v2546_v1  ;;  %v17027_v48 = vand.u32 4294901760, %v14358_v20 }
 0x38e   : > { %v2537_v29 = vand.u32 4294901760, %v2536_v28  ;;  %11321 = vmatprep.subr.bf16.mxu1 %v14080_v38  ;;  %3772 = vrot.lane.b32.xlu0 %v3694_v51, %s12918_s1  ;;  %2359 = vst [vmem:[#allocation2 + $0x68] sm:$0xff] %v2343_v14  ;;  %v2313_v12 = vmul.f32 %v12708_v25, %v13983_v40  ;;  %v2556_v9 = vsub.f32 %v14351_v31, %v17030_v10  ;;  %v3695_v36 = vmul.f32 0.125, %v3679_v44 }
 0x38f   : > { %v14375_v34 = vsub.f32 %v2309_v4, %v14363_v53  ;;  %2360 = vst [vmem:[#allocation2 + $0x70] sm:$0xff] %v2344_v3  ;;  %v2566_v28 = vsub.f32 %v14358_v20, %v17027_v48  ;;  %v14381_v1 = vsub.f32 %v2311_v21, %v14365_v17 }
 0x390   : > { %10117 = vmatmul.mubr.f32.gmra.mrb[24].mxu1 %v2537_v29  ;;  %v2345_v51 = vadd.f32 %v2329_v58, %v2313_v12  ;;  %v2557_v40 = vand.u32 4294901760, %v2556_v9  ;;  %v14385_v25 = vand.u32 4294901760, %v2313_v12  ;;  %3774 = vrot.lane.b32.xlu1 %v3695_v36, %s12918_s1 }
 0x391   : > { %11323 = vmatpush3.bf16.msra.mxu1 %v14080_v38  ;;  %10119 = vmatprep.mubr.f32.mxu1 %v2547_v23  ;;  %v17026_v14 = vand.u32 4294901760, %v14375_v34  ;;  %v2567_v4 = vand.u32 4294901760, %v2566_v28  ;;  %v17023_v44 = vand.u32 4294901760, %v14381_v1  ;;  %v3795_v23 = vpop.permute.xlu1 %3794 }
 0x392   : > { %11325 = vmatprep.subr.bf16.mxu1 %v14094_v19  ;;  %2361 = vst [vmem:[#allocation2 + $0x78] sm:$0xff] %v2345_v51  ;;  %v14394_v38 = vsub.f32 %v2313_v12, %v14385_v25  ;;  %v14406_v36 = vsel %vm787_vm0, %v3795_v23, 0  ;;  %v3793_v51 = vpop.permute.xlu0 %3792 }
 0x393   : > { %v2576_v58 = vsub.f32 %v14375_v34, %v17026_v14  ;;  %v2586_v21 = vsub.f32 %v14381_v1, %v17023_v44 }
 0x394   : > { %10120 = vmatmul.mubr.f32.gmra.mrb[26].mxu1 %v2557_v40  ;;  %v17022_v3 = vand.u32 4294901760, %v14394_v38  ;;  %v17018_v40 = vand.u32 4294901760, %v14406_v36 }
 0x395   : > { %11327 = vmatpush3.bf16.msra.mxu1 %v14094_v19  ;;  %10122 = vmatprep.mubr.f32.mxu1 %v2567_v4  ;;  %v2577_v29 = vand.u32 4294901760, %v2576_v58  ;;  %v2587_v9 = vand.u32 4294901760, %v2586_v21  ;;  %v3797_v28 = vpop.permute.xlu1 %3796  ;;  %v14412_v4 = vsel %vm787_vm0, %v3793_v51, 0 }
 0x396   : > { %11329 = vmatprep.subr.bf16.mxu1 %v14114_v57  ;;  %v2596_v12 = vsub.f32 %v14394_v38, %v17022_v3  ;;  %v17021_v58 = vand.u32 4294901760, %v14412_v4  ;;  %v14416_v21 = vsel %vm787_vm0, %v3797_v28, 0  ;;  %v14426_v23 = vsub.f32 %v14406_v36, %v17018_v40  ;;  %v3801_v44 = vpop.permute.xlu0 %3800 }
 0x397   : > { %v14486_v14 = vsel %vm787_vm0, %v3801_v44, 0 }
 0x398   : > { %10123 = vmatmul.mubr.f32.gmra.mrb[28].mxu1 %v2577_v29  ;;  %v2597_v19 = vand.u32 4294901760, %v2596_v12  ;;  %v11340_v29 = vpack.c.bf16 %v14193_v62, %v14187_v13  ;;  %17379 = vst [vmem:[#allocation39_spill] sm:$0xff] %v14426_v23  ;;  %v17019_v12 = vand.u32 4294901760, %v14416_v21  ;;  %v17025_v28 = vand.u32 4294901760, %v14426_v23 }
 0x399   : > { %11331 = vmatpush3.bf16.msra.mxu1 %v14114_v57  ;;  %10125 = vmatprep.mubr.f32.mxu1 %v2587_v9  ;;  %v3799_v57 = vpop.permute.xlu1 %3798  ;;  %v17032_v48 = vand.u32 4294901760, %v14486_v14 }
 0x39a   : > { %11333 = vmatprep.subr.bf16.mxu1 %v14116_v24  ;;  %v14429_v9 = vsel %vm787_vm0, %v3799_v57, 0  ;;  %v14445_v51 = vsub.f32 %v14416_v21, %v17019_v12 }
 0x39b   : > { %v14503_v44 = vsub.f32 %v14486_v14, %v17032_v48 }
 0x39c   : > { %10126 = vmatmul.mubr.f32.gmra.mrb[30].mxu1 %v2597_v19  ;;  %v17020_v19 = vand.u32 4294901760, %v14429_v9  ;;  %17381 = vst [vmem:[#allocation41_spill] sm:$0xff] %v14445_v51 }
 0x39d   : > { %11335 = vmatpush3.bf16.msra.mxu1 %v14116_v24  ;;  %10160 = vmatprep.mubr.f32.mxu1 %v14205_v15  ;;  %v14435_v24 = vsub.f32 %v14412_v4, %v17021_v58  ;;  %17388 = vst [vmem:[#allocation48_spill] sm:$0xff] %v14503_v44  ;;  %v17038_v48 = vand.u32 4294901760, %v14503_v44 }
 0x39e   : > { %11337 = vmatprep.subr.bf16.mxu1 %v14120_v56  ;;  %v14451_v40 = vsub.f32 %v14429_v9, %v17020_v19  ;;  %v17029_v19 = vand.u32 4294901760, %v14445_v51 }
 0x39f   : > { %17380 = vst [vmem:[#allocation40_spill] sm:$0xff] %v14435_v24  ;;  %v17024_v57 = vand.u32 4294901760, %v14435_v24 }
 0x3a0   : > { %10161 = vmatmul.mubr.f32.vlgmr.msra.gmra.mrb[16].mxu1 %v14224_v46  ;;  %17382 = vst [vmem:[#allocation42_spill] sm:$0xff] %v14451_v40  ;;  %v17028_v58 = vand.u32 4294901760, %v14451_v40  ;;  %v14470_v3 = vpack.c.bf16 %v14451_v40, %v14445_v51  ;;  %v17411_v51 = vld [vmem:[#allocation37_spill] sm:$0xff] }
 0x3a1   : > { %11339 = vmatpush3.bf16.msra.mxu1 %v14120_v56  ;;  %10163 = vmatprep.mubr.f32.mxu1 %v14227_v16  ;;  %v14455_v56 = vpack.c.bf16 %v14426_v23, %v14435_v24  ;;  %v14463_v12 = vpack.c.bf16 %v17025_v28, %v17024_v57 }
 0x3a2   : > { %11341 = vmatprep.subr.bf16.mxu1 %v11340_v29  ;;  %17385 = vst [vmem:[#allocation45_spill] sm:$0xff] %v14470_v3  ;;  %v14479_v57 = vpack.c.bf16 %v17028_v58, %v17029_v19  ;;  %v3805_v58 = vpop.permute.xlu0 %3804 }
 0x3a3   : > { %17383 = vst [vmem:[#allocation43_spill] sm:$0xff] %v14455_v56  ;;  %17384 = vst [vmem:[#allocation44_spill] sm:$0xff] %v14463_v12  ;;  %v14512_v10 = vsel %vm787_vm0, %v3805_v58, 0 }
 0x3a4   : > { %10164 = vmatmul.mubr.f32.gmra.mrb[18].mxu1 %v14247_v8  ;;  %17386 = vst [vmem:[#allocation46_spill] sm:$0xff] %v14479_v57  ;;  %v17040_v57 = vand.u32 4294901760, %v14512_v10 }
 0x3a5   : > { %11343 = vmatpush3.bf16.msra.mxu1 %v11340_v29  ;;  %10166 = vmatprep.mubr.f32.mxu1 %v14249_v59  ;;  %v3803_v29 = vpop.permute.xlu1 %3802 }
 0x3a6   : > { %11345 = vmatprep.subr.bf16.mxu1 %v14126_v11  ;;  %v14483_v28 = vsel %vm787_vm0, %v3803_v29, 0 }
 0x3a8   : > { %10167 = vmatmul.mubr.f32.gmra.mrb[20].mxu1 %v14271_v37 }
 0x3a9   : > { %11347 = vmatpush3.bf16.msra.mxu1 %v14126_v11  ;;  %10169 = vmatprep.mubr.f32.mxu1 %v14275_v30  ;;  %v17031_v11 = vand.u32 4294901760, %v14483_v28 }
 0x3aa   : > { %11349 = vmatprep.subr.bf16.mxu1 %v14134_v27 }
 0x3ab   : > { %v14498_v29 = vsub.f32 %v14483_v28, %v17031_v11 }
 0x3ac   : > { %10170 = vmatmul.mubr.f32.gmra.mrb[22].mxu1 %v14294_v22 }
 0x3ad   : > { %11351 = vmatpush3.bf16.msra.mxu1 %v14134_v27  ;;  %10172 = vmatprep.mubr.f32.mxu1 %v14298_v26  ;;  %17387 = vst [vmem:[#allocation47_spill] sm:$0xff] %v14498_v29  ;;  %v3807_v27 = vpop.permute.xlu1 %3806  ;;  %v14516_v11 = vpack.c.bf16 %v14498_v29, %v14503_v44 }
 0x3ae   : > { %11353 = vmatprep.subr.bf16.mxu1 %v14140_v6  ;;  %v14509_v19 = vsel %vm787_vm0, %v3807_v27, 0 }
 0x3af   : > { %17389 = vst [vmem:[#allocation49_spill] sm:$0xff] %v14516_v11  ;;  %v17039_v32 = vand.u32 4294901760, %v14509_v19  ;;  %v3809_v11 = vpop.permute.xlu0 %3808 }
 0x3b0   : > { %10173 = vmatmul.mubr.f32.gmra.mrb[24].mxu1 %v14314_v45 }
 0x3b1   : > { %11355 = vmatpush3.bf16.msra.mxu1 %v14140_v6  ;;  %10175 = vmatprep.mubr.f32.mxu1 %v14319_v39  ;;  %v17037_v6 = vand.u32 4294901760, %v14498_v29  ;;  %v14536_v27 = vsub.f32 %v14509_v19, %v17039_v32  ;;  %v3811_v12 = vpop.permute.xlu1 %3810 }
 0x3b2   : > { %11357 = vmatprep.subr.bf16.mxu1 %v14144_v0 }
 0x3b3   : > { %v14530_v58 = vpack.c.bf16 %v17037_v6, %v17038_v48  ;;  %17391 = vst [vmem:[#allocation51_spill] sm:$0xff] %v14536_v27  ;;  %v14547_v6 = vsel %vm787_vm0, %v3811_v12, 0  ;;  %v14550_v48 = vsel %vm787_vm0, %v3809_v11, 0  ;;  %v3813_v56 = vpop.permute.xlu0 %3812 }
 0x3b4   : > { %10176 = vmatmul.mubr.f32.gmra.mrb[26].mxu1 %v14338_v43  ;;  %v17048_v3 = vand.u32 4294901760, %v14550_v48 }
 0x3b5   : > { %11359 = vmatpush3.bf16.msra.mxu1 %v14144_v0  ;;  %10178 = vmatprep.mubr.f32.mxu1 %v14341_v7  ;;  %17390 = vst [vmem:[#allocation50_spill] sm:$0xff] %v14530_v58  ;;  %v14541_v0 = vsub.f32 %v14512_v10, %v17040_v57  ;;  %v17047_v58 = vand.u32 4294901760, %v14547_v6 }
 0x3b6   : > { %11361 = vmatprep.subr.bf16.mxu1 %v14148_v50 }
 0x3b7   : > { %17392 = vst [vmem:[#allocation52_spill] sm:$0xff] %v14541_v0  ;;  %v14554_v32 = vpack.c.bf16 %v14536_v27, %v14541_v0  ;;  %v17045_v57 = vand.u32 4294901760, %v14541_v0  ;;  %v14574_v11 = vsub.f32 %v14547_v6, %v17047_v58 }
 0x3b8   : > { %10179 = vmatmul.mubr.f32.gmra.mrb[28].mxu1 %v14363_v53 }
 0x3b9   : > { %11363 = vmatpush3.bf16.msra.mxu1 %v14148_v50  ;;  %10181 = vmatprep.mubr.f32.mxu1 %v14365_v17  ;;  %17393 = vst [vmem:[#allocation53_spill] sm:$0xff] %v14554_v32  ;;  %v17046_v50 = vand.u32 4294901760, %v14536_v27  ;;  %17395 = vst [vmem:[#allocation55_spill] sm:$0xff] %v14574_v11  ;;  %v3815_v32 = vpop.permute.xlu1 %3814 }
 0x3ba   : > { %11365 = vmatprep.subr.bf16.mxu1 %v14156_v41 }
 0x3bb   : > { %v14568_v12 = vpack.c.bf16 %v17046_v50, %v17045_v57  ;;  %v14585_v57 = vsel %vm787_vm0, %v3815_v32, 0  ;;  %v14588_v50 = vsel %vm787_vm0, %v3813_v56, 0 }
 0x3bc   : > { %10182 = vmatmul.mubr.f32.gmra.mrb[30].mxu1 %v14385_v25  ;;  %17397 = vst [vmem:[#allocation57_spill] sm:$0xff] %v14585_v57  ;;  %17398 = vst [vmem:[#allocation58_spill] sm:$0xff] %v14588_v50  ;;  %v17061_v0 = vand.u32 4294901760, %v14585_v57  ;;  %v17063_v27 = vand.u32 4294901760, %v14588_v50 }
 0x3bd   : > { %11367 = vmatpush3.bf16.msra.mxu1 %v14156_v41  ;;  %10216 = vmatprep.mubr.f32.mxu1 %v14215_v49  ;;  %17394 = vst [vmem:[#allocation54_spill] sm:$0xff] %v14568_v12  ;;  %v14579_v41 = vsub.f32 %v14550_v48, %v17048_v3  ;;  %v17060_v3 = vand.u32 4294901760, %v14574_v11 }
 0x3be   : > { %11369 = vmatprep.subr.bf16.mxu1 %v13853_v54  ;;  %v14612_v56 = vsub.f32 %v14585_v57, %v17061_v0 }
 0x3bf   : > { %17396 = vst [vmem:[#allocation56_spill] sm:$0xff] %v14579_v41  ;;  %v14592_v58 = vpack.c.bf16 %v14574_v11, %v14579_v41  ;;  %v17059_v12 = vand.u32 4294901760, %v14579_v41  ;;  %v3819_v41 = vpop.permute.xlu1 %3818  ;;  %v3817_v11 = vpop.permute.xlu0 %3816 }
 0x3c0   : > { %10217 = vmatmul.mubr.f32.vlgmr.msra.gmra.mrb[16].mxu1 %v14236_v60  ;;  %17401 = vst [vmem:[#allocation61_spill] sm:$0xff] %v14612_v56  ;;  %v17078_v29 = vand.u32 4294901760, %v14612_v56 }
 0x3c1   : > { %11371 = vmatpush3.bf16.msra.mxu1 %v13853_v54  ;;  %10219 = vmatprep.mubr.f32.mxu1 %v14241_v33  ;;  %17399 = vst [vmem:[#allocation59_spill] sm:$0xff] %v14592_v58  ;;  %v14606_v32 = vpack.c.bf16 %v17060_v3, %v17059_v12  ;;  %v14617_v58 = vsub.f32 %v14588_v50, %v17063_v27  ;;  %v14623_v12 = vsel %vm787_vm0, %v3819_v41, 0  ;;  %v14626_v3 = vsel %vm787_vm0, %v3817_v11, 0  ;;  %v17406_v11 = vld [vmem:[#allocation35_spill] sm:$0xff] }
 0x3c2   : > { %11373 = vmatprep.subr.bf16.mxu1 %v13859_v2  ;;  %17403 = vst [vmem:[#allocation63_spill] sm:$0xff] %v14623_v12  ;;  %17404 = vst [vmem:[#allocation64_spill] sm:$0xff] %v14626_v3  ;;  %v17079_v0 = vand.u32 4294901760, %v14623_v12  ;;  %v17426_v50 = vand.u32 4294901760, %v14215_v49 }
 0x3c3   : > { %17400 = vst [vmem:[#allocation60_spill] sm:$0xff] %v14606_v32  ;;  %17402 = vst [vmem:[#allocation62_spill] sm:$0xff] %v14617_v58  ;;  %v14632_v27 = vpack.c.bf16 %v14612_v56, %v14617_v58  ;;  %v17077_v44 = vand.u32 4294901760, %v14617_v58  ;;  %v3823_v24 = vpop.permute.xlu1 %3822  ;;  %v3821_v23 = vpop.permute.xlu0 %3820 }
 0x3c4   : > { %10220 = vmatmul.mubr.f32.gmra.mrb[18].mxu1 %v14263_v47  ;;  %v14649_v32 = vsub.f32 %v14623_v12, %v17079_v0  ;;  %v17414_v0 = vld [vmem:[#allocation29_spill] sm:$0xff] }
 0x3c5   : > { %11375 = vmatpush3.bf16.msra.mxu1 %v13859_v2  ;;  %10222 = vmatprep.mubr.f32.mxu1 %v14267_v42  ;;  %17405 = vst [vmem:[#allocation65_spill] sm:$0xff] %v14632_v27  ;;  %v14644_v41 = vpack.c.bf16 %v17078_v29, %v17077_v44  ;;  %v17409_v27 = vand.u32 4294901760, %v14626_v3  ;;  %v14660_v44 = vsel %vm787_vm0, %v3823_v24, 0  ;;  %v14663_v29 = vsel %vm787_vm0, %v3821_v23, 0 }
 0x3c6   : > { %11377 = vmatprep.subr.bf16.mxu1 %v13918_v18  ;;  %17408 = vst [vmem:[#allocation66_spill] sm:$0xff] %v14649_v32  ;;  %17412 = vst [vmem:[#allocation37_spill] sm:$0xff] %v14660_v44  ;;  %v17094_v58 = vand.u32 4294901760, %v14649_v32 }
 0x3c7   : > { %17407 = vst [vmem:[#allocation35_spill] sm:$0xff] %v14644_v41  ;;  %v14654_v40 = vsub.f32 %v14626_v3, %v17409_v27  ;;  %17413 = vst [vmem:[#allocation68_spill] sm:$0xff] %v14663_v29  ;;  %v17088_v41 = vand.u32 4294901760, %v14660_v44  ;;  %v17090_v27 = vand.u32 4294901760, %v14663_v29  ;;  %v17418_v3 = vld [vmem:[#allocation21_spill] sm:$0xff] }
 0x3c8   : > { %10223 = vmatmul.mubr.f32.gmra.mrb[20].mxu1 %v14283_v52 }
 0x3c9   : > { %11379 = vmatpush3.bf16.msra.mxu1 %v13918_v18  ;;  %10225 = vmatprep.mubr.f32.mxu1 %v14290_v35  ;;  %17410 = vst [vmem:[#allocation67_spill] sm:$0xff] %v14654_v40  ;;  %v17093_v56 = vand.u32 4294901760, %v14654_v40  ;;  %v14672_v12 = vpack.c.bf16 %v14649_v32, %v14654_v40  ;;  %v14680_v23 = vsub.f32 %v14660_v44, %v17088_v41  ;;  %v17420_v40 = vld [vmem:[#allocation22_spill] sm:$0xff] }
 0x3ca   : > { %11381 = vmatprep.subr.bf16.mxu1 %v13938_v63  ;;  %v14685_v24 = vsub.f32 %v14663_v29, %v17090_v27 }
 0x3cb   : > { %17415 = vst [vmem:[#allocation29_spill] sm:$0xff] %v14672_v12  ;;  %v14691_v12 = vpack.c.bf16 %v17094_v58, %v17093_v56  ;;  %v17103_v41 = vand.u32 4294901760, %v14680_v23  ;;  %v17421_v56 = vld [vmem:[#allocation38_spill] sm:$0xff] }
 0x3cc   : > { %10226 = vmatmul.mubr.f32.gmra.mrb[22].mxu1 %v14305_v5  ;;  %17416 = vst [vmem:[#allocation69_spill] sm:$0xff] %v14685_v24  ;;  %v17102_v44 = vand.u32 4294901760, %v14685_v24  ;;  %v14701_v27 = vpack.c.bf16 %v14680_v23, %v14685_v24  ;;  %v17422_v58 = vand.u32 4294901760, %v17421_v56  ;;  %v17428_v56 = vand.u32 4294901760, %v14193_v62  ;;  %v17437_v62 = vld [vmem:[#allocation23_spill] sm:$0xff] }
 0x3cd   : > { %11383 = vmatpush3.bf16.msra.mxu1 %v13938_v63  ;;  %10228 = vmatprep.mubr.f32.mxu1 %v14312_v61  ;;  %17417 = vst [vmem:[#allocation70_spill] sm:$0xff] %v14691_v12  ;;  %v17423_v12 = vld [vmem:[#allocation31_spill] sm:$0xff] }
 0x3ce   : > { %11385 = vmatprep.subr.bf16.mxu1 %v17406_v11  ;;  %17419 = vst [vmem:[#allocation21_spill] sm:$0xff] %v14701_v27  ;;  %v17424_v32 = vand.u32 4294901760, %v17423_v12  ;;  %v14712_v57 = vpack.c.bf16 %v17103_v41, %v17102_v44  ;;  %v17427_v27 = vand.u32 4294901760, %v14187_v13  ;;  %v17431_v44 = vld [vmem:[#allocation20_spill] sm:$0xff]  ;;  %v17436_v13 = vand.u32 4294901760, %v14267_v42 }
 0x3cf   : > { %v17432_v41 = vand.u32 4294901760, %v17431_v44 }
 0x3d0   : > { %10229 = vmatmul.mubr.f32.gmra.mrb[24].mxu1 %v17411_v51  ;;  %v11400_v29 = vpack.c.bf16 %v17424_v32, %v17422_v58  ;;  %17425 = vst [vmem:[#allocation22_spill] sm:$0xff] %v14712_v57  ;;  %v11404_v12 = vpack.c.bf16 %v17428_v56, %v17427_v27  ;;  %v17429_v58 = vand.u32 4294901760, %v14236_v60  ;;  %v17430_v32 = vand.u32 4294901760, %v14241_v33  ;;  %v17433_v57 = vld [vmem:[#allocation32_spill] sm:$0xff] }
 0x3d1   : > { %11387 = vmatpush3.bf16.msra.mxu1 %v17406_v11  ;;  %10231 = vmatprep.mubr.f32.mxu1 %v14331_v55  ;;  %v17434_v24 = vand.u32 4294901760, %v17433_v57  ;;  %v17438_v60 = vand.u32 4294901760, %v17437_v62  ;;  %v17441_v56 = vand.u32 4294901760, %v14283_v52  ;;  %v17442_v57 = vand.u32 4294901760, %v14290_v35  ;;  %v17449_v52 = vld [vmem:[#allocation25_spill] sm:$0xff] }
 0x3d2   : > { %11389 = vmatprep.subr.bf16.mxu1 %v17414_v0  ;;  %v17454_v62 = vand.u32 4294901760, %v14331_v55 }
 0x3d3   : > { %v11408_v49 = vpack.c.bf16 %v17434_v24, %v17432_v41  ;;  %v17445_v41 = vld [vmem:[#allocation34_spill] sm:$0xff] }
 0x3d4   : > { %10232 = vmatmul.mubr.f32.gmra.mrb[26].mxu1 %v14351_v31  ;;  %v17446_v24 = vand.u32 4294901760, %v17445_v41  ;;  %v17465_v41 = vand.u32 4294901760, %v14375_v34 }
 0x3d5   : > { %11391 = vmatpush3.bf16.msra.mxu1 %v17414_v0  ;;  %10234 = vmatprep.mubr.f32.mxu1 %v14358_v20 }
 0x3d6   : > { %11393 = vmatprep.subr.bf16.mxu1 %v17418_v3 }
 0x3d8   : > { %10235 = vmatmul.mubr.f32.gmra.mrb[28].mxu1 %v14375_v34 }
 0x3d9   : > { %11395 = vmatpush3.bf16.msra.mxu1 %v17418_v3  ;;  %10237 = vmatprep.mubr.f32.mxu1 %v14381_v1 }
 0x3da   : > { %11397 = vmatprep.subr.bf16.mxu1 %v17420_v40 }
 0x3dc   : > { %10238 = vmatmul.mubr.f32.gmra.mrb[30].mxu1 %v14394_v38 }
 0x3dd   : > { %11399 = vmatpush3.bf16.msra.mxu1 %v17420_v40  ;;  %10272 = vmatprep.mubr.f32.mxu1 %v17426_v50  ;;  %v17435_v50 = vand.u32 4294901760, %v14263_v47  ;;  %v17443_v47 = vld [vmem:[#allocation24_spill] sm:$0xff] }
 0x3de   : > { %11401 = vmatprep.subr.bf16.mxu1 %v11400_v29  ;;  %v17444_v44 = vand.u32 4294901760, %v17443_v47  ;;  %v17463_v47 = vld [vmem:[#allocation36_spill] sm:$0xff] }
 0x3e0   : > { %10273 = vmatmul.mubr.f32.vlgmr.msra.gmra.mrb[16].mxu1 %v17429_v58  ;;  %v11416_v42 = vpack.c.bf16 %v17446_v24, %v17444_v44  ;;  %v17448_v58 = vand.u32 4294901760, %v14312_v61  ;;  %v17464_v44 = vand.u32 4294901760, %v17463_v47  ;;  %v17466_v24 = vand.u32 4294901760, %v14381_v1  ;;  %v3745_v1 = vpop.permute.xlu0 %3744 }
 0x3e1   : > { %11403 = vmatpush3.bf16.msra.mxu1 %v11400_v29  ;;  %10275 = vmatprep.mubr.f32.mxu1 %v17430_v32  ;;  %v17439_v29 = vld [vmem:[#allocation33_spill] sm:$0xff]  ;;  %v17450_v32 = vand.u32 4294901760, %v17449_v52 }
 0x3e2   : > { %11405 = vmatprep.subr.bf16.mxu1 %v11404_v12  ;;  %v17440_v27 = vand.u32 4294901760, %v17439_v29  ;;  %v17457_v29 = vld [vmem:[#allocation28_spill] sm:$0xff] }
 0x3e4   : > { %10276 = vmatmul.mubr.f32.gmra.mrb[18].mxu1 %v17435_v50  ;;  %v11412_v33 = vpack.c.bf16 %v17440_v27, %v17438_v60  ;;  %v17458_v27 = vand.u32 4294901760, %v17457_v29 }
 0x3e5   : > { %11407 = vmatpush3.bf16.msra.mxu1 %v11404_v12  ;;  %10278 = vmatprep.mubr.f32.mxu1 %v17436_v13  ;;  %v17447_v12 = vand.u32 4294901760, %v14305_v5  ;;  %v17453_v13 = vand.u32 4294901760, %v17411_v51  ;;  %v17455_v5 = vld [vmem:[#allocation27_spill] sm:$0xff]  ;;  %v17461_v51 = vld [vmem:[#allocation30_spill] sm:$0xff] }
 0x3e6   : > { %11409 = vmatprep.subr.bf16.mxu1 %v11408_v49  ;;  %v17456_v60 = vand.u32 4294901760, %v17455_v5 }
 0x3e8   : > { %10279 = vmatmul.mubr.f32.gmra.mrb[20].mxu1 %v17441_v56  ;;  %v11424_v61 = vpack.c.bf16 %v17458_v27, %v17456_v60  ;;  %v17460_v56 = vand.u32 4294901760, %v14358_v20  ;;  %v17471_v20 = vand.u32 4294901760, %v14429_v9  ;;  %v17482_v9 = vld [vmem:[#allocation64_spill] sm:$0xff]  ;;  %v17490_v27 = vld [vmem:[#allocation39_spill] sm:$0xff] }
 0x3e9   : > { %11411 = vmatpush3.bf16.msra.mxu1 %v11408_v49  ;;  %10281 = vmatprep.mubr.f32.mxu1 %v17442_v57  ;;  %v17451_v49 = vld [vmem:[#allocation26_spill] sm:$0xff]  ;;  %v17462_v57 = vand.u32 4294901760, %v17461_v51 }
 0x3ea   : > { %11413 = vmatprep.subr.bf16.mxu1 %v11412_v33  ;;  %v17452_v50 = vand.u32 4294901760, %v17451_v49 }
 0x3eb   : > { %v11428_v55 = vpack.c.bf16 %v17464_v44, %v17462_v57 }
 0x3ec   : > { %10282 = vmatmul.mubr.f32.gmra.mrb[22].mxu1 %v17447_v12  ;;  %v11420_v35 = vpack.c.bf16 %v17452_v50, %v17450_v32  ;;  %v17486_v50 = vld [vmem:[#allocation68_spill] sm:$0xff] }
 0x3ed   : > { %11415 = vmatpush3.bf16.msra.mxu1 %v11412_v33  ;;  %10284 = vmatprep.mubr.f32.mxu1 %v17448_v58  ;;  %v17459_v33 = vand.u32 4294901760, %v14351_v31  ;;  %v17467_v31 = vand.u32 4294901760, %v14394_v38  ;;  %v17473_v38 = vand.u32 4294901760, %v14483_v28  ;;  %v17484_v28 = vld [vmem:[#allocation63_spill] sm:$0xff] }
 0x3ee   : > { %11417 = vmatprep.subr.bf16.mxu1 %v11416_v42 }
 0x3f0   : > { %10285 = vmatmul.mubr.f32.gmra.mrb[24].mxu1 %v17453_v13  ;;  %v17488_v13 = vld [vmem:[#allocation37_spill] sm:$0xff] }
 0x3f1   : > { %11419 = vmatpush3.bf16.msra.mxu1 %v11416_v42  ;;  %10287 = vmatprep.mubr.f32.mxu1 %v17454_v62  ;;  %v17489_v62 = vand.u32 4294901760, %v17488_v13 }
 0x3f2   : > { %11421 = vmatprep.subr.bf16.mxu1 %v11420_v35 }
 0x3f4   : > { %10288 = vmatmul.mubr.f32.gmra.mrb[26].mxu1 %v17459_v33 }
 0x3f5   : > { %11423 = vmatpush3.bf16.msra.mxu1 %v11420_v35  ;;  %10290 = vmatprep.mubr.f32.mxu1 %v17460_v56  ;;  %v17487_v35 = vand.u32 4294901760, %v17486_v50  ;;  %v17492_v56 = vld [vmem:[#allocation40_spill] sm:$0xff] }
 0x3f6   : > { %11425 = vmatprep.subr.bf16.mxu1 %v11424_v61  ;;  %v17493_v51 = vand.u32 4294901760, %v17492_v56 }
 0x3f7   : > { %v14898_v5 = vpack.c.bf16 %v17489_v62, %v17487_v35 }
 0x3f8   : > { %10291 = vmatmul.mubr.f32.gmra.mrb[28].mxu1 %v17465_v41  ;;  %v4133_v57 = vsub.f32 %v17492_v56, %v17493_v51 }
 0x3f9   : > { %11427 = vmatpush3.bf16.msra.mxu1 %v11424_v61  ;;  %10293 = vmatprep.mubr.f32.mxu1 %v17466_v24  ;;  %v17491_v61 = vand.u32 4294901760, %v17490_v27 }
 0x3fa   : > { %11429 = vmatprep.subr.bf16.mxu1 %v11428_v55 }
 0x3fb   : > { %v4140_v33 = vsub.f32 %v17490_v27, %v17491_v61 }
 0x3fc   : > { %10294 = vmatmul.mubr.f32.gmra.mrb[30].mxu1 %v17467_v31 }
 0x3fd   : > { %11431 = vmatpush3.bf16.msra.mxu1 %v11428_v55  ;;  %10328 = vmatprep.mubr.f32.mxu1 %v14205_v15 }
 0x3fe   : > { %11433 = vmatprep.subr.bf16.mxu1 %v13853_v54 }
 0x400   : > { %10329 = vmatmul.mubr.f32.vlgmr.msra.gmra.mrb[16].mxu1 %v14224_v46 }
 0x401   : > { %11435 = vmatpush3.bf16.msra.mxu1 %v13853_v54  ;;  %10331 = vmatprep.mubr.f32.mxu1 %v14227_v16  ;;  %v17468_v54 = vand.u32 4294901760, %v14412_v4 }
 0x402   : > { %11437 = vmatprep.subr.bf16.mxu1 %v13859_v2 }
 0x404   : > { %10332 = vmatmul.mubr.f32.gmra.mrb[18].mxu1 %v14247_v8 }
 0x405   : > { %11439 = vmatpush3.bf16.msra.mxu1 %v13859_v2  ;;  %10334 = vmatprep.mubr.f32.mxu1 %v14249_v59  ;;  %v17469_v2 = vand.u32 4294901760, %v14406_v36  ;;  %v17478_v36 = vld [vmem:[#allocation58_spill] sm:$0xff] }
 0x406   : > { %11441 = vmatprep.subr.bf16.mxu1 %v13918_v18 }
 0x408   : > { %10335 = vmatmul.mubr.f32.gmra.mrb[20].mxu1 %v14271_v37 }
 0x409   : > { %11443 = vmatpush3.bf16.msra.mxu1 %v13918_v18  ;;  %10337 = vmatprep.mubr.f32.mxu1 %v14275_v30  ;;  %v14809_v18 = vpack.c.bf16 %v17469_v2, %v17468_v54 }
 0x40a   : > { %11445 = vmatprep.subr.bf16.mxu1 %v13938_v63 }
 0x40c   : > { %10338 = vmatmul.mubr.f32.gmra.mrb[22].mxu1 %v14294_v22 }
 0x40d   : > { %11447 = vmatpush3.bf16.msra.mxu1 %v13938_v63  ;;  %10340 = vmatprep.mubr.f32.mxu1 %v14298_v26  ;;  %v17470_v63 = vand.u32 4294901760, %v14416_v21 }
 0x40e   : > { %11449 = vmatprep.subr.bf16.mxu1 %v17406_v11 }
 0x40f   : > { %v14822_v34 = vpack.c.bf16 %v17471_v20, %v17470_v63 }
 0x410   : > { %10341 = vmatmul.mubr.f32.gmra.mrb[24].mxu1 %v14314_v45 }
 0x411   : > { %11451 = vmatpush3.bf16.msra.mxu1 %v17406_v11  ;;  %10343 = vmatprep.mubr.f32.mxu1 %v14319_v39 }
 0x412   : > { %11453 = vmatprep.subr.bf16.mxu1 %v17414_v0 }
 0x414   : > { %10344 = vmatmul.mubr.f32.gmra.mrb[26].mxu1 %v14338_v43 }
 0x415   : > { %11455 = vmatpush3.bf16.msra.mxu1 %v17414_v0  ;;  %10346 = vmatprep.mubr.f32.mxu1 %v14341_v7 }
 0x416   : > { %11457 = vmatprep.subr.bf16.mxu1 %v17418_v3 }
 0x418   : > { %10347 = vmatmul.mubr.f32.gmra.mrb[28].mxu1 %v14363_v53 }
 0x419   : > { %11459 = vmatpush3.bf16.msra.mxu1 %v17418_v3  ;;  %10349 = vmatprep.mubr.f32.mxu1 %v14365_v17 }
 0x41a   : > { %11461 = vmatprep.subr.bf16.mxu1 %v17420_v40 }
 0x41c   : > { %10350 = vmatmul.mubr.f32.gmra.mrb[30].mxu1 %v14385_v25 }
 0x41d   : > { %11463 = vmatpush3.bf16.msra.mxu1 %v17420_v40  ;;  %10384 = vmatprep.mubr.f32.mxu1 %v14205_v15  ;;  %v3824_v15 = vsel %vm787_vm0, %v3745_v1, 0  ;;  %v17480_v40 = vld [vmem:[#allocation57_spill] sm:$0xff] }
 0x41e   : > { %11465 = vmatprep.subr.bf16.mxu1 %v14809_v18 }
 0x420   : > { %10385 = vmatmul.mubr.f32.vlgmr.msra.gmra.mrb[16].mxu1 %v14224_v46  ;;  %v17472_v46 = vand.u32 4294901760, %v14486_v14  ;;  %v3749_v14 = vpop.permute.xlu0 %3748 }
 0x421   : > { %10387 = vmatprep.mubr.f32.mxu1 %v14227_v16  ;;  %v14831_v16 = vand.u32 4294901760, %v3824_v15  ;;  %v3828_v42 = vsel %vm787_vm0, %v3749_v14, 0 }
 0x422   : > { %v14837_v3 = vpack.c.bf16 %v17473_v38, %v17472_v46  ;;  %v14891_v52 = vand.u32 4294901760, %v3828_v42  ;;  %v4141_v46 = vand.u32 4294901760, %v4140_v33 }
 0x424   : > { %10388 = vmatmul.mubr.f32.gmra.mrb[18].mxu1 %v14247_v8  ;;  %v14842_v8 = vsub.f32 %v3824_v15, %v14831_v16  ;;  %v3753_v21 = vpop.permute.xlu0 %3752  ;;  %v14915_v24 = vsub.f32 %v3828_v42, %v14891_v52  ;;  %v4134_v15 = vand.u32 4294901760, %v4133_v57 }
 0x425   : > { %10390 = vmatprep.mubr.f32.mxu1 %v14249_v59  ;;  %v3832_v29 = vsel %vm787_vm0, %v3753_v21, 0 }
 0x426   : > { %11467 = vmatpush3.bf16.xpose.msra.mxu1 %v14809_v18  ;;  %v3971_v59 = vand.u32 4294901760, %v14842_v8  ;;  %v14917_v31 = vand.u32 4294901760, %v3832_v29 }
 0x427   : > { %11469 = vmatprep.subr.bf16.mxu1 %v14822_v34 }
 0x428   : > { %10391 = vmatmul.mubr.f32.gmra.mrb[20].mxu1 %v14271_v37  ;;  %v17474_v37 = vand.u32 4294901760, %v14512_v10  ;;  %v17477_v10 = vand.u32 4294901760, %v14547_v6  ;;  %v17485_v6 = vand.u32 4294901760, %v17484_v28  ;;  %v3757_v11 = vpop.permute.xlu0 %3756 }
 0x429   : > { %10393 = vmatprep.mubr.f32.mxu1 %v14275_v30  ;;  %v17475_v30 = vand.u32 4294901760, %v14509_v19  ;;  %v17483_v19 = vand.u32 4294901760, %v17482_v9  ;;  %v3836_v55 = vsel %vm787_vm0, %v3757_v11, 0  ;;  %v11496_v9 = vpack.c.bf16 %v4141_v46, %v4134_v15 }
 0x42a   : > { %v14925_v63 = vand.u32 4294901760, %v3836_v55 }
 0x42b   : > { %v14885_v0 = vpack.c.bf16 %v17485_v6, %v17483_v19 }
 0x42c   : > { %10394 = vmatmul.mubr.f32.gmra.mrb[22].mxu1 %v14294_v22  ;;  %v14853_v22 = vpack.c.bf16 %v17475_v30, %v17474_v37  ;;  %v3761_v49 = vpop.permute.xlu0 %3760  ;;  %v17115_v37 = vand.u32 4294901760, %v14915_v24  ;;  %v14933_v30 = vsub.f32 %v3832_v29, %v14917_v31 }
 0x42d   : > { %10396 = vmatprep.mubr.f32.mxu1 %v14298_v26  ;;  %v3972_v26 = vsub.f32 %v14842_v8, %v3971_v59 }
 0x42e   : > { %11471 = vmatpush3.bf16.xpose.msra.mxu1 %v14822_v34  ;;  %v17110_v28 = vand.u32 4294901760, %v14933_v30  ;;  %v3992_v6 = vsub.f32 %v14915_v24, %v17115_v37 }
 0x42f   : > { %11473 = vmatprep.subr.bf16.mxu1 %v14837_v3 }
 0x430   : > { %10397 = vmatmul.mubr.f32.gmra.mrb[24].mxu1 %v14314_v45  ;;  %v3973_v45 = vand.u32 4294901760, %v3972_v26  ;;  %v3765_v20 = vpop.permute.xlu0 %3764  ;;  %v3840_v26 = vsel %vm787_vm0, %v3761_v49, 0  ;;  %v3993_v33 = vand.u32 4294901760, %v3992_v6  ;;  %v4012_v56 = vsub.f32 %v14933_v30, %v17110_v28 }
 0x431   : > { %10399 = vmatprep.mubr.f32.mxu1 %v14319_v39  ;;  %v17476_v39 = vand.u32 4294901760, %v14550_v48  ;;  %v14952_v19 = vand.u32 4294901760, %v3840_v26  ;;  %v3844_v49 = vsel %vm787_vm0, %v3765_v20, 0 }
 0x432   : > { %v14980_v51 = vand.u32 4294901760, %v3844_v49 }
 0x433   : > { %v14970_v62 = vsub.f32 %v3840_v26, %v14952_v19 }
 0x434   : > { %10400 = vmatmul.mubr.f32.gmra.mrb[26].mxu1 %v14338_v43  ;;  %v14868_v43 = vpack.c.bf16 %v17477_v10, %v17476_v39  ;;  %v3769_v42 = vpop.permute.xlu0 %3768 }
 0x435   : > { %10402 = vmatprep.mubr.f32.mxu1 %v14341_v7  ;;  %v3747_v7 = vpop.permute.xlu1 %3746  ;;  %v3848_v46 = vsel %vm787_vm0, %v3769_v42, 0 }
 0x436   : > { %11475 = vmatpush3.bf16.xpose.msra.mxu1 %v14837_v3  ;;  %v3826_v58 = vsel %vm787_vm0, %v3747_v7, 0  ;;  %v17496_v7 = vld [vmem:[#allocation42_spill] sm:$0xff] }
 0x437   : > { %11477 = vmatprep.subr.bf16.mxu1 %v14853_v22  ;;  %v14900_v60 = vand.u32 4294901760, %v3826_v58  ;;  %v17497_v14 = vand.u32 4294901760, %v17496_v7 }
 0x438   : > { %10403 = vmatmul.mubr.f32.gmra.mrb[28].mxu1 %v14363_v53  ;;  %v17479_v53 = vand.u32 4294901760, %v17478_v36 }
 0x439   : > { %10405 = vmatprep.mubr.f32.mxu1 %v14365_v17  ;;  %v17481_v17 = vand.u32 4294901760, %v17480_v40  ;;  %v3751_v48 = vpop.permute.xlu1 %3750  ;;  %v14920_v54 = vsub.f32 %v3826_v58, %v14900_v60  ;;  %v4154_v36 = vsub.f32 %v17496_v7, %v17497_v14  ;;  %v3773_v14 = vpop.permute.xlu0 %3772 }
 0x43a   : > { %v3830_v32 = vsel %vm787_vm0, %v3751_v48, 0  ;;  %v14947_v48 = vsub.f32 %v3836_v55, %v14925_v63 }
 0x43b   : > { %v14877_v4 = vpack.c.bf16 %v17481_v17, %v17479_v53  ;;  %v14909_v47 = vand.u32 4294901760, %v3830_v32  ;;  %v3981_v53 = vand.u32 4294901760, %v14920_v54 }
 0x43c   : > { %10406 = vmatmul.mubr.f32.gmra.mrb[30].mxu1 %v14385_v25  ;;  %v17108_v35 = vand.u32 4294901760, %v14947_v48 }
 0x43d   : > { %10440 = vmatprep.mubr.f32.mxu1 %v3973_v45  ;;  %v3755_v25 = vpop.permute.xlu1 %3754  ;;  %v14928_v1 = vsub.f32 %v3830_v32, %v14909_v47  ;;  %v17494_v45 = vld [vmem:[#allocation41_spill] sm:$0xff]  ;;  %v4155_v32 = vand.u32 4294901760, %v4154_v36  ;;  %v17111_v36 = vand.u32 4294901760, %v14970_v62 }
 0x43e   : > { %11479 = vmatpush3.bf16.xpose.msra.mxu1 %v14853_v22  ;;  %v3834_v44 = vsel %vm787_vm0, %v3755_v25, 0  ;;  %v17495_v39 = vand.u32 4294901760, %v17494_v45  ;;  %v4032_v7 = vsub.f32 %v14947_v48, %v17108_v35 }
 0x43f   : > { %11481 = vmatprep.subr.bf16.mxu1 %v14868_v43  ;;  %v14923_v2 = vand.u32 4294901760, %v3834_v44  ;;  %v17112_v25 = vand.u32 4294901760, %v14928_v1 }
 0x440   : > { %v4147_v10 = vsub.f32 %v17494_v45, %v17495_v39 }
 0x441   : > { %v3759_v12 = vpop.permute.xlu1 %3758  ;;  %v14944_v17 = vsub.f32 %v3834_v44, %v14923_v2  ;;  %v4002_v27 = vsub.f32 %v14928_v1, %v17112_v25  ;;  %v17498_v44 = vld [vmem:[#allocation48_spill] sm:$0xff] }
 0x442   : > { %v3838_v38 = vsel %vm787_vm0, %v3759_v12, 0  ;;  %v3982_v12 = vsub.f32 %v14920_v54, %v3981_v53  ;;  %v4148_v58 = vand.u32 4294901760, %v4147_v10  ;;  %v17499_v55 = vand.u32 4294901760, %v17498_v44 }
 0x443   : > { %v14949_v21 = vand.u32 4294901760, %v3838_v38  ;;  %v17109_v50 = vand.u32 4294901760, %v14944_v17  ;;  %v4003_v6 = vand.u32 4294901760, %v4002_v27  ;;  %v4033_v27 = vand.u32 4294901760, %v4032_v7 }
 0x444   : > { %v3983_v20 = vand.u32 4294901760, %v3982_v12  ;;  %v11500_v15 = vpack.c.bf16 %v4155_v32, %v4148_v58  ;;  %v4013_v12 = vand.u32 4294901760, %v4012_v56  ;;  %v15004_v58 = vsub.f32 %v3844_v49, %v14980_v51 }
 0x445   : > { %v3763_v41 = vpop.permute.xlu1 %3762  ;;  %v14967_v13 = vsub.f32 %v3838_v38, %v14949_v21  ;;  %v17500_v38 = vld [vmem:[#allocation47_spill] sm:$0xff]  ;;  %v4022_v10 = vsub.f32 %v14944_v17, %v17109_v50  ;;  %v15006_v32 = vand.u32 4294901760, %v3848_v46 }
 0x446   : > { %11483 = vmatpush3.bf16.xpose.msra.mxu1 %v14868_v43  ;;  %v3842_v11 = vsel %vm787_vm0, %v3763_v41, 0  ;;  %v4161_v41 = vsub.f32 %v17498_v44, %v17499_v55  ;;  %v17501_v26 = vand.u32 4294901760, %v17500_v38 }
 0x447   : > { %11485 = vmatprep.subr.bf16.mxu1 %v14877_v4  ;;  %v14972_v29 = vand.u32 4294901760, %v3842_v11  ;;  %v17107_v39 = vand.u32 4294901760, %v14967_v13 }
 0x448   : > { %v4168_v45 = vsub.f32 %v17500_v38, %v17501_v26  ;;  %v4162_v55 = vand.u32 4294901760, %v4161_v41  ;;  %v17113_v41 = vand.u32 4294901760, %v15004_v58 }
 0x449   : > { %v3767_v40 = vpop.permute.xlu1 %3766 }
 0x44a   : > { %v3846_v57 = vsel %vm787_vm0, %v3767_v40, 0  ;;  %v14999_v40 = vsub.f32 %v3842_v11, %v14972_v29  ;;  %v4023_v11 = vand.u32 4294901760, %v4022_v10  ;;  %v4169_v26 = vand.u32 4294901760, %v4168_v45 }
 0x44b   : > { %v15001_v42 = vand.u32 4294901760, %v3846_v57  ;;  %v15024_v45 = vsub.f32 %v3848_v46, %v15006_v32 }
 0x44c   : > { %v11504_v28 = vpack.c.bf16 %v4169_v26, %v4162_v55 }
 0x44d   : > { %v3771_v61 = vpop.permute.xlu1 %3770  ;;  %v15015_v49 = vsub.f32 %v3846_v57, %v15001_v42 }
 0x44e   : > { %11487 = vmatpush3.bf16.xpose.msra.mxu1 %v14877_v4  ;;  %v3850_v44 = vsel %vm787_vm0, %v3771_v61, 0  ;;  %v4052_v61 = vsub.f32 %v14970_v62, %v17111_v36 }
 0x44f   : > { %11489 = vmatprep.subr.bf16.mxu1 %v14885_v0  ;;  %v15017_v56 = vand.u32 4294901760, %v3850_v44 }
 0x451   : > { %v3775_v38 = vpop.permute.xlu1 %3774  ;;  %v15037_v46 = vsub.f32 %v3850_v44, %v15017_v56 }
 0x452   : > { %v3854_v7 = vsel %vm787_vm0, %v3775_v38, 0 }
 0x453   : > { %v15039_v25 = vand.u32 4294901760, %v3854_v7 }
 0x455   : > { %v15053_v26 = vsub.f32 %v3854_v7, %v15039_v25  ;;  %v17508_v7 = vld [vmem:[#allocation56_spill] sm:$0xff] }
 0x456   : > { %11491 = vmatpush3.bf16.xpose.msra.mxu1 %v14885_v0 }
 0x457   : > { %11493 = vmatprep.subr.bf16.mxu1 %v14898_v5  ;;  %v17119_v37 = vand.u32 4294901760, %v15053_v26 }
 0x45e   : > { %11495 = vmatpush3.bf16.xpose.msra.mxu1 %v14898_v5 }
 0x45f   : > { %11497 = vmatprep.subr.bf16.mxu1 %v11496_v9 }
 0x465   : > { %10441 = vmatmul.mubr.f32.vlgmr.msra.gmra.mrb[32].mxu1 %v3983_v20  ;;  %v3852_v20 = vsel %vm787_vm0, %v3773_v14, 0  ;;  %v17502_v14 = vld [vmem:[#allocation51_spill] sm:$0xff] }
 0x466   : > { %11499 = vmatpush3.bf16.xpose.msra.mxu1 %v11496_v9  ;;  %10443 = vmatprep.mubr.f32.mxu1 %v3993_v33  ;;  %v4042_v9 = vsub.f32 %v14967_v13, %v17107_v39  ;;  %v17114_v33 = vand.u32 4294901760, %v14999_v40  ;;  %v15026_v10 = vand.u32 4294901760, %v3852_v20  ;;  %v17504_v39 = vld [vmem:[#allocation52_spill] sm:$0xff] }
 0x467   : > { %11501 = vmatprep.subr.bf16.mxu1 %v11500_v15  ;;  %v17505_v35 = vand.u32 4294901760, %v17504_v39 }
 0x468   : > { %v4043_v36 = vand.u32 4294901760, %v4042_v9  ;;  %v4062_v38 = vsub.f32 %v14999_v40, %v17114_v33  ;;  %v17509_v33 = vand.u32 4294901760, %v17508_v7 }
 0x469   : > { %10444 = vmatmul.mubr.f32.gmra.mrb[34].mxu1 %v4003_v6  ;;  %v17503_v6 = vand.u32 4294901760, %v17502_v14  ;;  %v4175_v50 = vsub.f32 %v17504_v39, %v17505_v35  ;;  %v15046_v35 = vsub.f32 %v3852_v20, %v15026_v10  ;;  %v4072_v39 = vsub.f32 %v15004_v58, %v17113_v41 }
 0x46a   : > { %10446 = vmatprep.mubr.f32.mxu1 %v4013_v12  ;;  %v4081_v12 = vand.u32 4294901760, %v15015_v49 }
 0x46b   : > { %v4182_v57 = vsub.f32 %v17502_v14, %v17503_v6  ;;  %v17116_v14 = vand.u32 4294901760, %v15024_v45  ;;  %v4053_v6 = vand.u32 4294901760, %v4052_v61  ;;  %v4176_v44 = vand.u32 4294901760, %v4175_v50  ;;  %v17506_v61 = vld [vmem:[#allocation55_spill] sm:$0xff] }
 0x46c   : > { %v17118_v20 = vand.u32 4294901760, %v15046_v35  ;;  %v4073_v9 = vand.u32 4294901760, %v4072_v39 }
 0x46d   : > { %10447 = vmatmul.mubr.f32.gmra.mrb[36].mxu1 %v4023_v11  ;;  %v4183_v55 = vand.u32 4294901760, %v4182_v57  ;;  %v17117_v11 = vand.u32 4294901760, %v15037_v46  ;;  %v4092_v50 = vsub.f32 %v15024_v45, %v17116_v14  ;;  %v17507_v57 = vand.u32 4294901760, %v17506_v61 }
 0x46e   : > { %11503 = vmatpush3.bf16.xpose.msra.mxu1 %v11500_v15  ;;  %10449 = vmatprep.mubr.f32.mxu1 %v4033_v27  ;;  %v4063_v15 = vand.u32 4294901760, %v4062_v38  ;;  %v4082_v27 = vsub.f32 %v15015_v49, %v4081_v12  ;;  %v4189_v38 = vsub.f32 %v17508_v7, %v17509_v33 }
 0x46f   : > { %11505 = vmatprep.subr.bf16.mxu1 %v11504_v28  ;;  %v11508_v41 = vpack.c.bf16 %v4183_v55, %v4176_v44  ;;  %v4102_v39 = vsub.f32 %v15037_v46, %v17117_v11  ;;  %v4093_v14 = vand.u32 4294901760, %v4092_v50 }
 0x470   : > { %v4190_v55 = vand.u32 4294901760, %v4189_v38 }
 0x471   : > { %10450 = vmatmul.mubr.f32.gmra.mrb[38].mxu1 %v4043_v36  ;;  %v4196_v36 = vsub.f32 %v17506_v61, %v17507_v57  ;;  %v4112_v61 = vsub.f32 %v15046_v35, %v17118_v20  ;;  %v4103_v44 = vand.u32 4294901760, %v4102_v39  ;;  %v17510_v57 = vld [vmem:[#allocation61_spill] sm:$0xff] }
 0x472   : > { %10452 = vmatprep.mubr.f32.mxu1 %v4053_v6  ;;  %v4083_v6 = vand.u32 4294901760, %v4082_v27  ;;  %v17511_v7 = vand.u32 4294901760, %v17510_v57 }
 0x473   : > { %v4197_v33 = vand.u32 4294901760, %v4196_v36  ;;  %v4113_v27 = vand.u32 4294901760, %v4112_v61 }
 0x475   : > { %10453 = vmatmul.mubr.f32.gmra.mrb[40].mxu1 %v4063_v15  ;;  %v4122_v15 = vsub.f32 %v15053_v26, %v17119_v37  ;;  %v11512_v20 = vpack.c.bf16 %v4197_v33, %v4190_v55  ;;  %v17518_v55 = vand.u32 4294901760, %v14680_v23  ;;  %v17519_v33 = vld [vmem:[#allocation69_spill] sm:$0xff] }
 0x476   : > { %11507 = vmatpush3.bf16.xpose.msra.mxu1 %v11504_v28  ;;  %10455 = vmatprep.mubr.f32.mxu1 %v4073_v9  ;;  %v4210_v28 = vsub.f32 %v17510_v57, %v17511_v7  ;;  %v17512_v9 = vld [vmem:[#allocation62_spill] sm:$0xff]  ;;  %v17516_v57 = vld [vmem:[#allocation67_spill] sm:$0xff] }
 0x477   : > { %11509 = vmatprep.subr.bf16.mxu1 %v11508_v41  ;;  %v17513_v50 = vand.u32 4294901760, %v17512_v9  ;;  %v17517_v7 = vand.u32 4294901760, %v17516_v57 }
 0x478   : > { %v4211_v38 = vand.u32 4294901760, %v4210_v28 }
 0x479   : > { %10456 = vmatmul.mubr.f32.gmra.mrb[42].mxu1 %v4083_v6  ;;  %v4203_v11 = vsub.f32 %v17512_v9, %v17513_v50  ;;  %v4123_v6 = vand.u32 4294901760, %v4122_v15  ;;  %v4217_v37 = vsub.f32 %v17516_v57, %v17517_v7  ;;  %v17520_v15 = vand.u32 4294901760, %v17519_v33  ;;  %v17528_v57 = vld [vmem:[#allocation21_spill] sm:$0xff] }
 0x47a   : > { %10458 = vmatprep.mubr.f32.mxu1 %v4093_v14  ;;  %v17514_v14 = vld [vmem:[#allocation66_spill] sm:$0xff] }
 0x47b   : > { %v4204_v36 = vand.u32 4294901760, %v4203_v11  ;;  %v17515_v39 = vand.u32 4294901760, %v17514_v14  ;;  %v4238_v11 = vsub.f32 %v14680_v23, %v17518_v55  ;;  %v17522_v23 = vld [vmem:[#allocation45_spill] sm:$0xff] }
 0x47d   : > { %10459 = vmatmul.mubr.f32.gmra.mrb[44].mxu1 %v4103_v44  ;;  %v4224_v61 = vsub.f32 %v17514_v14, %v17515_v39  ;;  %v11516_v9 = vpack.c.bf16 %v4211_v38, %v4204_v36  ;;  %v4218_v44 = vand.u32 4294901760, %v4217_v37  ;;  %v17523_v37 = vld [vmem:[#allocation49_spill] sm:$0xff]  ;;  %v17525_v38 = vld [vmem:[#allocation59_spill] sm:$0xff] }
 0x47e   : > { %11511 = vmatpush3.bf16.xpose.msra.mxu1 %v11508_v41  ;;  %10461 = vmatprep.mubr.f32.mxu1 %v4113_v27  ;;  %v4231_v27 = vsub.f32 %v17519_v33, %v17520_v15  ;;  %v17524_v36 = vld [vmem:[#allocation53_spill] sm:$0xff] }
 0x47f   : > { %11513 = vmatprep.subr.bf16.mxu1 %v11512_v20  ;;  %v4225_v41 = vand.u32 4294901760, %v4224_v61  ;;  %v17526_v39 = vld [vmem:[#allocation65_spill] sm:$0xff] }
 0x480   : > { %v4232_v50 = vand.u32 4294901760, %v4231_v27  ;;  %v17527_v61 = vld [vmem:[#allocation29_spill] sm:$0xff] }
 0x481   : > { %10462 = vmatmul.mubr.f32.gmra.mrb[46].mxu1 %v4123_v6  ;;  %v11520_v28 = vpack.c.bf16 %v4225_v41, %v4218_v44  ;;  %v4239_v6 = vand.u32 4294901760, %v4238_v11 }
 0x482   : > { %10496 = vmatprep.mubr.f32.mxu1 %v14831_v16 }
 0x483   : > { %v11524_v14 = vpack.c.bf16 %v4239_v6, %v4232_v50 }
 0x486   : > { %11515 = vmatpush3.bf16.xpose.msra.mxu1 %v11512_v20  ;;  %v17521_v20 = vld [vmem:[#allocation43_spill] sm:$0xff] }
 0x487   : > { %11517 = vmatprep.subr.bf16.mxu1 %v11516_v9 }
 0x48e   : > { %11519 = vmatpush3.bf16.xpose.msra.mxu1 %v11516_v9 }
 0x48f   : > { %11521 = vmatprep.subr.bf16.mxu1 %v11520_v28 }
 0x496   : > { %11523 = vmatpush3.bf16.xpose.msra.mxu1 %v11520_v28 }
 0x497   : > { %11525 = vmatprep.subr.bf16.mxu1 %v11524_v14 }
 0x49e   : > { %11527 = vmatpush3.bf16.xpose.msra.mxu1 %v11524_v14 }
 0x49f   : > { %11529 = vmatprep.subr.bf16.mxu1 %v17521_v20 }
 0x4a5   : > { %10497 = vmatmul.mubr.f32.vlgmr.msra.gmra.mrb[32].mxu1 %v14900_v60 }
 0x4a6   : > { %10499 = vmatprep.mubr.f32.mxu1 %v14891_v52  ;;  %11531 = vmatpush3.bf16.xpose.msra.mxu1 %v17521_v20 }
 0x4a7   : > { %11533 = vmatprep.subr.bf16.mxu1 %v17522_v23 }
 0x4a9   : > { %10500 = vmatmul.mubr.f32.gmra.mrb[34].mxu1 %v14909_v47 }
 0x4aa   : > { %10502 = vmatprep.mubr.f32.mxu1 %v14917_v31 }
 0x4ad   : > { %10503 = vmatmul.mubr.f32.gmra.mrb[36].mxu1 %v14923_v2 }
 0x4ae   : > { %10505 = vmatprep.mubr.f32.mxu1 %v14925_v63  ;;  %11535 = vmatpush3.bf16.xpose.msra.mxu1 %v17522_v23  ;;  %v17529_v23 = vld [vmem:[#allocation44_spill] sm:$0xff] }
 0x4af   : > { %11537 = vmatprep.subr.bf16.mxu1 %v17523_v37 }
 0x4b1   : > { %10506 = vmatmul.mubr.f32.gmra.mrb[38].mxu1 %v14949_v21 }
 0x4b2   : > { %10508 = vmatprep.mubr.f32.mxu1 %v14952_v19 }
 0x4b5   : > { %10509 = vmatmul.mubr.f32.gmra.mrb[40].mxu1 %v14972_v29 }
 0x4b6   : > { %10511 = vmatprep.mubr.f32.mxu1 %v14980_v51  ;;  %11539 = vmatpush3.bf16.xpose.msra.mxu1 %v17523_v37  ;;  %v17530_v37 = vand.u32 4294901760, %v14915_v24 }
 0x4b7   : > { %11541 = vmatprep.subr.bf16.mxu1 %v17524_v36 }
 0x4b9   : > { %10512 = vmatmul.mubr.f32.gmra.mrb[42].mxu1 %v15001_v42 }
 0x4ba   : > { %10514 = vmatprep.mubr.f32.mxu1 %v15006_v32 }
 0x4bd   : > { %10515 = vmatmul.mubr.f32.gmra.mrb[44].mxu1 %v15017_v56 }
 0x4be   : > { %10517 = vmatprep.mubr.f32.mxu1 %v15026_v10  ;;  %11543 = vmatpush3.bf16.xpose.msra.mxu1 %v17524_v36  ;;  %v17531_v36 = vld [vmem:[#allocation46_spill] sm:$0xff] }
 0x4bf   : > { %11545 = vmatprep.subr.bf16.mxu1 %v17525_v38 }
 0x4c1   : > { %10518 = vmatmul.mubr.f32.gmra.mrb[46].mxu1 %v15039_v25 }
 0x4c2   : > { %10552 = vmatprep.mubr.f32.mxu1 %v14842_v8 }
 0x4c6   : > { %11547 = vmatpush3.bf16.xpose.msra.mxu1 %v17525_v38  ;;  %v17532_v38 = vand.u32 4294901760, %v14928_v1 }
 0x4c7   : > { %11549 = vmatprep.subr.bf16.mxu1 %v17526_v39 }
 0x4ce   : > { %11551 = vmatpush3.bf16.xpose.msra.mxu1 %v17526_v39  ;;  %v17533_v39 = vand.u32 4294901760, %v14933_v30 }
 0x4cf   : > { %11553 = vmatprep.subr.bf16.mxu1 %v17527_v61 }
 0x4d6   : > { %11555 = vmatpush3.bf16.xpose.msra.mxu1 %v17527_v61  ;;  %v17534_v61 = vand.u32 4294901760, %v14944_v17 }
 0x4d7   : > { %11557 = vmatprep.subr.bf16.mxu1 %v17528_v57 }
 0x4de   : > { %11559 = vmatpush3.bf16.xpose.msra.mxu1 %v17528_v57  ;;  %v17535_v57 = vand.u32 4294901760, %v14947_v48 }
 0x4df   : > { %11561 = vmatprep.subr.bf16.mxu1 %v14809_v18 }
 0x4e5   : > { %10553 = vmatmul.mubr.f32.vlgmr.msra.gmra.mrb[32].mxu1 %v14920_v54  ;;  %v17537_v54 = vand.u32 4294901760, %v14967_v13 }
 0x4e6   : > { %10555 = vmatprep.mubr.f32.mxu1 %v14915_v24  ;;  %11563 = vmatpush3.bf16.xpose.msra.mxu1 %v14809_v18  ;;  %v17536_v24 = vld [vmem:[#allocation50_spill] sm:$0xff] }
 0x4e7   : > { %11565 = vmatprep.subr.bf16.mxu1 %v14822_v34 }
 0x4e9   : > { %10556 = vmatmul.mubr.f32.gmra.mrb[34].mxu1 %v14928_v1  ;;  %v17538_v1 = vand.u32 4294901760, %v14970_v62 }
 0x4ea   : > { %10558 = vmatprep.mubr.f32.mxu1 %v14933_v30  ;;  %v17539_v30 = vand.u32 4294901760, %v14999_v40 }
 0x4ed   : > { %10559 = vmatmul.mubr.f32.gmra.mrb[36].mxu1 %v14944_v17  ;;  %v17541_v17 = vld [vmem:[#allocation54_spill] sm:$0xff] }
 0x4ee   : > { %10561 = vmatprep.mubr.f32.mxu1 %v14947_v48  ;;  %11567 = vmatpush3.bf16.xpose.msra.mxu1 %v14822_v34  ;;  %v17542_v48 = vand.u32 4294901760, %v15024_v45 }
 0x4ef   : > { %11569 = vmatprep.subr.bf16.mxu1 %v14837_v3 }
 0x4f1   : > { %10562 = vmatmul.mubr.f32.gmra.mrb[38].mxu1 %v14967_v13  ;;  %v17543_v13 = vand.u32 4294901760, %v15037_v46 }
 0x4f2   : > { %10564 = vmatprep.mubr.f32.mxu1 %v14970_v62  ;;  %v17544_v62 = vand.u32 4294901760, %v15046_v35 }
 0x4f3   : > { %v10386_v7 = vpop.f32.mrb[16].mxu1 }
 0x4f4   : > { %3649 = vst.msk [vmem:[#allocation4 + $0x8] sm:$0xff] %vm787_vm0, %v10386_v7  ;;  %v3554_v9 = vpop.f32.mrb[17].mxu1  ;;  %v3716_v7 = vld [vmem:[%s13206_s18 + $0x20] sm:$0xff] }
 0x4f5   : > { %3648 = vst.msk [vmem:[#allocation4] sm:$0xff] %vm787_vm0, %v3554_v9  ;;  %10565 = vmatmul.mubr.f32.gmra.mrb[40].mxu1 %v14999_v40  ;;  %v17545_v40 = vld [vmem:[#allocation60_spill] sm:$0xff]  ;;  %v3719_v9 = vld [vmem:[%s13206_s18 + $0x38] sm:$0xff] }
 0x4f6   : > { %10567 = vmatprep.mubr.f32.mxu1 %v15004_v58  ;;  %11571 = vmatpush3.bf16.xpose.msra.mxu1 %v14837_v3 }
 0x4f7   : > { %11573 = vmatprep.subr.bf16.mxu1 %v14853_v22  ;;  %v10389_v44 = vpop.f32.mrb[18].mxu1 }
 0x4f8   : > { %3651 = vst.msk [vmem:[#allocation4 + $0x18] sm:$0xff] %vm787_vm0, %v10389_v44  ;;  %v3566_v41 = vpop.f32.mrb[19].mxu1  ;;  %v3718_v44 = vld [vmem:[%s13206_s18 + $0x30] sm:$0xff] }
 0x4f9   : > { %3650 = vst.msk [vmem:[#allocation4 + $0x10] sm:$0xff] %vm787_vm0, %v3566_v41  ;;  %10568 = vmatmul.mubr.f32.gmra.mrb[42].mxu1 %v15015_v49  ;;  %v3713_v49 = vld [vmem:[%s13206_s18 + $0x8] sm:$0xff]  ;;  %v17548_v41 = vld [vmem:[#allocation70_spill] sm:$0xff] }
 0x4fa   : > { %10570 = vmatprep.mubr.f32.mxu1 %v15024_v45  ;;  %v3712_v45 = vld [vmem:[%s13206_s18] sm:$0xff]  ;;  %5384 = vrot.lane.b32.xlu1 %v3713_v49, %s12918_s1 }
 0x4fb   : > { %v10392_v55 = vpop.f32.mrb[20].mxu1  ;;  %5382 = vrot.lane.b32.xlu0 %v3712_v45, %s12918_s1 }
 0x4fc   : > { %3653 = vst.msk [vmem:[#allocation4 + $0x28] sm:$0xff] %vm787_vm0, %v10392_v55  ;;  %v3578_v11 = vpop.f32.mrb[21].mxu1  ;;  %v3721_v55 = vld [vmem:[%s13206_s18 + $0x48] sm:$0xff] }
 0x4fd   : > { %3652 = vst.msk [vmem:[#allocation4 + $0x20] sm:$0xff] %vm787_vm0, %v3578_v11  ;;  %10571 = vmatmul.mubr.f32.gmra.mrb[44].mxu1 %v15037_v46  ;;  %v3714_v46 = vld [vmem:[%s13206_s18 + $0x10] sm:$0xff]  ;;  %v3720_v11 = vld [vmem:[%s13206_s18 + $0x40] sm:$0xff] }
 0x4fe   : > { %10573 = vmatprep.mubr.f32.mxu1 %v15046_v35  ;;  %11575 = vmatpush3.bf16.xpose.msra.mxu1 %v14853_v22  ;;  %v17547_v35 = vld [vmem:[#allocation35_spill] sm:$0xff] }
 0x4ff   : > { %11577 = vmatprep.subr.bf16.mxu1 %v14868_v43  ;;  %v10395_v33 = vpop.f32.mrb[22].mxu1  ;;  %5386 = vrot.lane.b32.xlu0 %v3714_v46, %s12918_s1 }
 0x500   : > { %3655 = vst.msk [vmem:[#allocation4 + $0x38] sm:$0xff] %vm787_vm0, %v10395_v33  ;;  %v3590_v15 = vpop.f32.mrb[23].mxu1  ;;  %v3723_v33 = vld [vmem:[%s13206_s18 + $0x58] sm:$0xff] }
 0x501   : > { %3654 = vst.msk [vmem:[#allocation4 + $0x30] sm:$0xff] %vm787_vm0, %v3590_v15  ;;  %10574 = vmatmul.mubr.f32.gmra.mrb[46].mxu1 %v15053_v26  ;;  %v3722_v15 = vld [vmem:[%s13206_s18 + $0x50] sm:$0xff] }
 0x502   : > { %10608 = vmatprep.mubr.f32.mxu1 %v3971_v59 }
 0x503   : > { %v10398_v27 = vpop.f32.mrb[24].mxu1  ;;  %5390 = vrot.lane.b32.xlu0 %v3716_v7, %s12918_s1 }
 0x504   : > { %3657 = vst.msk [vmem:[#allocation4 + $0x48] sm:$0xff] %vm787_vm0, %v10398_v27  ;;  %v3602_v28 = vpop.f32.mrb[25].mxu1  ;;  %v17549_v27 = vld [vmem:[#allocation22_spill] sm:$0xff] }
 0x505   : > { %3656 = vst.msk [vmem:[#allocation4 + $0x40] sm:$0xff] %vm787_vm0, %v3602_v28 }
 0x506   : > { %11579 = vmatpush3.bf16.xpose.msra.mxu1 %v14868_v43 }
 0x507   : > { %11581 = vmatprep.subr.bf16.mxu1 %v14877_v4  ;;  %v10401_v50 = vpop.f32.mrb[26].mxu1  ;;  %5394 = vrot.lane.b32.xlu0 %v3718_v44, %s12918_s1 }
 0x508   : > { %3659 = vst.msk [vmem:[#allocation4 + $0x58] sm:$0xff] %vm787_vm0, %v10401_v50  ;;  %v3614_v6 = vpop.f32.mrb[27].mxu1 }
 0x509   : > { %3658 = vst.msk [vmem:[#allocation4 + $0x50] sm:$0xff] %vm787_vm0, %v3614_v6 }
 0x50b   : > { %v10404_v14 = vpop.f32.mrb[28].mxu1  ;;  %5398 = vrot.lane.b32.xlu0 %v3720_v11, %s12918_s1 }
 0x50c   : > { %3661 = vst.msk [vmem:[#allocation4 + $0x68] sm:$0xff] %vm787_vm0, %v10404_v14  ;;  %v3626_v8 = vpop.f32.mrb[29].mxu1 }
 0x50d   : > { %3660 = vst.msk [vmem:[#allocation4 + $0x60] sm:$0xff] %vm787_vm0, %v3626_v8 }
 0x50e   : > { %11583 = vmatpush3.bf16.xpose.msra.mxu1 %v14877_v4 }
 0x50f   : > { %11585 = vmatprep.subr.bf16.mxu1 %v14885_v0  ;;  %v10407_v59 = vpop.f32.mrb[30].mxu1  ;;  %5402 = vrot.lane.b32.xlu0 %v3722_v15, %s12918_s1 }
 0x510   : > { %3663 = vst.msk [vmem:[#allocation4 + $0x78] sm:$0xff] %vm787_vm0, %v10407_v59  ;;  %v3638_v20 = vpop.f32.mrb[31].mxu1 }
 0x511   : > { %3662 = vst.msk [vmem:[#allocation4 + $0x70] sm:$0xff] %vm787_vm0, %v3638_v20 }
 0x516   : > { %11587 = vmatpush3.bf16.xpose.msra.mxu1 %v14885_v0 }
 0x517   : > { %11589 = vmatprep.subr.bf16.mxu1 %v14898_v5 }
 0x51e   : > { %11591 = vmatpush3.bf16.xpose.msra.mxu1 %v14898_v5 }
 0x51f   : > { %11593 = vmatprep.subr.bf16.mxu1 %v17529_v23 }
 0x525   : > { %10609 = vmatmul.mubr.f32.vlgmr.msra.gmra.mrb[32].mxu1 %v3981_v53  ;;  %v17540_v53 = vand.u32 4294901760, %v15004_v58  ;;  %v17546_v58 = vand.u32 4294901760, %v15053_v26  ;;  %v3717_v26 = vld [vmem:[%s13206_s18 + $0x28] sm:$0xff] }
 0x526   : > { %10611 = vmatprep.mubr.f32.mxu1 %v17530_v37  ;;  %11595 = vmatpush3.bf16.xpose.msra.mxu1 %v17529_v23 }
 0x527   : > { %11597 = vmatprep.subr.bf16.mxu1 %v17531_v36 }
 0x529   : > { %10612 = vmatmul.mubr.f32.gmra.mrb[34].mxu1 %v17532_v38 }
 0x52a   : > { %10614 = vmatprep.mubr.f32.mxu1 %v17533_v39 }
 0x52d   : > { %10615 = vmatmul.mubr.f32.gmra.mrb[36].mxu1 %v17534_v61 }
 0x52e   : > { %10617 = vmatprep.mubr.f32.mxu1 %v17535_v57  ;;  %11599 = vmatpush3.bf16.xpose.msra.mxu1 %v17531_v36 }
 0x52f   : > { %11601 = vmatprep.subr.bf16.mxu1 %v17536_v24 }
 0x531   : > { %10618 = vmatmul.mubr.f32.gmra.mrb[38].mxu1 %v17537_v54 }
 0x532   : > { %10620 = vmatprep.mubr.f32.mxu1 %v17538_v1 }
 0x535   : > { %10621 = vmatmul.mubr.f32.gmra.mrb[40].mxu1 %v17539_v30 }
 0x536   : > { %10623 = vmatprep.mubr.f32.mxu1 %v17540_v53  ;;  %11603 = vmatpush3.bf16.xpose.msra.mxu1 %v17536_v24 }
 0x537   : > { %11605 = vmatprep.subr.bf16.mxu1 %v17541_v17 }
 0x539   : > { %10624 = vmatmul.mubr.f32.gmra.mrb[42].mxu1 %v4081_v12  ;;  %v3715_v12 = vld [vmem:[%s13206_s18 + $0x18] sm:$0xff] }
 0x53a   : > { %10626 = vmatprep.mubr.f32.mxu1 %v17542_v48  ;;  %5388 = vrot.lane.b32.xlu1 %v3715_v12, %s12918_s1 }
 0x53d   : > { %10627 = vmatmul.mubr.f32.gmra.mrb[44].mxu1 %v17543_v13 }
 0x53e   : > { %10629 = vmatprep.mubr.f32.mxu1 %v17544_v62  ;;  %11607 = vmatpush3.bf16.xpose.msra.mxu1 %v17541_v17 }
 0x53f   : > { %11609 = vmatprep.subr.bf16.mxu1 %v17545_v40  ;;  %5392 = vrot.lane.b32.xlu1 %v3717_v26, %s12918_s1 }
 0x541   : > { %10630 = vmatmul.mubr.f32.gmra.mrb[46].mxu1 %v17546_v58 }
 0x542   : > { %10664 = vmatprep.mubr.f32.mxu1 %v14831_v16 }
 0x543   : > { %5396 = vrot.lane.b32.xlu1 %v3719_v9, %s12918_s1 }
 0x546   : > { %11611 = vmatpush3.bf16.xpose.msra.mxu1 %v17545_v40 }
 0x547   : > { %11613 = vmatprep.subr.bf16.mxu1 %v17547_v35  ;;  %5400 = vrot.lane.b32.xlu1 %v3721_v55, %s12918_s1 }
 0x54b   : > { %5404 = vrot.lane.b32.xlu1 %v3723_v33, %s12918_s1 }
 0x54e   : > { %11615 = vmatpush3.bf16.xpose.msra.mxu1 %v17547_v35 }
 0x54f   : > { %11617 = vmatprep.subr.bf16.mxu1 %v17548_v41 }
 0x556   : > { %11619 = vmatpush3.bf16.xpose.msra.mxu1 %v17548_v41 }
 0x557   : > { %11621 = vmatprep.subr.bf16.mxu1 %v17549_v27 }
 0x55e   : > { %11623 = vmatpush3.bf16.xpose.msra.mxu1 %v17549_v27 }
 0x55f   : > { %11625 = vmatprep.subr.bf16.mxu1 %v14809_v18 }
 0x565   : > { %10665 = vmatmul.mubr.f32.vlgmr.msra.gmra.mrb[32].mxu1 %v14900_v60 }
 0x566   : > { %10667 = vmatprep.mubr.f32.mxu1 %v14891_v52  ;;  %11627 = vmatpush3.bf16.xpose.msra.mxu1 %v14809_v18 }
 0x567   : > { %11629 = vmatprep.subr.bf16.mxu1 %v14822_v34 }
 0x569   : > { %10668 = vmatmul.mubr.f32.gmra.mrb[34].mxu1 %v14909_v47 }
 0x56a   : > { %10670 = vmatprep.mubr.f32.mxu1 %v14917_v31 }
 0x56c   : > { %v5385_v18 = vpop.permute.xlu1 %5384 }
 0x56d   : > { %10671 = vmatmul.mubr.f32.gmra.mrb[36].mxu1 %v14923_v2 }
 0x56e   : > { %10673 = vmatprep.mubr.f32.mxu1 %v14925_v63  ;;  %11631 = vmatpush3.bf16.xpose.msra.mxu1 %v14822_v34  ;;  %v5383_v34 = vpop.permute.xlu0 %5382 }
 0x56f   : > { %11633 = vmatprep.subr.bf16.mxu1 %v14837_v3 }
 0x571   : > { %10674 = vmatmul.mubr.f32.gmra.mrb[38].mxu1 %v14949_v21 }
 0x572   : > { %10676 = vmatprep.mubr.f32.mxu1 %v14952_v19 }
 0x575   : > { %10677 = vmatmul.mubr.f32.gmra.mrb[40].mxu1 %v14972_v29 }
 0x576   : > { %10679 = vmatprep.mubr.f32.mxu1 %v14980_v51  ;;  %11635 = vmatpush3.bf16.xpose.msra.mxu1 %v14837_v3  ;;  %v5431_v3 = vand.u32 4294901760, %v5383_v34 }
 0x577   : > { %11637 = vmatprep.subr.bf16.mxu1 %v14853_v22 }
 0x579   : > { %10680 = vmatmul.mubr.f32.gmra.mrb[42].mxu1 %v15001_v42 }
 0x57a   : > { %10682 = vmatprep.mubr.f32.mxu1 %v15006_v32 }
 0x57d   : > { %10683 = vmatmul.mubr.f32.gmra.mrb[44].mxu1 %v15017_v56 }
 0x57e   : > { %10685 = vmatprep.mubr.f32.mxu1 %v15026_v10  ;;  %11639 = vmatpush3.bf16.xpose.msra.mxu1 %v14853_v22 }
 0x57f   : > { %11641 = vmatprep.subr.bf16.mxu1 %v14868_v43 }
 0x581   : > { %10686 = vmatmul.mubr.f32.gmra.mrb[46].mxu1 %v15039_v25 }
 0x582   : > { %10720 = vmatprep.mubr.f32.mxu1 %v14831_v16  ;;  %v5434_v16 = vand.u32 4294901760, %v5385_v18 }
 0x584   : > { %v15296_v22 = vsub.f32 %v5385_v18, %v5434_v16 }
 0x586   : > { %11643 = vmatpush3.bf16.xpose.msra.mxu1 %v14868_v43  ;;  %v15298_v43 = vpack.c.bf16 %v5434_v16, %v5431_v3  ;;  %v5681_v1 = vand.u32 4294901760, %v15296_v22 }
 0x587   : > { %11645 = vmatprep.subr.bf16.mxu1 %v14877_v4 }
 0x588   : > { %11657 = vmatprep.subr.bf16.mxu0 %v15298_v43  ;;  %v5682_v53 = vsub.f32 %v15296_v22, %v5681_v1 }
 0x589   : > { %11659 = vmatpush3.bf16.msra.mxu0 %v15298_v43 }
 0x58a   : > { %v5683_v12 = vand.u32 4294901760, %v5682_v53 }
 0x58e   : > { %11647 = vmatpush3.bf16.xpose.msra.mxu1 %v14877_v4  ;;  %v15300_v4 = vsub.f32 %v5383_v34, %v5431_v3 }
 0x58f   : > { %11649 = vmatprep.subr.bf16.mxu1 %v14885_v0 }
 0x590   : > { %v5674_v30 = vand.u32 4294901760, %v15300_v4  ;;  %v15356_v55 = vpack.c.bf16 %v15296_v22, %v15300_v4 }
 0x592   : > { %v5675_v17 = vsub.f32 %v15300_v4, %v5674_v30  ;;  %v15360_v33 = vpack.c.bf16 %v5681_v1, %v5674_v30 }
 0x594   : > { %v5676_v45 = vand.u32 4294901760, %v5675_v17  ;;  %17551 = vst [vmem:[#allocation31_spill] sm:$0xff] %v15360_v33 }
 0x596   : > { %11651 = vmatpush3.bf16.xpose.msra.mxu1 %v14885_v0  ;;  %v15348_v46 = vpack.c.bf16 %v5683_v12, %v5676_v45 }
 0x597   : > { %11653 = vmatprep.subr.bf16.mxu1 %v14898_v5 }
 0x59e   : > { %11655 = vmatpush3.bf16.xpose.msra.mxu1 %v14898_v5 }
 0x5a5   : > { %10721 = vmatmul.mubr.f32.vlgmr.msra.gmra.mrb[32].mxu1 %v14900_v60 }
 0x5a6   : > { %10723 = vmatprep.mubr.f32.mxu1 %v14891_v52  ;;  %v5387_v52 = vpop.permute.xlu0 %5386 }
 0x5a7   : > { %v5437_v60 = vand.u32 4294901760, %v5387_v52 }
 0x5a9   : > { %10724 = vmatmul.mubr.f32.gmra.mrb[34].mxu1 %v14909_v47 }
 0x5aa   : > { %10726 = vmatprep.mubr.f32.mxu1 %v14917_v31 }
 0x5ac   : > { %v5389_v0 = vpop.permute.xlu1 %5388 }
 0x5ad   : > { %10727 = vmatmul.mubr.f32.gmra.mrb[36].mxu1 %v14923_v2  ;;  %v5440_v5 = vand.u32 4294901760, %v5389_v0  ;;  %v15308_v2 = vsub.f32 %v5387_v52, %v5437_v60 }
 0x5ae   : > { %10729 = vmatprep.mubr.f32.mxu1 %v14925_v63 }
 0x5af   : > { %v15304_v47 = vsub.f32 %v5389_v0, %v5440_v5  ;;  %v15306_v31 = vpack.c.bf16 %v5440_v5, %v5437_v60  ;;  %v5688_v13 = vand.u32 4294901760, %v15308_v2 }
 0x5b1   : > { %10730 = vmatmul.mubr.f32.gmra.mrb[38].mxu1 %v14949_v21  ;;  %v5393_v63 = vpop.permute.xlu1 %5392  ;;  %v5391_v21 = vpop.permute.xlu0 %5390  ;;  %11661 = vmatprep.subr.bf16.mxu0 %v15306_v31  ;;  %v5695_v48 = vand.u32 4294901760, %v15304_v47  ;;  %v5689_v49 = vsub.f32 %v15308_v2, %v5688_v13  ;;  %v15366_v16 = vpack.c.bf16 %v15304_v47, %v15308_v2 }
 0x5b2   : > { %10732 = vmatprep.mubr.f32.mxu1 %v14952_v19  ;;  %v5443_v19 = vand.u32 4294901760, %v5391_v21  ;;  %11663 = vmatpush3.bf16.msra.mxu0 %v15306_v31 }
 0x5b3   : > { %v5696_v58 = vsub.f32 %v15304_v47, %v5695_v48  ;;  %v5690_v44 = vand.u32 4294901760, %v5689_v49  ;;  %v15371_v22 = vpack.c.bf16 %v5695_v48, %v5688_v13 }
 0x5b5   : > { %10733 = vmatmul.mubr.f32.gmra.mrb[40].mxu1 %v14972_v29  ;;  %v5697_v41 = vand.u32 4294901760, %v5696_v58  ;;  %17552 = vst [vmem:[#allocation20_spill] sm:$0xff] %v15371_v22 }
 0x5b6   : > { %10735 = vmatprep.mubr.f32.mxu1 %v14980_v51 }
 0x5b7   : > { %v15358_v11 = vpack.c.bf16 %v5697_v41, %v5690_v44 }
 0x5b9   : > { %10736 = vmatmul.mubr.f32.gmra.mrb[42].mxu1 %v15001_v42  ;;  %v15316_v42 = vsub.f32 %v5391_v21, %v5443_v19 }
 0x5ba   : > { %10738 = vmatprep.mubr.f32.mxu1 %v15006_v32  ;;  %v5397_v32 = vpop.permute.xlu1 %5396 }
 0x5bb   : > { %v5702_v40 = vand.u32 4294901760, %v15316_v42 }
 0x5bd   : > { %10739 = vmatmul.mubr.f32.gmra.mrb[44].mxu1 %v15017_v56  ;;  %v5395_v56 = vpop.permute.xlu0 %5394  ;;  %v5703_v26 = vsub.f32 %v15316_v42, %v5702_v40 }
 0x5be   : > { %10741 = vmatprep.mubr.f32.mxu1 %v15026_v10  ;;  %v5452_v10 = vand.u32 4294901760, %v5397_v32  ;;  %v5449_v28 = vand.u32 4294901760, %v5395_v56  ;;  %v5401_v8 = vpop.permute.xlu1 %5400 }
 0x5bf   : > { %v5458_v20 = vand.u32 4294901760, %v5401_v8  ;;  %v5704_v18 = vand.u32 4294901760, %v5703_v26 }
 0x5c0   : > { %v15320_v50 = vsub.f32 %v5397_v32, %v5452_v10  ;;  %v15322_v6 = vpack.c.bf16 %v5452_v10, %v5449_v28  ;;  %v15324_v14 = vsub.f32 %v5395_v56, %v5449_v28 }
 0x5c1   : > { %10742 = vmatmul.mubr.f32.gmra.mrb[46].mxu1 %v15039_v25  ;;  %v5446_v25 = vand.u32 4294901760, %v5393_v63  ;;  %v5399_v59 = vpop.permute.xlu0 %5398  ;;  %v15328_v37 = vsub.f32 %v5401_v8, %v5458_v20 }
 0x5c2   : > { %v5455_v23 = vand.u32 4294901760, %v5399_v59  ;;  %v5405_v39 = vpop.permute.xlu1 %5404  ;;  %v5723_v7 = vand.u32 4294901760, %v15320_v50  ;;  %v5716_v9 = vand.u32 4294901760, %v15324_v14  ;;  %v15384_v32 = vpack.c.bf16 %v15320_v50, %v15324_v14 }
 0x5c3   : > { %v15312_v29 = vsub.f32 %v5393_v63, %v5446_v25  ;;  %v15314_v51 = vpack.c.bf16 %v5446_v25, %v5443_v19  ;;  %v5464_v57 = vand.u32 4294901760, %v5405_v39  ;;  %v5737_v3 = vand.u32 4294901760, %v15328_v37 }
 0x5c4   : > { %v15330_v36 = vpack.c.bf16 %v5458_v20, %v5455_v23  ;;  %v5729_v38 = vsub.f32 %v5399_v59, %v5455_v23  ;;  %v5724_v15 = vsub.f32 %v15320_v50, %v5723_v7  ;;  %v5717_v27 = vsub.f32 %v15324_v14, %v5716_v9 }
 0x5c5   : > { %11665 = vmatprep.subr.bf16.mxu0 %v15314_v51  ;;  %v5403_v61 = vpop.permute.xlu0 %5402  ;;  %v5709_v62 = vand.u32 4294901760, %v15312_v29  ;;  %v15375_v60 = vpack.c.bf16 %v15312_v29, %v15316_v42  ;;  %v5738_v63 = vsub.f32 %v15328_v37, %v5737_v3  ;;  %v5750_v25 = vsub.f32 %v5405_v39, %v5464_v57 }
 0x5c6   : > { %11667 = vmatpush3.bf16.msra.mxu0 %v15314_v51  ;;  %v5461_v24 = vand.u32 4294901760, %v5403_v61  ;;  %v5730_v0 = vand.u32 4294901760, %v5729_v38  ;;  %v5718_v4 = vand.u32 4294901760, %v5717_v27  ;;  %v5725_v5 = vand.u32 4294901760, %v5724_v15 }
 0x5c7   : > { %11669 = vmatprep.subr.bf16.mxu0 %v15322_v6  ;;  %v5710_v35 = vsub.f32 %v15312_v29, %v5709_v62  ;;  %v15380_v2 = vpack.c.bf16 %v5709_v62, %v5702_v40  ;;  %v5739_v10 = vand.u32 4294901760, %v5738_v63  ;;  %v5751_v28 = vand.u32 4294901760, %v5750_v25 }
 0x5c8   : > { %v15334_v54 = vpack.c.bf16 %v5464_v57, %v5461_v24  ;;  %v5731_v21 = vsub.f32 %v5729_v38, %v5730_v0  ;;  %v5743_v19 = vsub.f32 %v5403_v61, %v5461_v24  ;;  %v15378_v47 = vpack.c.bf16 %v5725_v5, %v5718_v4 }
 0x5c9   : > { %v5711_v34 = vand.u32 4294901760, %v5710_v35  ;;  %17553 = vst [vmem:[#allocation32_spill] sm:$0xff] %v15380_v2  ;;  %v15386_v59 = vpack.c.bf16 %v5723_v7, %v5716_v9  ;;  %v15391_v42 = vpack.c.bf16 %v15328_v37, %v5729_v38  ;;  %v5752_v20 = vsub.f32 %v5750_v25, %v5751_v28  ;;  %v3725_v7 = vld [vmem:[%s13206_s18 + $0x68] sm:$0xff]  ;;  %v3724_v9 = vld [vmem:[%s13206_s18 + $0x60] sm:$0xff] }
 0x5ca   : > { %11671 = vmatpush3.bf16.msra.mxu0 %v15322_v6  ;;  %17550 = vst [vmem:[#allocation38_spill] sm:$0xff] %v15334_v54  ;;  %v5732_v56 = vand.u32 4294901760, %v5731_v21  ;;  %v5744_v8 = vand.u32 4294901760, %v5743_v19  ;;  %v15393_v39 = vpack.c.bf16 %v5737_v3, %v5730_v0  ;;  %v15395_v61 = vpack.c.bf16 %v5750_v25, %v5743_v19 }
 0x5cb   : > { %11673 = vmatprep.subr.bf16.mxu0 %v15330_v36  ;;  %v15369_v52 = vpack.c.bf16 %v5711_v34, %v5704_v18  ;;  %17554 = vst [vmem:[#allocation23_spill] sm:$0xff] %v15386_v59  ;;  %v5753_v50 = vand.u32 4294901760, %v5752_v20 }
 0x5cc   : > { %v15388_v29 = vpack.c.bf16 %v5739_v10, %v5732_v56  ;;  %v5745_v23 = vsub.f32 %v5743_v19, %v5744_v8  ;;  %17555 = vst [vmem:[#allocation33_spill] sm:$0xff] %v15393_v39  ;;  %v15397_v14 = vpack.c.bf16 %v5751_v28, %v5744_v8 }
 0x5ce   : > { %11675 = vmatpush3.bf16.msra.mxu0 %v15330_v36  ;;  %v5746_v57 = vand.u32 4294901760, %v5745_v23  ;;  %17556 = vst [vmem:[#allocation24_spill] sm:$0xff] %v15397_v14  ;;  %v5331_v14 = vld [vmem:[#allocation2 + $0x68] sm:$0xff] }
 0x5cf   : > { %11677 = vmatprep.subr.bf16.mxu0 %v15334_v54 }
 0x5d0   : > { %v15399_v24 = vpack.c.bf16 %v5753_v50, %v5746_v57 }
 0x5d2   : > { %11679 = vmatpush3.bf16.msra.mxu0 %v15334_v54 }
 0x678   : > { %v10722_v1 = vpop.f32.mrb[32].mxu1 }
 0x679   : > { %5176 = vmax.xlane.f32.xlu1 %v10722_v1  ;;  %v5080_v30 = vpop.f32.mrb[33].mxu1 }
 0x67a   : > { %5174 = vmax.xlane.f32.xlu0 %v5080_v30 }
 0x67c   : > { %v10725_v53 = vpop.f32.mrb[34].mxu1 }
 0x67d   : > { %v5092_v17 = vpop.f32.mrb[35].mxu1 }
 0x67e   : > { %5180 = vmax.xlane.f32.xlu0 %v10725_v53 }
 0x680   : > { %v10728_v37 = vpop.f32.mrb[36].mxu1 }
 0x681   : > { %5184 = vmax.xlane.f32.xlu1 %v10728_v37  ;;  %v5104_v38 = vpop.f32.mrb[37].mxu1 }
 0x682   : > { %5178 = vmax.xlane.f32.xlu0 %v5092_v17 }
 0x684   : > { %v10731_v48 = vpop.f32.mrb[38].mxu1 }
 0x685   : > { %5188 = vmax.xlane.f32.xlu1 %v10731_v48  ;;  %v5116_v13 = vpop.f32.mrb[39].mxu1 }
 0x686   : > { %5182 = vmax.xlane.f32.xlu0 %v5104_v38 }
 0x688   : > { %v10734_v62 = vpop.f32.mrb[40].mxu1 }
 0x689   : > { %5192 = vmax.xlane.f32.xlu1 %v10734_v62  ;;  %v15401_v40 = vpop.f32.mrb[41].mxu1 }
 0x68a   : > { %5186 = vmax.xlane.f32.xlu0 %v5116_v13 }
 0x68c   : > { %v15403_v58 = vpop.f32.mrb[42].mxu1 }
 0x68d   : > { %5196 = vmax.xlane.f32.xlu1 %v15403_v58  ;;  %v15406_v49 = vpop.f32.mrb[43].mxu1 }
 0x68e   : > { %5190 = vmax.xlane.f32.xlu0 %v15401_v40 }
 0x690   : > { %v15409_v45 = vpop.f32.mrb[44].mxu1 }
 0x691   : > { %5200 = vmax.xlane.f32.xlu1 %v15409_v45  ;;  %v15412_v12 = vpop.f32.mrb[45].mxu1 }
 0x692   : > { %5194 = vmax.xlane.f32.xlu0 %v15406_v49 }
 0x694   : > { %v15415_v35 = vpop.f32.mrb[46].mxu1 }
 0x695   : > { %5204 = vmax.xlane.f32.xlu1 %v15415_v35  ;;  %v15418_v26 = vpop.f32.mrb[47].mxu1 }
 0x696   : > { %5198 = vmax.xlane.f32.xlu0 %v15412_v12 }
 0x69a   : > { %5202 = vmax.xlane.f32.xlu0 %v15418_v26 }
 0x6a6   : > { %5408 = vrot.lane.b32.xlu1 %v3725_v7, %s12918_s1 }
 0x6b0   : > { %5406 = vrot.lane.b32.xlu0 %v3724_v9, %s12918_s1 }
 0x706   : > { %v5177_v44 = vpop.xlane.xlu1 %5176 }
 0x707   : > { %v5207_v41 = vsub.f32 %v10722_v1, %v5177_v44  ;;  %v5175_v15 = vpop.xlane.xlu0 %5174 }
 0x708   : > { %v5206_v27 = vsub.f32 %v5080_v30, %v5175_v15 }
 0x709   : > { %v5224_v18 = vmul.f32 1.442695, %v5207_v41 }
 0x70a   : > { %v5222_v34 = vmul.f32 1.442695, %v5206_v27 }
 0x70b   : > { %12709 = vpow2.f32 %v5224_v18  ;;  %v5181_v3 = vpop.xlane.xlu0 %5180 }
 0x70c   : > { %12711 = vpow2.f32 %v5222_v34  ;;  %v5209_v0 = vsub.f32 %v10725_v53, %v5181_v3 }
 0x70e   : > { %v5228_v4 = vmul.f32 1.442695, %v5209_v0  ;;  %v5185_v5 = vpop.xlane.xlu1 %5184 }
 0x70f   : > { %v5211_v63 = vsub.f32 %v10728_v37, %v5185_v5  ;;  %v5179_v21 = vpop.xlane.xlu0 %5178 }
 0x710   : > { %12713 = vpow2.f32 %v5228_v4  ;;  %v5208_v25 = vsub.f32 %v5092_v17, %v5179_v21 }
 0x711   : > { %v5232_v19 = vmul.f32 1.442695, %v5211_v63 }
 0x712   : > { %v5226_v56 = vmul.f32 1.442695, %v5208_v25  ;;  %v5189_v10 = vpop.xlane.xlu1 %5188 }
 0x713   : > { %12715 = vpow2.f32 %v5232_v19  ;;  %v5213_v28 = vsub.f32 %v10731_v48, %v5189_v10  ;;  %v5183_v8 = vpop.xlane.xlu0 %5182 }
 0x714   : > { %12717 = vpow2.f32 %v5226_v56  ;;  %v5210_v20 = vsub.f32 %v5104_v38, %v5183_v8 }
 0x715   : > { %v15426_v23 = vpop.eup %12709  ;;  %v5236_v57 = vmul.f32 1.442695, %v5213_v28 }
 0x716   : > { %v15428_v50 = vpop.eup %12711  ;;  %v5230_v1 = vmul.f32 1.442695, %v5210_v20  ;;  %v5193_v30 = vpop.xlane.xlu1 %5192  ;;  %5256 = vadd.xlane.f32.xlu1 %v15426_v23 }
 0x717   : > { %12719 = vpow2.f32 %v5236_v57  ;;  %v5215_v53 = vsub.f32 %v10734_v62, %v5193_v30  ;;  %5254 = vadd.xlane.f32.xlu0 %v15428_v50  ;;  %v5187_v17 = vpop.xlane.xlu0 %5186 }
 0x718   : > { %12721 = vpow2.f32 %v5230_v1  ;;  %v5212_v37 = vsub.f32 %v5116_v13, %v5187_v17 }
 0x719   : > { %v5240_v48 = vmul.f32 1.442695, %v5215_v53 }
 0x71a   : > { %v15432_v7 = vpop.eup %12713  ;;  %v5234_v38 = vmul.f32 1.442695, %v5212_v37  ;;  %v5197_v9 = vpop.xlane.xlu1 %5196 }
 0x71b   : > { %12723 = vpow2.f32 %v5240_v48  ;;  %v5217_v44 = vsub.f32 %v15403_v58, %v5197_v9  ;;  %5260 = vadd.xlane.f32.xlu0 %v15432_v7  ;;  %v5191_v41 = vpop.xlane.xlu0 %5190 }
 0x71c   : > { %12725 = vpow2.f32 %v5234_v38  ;;  %v5214_v15 = vsub.f32 %v15401_v40, %v5191_v41 }
 0x71d   : > { %v15437_v62 = vpop.eup %12715  ;;  %v5244_v27 = vmul.f32 1.442695, %v5217_v44 }
 0x71e   : > { %v15439_v18 = vpop.eup %12717  ;;  %v5238_v13 = vmul.f32 1.442695, %v5214_v15  ;;  %v5201_v34 = vpop.xlane.xlu1 %5200 }
 0x71f   : > { %12727 = vpow2.f32 %v5244_v27  ;;  %v5219_v3 = vsub.f32 %v15409_v45, %v5201_v34  ;;  %5264 = vadd.xlane.f32.xlu0 %v15437_v62  ;;  %5258 = vadd.xlane.f32.xlu1 %v15439_v18  ;;  %v5195_v58 = vpop.xlane.xlu0 %5194 }
 0x720   : > { %12729 = vpow2.f32 %v5238_v13  ;;  %v5216_v0 = vsub.f32 %v15406_v49, %v5195_v58 }
 0x721   : > { %v15445_v4 = vpop.eup %12719  ;;  %v5248_v40 = vmul.f32 1.442695, %v5219_v3 }
 0x722   : > { %v15447_v5 = vpop.eup %12721  ;;  %v5242_v63 = vmul.f32 1.442695, %v5216_v0  ;;  %v5205_v21 = vpop.xlane.xlu1 %5204 }
 0x723   : > { %12731 = vpow2.f32 %v5248_v40  ;;  %v5221_v25 = vsub.f32 %v15415_v35, %v5205_v21  ;;  %5268 = vadd.xlane.f32.xlu0 %v15445_v4  ;;  %5262 = vadd.xlane.f32.xlu1 %v15447_v5  ;;  %v5199_v45 = vpop.xlane.xlu0 %5198 }
 0x724   : > { %12733 = vpow2.f32 %v5242_v63  ;;  %v5218_v19 = vsub.f32 %v15412_v12, %v5199_v45  ;;  %v3726_v45 = vld [vmem:[%s13206_s18 + $0x70] sm:$0xff] }
 0x725   : > { %v15453_v56 = vpop.eup %12723  ;;  %v5252_v49 = vmul.f32 1.442695, %v5221_v25  ;;  %v3727_v25 = vld [vmem:[%s13206_s18 + $0x78] sm:$0xff] }
 0x726   : > { %v15455_v10 = vpop.eup %12725  ;;  %v5246_v28 = vmul.f32 1.442695, %v5218_v19  ;;  %v5409_v8 = vpop.permute.xlu1 %5408 }
 0x727   : > { %12735 = vpow2.f32 %v5252_v49  ;;  %5272 = vadd.xlane.f32.xlu0 %v15453_v56  ;;  %5266 = vadd.xlane.f32.xlu1 %v15455_v10  ;;  %v5203_v35 = vpop.xlane.xlu0 %5202  ;;  %v5470_v20 = vand.u32 4294901760, %v5409_v8 }
 0x728   : > { %12737 = vpow2.f32 %v5246_v28  ;;  %v5220_v57 = vsub.f32 %v15418_v26, %v5203_v35 }
 0x729   : > { %v15460_v1 = vpop.eup %12727  ;;  %v5764_v12 = vsub.f32 %v5409_v8, %v5470_v20 }
 0x72a   : > { %v15462_v30 = vpop.eup %12729  ;;  %v5250_v53 = vmul.f32 1.442695, %v5220_v57 }
 0x72b   : > { %5276 = vadd.xlane.f32.xlu0 %v15460_v1  ;;  %5270 = vadd.xlane.f32.xlu1 %v15462_v30  ;;  %v5765_v17 = vand.u32 4294901760, %v5764_v12  ;;  %v5407_v37 = vpop.permute.xlu0 %5406 }
 0x72c   : > { %12739 = vpow2.f32 %v5250_v53  ;;  %v5467_v48 = vand.u32 4294901760, %v5407_v37  ;;  %v5319_v53 = vld [vmem:[#allocation2 + $0x8] sm:$0xff] }
 0x72d   : > { %v15466_v38 = vpop.eup %12731  ;;  %v5766_v44 = vsub.f32 %v5764_v12, %v5765_v17 }
 0x72e   : > { %v15468_v9 = vpop.eup %12733  ;;  %v15470_v26 = vpack.c.bf16 %v5470_v20, %v5467_v48  ;;  %v5757_v41 = vsub.f32 %v5407_v37, %v5467_v48 }
 0x72f   : > { %5280 = vadd.xlane.f32.xlu0 %v15466_v38  ;;  %5274 = vadd.xlane.f32.xlu1 %v15468_v9  ;;  %v5767_v58 = vand.u32 4294901760, %v5766_v44 }
 0x730   : > { %17557 = vst [vmem:[#allocation34_spill] sm:$0xff] %v15470_v26  ;;  %v5758_v15 = vand.u32 4294901760, %v5757_v41  ;;  %11681 = vmatprep.subr.bf16.mxu0 %v15470_v26  ;;  %v15475_v27 = vpack.c.bf16 %v5764_v12, %v5757_v41 }
 0x731   : > { %v15477_v13 = vpop.eup %12735  ;;  %11683 = vmatpush3.bf16.msra.mxu0 %v15470_v26 }
 0x732   : > { %v15480_v34 = vpop.eup %12737  ;;  %v5759_v3 = vsub.f32 %v5757_v41, %v5758_v15  ;;  %v15482_v0 = vpack.c.bf16 %v5765_v17, %v5758_v15  ;;  %v5318_v41 = vld [vmem:[#allocation2] sm:$0xff] }
 0x733   : > { %5284 = vadd.xlane.f32.xlu0 %v15477_v13  ;;  %5278 = vadd.xlane.f32.xlu1 %v15480_v34 }
 0x734   : > { %17558 = vst [vmem:[#allocation25_spill] sm:$0xff] %v15482_v0  ;;  %v5760_v40 = vand.u32 4294901760, %v5759_v3 }
 0x736   : > { %v15486_v63 = vpop.eup %12739  ;;  %v15488_v21 = vpack.c.bf16 %v5767_v58, %v5760_v40 }
 0x737   : > { %5282 = vadd.xlane.f32.xlu1 %v15486_v63 }
 0x748   : > { %5412 = vrot.lane.b32.xlu1 %v3727_v25, %s12918_s1 }
 0x749   : > { %5410 = vrot.lane.b32.xlu0 %v3726_v45, %s12918_s1 }
 0x7a3   : > { %v5257_v19 = vpop.xlane.xlu1 %5256 }
 0x7a4   : > { %12741 = vrcp.f32 %v5257_v19  ;;  %v5255_v49 = vpop.xlane.xlu0 %5254 }
 0x7a5   : > { %12743 = vrcp.f32 %v5255_v49 }
 0x7a8   : > { %v5261_v28 = vpop.xlane.xlu0 %5260 }
 0x7a9   : > { %12745 = vrcp.f32 %v5261_v28 }
 0x7ac   : > { %v5259_v8 = vpop.xlane.xlu1 %5258  ;;  %v5265_v35 = vpop.xlane.xlu0 %5264 }
 0x7ad   : > { %12747 = vrcp.f32 %v5259_v8 }
 0x7ae   : > { %v12742_v20 = vpop.eup %12741  ;;  %12749 = vrcp.f32 %v5265_v35 }
 0x7af   : > { %v12744_v57 = vpop.eup %12743  ;;  %v5289_v12 = vmul.f32 %v12742_v20, %v15426_v23 }
 0x7b0   : > { %v5287_v17 = vmul.f32 %v12744_v57, %v15428_v50  ;;  %v5263_v37 = vpop.xlane.xlu1 %5262  ;;  %v5269_v48 = vpop.xlane.xlu0 %5268  ;;  %v5321_v50 = vld [vmem:[#allocation2 + $0x18] sm:$0xff] }
 0x7b1   : > { %v5335_v44 = vadd.f32 %v5319_v53, %v5289_v12  ;;  %12751 = vrcp.f32 %v5263_v37  ;;  %v5320_v53 = vld [vmem:[#allocation2 + $0x10] sm:$0xff] }
 0x7b2   : > { %v5334_v15 = vadd.f32 %v5318_v41, %v5287_v17  ;;  %v15497_v3 = vand.u32 4294901760, %v5287_v17  ;;  %12753 = vrcp.f32 %v5269_v48  ;;  %v5323_v48 = vld [vmem:[#allocation2 + $0x28] sm:$0xff] }
 0x7b3   : > { %v12746_v58 = vpop.eup %12745  ;;  %5351 = vst [vmem:[#allocation2 + $0x8] sm:$0xff] %v5335_v44 }
 0x7b4   : > { %5350 = vst [vmem:[#allocation2] sm:$0xff] %v5334_v15  ;;  %v15500_v40 = vmul.f32 %v12746_v58, %v15432_v7  ;;  %v5267_v25 = vpop.xlane.xlu1 %5266  ;;  %v5273_v23 = vpop.xlane.xlu0 %5272  ;;  %v15503_v45 = vsub.f32 %v5287_v17, %v15497_v3 }
 0x7b5   : > { %12755 = vrcp.f32 %v5267_v25 }
 0x7b6   : > { %v5337_v19 = vadd.f32 %v5321_v50, %v15500_v40  ;;  %12757 = vrcp.f32 %v5273_v23  ;;  %v17120_v49 = vand.u32 4294901760, %v15503_v45 }
 0x7b7   : > { %v12748_v28 = vpop.eup %12747 }
 0x7b8   : > { %v12750_v8 = vpop.eup %12749  ;;  %5353 = vst [vmem:[#allocation2 + $0x18] sm:$0xff] %v5337_v19  ;;  %v5291_v35 = vmul.f32 %v12748_v28, %v15439_v18  ;;  %v5271_v20 = vpop.xlane.xlu1 %5270  ;;  %v5514_v57 = vsub.f32 %v15503_v45, %v17120_v49  ;;  %v15515_v18 = vand.u32 4294901760, %v5289_v12  ;;  %v5328_v49 = vld [vmem:[#allocation2 + $0x50] sm:$0xff] }
 0x7b9   : > { %v5277_v7 = vpop.xlane.xlu0 %5276  ;;  %v15512_v17 = vmul.f32 %v12750_v8, %v15437_v62  ;;  %12759 = vrcp.f32 %v5271_v20  ;;  %v5322_v62 = vld [vmem:[#allocation2 + $0x20] sm:$0xff]  ;;  %v5325_v20 = vld [vmem:[#allocation2 + $0x38] sm:$0xff] }
 0x7ba   : > { %v5336_v37 = vadd.f32 %v5320_v53, %v5291_v35  ;;  %12761 = vrcp.f32 %v5277_v7  ;;  %v5515_v44 = vand.u32 4294901760, %v5514_v57  ;;  %v15521_v28 = vand.u32 4294901760, %v5291_v35 }
 0x7bb   : > { %v12752_v41 = vpop.eup %12751  ;;  %v5339_v15 = vadd.f32 %v5323_v48, %v15512_v17 }
 0x7bc   : > { %v12754_v58 = vpop.eup %12753  ;;  %5352 = vst [vmem:[#allocation2 + $0x10] sm:$0xff] %v5336_v37  ;;  %v5295_v25 = vmul.f32 %v12752_v41, %v15447_v5  ;;  %v5275_v23 = vpop.xlane.xlu1 %5274  ;;  %10776 = vmatprep.mubr.f32.mxu0 %v5515_v44  ;;  %v15525_v5 = vsub.f32 %v5289_v12, %v15515_v18  ;;  %v5324_v41 = vld [vmem:[#allocation2 + $0x30] sm:$0xff]  ;;  %v15535_v12 = vsub.f32 %v5291_v35, %v15521_v28 }
 0x7bd   : > { %v5281_v50 = vpop.xlane.xlu0 %5280  ;;  %5355 = vst [vmem:[#allocation2 + $0x28] sm:$0xff] %v5339_v15  ;;  %v15519_v19 = vmul.f32 %v12754_v58, %v15445_v4  ;;  %12763 = vrcp.f32 %v5275_v23  ;;  %v15529_v4 = vand.u32 4294901760, %v15500_v40  ;;  %v5327_v23 = vld [vmem:[#allocation2 + $0x48] sm:$0xff] }
 0x7be   : > { %v5338_v8 = vadd.f32 %v5322_v62, %v5295_v25  ;;  %12765 = vrcp.f32 %v5281_v50 }
 0x7bf   : > { %v12756_v7 = vpop.eup %12755  ;;  %v5341_v57 = vadd.f32 %v5325_v20, %v15519_v19  ;;  %v15549_v35 = vsub.f32 %v15500_v40, %v15529_v4 }
 0x7c0   : > { %v12758_v53 = vpop.eup %12757  ;;  %5354 = vst [vmem:[#allocation2 + $0x20] sm:$0xff] %v5338_v8  ;;  %v5299_v37 = vmul.f32 %v12756_v7, %v15455_v10  ;;  %v5279_v48 = vpop.xlane.xlu1 %5278  ;;  %v15538_v8 = vand.u32 4294901760, %v5295_v25 }
 0x7c1   : > { %v5285_v44 = vpop.xlane.xlu0 %5284  ;;  %5357 = vst [vmem:[#allocation2 + $0x38] sm:$0xff] %v5341_v57  ;;  %v15532_v15 = vmul.f32 %v12758_v53, %v15453_v56  ;;  %12767 = vrcp.f32 %v5279_v48  ;;  %v17123_v56 = vand.u32 4294901760, %v15525_v5  ;;  %v5326_v57 = vld [vmem:[#allocation2 + $0x40] sm:$0xff]  ;;  %v15552_v48 = vand.u32 4294901760, %v15512_v17 }
 0x7c2   : > { %v5340_v58 = vadd.f32 %v5324_v41, %v5299_v37  ;;  %12769 = vrcp.f32 %v5285_v44  ;;  %v17560_v33 = vand.u32 4294901760, %v15549_v35 }
 0x7c3   : > { %v12760_v50 = vpop.eup %12759  ;;  %v5343_v10 = vadd.f32 %v5327_v23, %v15532_v15 }
 0x7c4   : > { %v12762_v62 = vpop.eup %12761  ;;  %5356 = vst [vmem:[#allocation2 + $0x30] sm:$0xff] %v5340_v58  ;;  %v15541_v20 = vmul.f32 %v12760_v50, %v15462_v30  ;;  %v5283_v7 = vpop.xlane.xlu1 %5282  ;;  %v5329_v30 = vld [vmem:[#allocation2 + $0x58] sm:$0xff]  ;;  %v15556_v50 = vand.u32 4294901760, %v5299_v37  ;;  %v5544_v26 = vsub.f32 %v15549_v35, %v17560_v33 }
 0x7c5   : > { %5359 = vst [vmem:[#allocation2 + $0x48] sm:$0xff] %v5343_v10  ;;  %v15545_v53 = vmul.f32 %v12762_v62, %v15460_v1  ;;  %12771 = vrcp.f32 %v5283_v7  ;;  %v5411_v41 = vpop.permute.xlu0 %5410  ;;  %v5524_v7 = vsub.f32 %v15525_v5, %v17123_v56  ;;  %v17559_v56 = vand.u32 4294901760, %v15535_v12 }
 0x7c6   : > { %v5342_v44 = vadd.f32 %v5326_v57, %v15541_v20  ;;  %v15566_v57 = vsub.f32 %v5295_v25, %v15538_v8  ;;  %v5473_v0 = vand.u32 4294901760, %v5411_v41 }
 0x7c7   : > { %v12764_v23 = vpop.eup %12763  ;;  %v5345_v1 = vadd.f32 %v5329_v30, %v15545_v53  ;;  %v5534_v25 = vsub.f32 %v15535_v12, %v17559_v56 }
 0x7c8   : > { %v12766_v10 = vpop.eup %12765  ;;  %5358 = vst [vmem:[#allocation2 + $0x40] sm:$0xff] %v5342_v44  ;;  %v15560_v62 = vmul.f32 %v12764_v23, %v15468_v9  ;;  %v5413_v40 = vpop.permute.xlu1 %5412  ;;  %v15573_v9 = vand.u32 4294901760, %v15519_v19  ;;  %v15587_v44 = vsub.f32 %v5299_v37, %v15556_v50  ;;  %v17133_v56 = vand.u32 4294901760, %v15566_v57 }
 0x7c9   : > { %5361 = vst [vmem:[#allocation2 + $0x58] sm:$0xff] %v5345_v1  ;;  %v15569_v58 = vmul.f32 %v12766_v10, %v15466_v38  ;;  %v5476_v30 = vand.u32 4294901760, %v5413_v40  ;;  %v15581_v1 = vsub.f32 %v15512_v17, %v15552_v48  ;;  %v5330_v17 = vld [vmem:[#allocation2 + $0x60] sm:$0xff]  ;;  %v5525_v37 = vand.u32 4294901760, %v5524_v7 }
 0x7ca   : > { %v5344_v23 = vadd.f32 %v5328_v49, %v15560_v62  ;;  %v15590_v49 = vand.u32 4294901760, %v15541_v20  ;;  %v17135_v33 = vand.u32 4294901760, %v15587_v44 }
 0x7cb   : > { %v12768_v38 = vpop.eup %12767  ;;  %v5347_v10 = vadd.f32 %v5331_v14, %v15569_v58  ;;  %v15584_v39 = vpack.c.bf16 %v5476_v30, %v5473_v0  ;;  %v15597_v14 = vsub.f32 %v5413_v40, %v5476_v30  ;;  %v15610_v40 = vand.u32 4294901760, %v15532_v15 }
 0x7cc   : > { %v12770_v59 = vpop.eup %12769  ;;  %5360 = vst [vmem:[#allocation2 + $0x50] sm:$0xff] %v5344_v23  ;;  %v5311_v2 = vmul.f32 %v12768_v38, %v15480_v34  ;;  %v5333_v23 = vld [vmem:[#allocation2 + $0x78] sm:$0xff]  ;;  %v5535_v34 = vand.u32 4294901760, %v5534_v25  ;;  %v17134_v38 = vand.u32 4294901760, %v15581_v1  ;;  %v15613_v30 = vsub.f32 %v5411_v41, %v5473_v0  ;;  %v5332_v0 = vld [vmem:[#allocation2 + $0x70] sm:$0xff] }
 0x7cd   : > { %5363 = vst [vmem:[#allocation2 + $0x68] sm:$0xff] %v5347_v10  ;;  %v15595_v22 = vmul.f32 %v12770_v59, %v15477_v13  ;;  %11685 = vmatprep.subr.bf16.mxu0 %v15584_v39  ;;  %v15607_v59 = vsub.f32 %v15519_v19, %v15573_v9  ;;  %v15618_v25 = vand.u32 4294901760, %v15560_v62  ;;  %v5554_v19 = vsub.f32 %v15566_v57, %v17133_v56 }
 0x7ce   : > { %v5346_v54 = vadd.f32 %v5330_v17, %v5311_v2  ;;  %11687 = vmatpush3.bf16.msra.mxu0 %v15584_v39  ;;  %v15626_v17 = vsub.f32 %v15541_v20, %v15590_v49  ;;  %v5779_v41 = vand.u32 4294901760, %v15597_v14  ;;  %v15635_v56 = vand.u32 4294901760, %v15545_v53 }
 0x7cf   : > { %v12772_v13 = vpop.eup %12771  ;;  %v5349_v7 = vadd.f32 %v5333_v23, %v15595_v22  ;;  %11689 = vmatprep.subr.bf16.mxu0 %v15348_v46  ;;  %v5772_v20 = vand.u32 4294901760, %v15613_v30 }
 0x7d0   : > { %5362 = vst [vmem:[#allocation2 + $0x60] sm:$0xff] %v5346_v54  ;;  %v5315_v10 = vmul.f32 %v12772_v13, %v15486_v63  ;;  %v5545_v54 = vand.u32 4294901760, %v5544_v26  ;;  %v5564_v63 = vsub.f32 %v15581_v1, %v17134_v38  ;;  %v17136_v13 = vand.u32 4294901760, %v15607_v59 }
 0x7d1   : > { %5365 = vst [vmem:[#allocation2 + $0x78] sm:$0xff] %v5349_v7  ;;  %10777 = vmatmul.mubr.f32.vlgmr.msra.gmra.mrb[16].mxu0 %v5525_v37  ;;  %v5574_v37 = vsub.f32 %v15587_v44, %v17135_v33  ;;  %v15646_v26 = vand.u32 4294901760, %v5311_v2  ;;  %v17138_v7 = vand.u32 4294901760, %v15626_v17  ;;  %v15653_v38 = vpack.c.bf16 %v5779_v41, %v5772_v20 }
 0x7d2   : > { %v5348_v23 = vadd.f32 %v5332_v0, %v5315_v10  ;;  %10779 = vmatprep.mubr.f32.mxu0 %v5535_v34  ;;  %11691 = vmatpush3.bf16.msra.mxu0 %v15348_v46  ;;  %v15644_v46 = vsub.f32 %v15532_v15, %v15610_v40  ;;  %v5555_v34 = vand.u32 4294901760, %v5554_v19  ;;  %v15651_v0 = vsub.f32 %v15560_v62, %v15618_v25 }
 0x7d3   : > { %11693 = vmatprep.subr.bf16.mxu0 %v15358_v11  ;;  %17561 = vst [vmem:[#allocation26_spill] sm:$0xff] %v15653_v38  ;;  %v5565_v33 = vand.u32 4294901760, %v5564_v63  ;;  %v5584_v15 = vsub.f32 %v15607_v59, %v17136_v13  ;;  %v5575_v19 = vand.u32 4294901760, %v5574_v37  ;;  %v15675_v13 = vsub.f32 %v5311_v2, %v15646_v26 }
 0x7d4   : > { %5364 = vst [vmem:[#allocation2 + $0x70] sm:$0xff] %v5348_v23  ;;  %v15660_v23 = vand.u32 4294901760, %v15569_v58  ;;  %v17139_v63 = vand.u32 4294901760, %v15651_v0  ;;  %v15679_v62 = vand.u32 4294901760, %v15595_v22 }
 0x7d5   : > { %10780 = vmatmul.mubr.f32.gmra.mrb[18].mxu0 %v5545_v54  ;;  %v15666_v54 = vsub.f32 %v15545_v53, %v15635_v56  ;;  %v5585_v37 = vand.u32 4294901760, %v5584_v15  ;;  %v17562_v53 = vand.u32 4294901760, %v15644_v46 }
 0x7d6   : > { %10782 = vmatprep.mubr.f32.mxu0 %v5555_v34  ;;  %11695 = vmatpush3.bf16.msra.mxu0 %v15358_v11  ;;  %v15668_v34 = vand.u32 4294901760, %v5315_v10  ;;  %v5594_v11 = vsub.f32 %v15626_v17, %v17138_v7  ;;  %v15688_v2 = vsub.f32 %v15569_v58, %v15660_v23 }
 0x7d7   : > { %11697 = vmatprep.subr.bf16.mxu0 %v15369_v52  ;;  %v5604_v38 = vsub.f32 %v15644_v46, %v17562_v53  ;;  %v17140_v7 = vand.u32 4294901760, %v15666_v54 }
 0x7d9   : > { %10783 = vmatmul.mubr.f32.gmra.mrb[20].mxu0 %v5565_v33  ;;  %v5595_v33 = vand.u32 4294901760, %v5594_v11  ;;  %v5605_v53 = vand.u32 4294901760, %v5604_v38  ;;  %v5624_v58 = vsub.f32 %v15666_v54, %v17140_v7  ;;  %v5643_v11 = vand.u32 4294901760, %v15688_v2 }
 0x7da   : > { %10785 = vmatprep.mubr.f32.mxu0 %v5575_v19  ;;  %11699 = vmatpush3.bf16.msra.mxu0 %v15369_v52  ;;  %v5614_v52 = vsub.f32 %v15651_v0, %v17139_v63  ;;  %v15695_v19 = vsub.f32 %v5315_v10, %v15668_v34  ;;  %v15705_v63 = vsub.f32 %v15595_v22, %v15679_v62  ;;  %v17563_v10 = vand.u32 4294901760, %v15675_v13 }
 0x7db   : > { %11701 = vmatprep.subr.bf16.mxu0 %v15378_v47  ;;  %v5773_v38 = vsub.f32 %v15613_v30, %v5772_v20  ;;  %v5625_v7 = vand.u32 4294901760, %v5624_v58  ;;  %v5644_v22 = vsub.f32 %v15688_v2, %v5643_v11 }
 0x7dc   : > { %v5615_v15 = vand.u32 4294901760, %v5614_v52  ;;  %v5663_v52 = vand.u32 4294901760, %v15705_v63 }
 0x7dd   : > { %10786 = vmatmul.mubr.f32.gmra.mrb[22].mxu0 %v5585_v37  ;;  %v5634_v37 = vsub.f32 %v15675_v13, %v17563_v10  ;;  %v5774_v20 = vand.u32 4294901760, %v5773_v38  ;;  %v17582_v38 = vld [vmem:[#allocation24_spill] sm:$0xff] }
 0x7de   : > { %10788 = vmatprep.mubr.f32.mxu0 %v5595_v33  ;;  %11703 = vmatpush3.bf16.msra.mxu0 %v15378_v47  ;;  %v5653_v47 = vand.u32 4294901760, %v15695_v19  ;;  %v5780_v33 = vsub.f32 %v15597_v14, %v5779_v41 }
 0x7df   : > { %11705 = vmatprep.subr.bf16.mxu0 %v15388_v29  ;;  %v5635_v10 = vand.u32 4294901760, %v5634_v37 }
 0x7e0   : > { %v5654_v41 = vsub.f32 %v15695_v19, %v5653_v47 }
 0x7e1   : > { %10789 = vmatmul.mubr.f32.gmra.mrb[24].mxu0 %v5605_v53  ;;  %v5664_v53 = vsub.f32 %v15705_v63, %v5663_v52 }
 0x7e2   : > { %10791 = vmatprep.mubr.f32.mxu0 %v5615_v15  ;;  %11707 = vmatpush3.bf16.msra.mxu0 %v15388_v29  ;;  %v5781_v15 = vand.u32 4294901760, %v5780_v33  ;;  %v5645_v29 = vand.u32 4294901760, %v5644_v22  ;;  %v5655_v58 = vand.u32 4294901760, %v5654_v41  ;;  %v17579_v33 = vld [vmem:[#allocation33_spill] sm:$0xff] }
 0x7e3   : > { %11709 = vmatprep.subr.bf16.mxu0 %v15399_v24  ;;  %v17585_v22 = vld [vmem:[#allocation25_spill] sm:$0xff] }
 0x7e4   : > { %v11716_v37 = vpack.c.bf16 %v5781_v15, %v5774_v20 }
 0x7e5   : > { %10792 = vmatmul.mubr.f32.gmra.mrb[26].mxu0 %v5625_v7  ;;  %v5665_v7 = vand.u32 4294901760, %v5664_v53  ;;  %v6857_v53 = vld [vmem:[%s13200_s24 + $0x60] sm:$0xff] }
 0x7e6   : > { %10794 = vmatprep.mubr.f32.mxu0 %v5635_v10  ;;  %11711 = vmatpush3.bf16.msra.mxu0 %v15399_v24  ;;  %v17569_v24 = vand.u32 4294901760, %v15535_v12 }
 0x7e7   : > { %11713 = vmatprep.subr.bf16.mxu0 %v15488_v21 }
 0x7e9   : > { %10795 = vmatmul.mubr.f32.gmra.mrb[28].mxu0 %v5645_v29  ;;  %v6860_v29 = vld [vmem:[%s13200_s24 + $0x78] sm:$0xff] }
 0x7ea   : > { %10797 = vmatprep.mubr.f32.mxu0 %v5655_v58  ;;  %11715 = vmatpush3.bf16.msra.mxu0 %v15488_v21  ;;  %v17571_v21 = vand.u32 4294901760, %v15549_v35 }
 0x7eb   : > { %11717 = vmatprep.subr.bf16.mxu0 %v11716_v37 }
 0x7ed   : > { %10798 = vmatmul.mubr.f32.gmra.mrb[30].mxu0 %v5665_v7 }
 0x7ee   : > { %11719 = vmatpush3.bf16.msra.mxu0 %v11716_v37  ;;  %10832 = vmatprep.mubr.f32.mxu0 %v15497_v3 }
 0x7ef   : > { %11721 = vmatprep.subr.bf16.mxu0 %v15356_v55 }
 0x7f1   : > { %10833 = vmatmul.mubr.f32.vlgmr.msra.gmra.mrb[16].mxu0 %v15515_v18 }
 0x7f2   : > { %10835 = vmatprep.mubr.f32.mxu0 %v15521_v28  ;;  %11723 = vmatpush3.bf16.msra.mxu0 %v15356_v55  ;;  %v11748_v55 = vpack.c.bf16 %v15597_v14, %v15613_v30  ;;  %v17572_v14 = vand.u32 4294901760, %v15566_v57  ;;  %v17576_v30 = vld [vmem:[#allocation23_spill] sm:$0xff] }
 0x7f3   : > { %11725 = vmatprep.subr.bf16.mxu0 %v15366_v16 }
 0x7f5   : > { %10836 = vmatmul.mubr.f32.gmra.mrb[18].mxu0 %v15529_v4 }
 0x7f6   : > { %10838 = vmatprep.mubr.f32.mxu0 %v15538_v8  ;;  %11727 = vmatpush3.bf16.msra.mxu0 %v15366_v16  ;;  %v17564_v16 = vld [vmem:[#allocation38_spill] sm:$0xff] }
 0x7f7   : > { %11729 = vmatprep.subr.bf16.mxu0 %v15375_v60 }
 0x7f9   : > { %10839 = vmatmul.mubr.f32.gmra.mrb[20].mxu0 %v15552_v48 }
 0x7fa   : > { %10841 = vmatprep.mubr.f32.mxu0 %v15556_v50  ;;  %11731 = vmatpush3.bf16.msra.mxu0 %v15375_v60  ;;  %v17565_v60 = vld [vmem:[#allocation34_spill] sm:$0xff] }
 0x7fb   : > { %11733 = vmatprep.subr.bf16.mxu0 %v15384_v32 }
 0x7fd   : > { %10842 = vmatmul.mubr.f32.gmra.mrb[22].mxu0 %v15573_v9 }
 0x7fe   : > { %10844 = vmatprep.mubr.f32.mxu0 %v15590_v49  ;;  %11735 = vmatpush3.bf16.msra.mxu0 %v15384_v32  ;;  %v17566_v32 = vand.u32 4294901760, %v15503_v45 }
 0x7ff   : > { %11737 = vmatprep.subr.bf16.mxu0 %v15391_v42 }
 0x801   : > { %10845 = vmatmul.mubr.f32.gmra.mrb[24].mxu0 %v15610_v40 }
 0x802   : > { %10847 = vmatprep.mubr.f32.mxu0 %v15618_v25  ;;  %11739 = vmatpush3.bf16.msra.mxu0 %v15391_v42  ;;  %v17567_v42 = vld [vmem:[#allocation31_spill] sm:$0xff] }
 0x803   : > { %11741 = vmatprep.subr.bf16.mxu0 %v15395_v61 }
 0x805   : > { %10848 = vmatmul.mubr.f32.gmra.mrb[26].mxu0 %v15635_v56 }
 0x806   : > { %10850 = vmatprep.mubr.f32.mxu0 %v15646_v26  ;;  %11743 = vmatpush3.bf16.msra.mxu0 %v15395_v61  ;;  %v17568_v61 = vand.u32 4294901760, %v15525_v5 }
 0x807   : > { %11745 = vmatprep.subr.bf16.mxu0 %v15475_v27 }
 0x809   : > { %10851 = vmatmul.mubr.f32.gmra.mrb[28].mxu0 %v15660_v23 }
 0x80a   : > { %10853 = vmatprep.mubr.f32.mxu0 %v15668_v34  ;;  %11747 = vmatpush3.bf16.msra.mxu0 %v15475_v27  ;;  %v17570_v27 = vld [vmem:[#allocation20_spill] sm:$0xff] }
 0x80b   : > { %11749 = vmatprep.subr.bf16.mxu0 %v11748_v55 }
 0x80d   : > { %10854 = vmatmul.mubr.f32.gmra.mrb[30].mxu0 %v15679_v62 }
 0x80e   : > { %11751 = vmatpush3.bf16.msra.mxu0 %v11748_v55  ;;  %10888 = vmatprep.mubr.f32.mxu0 %v15503_v45  ;;  %v17573_v45 = vld [vmem:[#allocation32_spill] sm:$0xff] }
 0x80f   : > { %11753 = vmatprep.subr.bf16.mxu0 %v15298_v43 }
 0x811   : > { %10889 = vmatmul.mubr.f32.vlgmr.msra.gmra.mrb[16].mxu0 %v15525_v5  ;;  %v17574_v5 = vand.u32 4294901760, %v15581_v1 }
 0x812   : > { %10891 = vmatprep.mubr.f32.mxu0 %v15535_v12  ;;  %11755 = vmatpush3.bf16.msra.mxu0 %v15298_v43  ;;  %v17575_v12 = vand.u32 4294901760, %v15587_v44 }
 0x813   : > { %11757 = vmatprep.subr.bf16.mxu0 %v15306_v31 }
 0x815   : > { %10892 = vmatmul.mubr.f32.gmra.mrb[18].mxu0 %v15549_v35  ;;  %v17577_v35 = vand.u32 4294901760, %v15607_v59 }
 0x816   : > { %10894 = vmatprep.mubr.f32.mxu0 %v15566_v57  ;;  %11759 = vmatpush3.bf16.msra.mxu0 %v15306_v31  ;;  %v17578_v57 = vand.u32 4294901760, %v15626_v17 }
 0x817   : > { %11761 = vmatprep.subr.bf16.mxu0 %v15314_v51 }
 0x819   : > { %10895 = vmatmul.mubr.f32.gmra.mrb[20].mxu0 %v15581_v1  ;;  %v17580_v1 = vand.u32 4294901760, %v15644_v46 }
 0x81a   : > { %10897 = vmatprep.mubr.f32.mxu0 %v15587_v44  ;;  %11763 = vmatpush3.bf16.msra.mxu0 %v15314_v51  ;;  %v17581_v44 = vand.u32 4294901760, %v15651_v0 }
 0x81b   : > { %11765 = vmatprep.subr.bf16.mxu0 %v15322_v6 }
 0x81d   : > { %10898 = vmatmul.mubr.f32.gmra.mrb[22].mxu0 %v15607_v59  ;;  %v17583_v59 = vand.u32 4294901760, %v15666_v54 }
 0x81e   : > { %10900 = vmatprep.mubr.f32.mxu0 %v15626_v17  ;;  %11767 = vmatpush3.bf16.msra.mxu0 %v15322_v6  ;;  %v17584_v17 = vand.u32 4294901760, %v15675_v13 }
 0x81f   : > { %11769 = vmatprep.subr.bf16.mxu0 %v15330_v36 }
 0x821   : > { %10901 = vmatmul.mubr.f32.gmra.mrb[24].mxu0 %v15644_v46  ;;  %v17586_v46 = vld [vmem:[#allocation26_spill] sm:$0xff] }
 0x822   : > { %10903 = vmatprep.mubr.f32.mxu0 %v15651_v0  ;;  %11771 = vmatpush3.bf16.msra.mxu0 %v15330_v36  ;;  %v6853_v0 = vld [vmem:[%s13200_s24 + $0x40] sm:$0xff] }
 0x823   : > { %11773 = vmatprep.subr.bf16.mxu0 %v17564_v16  ;;  %v6895_v41 = vand.u32 4294901760, %v6853_v0 }
 0x825   : > { %10904 = vmatmul.mubr.f32.gmra.mrb[26].mxu0 %v15666_v54 }
 0x826   : > { %10906 = vmatprep.mubr.f32.mxu0 %v15675_v13  ;;  %11775 = vmatpush3.bf16.msra.mxu0 %v17564_v16 }
 0x827   : > { %11777 = vmatprep.subr.bf16.mxu0 %v17565_v60 }
 0x829   : > { %10907 = vmatmul.mubr.f32.gmra.mrb[28].mxu0 %v15688_v2  ;;  %v6858_v2 = vld [vmem:[%s13200_s24 + $0x68] sm:$0xff] }
 0x82a   : > { %10909 = vmatprep.mubr.f32.mxu0 %v15695_v19  ;;  %11779 = vmatpush3.bf16.msra.mxu0 %v17565_v60  ;;  %v6901_v20 = vand.u32 4294901760, %v6858_v2 }
 0x82b   : > { %11781 = vmatprep.subr.bf16.mxu0 %v15584_v39 }
 0x82d   : > { %10910 = vmatmul.mubr.f32.gmra.mrb[30].mxu0 %v15705_v63 }
 0x82e   : > { %11783 = vmatpush3.bf16.msra.mxu0 %v15584_v39  ;;  %10944 = vmatprep.mubr.f32.mxu0 %v17566_v32 }
 0x82f   : > { %11785 = vmatprep.subr.bf16.mxu0 %v17567_v42 }
 0x831   : > { %10945 = vmatmul.mubr.f32.vlgmr.msra.gmra.mrb[16].mxu0 %v17568_v61 }
 0x832   : > { %10947 = vmatprep.mubr.f32.mxu0 %v17569_v24  ;;  %11787 = vmatpush3.bf16.msra.mxu0 %v17567_v42  ;;  %v15937_v42 = vsub.f32 %v6853_v0, %v6895_v41  ;;  %v6905_v24 = vand.u32 4294901760, %v6860_v29 }
 0x833   : > { %11789 = vmatprep.subr.bf16.mxu0 %v17570_v27 }
 0x835   : > { %10948 = vmatmul.mubr.f32.gmra.mrb[18].mxu0 %v17571_v21  ;;  %v6903_v21 = vand.u32 4294901760, %v6857_v53 }
 0x836   : > { %10950 = vmatprep.mubr.f32.mxu0 %v17572_v14  ;;  %11791 = vmatpush3.bf16.msra.mxu0 %v17570_v27  ;;  %v15941_v27 = vsub.f32 %v6858_v2, %v6901_v20 }
 0x837   : > { %11793 = vmatprep.subr.bf16.mxu0 %v17573_v45 }
 0x839   : > { %10951 = vmatmul.mubr.f32.gmra.mrb[20].mxu0 %v17574_v5  ;;  %v15947_v5 = vpack.c.bf16 %v6905_v24, %v6901_v20 }
 0x83a   : > { %10953 = vmatprep.mubr.f32.mxu0 %v17575_v12  ;;  %11795 = vmatpush3.bf16.msra.mxu0 %v17573_v45  ;;  %v15949_v12 = vsub.f32 %v6860_v29, %v6905_v24  ;;  %v6871_v29 = vld [vmem:[%s13200_s24 + $0xd0] sm:$0xff] }
 0x83b   : > { %11797 = vmatprep.subr.bf16.mxu0 %v17576_v30  ;;  %17593 = vst [vmem:[#allocation64_spill] sm:$0xff] %v15947_v5 }
 0x83d   : > { %10954 = vmatmul.mubr.f32.gmra.mrb[22].mxu0 %v17577_v35 }
 0x83e   : > { %10956 = vmatprep.mubr.f32.mxu0 %v17578_v57  ;;  %11799 = vmatpush3.bf16.msra.mxu0 %v17576_v30  ;;  %v15951_v30 = vsub.f32 %v6857_v53, %v6903_v21  ;;  %v6931_v53 = vand.u32 4294901760, %v6871_v29 }
 0x83f   : > { %11801 = vmatprep.subr.bf16.mxu0 %v17579_v33 }
 0x841   : > { %10957 = vmatmul.mubr.f32.gmra.mrb[24].mxu0 %v17580_v1  ;;  %v6864_v1 = vld [vmem:[%s13200_s24 + $0x98] sm:$0xff] }
 0x842   : > { %10959 = vmatprep.mubr.f32.mxu0 %v17581_v44  ;;  %11803 = vmatpush3.bf16.msra.mxu0 %v17579_v33  ;;  %v6862_v33 = vld [vmem:[%s13200_s24 + $0x88] sm:$0xff]  ;;  %v6861_v44 = vld [vmem:[%s13200_s24 + $0x80] sm:$0xff] }
 0x843   : > { %11805 = vmatprep.subr.bf16.mxu0 %v17582_v38 }
 0x845   : > { %10960 = vmatmul.mubr.f32.gmra.mrb[26].mxu0 %v17583_v59  ;;  %v6913_v59 = vand.u32 4294901760, %v6864_v1 }
 0x846   : > { %10962 = vmatprep.mubr.f32.mxu0 %v17584_v17  ;;  %11807 = vmatpush3.bf16.msra.mxu0 %v17582_v38  ;;  %v6909_v38 = vand.u32 4294901760, %v6862_v33  ;;  %v6863_v17 = vld [vmem:[%s13200_s24 + $0x90] sm:$0xff] }
 0x847   : > { %11809 = vmatprep.subr.bf16.mxu0 %v17585_v22 }
 0x849   : > { %10963 = vmatmul.mubr.f32.gmra.mrb[28].mxu0 %v5643_v11 }
 0x84a   : > { %10965 = vmatprep.mubr.f32.mxu0 %v5653_v47  ;;  %11811 = vmatpush3.bf16.msra.mxu0 %v17585_v22  ;;  %v6911_v22 = vand.u32 4294901760, %v6861_v44 }
 0x84b   : > { %11813 = vmatprep.subr.bf16.mxu0 %v17586_v46 }
 0x84d   : > { %10966 = vmatmul.mubr.f32.gmra.mrb[30].mxu0 %v5663_v52 }
 0x84e   : > { %11815 = vmatpush3.bf16.msra.mxu0 %v17586_v46  ;;  %11000 = vmatprep.mubr.f32.mxu0 %v15497_v3  ;;  %v6915_v46 = vand.u32 4294901760, %v6863_v17 }
 0x84f   : > { %11817 = vmatprep.subr.bf16.mxu0 %v15298_v43 }
 0x851   : > { %11001 = vmatmul.mubr.f32.vlgmr.msra.gmra.mrb[16].mxu0 %v15515_v18 }
 0x852   : > { %11003 = vmatprep.mubr.f32.mxu0 %v15521_v28  ;;  %11819 = vmatpush3.bf16.msra.mxu0 %v15298_v43  ;;  %v6846_v43 = vld [vmem:[%s13200_s24 + $0x8] sm:$0xff] }
 0x853   : > { %11821 = vmatprep.subr.bf16.mxu0 %v15306_v31 }
 0x855   : > { %11004 = vmatmul.mubr.f32.gmra.mrb[18].mxu0 %v15529_v4 }
 0x856   : > { %11006 = vmatprep.mubr.f32.mxu0 %v15538_v8  ;;  %11823 = vmatpush3.bf16.msra.mxu0 %v15306_v31  ;;  %v6848_v31 = vld [vmem:[%s13200_s24 + $0x18] sm:$0xff] }
 0x857   : > { %11825 = vmatprep.subr.bf16.mxu0 %v15314_v51 }
 0x859   : > { %11007 = vmatmul.mubr.f32.gmra.mrb[20].mxu0 %v15552_v48 }
 0x85a   : > { %11009 = vmatprep.mubr.f32.mxu0 %v15556_v50  ;;  %11827 = vmatpush3.bf16.msra.mxu0 %v15314_v51  ;;  %v6845_v51 = vld [vmem:[%s13200_s24] sm:$0xff] }
 0x85b   : > { %11829 = vmatprep.subr.bf16.mxu0 %v15322_v6 }
 0x85d   : > { %11010 = vmatmul.mubr.f32.gmra.mrb[22].mxu0 %v15573_v9 }
 0x85e   : > { %11012 = vmatprep.mubr.f32.mxu0 %v15590_v49  ;;  %11831 = vmatpush3.bf16.msra.mxu0 %v15322_v6  ;;  %v6877_v6 = vand.u32 4294901760, %v6846_v43 }
 0x85f   : > { %11833 = vmatprep.subr.bf16.mxu0 %v15330_v36 }
 0x861   : > { %11013 = vmatmul.mubr.f32.gmra.mrb[24].mxu0 %v15610_v40 }
 0x862   : > { %11015 = vmatprep.mubr.f32.mxu0 %v15618_v25  ;;  %11835 = vmatpush3.bf16.msra.mxu0 %v15330_v36  ;;  %v6881_v36 = vand.u32 4294901760, %v6848_v31 }
 0x863   : > { %11837 = vmatprep.subr.bf16.mxu0 %v17564_v16 }
 0x865   : > { %11016 = vmatmul.mubr.f32.gmra.mrb[26].mxu0 %v15635_v56 }
 0x866   : > { %11018 = vmatprep.mubr.f32.mxu0 %v15646_v26  ;;  %11839 = vmatpush3.bf16.msra.mxu0 %v17564_v16  ;;  %v6859_v16 = vld [vmem:[%s13200_s24 + $0x70] sm:$0xff] }
 0x867   : > { %11841 = vmatprep.subr.bf16.mxu0 %v17565_v60  ;;  %v6907_v45 = vand.u32 4294901760, %v6859_v16 }
 0x869   : > { %11019 = vmatmul.mubr.f32.gmra.mrb[28].mxu0 %v15660_v23  ;;  %v15953_v35 = vsub.f32 %v6859_v16, %v6907_v45  ;;  %v15956_v57 = vpack.c.bf16 %v6907_v45, %v6903_v21 }
 0x86a   : > { %11021 = vmatprep.mubr.f32.mxu0 %v15668_v34  ;;  %11843 = vmatpush3.bf16.msra.mxu0 %v17565_v60 }
 0x86b   : > { %11845 = vmatprep.subr.bf16.mxu0 %v15584_v39  ;;  %17594 = vst [vmem:[#allocation63_spill] sm:$0xff] %v15956_v57 }
 0x86d   : > { %11022 = vmatmul.mubr.f32.gmra.mrb[30].mxu0 %v15679_v62 }
 0x86e   : > { %11847 = vmatpush3.bf16.msra.mxu0 %v15584_v39  ;;  %11056 = vmatprep.mubr.f32.mxu0 %v15497_v3  ;;  %v6847_v39 = vld [vmem:[%s13200_s24 + $0x10] sm:$0xff]  ;;  %v6879_v3 = vand.u32 4294901760, %v6845_v51 }
 0x870   : > { %v15903_v13 = vsub.f32 %v6845_v51, %v6879_v3  ;;  %v15968_v51 = vsub.f32 %v6864_v1, %v6913_v59 }
 0x871   : > { %11057 = vmatmul.mubr.f32.vlgmr.msra.gmra.mrb[16].mxu0 %v15515_v18  ;;  %v6850_v18 = vld [vmem:[%s13200_s24 + $0x28] sm:$0xff] }
 0x872   : > { %11059 = vmatprep.mubr.f32.mxu0 %v15521_v28  ;;  %v6852_v28 = vld [vmem:[%s13200_s24 + $0x38] sm:$0xff] }
 0x875   : > { %11060 = vmatmul.mubr.f32.gmra.mrb[18].mxu0 %v15529_v4  ;;  %v6883_v4 = vand.u32 4294901760, %v6847_v39 }
 0x876   : > { %11062 = vmatprep.mubr.f32.mxu0 %v15538_v8  ;;  %v6885_v8 = vand.u32 4294901760, %v6850_v18 }
 0x877   : > { %v15910_v54 = vsub.f32 %v6847_v39, %v6883_v4  ;;  %v15974_v39 = vsub.f32 %v6863_v17, %v6915_v46  ;;  %v6876_v17 = vld [vmem:[%s13200_s24 + $0xf8] sm:$0xff] }
 0x878   : > { %v15914_v63 = vsub.f32 %v6850_v18, %v6885_v8  ;;  %v6868_v18 = vld [vmem:[%s13200_s24 + $0xb8] sm:$0xff] }
 0x879   : > { %11063 = vmatmul.mubr.f32.gmra.mrb[20].mxu0 %v15552_v48  ;;  %v6889_v48 = vand.u32 4294901760, %v6852_v28 }
 0x87a   : > { %11065 = vmatprep.mubr.f32.mxu0 %v15556_v50  ;;  %v6849_v50 = vld [vmem:[%s13200_s24 + $0x20] sm:$0xff] }
 0x87b   : > { %v15918_v19 = vsub.f32 %v6852_v28, %v6889_v48  ;;  %v6887_v11 = vand.u32 4294901760, %v6849_v50  ;;  %v6865_v28 = vld [vmem:[%s13200_s24 + $0xa0] sm:$0xff] }
 0x87d   : > { %11066 = vmatmul.mubr.f32.gmra.mrb[22].mxu0 %v15573_v9  ;;  %v6851_v9 = vld [vmem:[%s13200_s24 + $0x30] sm:$0xff]  ;;  %v15926_v37 = vsub.f32 %v6849_v50, %v6887_v11  ;;  %v6919_v50 = vand.u32 4294901760, %v6865_v28 }
 0x87e   : > { %11068 = vmatprep.mubr.f32.mxu0 %v15590_v49  ;;  %v6854_v49 = vld [vmem:[%s13200_s24 + $0x48] sm:$0xff]  ;;  %v6891_v47 = vand.u32 4294901760, %v6851_v9 }
 0x87f   : > { %v6893_v52 = vand.u32 4294901760, %v6854_v49 }
 0x880   : > { %v15924_v58 = vpack.c.bf16 %v6891_v47, %v6887_v11  ;;  %v15928_v7 = vsub.f32 %v6851_v9, %v6891_v47  ;;  %v6870_v47 = vld [vmem:[%s13200_s24 + $0xc8] sm:$0xff] }
 0x881   : > { %11069 = vmatmul.mubr.f32.gmra.mrb[24].mxu0 %v15610_v40  ;;  %v15899_v40 = vsub.f32 %v6846_v43, %v6877_v6  ;;  %v15930_v55 = vsub.f32 %v6854_v49, %v6893_v52  ;;  %v15964_v43 = vpack.c.bf16 %v6913_v59, %v6909_v38  ;;  %v6874_v59 = vld [vmem:[%s13200_s24 + $0xe8] sm:$0xff] }
 0x882   : > { %11071 = vmatprep.mubr.f32.mxu0 %v15618_v25  ;;  %v15901_v25 = vsub.f32 %v6848_v31, %v6881_v36  ;;  %17590 = vst [vmem:[#allocation36_spill] sm:$0xff] %v15924_v58  ;;  %v15966_v31 = vsub.f32 %v6862_v33, %v6909_v38  ;;  %v16010_v38 = vsub.f32 %v6871_v29, %v6931_v53 }
 0x883   : > { %17595 = vst [vmem:[#allocation68_spill] sm:$0xff] %v15964_v43  ;;  %v17141_v29 = vand.u32 4294901760, %v15899_v40 }
 0x885   : > { %11072 = vmatmul.mubr.f32.gmra.mrb[26].mxu0 %v15635_v56  ;;  %v15897_v56 = vpack.c.bf16 %v6881_v36, %v6877_v6  ;;  %v15970_v6 = vsub.f32 %v6861_v44, %v6911_v22  ;;  %v15972_v36 = vpack.c.bf16 %v6915_v46, %v6911_v22  ;;  %v6873_v22 = vld [vmem:[%s13200_s24 + $0xe0] sm:$0xff]  ;;  %v6933_v46 = vand.u32 4294901760, %v6874_v59 }
 0x886   : > { %11074 = vmatprep.mubr.f32.mxu0 %v15646_v26  ;;  %v6856_v26 = vld [vmem:[%s13200_s24 + $0x58] sm:$0xff] }
 0x887   : > { %17587 = vst [vmem:[#allocation27_spill] sm:$0xff] %v15897_v56  ;;  %11849 = vmatprep.subr.bf16.mxu0 %v15897_v56  ;;  %v6897_v10 = vand.u32 4294901760, %v6856_v26  ;;  %17596 = vst [vmem:[#allocation37_spill] sm:$0xff] %v15972_v36 }
 0x889   : > { %11075 = vmatmul.mubr.f32.gmra.mrb[28].mxu0 %v15660_v23  ;;  %v6855_v23 = vld [vmem:[%s13200_s24 + $0x50] sm:$0xff]  ;;  %v15933_v60 = vpack.c.bf16 %v6897_v10, %v6893_v52  ;;  %v15935_v32 = vsub.f32 %v6856_v26, %v6897_v10  ;;  %v6872_v52 = vld [vmem:[%s13200_s24 + $0xd8] sm:$0xff]  ;;  %v6869_v10 = vld [vmem:[%s13200_s24 + $0xc0] sm:$0xff] }
 0x88a   : > { %11077 = vmatprep.mubr.f32.mxu0 %v15668_v34  ;;  %v15912_v34 = vpack.c.bf16 %v6889_v48, %v6885_v8  ;;  %v6899_v15 = vand.u32 4294901760, %v6855_v23  ;;  %v6921_v8 = vand.u32 4294901760, %v6868_v18  ;;  %v6867_v48 = vld [vmem:[%s13200_s24 + $0xb0] sm:$0xff]  ;;  %v6927_v20 = vand.u32 4294901760, %v6869_v10 }
 0x88b   : > { %17591 = vst [vmem:[#allocation58_spill] sm:$0xff] %v15933_v60  ;;  %v6923_v9 = vand.u32 4294901760, %v6867_v48 }
 0x88c   : > { %17589 = vst [vmem:[#allocation30_spill] sm:$0xff] %v15912_v34  ;;  %v15939_v61 = vsub.f32 %v6855_v23, %v6899_v15  ;;  %v15944_v14 = vpack.c.bf16 %v6899_v15, %v6895_v41  ;;  %v15986_v0 = vsub.f32 %v6868_v18, %v6921_v8  ;;  %v15988_v23 = vsub.f32 %v6865_v28, %v6919_v50  ;;  %v6875_v18 = vld [vmem:[%s13200_s24 + $0xf0] sm:$0xff] }
 0x88d   : > { %11078 = vmatmul.mubr.f32.gmra.mrb[30].mxu0 %v15679_v62  ;;  %v15908_v62 = vpack.c.bf16 %v6883_v4, %v6879_v3  ;;  %v6866_v3 = vld [vmem:[%s13200_s24 + $0xa8] sm:$0xff]  ;;  %v15990_v2 = vpack.c.bf16 %v6923_v9, %v6919_v50  ;;  %v15992_v11 = vsub.f32 %v6867_v48, %v6923_v9  ;;  %v6925_v41 = vand.u32 4294901760, %v6870_v47 }
 0x88e   : > { %17592 = vst [vmem:[#allocation57_spill] sm:$0xff] %v15944_v14  ;;  %v6917_v4 = vand.u32 4294901760, %v6866_v3  ;;  %v6929_v15 = vand.u32 4294901760, %v6872_v52  ;;  %v16006_v33 = vsub.f32 %v6869_v10, %v6927_v20  ;;  %v16008_v44 = vpack.c.bf16 %v6931_v53, %v6927_v20 }
 0x88f   : > { %17588 = vst [vmem:[#allocation28_spill] sm:$0xff] %v15908_v62  ;;  %11851 = vmatpush1.bf16.msra.mxu0 %v15908_v62  ;;  %17598 = vst [vmem:[#allocation40_spill] sm:$0xff] %v15990_v2  ;;  %v16002_v21 = vsub.f32 %v6870_v47, %v6925_v41  ;;  %v6935_v28 = vand.u32 4294901760, %v6873_v22  ;;  %v16021_v50 = vsub.f32 %v6874_v59, %v6933_v46  ;;  %v17146_v20 = vand.u32 4294901760, %v15901_v25 }
 0x890   : > { %11853 = vmatprep.subr.bf16.mxu0 %v15912_v34  ;;  %v15982_v49 = vpack.c.bf16 %v6921_v8, %v6917_v4  ;;  %v15984_v26 = vsub.f32 %v6866_v3, %v6917_v4  ;;  %v16000_v24 = vpack.c.bf16 %v6929_v15, %v6925_v41  ;;  %v16004_v45 = vsub.f32 %v6872_v52, %v6929_v15 }
 0x891   : > { %17600 = vst [vmem:[#allocation42_spill] sm:$0xff] %v16008_v44  ;;  %v6937_v3 = vand.u32 4294901760, %v6876_v17  ;;  %v6939_v4 = vand.u32 4294901760, %v6875_v18  ;;  %17602 = vst [vmem:[#allocation47_spill] sm:$0xff] %v16021_v50  ;;  %v16025_v47 = vsub.f32 %v6873_v22, %v6935_v28  ;;  %v17142_v15 = vmov 0.0  }
 0x892   : > { %17597 = vst [vmem:[#allocation39_spill] sm:$0xff] %v15982_v49  ;;  %17599 = vst [vmem:[#allocation41_spill] sm:$0xff] %v16000_v24  ;;  %6973 = vmatprep.mubr.f32.mxu0 %v17142_v15  ;;  %v17149_v53 = vand.u32 4294901760, %v15903_v13  ;;  %v7165_v22 = vsub.f32 %v15901_v25, %v17146_v20 }
 0x893   : > { %11855 = vmatpush1.bf16.msra.mxu0 %v15924_v58  ;;  %v16019_v48 = vpack.c.bf16 %v6937_v3, %v6933_v46  ;;  %v16023_v9 = vsub.f32 %v6876_v17, %v6937_v3  ;;  %17603 = vst [vmem:[#allocation51_spill] sm:$0xff] %v16025_v47  ;;  %v16027_v10 = vpack.c.bf16 %v6939_v4, %v6935_v28 }
 0x894   : > { %11857 = vmatprep.subr.bf16.mxu0 %v15933_v60  ;;  %v16029_v41 = vsub.f32 %v6875_v18, %v6939_v4  ;;  %v7159_v46 = vsub.f32 %v15903_v13, %v17149_v53  ;;  %v7166_v28 = vand.u32 4294901760, %v7165_v22 }
 0x895   : > { %17601 = vst [vmem:[#allocation48_spill] sm:$0xff] %v16019_v48  ;;  %17604 = vst [vmem:[#allocation52_spill] sm:$0xff] %v16027_v10 }
 0x896   : > { %17605 = vst [vmem:[#allocation55_spill] sm:$0xff] %v16029_v41  ;;  %v7160_v4 = vand.u32 4294901760, %v7159_v46 }
 0x897   : > { %11859 = vmatpush1.bf16.msra.mxu0 %v15944_v14 }
 0x898   : > { %11861 = vmatprep.subr.bf16.mxu0 %v15947_v5  ;;  %v17195_v5 = vand.u32 4294901760, %v16025_v47 }
 0x89b   : > { %11863 = vmatpush1.bf16.msra.mxu0 %v15956_v57 }
 0x89c   : > { %11865 = vmatprep.subr.bf16.mxu0 %v15964_v43  ;;  %v17189_v43 = vand.u32 4294901760, %v16006_v33 }
 0x89f   : > { %11867 = vmatpush1.bf16.msra.mxu0 %v15972_v36 }
 0x8a0   : > { %11869 = vmatprep.subr.bf16.mxu0 %v15982_v49  ;;  %v17181_v49 = vand.u32 4294901760, %v15988_v23 }
 0x8a3   : > { %11871 = vmatpush1.bf16.msra.mxu0 %v15990_v2  ;;  %v17174_v2 = vand.u32 4294901760, %v15974_v39 }
 0x8a4   : > { %11873 = vmatprep.subr.bf16.mxu0 %v16000_v24 }
 0x8a7   : > { %11875 = vmatpush1.bf16.msra.mxu0 %v16008_v44 }
 0x8a8   : > { %11877 = vmatprep.subr.bf16.mxu0 %v16019_v48 }
 0x8ab   : > { %11879 = vmatpush1.bf16.msra.mxu0 %v16027_v10 }
 0x944   : > { %v11058_v16 = vpop.f32.mrb[16].mxu0 }
 0x945   : > { %v6622_v1 = vpop.f32.mrb[17].mxu0 }
 0x946   : > { %6732 = vrot.lane.b32.xlu1 %v6622_v1, %s12918_s1  ;;  %v17147_v1 = vand.u32 4294901760, %v15910_v54 }
 0x948   : > { %v11061_v8 = vpop.f32.mrb[18].mxu0  ;;  %v7171_v3 = vsub.f32 %v15910_v54, %v17147_v1  ;;  %v17148_v1 = vand.u32 4294901760, %v15914_v63 }
 0x949   : > { %v6634_v52 = vpop.f32.mrb[19].mxu0 }
 0x94a   : > { %6734 = vrot.lane.b32.xlu1 %v11058_v16, %s12918_s1  ;;  %6736 = vrot.lane.b32.xlu0 %v6634_v52, %s12918_s1  ;;  %v7153_v16 = vsub.f32 %v15899_v40, %v17141_v29  ;;  %v7172_v52 = vand.u32 4294901760, %v7171_v3  ;;  %v7177_v3 = vsub.f32 %v15914_v63, %v17148_v1 }
 0x94c   : > { %v11064_v59 = vpop.f32.mrb[20].mxu0  ;;  %v7154_v18 = vand.u32 4294901760, %v7153_v16  ;;  %v16054_v20 = vpack.c.bf16 %v7172_v52, %v7160_v4  ;;  %v17153_v16 = vand.u32 4294901760, %v15928_v7 }
 0x94d   : > { %v6646_v17 = vpop.f32.mrb[21].mxu0 }
 0x94e   : > { %6738 = vrot.lane.b32.xlu1 %v11061_v8, %s12918_s1  ;;  %6740 = vrot.lane.b32.xlu0 %v6646_v17, %s12918_s1  ;;  %v11880_v10 = vpack.c.bf16 %v7166_v28, %v7154_v18  ;;  %v17152_v8 = vand.u32 4294901760, %v15918_v19  ;;  %v17155_v17 = vand.u32 4294901760, %v15926_v37  ;;  %v7178_v18 = vand.u32 4294901760, %v7177_v3 }
 0x94f   : > { %v17161_v3 = vand.u32 4294901760, %v15939_v61 }
 0x950   : > { %v11067_v29 = vpop.f32.mrb[22].mxu0  ;;  %11881 = vmatprep.subr.bf16.mxu0 %v11880_v10  ;;  %v7183_v10 = vsub.f32 %v15926_v37, %v17155_v17 }
 0x951   : > { %v6658_v15 = vpop.f32.mrb[23].mxu0 }
 0x952   : > { %6742 = vrot.lane.b32.xlu1 %v11064_v59, %s12918_s1  ;;  %6744 = vrot.lane.b32.xlu0 %v6658_v15, %s12918_s1  ;;  %v7189_v59 = vsub.f32 %v15918_v19, %v17152_v8  ;;  %v7195_v15 = vsub.f32 %v15928_v7, %v17153_v16  ;;  %v7184_v4 = vand.u32 4294901760, %v7183_v10  ;;  %v17154_v16 = vand.u32 4294901760, %v15930_v55 }
 0x954   : > { %v11070_v22 = vpop.f32.mrb[24].mxu0  ;;  %v7190_v28 = vand.u32 4294901760, %v7189_v59  ;;  %v7196_v52 = vand.u32 4294901760, %v7195_v15  ;;  %v7201_v15 = vsub.f32 %v15930_v55, %v17154_v16 }
 0x955   : > { %v6670_v46 = vpop.f32.mrb[25].mxu0 }
 0x956   : > { %6746 = vrot.lane.b32.xlu1 %v11067_v29, %s12918_s1  ;;  %6748 = vrot.lane.b32.xlu0 %v6670_v46, %s12918_s1  ;;  %v16076_v48 = vpack.c.bf16 %v7190_v28, %v7178_v18  ;;  %v16078_v8 = vpack.c.bf16 %v7196_v52, %v7184_v4  ;;  %v17160_v29 = vand.u32 4294901760, %v15935_v32  ;;  %v17164_v46 = vand.u32 4294901760, %v15937_v42 }
 0x957   : > { %v7219_v18 = vsub.f32 %v15939_v61, %v17161_v3  ;;  %v7202_v28 = vand.u32 4294901760, %v7201_v15  ;;  %v17162_v3 = vand.u32 4294901760, %v15941_v27  ;;  %v17168_v15 = vand.u32 4294901760, %v15953_v35 }
 0x958   : > { %v11073_v1 = vpop.f32.mrb[26].mxu0 }
 0x959   : > { %v6682_v53 = vpop.f32.mrb[27].mxu0  ;;  %v7220_v16 = vand.u32 4294901760, %v7219_v18 }
 0x95a   : > { %6750 = vrot.lane.b32.xlu1 %v11070_v22, %s12918_s1  ;;  %6752 = vrot.lane.b32.xlu0 %v6682_v53, %s12918_s1  ;;  %v7213_v22 = vsub.f32 %v15935_v32, %v17160_v29  ;;  %v7207_v53 = vsub.f32 %v15937_v42, %v17164_v46  ;;  %v17170_v46 = vand.u32 4294901760, %v15968_v51 }
 0x95c   : > { %v11076_v59 = vpop.f32.mrb[28].mxu0  ;;  %v7214_v4 = vand.u32 4294901760, %v7213_v22  ;;  %v7208_v52 = vand.u32 4294901760, %v7207_v53  ;;  %v7225_v22 = vsub.f32 %v15941_v27, %v17162_v3 }
 0x95d   : > { %v6694_v10 = vpop.f32.mrb[29].mxu0 }
 0x95e   : > { %6754 = vrot.lane.b32.xlu1 %v11073_v1, %s12918_s1  ;;  %6756 = vrot.lane.b32.xlu0 %v6694_v10, %s12918_s1  ;;  %v16100_v24 = vpack.c.bf16 %v7214_v4, %v7202_v28  ;;  %v16102_v29 = vpack.c.bf16 %v7220_v16, %v7208_v52  ;;  %v17163_v1 = vand.u32 4294901760, %v15949_v12  ;;  %v17165_v10 = vand.u32 4294901760, %v15951_v30 }
 0x95f   : > { %v7226_v53 = vand.u32 4294901760, %v7225_v22  ;;  %v7261_v22 = vsub.f32 %v15968_v51, %v17170_v46  ;;  %v17178_v46 = vand.u32 4294901760, %v15986_v0 }
 0x960   : > { %v11079_v17 = vpop.f32.mrb[30].mxu0  ;;  %v7237_v16 = vsub.f32 %v15949_v12, %v17163_v1  ;;  %v17169_v1 = vand.u32 4294901760, %v15966_v31 }
 0x961   : > { %v6706_v44 = vpop.f32.mrb[31].mxu0 }
 0x962   : > { %6758 = vrot.lane.b32.xlu1 %v11076_v59, %s12918_s1  ;;  %6760 = vrot.lane.b32.xlu0 %v6706_v44, %s12918_s1  ;;  %v7231_v44 = vsub.f32 %v15951_v30, %v17165_v10  ;;  %v7243_v59 = vsub.f32 %v15953_v35, %v17168_v15  ;;  %v7238_v18 = vand.u32 4294901760, %v7237_v16  ;;  %v17173_v10 = vand.u32 4294901760, %v15970_v6 }
 0x964   : > { %v7232_v28 = vand.u32 4294901760, %v7231_v44  ;;  %v7244_v4 = vand.u32 4294901760, %v7243_v59  ;;  %v16123_v52 = vpack.c.bf16 %v7238_v18, %v7226_v53  ;;  %v7255_v16 = vsub.f32 %v15970_v6, %v17173_v10 }
 0x965   : > { %v7267_v44 = vsub.f32 %v15974_v39, %v17174_v2  ;;  %v7262_v53 = vand.u32 4294901760, %v7261_v22  ;;  %v17182_v10 = vand.u32 4294901760, %v15992_v11  ;;  %v7279_v22 = vsub.f32 %v15988_v23, %v17181_v49 }
 0x966   : > { %6762 = vrot.lane.b32.xlu1 %v11079_v17, %s12918_s1  ;;  %v16125_v3 = vpack.c.bf16 %v7244_v4, %v7232_v28  ;;  %v7249_v17 = vsub.f32 %v15966_v31, %v17169_v1  ;;  %v7256_v18 = vand.u32 4294901760, %v7255_v16  ;;  %v17177_v1 = vand.u32 4294901760, %v15984_v26 }
 0x967   : > { %v7268_v28 = vand.u32 4294901760, %v7267_v44  ;;  %v7291_v16 = vsub.f32 %v15992_v11, %v17182_v10  ;;  %v17190_v49 = vand.u32 4294901760, %v16010_v38 }
 0x968   : > { %v7250_v59 = vand.u32 4294901760, %v7249_v17  ;;  %v7273_v2 = vsub.f32 %v15984_v26, %v17177_v1  ;;  %v7285_v17 = vsub.f32 %v15986_v0, %v17178_v46  ;;  %v17185_v1 = vand.u32 4294901760, %v16002_v21 }
 0x969   : > { %v16145_v15 = vpack.c.bf16 %v7268_v28, %v7256_v18  ;;  %v7292_v18 = vand.u32 4294901760, %v7291_v16  ;;  %v17186_v46 = vand.u32 4294901760, %v16004_v45 }
 0x96a   : > { %v16143_v4 = vpack.c.bf16 %v7262_v53, %v7250_v59  ;;  %v7274_v44 = vand.u32 4294901760, %v7273_v2  ;;  %v7286_v59 = vand.u32 4294901760, %v7285_v17  ;;  %v7280_v53 = vand.u32 4294901760, %v7279_v22 }
 0x96b   : > { %v7297_v10 = vsub.f32 %v16002_v21, %v17185_v1  ;;  %v7309_v2 = vsub.f32 %v16004_v45, %v17186_v46  ;;  %v7303_v17 = vsub.f32 %v16006_v33, %v17189_v43  ;;  %v7315_v22 = vsub.f32 %v16010_v38, %v17190_v49 }
 0x96c   : > { %v16163_v28 = vpack.c.bf16 %v7286_v59, %v7274_v44  ;;  %v16165_v36 = vpack.c.bf16 %v7292_v18, %v7280_v53  ;;  %v17193_v1 = vand.u32 4294901760, %v16021_v50  ;;  %v17194_v46 = vand.u32 4294901760, %v16023_v9 }
 0x96d   : > { %v7298_v16 = vand.u32 4294901760, %v7297_v10  ;;  %v7310_v44 = vand.u32 4294901760, %v7309_v2  ;;  %v7304_v59 = vand.u32 4294901760, %v7303_v17  ;;  %v7316_v53 = vand.u32 4294901760, %v7315_v22 }
 0x96e   : > { %v17196_v43 = vand.u32 4294901760, %v16029_v41  ;;  %v7321_v49 = vsub.f32 %v16021_v50, %v17193_v1  ;;  %v7333_v10 = vsub.f32 %v16023_v9, %v17194_v46  ;;  %v7327_v2 = vsub.f32 %v16025_v47, %v17195_v5 }
 0x96f   : > { %v16183_v18 = vpack.c.bf16 %v7310_v44, %v7298_v16  ;;  %v16185_v57 = vpack.c.bf16 %v7316_v53, %v7304_v59 }
 0x970   : > { %v7339_v17 = vsub.f32 %v16029_v41, %v17196_v43  ;;  %v7322_v22 = vand.u32 4294901760, %v7321_v49  ;;  %v7334_v16 = vand.u32 4294901760, %v7333_v10  ;;  %v7328_v44 = vand.u32 4294901760, %v7327_v2 }
 0x972   : > { %v7340_v59 = vand.u32 4294901760, %v7339_v17  ;;  %v16203_v53 = vpack.c.bf16 %v7334_v16, %v7322_v22 }
 0x974   : > { %v16205_v14 = vpack.c.bf16 %v7340_v59, %v7328_v44 }
 0x9b8   : > { %v6733_v10 = vpop.permute.xlu1 %6732 }
 0x9b9   : > { %6781 = vst.msk [vmem:[#allocation4] sm:$0xff] %vm6780_vm1, %v6733_v10 }
 0x9bc   : > { %v6735_v22 = vpop.permute.xlu1 %6734  ;;  %v6737_v49 = vpop.permute.xlu0 %6736 }
 0x9bd   : > { %6782 = vst.msk [vmem:[#allocation4 + $0x8] sm:$0xff] %vm6780_vm1, %v6735_v22  ;;  %6783 = vst.msk [vmem:[#allocation4 + $0x10] sm:$0xff] %vm6780_vm1, %v6737_v49 }
 0x9c0   : > { %v6739_v44 = vpop.permute.xlu1 %6738  ;;  %v6741_v16 = vpop.permute.xlu0 %6740  ;;  %v6829_v43 = vld [vmem:[#allocation4] sm:$0xff] }
 0x9c1   : > { %6784 = vst.msk [vmem:[#allocation4 + $0x18] sm:$0xff] %vm6780_vm1, %v6739_v44  ;;  %6785 = vst.msk [vmem:[#allocation4 + $0x20] sm:$0xff] %vm6780_vm1, %v6741_v16  ;;  %v16240_v10 = vand.u32 4294901760, %v6829_v43 }
 0x9c3   : > { %v16243_v2 = vsub.f32 %v6829_v43, %v16240_v10 }
 0x9c4   : > { %v6743_v59 = vpop.permute.xlu1 %6742  ;;  %v6745_v49 = vpop.permute.xlu0 %6744  ;;  %v6830_v5 = vld [vmem:[#allocation4 + $0x8] sm:$0xff]  ;;  %v6831_v46 = vld [vmem:[#allocation4 + $0x10] sm:$0xff] }
 0x9c5   : > { %17606 = vst [vmem:[#allocation56_spill] sm:$0xff] %v16243_v2  ;;  %6786 = vst.msk [vmem:[#allocation4 + $0x28] sm:$0xff] %vm6780_vm1, %v6743_v59  ;;  %v17207_v16 = vand.u32 4294901760, %v16243_v2  ;;  %v16252_v44 = vand.u32 4294901760, %v6830_v5  ;;  %v16254_v43 = vand.u32 4294901760, %v6831_v46 }
 0x9c6   : > { %6787 = vst.msk [vmem:[#allocation4 + $0x30] sm:$0xff] %vm6780_vm1, %v6745_v49 }
 0x9c7   : > { %17607 = vst [vmem:[#allocation61_spill] sm:$0xff] %v16254_v43  ;;  %v6977_v17 = vsub.f32 %v16243_v2, %v17207_v16  ;;  %v16260_v22 = vsub.f32 %v6830_v5, %v16252_v44  ;;  %v16263_v1 = vsub.f32 %v6831_v46, %v16254_v43 }
 0x9c8   : > { %v6747_v60 = vpop.permute.xlu1 %6746  ;;  %v6749_v59 = vpop.permute.xlu0 %6748  ;;  %v6832_v58 = vld [vmem:[#allocation4 + $0x18] sm:$0xff]  ;;  %v6833_v49 = vld [vmem:[#allocation4 + $0x20] sm:$0xff] }
 0x9c9   : > { %17608 = vst [vmem:[#allocation62_spill] sm:$0xff] %v16260_v22  ;;  %6788 = vst.msk [vmem:[#allocation4 + $0x38] sm:$0xff] %vm6780_vm1, %v6747_v60  ;;  %v6978_v34 = vand.u32 4294901760, %v6977_v17  ;;  %v17212_v62 = vand.u32 4294901760, %v16260_v22  ;;  %v16269_v16 = vand.u32 4294901760, %v6832_v58  ;;  %v16271_v5 = vand.u32 4294901760, %v6833_v49 }
 0x9ca   : > { %6789 = vst.msk [vmem:[#allocation4 + $0x40] sm:$0xff] %vm6780_vm1, %v6749_v59  ;;  %v17612_v59 = vmov 0.0  }
 0x9cb   : > { %17609 = vst [vmem:[#allocation66_spill] sm:$0xff] %v16269_v16  ;;  %17610 = vst [vmem:[#allocation67_spill] sm:$0xff] %v16271_v5  ;;  %6979 = vmatmul.mubr.f32.vlgmr.msra.gmra.mrb[32].mxu0 %v6978_v34  ;;  %v6988_v46 = vsub.f32 %v16260_v22, %v17212_v62  ;;  %v16277_v2 = vsub.f32 %v6832_v58, %v16269_v16  ;;  %v16282_v56 = vsub.f32 %v6833_v49, %v16271_v5 }
 0x9cc   : > { %11883 = vmatpush1.bf16.msra.mxu0 %v16054_v20  ;;  %v6751_v60 = vpop.permute.xlu1 %6750  ;;  %v6753_v17 = vpop.permute.xlu0 %6752  ;;  %6984 = vmatprep.mubr.f32.mxu0 %v17612_v59  ;;  %v6834_v47 = vld [vmem:[#allocation4 + $0x28] sm:$0xff]  ;;  %v17613_v62 = vand.u32 4294901760, %v16263_v1 }
 0x9cd   : > { %17611 = vst [vmem:[#allocation69_spill] sm:$0xff] %v16277_v2  ;;  %6790 = vst.msk [vmem:[#allocation4 + $0x48] sm:$0xff] %vm6780_vm1, %v6751_v60  ;;  %v6989_v34 = vand.u32 4294901760, %v6988_v46  ;;  %11885 = vmatprep.subr.bf16.mxu0 %v16076_v48  ;;  %v17219_v20 = vand.u32 4294901760, %v16277_v2  ;;  %v16291_v22 = vand.u32 4294901760, %v6834_v47  ;;  %v6835_v41 = vld [vmem:[#allocation4 + $0x30] sm:$0xff] }
 0x9ce   : > { %6791 = vst.msk [vmem:[#allocation4 + $0x50] sm:$0xff] %vm6780_vm1, %v6753_v17  ;;  %v6999_v58 = vsub.f32 %v16263_v1, %v17613_v62  ;;  %v16305_v17 = vand.u32 4294901760, %v6835_v41 }
 0x9cf   : > { %17614 = vst [vmem:[#allocation43_spill] sm:$0xff] %v16291_v22  ;;  %6990 = vmatmul.mubr.f32.gmra.mrb[34].mxu0 %v6989_v34  ;;  %v7010_v48 = vsub.f32 %v16277_v2, %v17219_v20  ;;  %v16303_v60 = vsub.f32 %v6834_v47, %v16291_v22 }
 0x9d0   : > { %v6755_v49 = vpop.permute.xlu1 %6754  ;;  %v6757_v50 = vpop.permute.xlu0 %6756  ;;  %6995 = vmatprep.mubr.f32.mxu0 %v17612_v59  ;;  %11887 = vmatpush1.bf16.msra.mxu0 %v16078_v8  ;;  %v7000_v62 = vand.u32 4294901760, %v6999_v58  ;;  %17615 = vst [vmem:[#allocation45_spill] sm:$0xff] %v16305_v17  ;;  %v6836_v34 = vld [vmem:[#allocation4 + $0x38] sm:$0xff] }
 0x9d1   : > { %6792 = vst.msk [vmem:[#allocation4 + $0x58] sm:$0xff] %vm6780_vm1, %v6755_v49  ;;  %6793 = vst.msk [vmem:[#allocation4 + $0x60] sm:$0xff] %vm6780_vm1, %v6757_v50  ;;  %11889 = vmatprep.subr.bf16.mxu0 %v16100_v24  ;;  %v17616_v50 = vand.u32 4294901760, %v16282_v56  ;;  %v7011_v24 = vand.u32 4294901760, %v7010_v48  ;;  %v17226_v47 = vand.u32 4294901760, %v16303_v60  ;;  %v16316_v49 = vsub.f32 %v6835_v41, %v16305_v17  ;;  %v6837_v20 = vld [vmem:[#allocation4 + $0x40] sm:$0xff] }
 0x9d3   : > { %7001 = vmatmul.mubr.f32.gmra.mrb[36].mxu0 %v7000_v62  ;;  %v7021_v58 = vsub.f32 %v16282_v56, %v17616_v50  ;;  %v16319_v62 = vand.u32 4294901760, %v6836_v34  ;;  %v7032_v41 = vsub.f32 %v16303_v60, %v17226_v47 }
 0x9d4   : > { %v6759_v8 = vpop.permute.xlu1 %6758  ;;  %v6761_v46 = vpop.permute.xlu0 %6760  ;;  %7006 = vmatprep.mubr.f32.mxu0 %v17612_v59  ;;  %11891 = vmatpush1.bf16.msra.mxu0 %v16102_v29  ;;  %v16323_v29 = vand.u32 4294901760, %v6837_v20 }
 0x9d5   : > { %6794 = vst.msk [vmem:[#allocation4 + $0x68] sm:$0xff] %vm6780_vm1, %v6759_v8  ;;  %6795 = vst.msk [vmem:[#allocation4 + $0x70] sm:$0xff] %vm6780_vm1, %v6761_v46  ;;  %11893 = vmatprep.subr.bf16.mxu0 %v16123_v52  ;;  %v7022_v46 = vand.u32 4294901760, %v7021_v58  ;;  %v17225_v52 = vand.u32 4294901760, %v16316_v49  ;;  %v16331_v48 = vsub.f32 %v6836_v34, %v16319_v62  ;;  %v6838_v8 = vld [vmem:[#allocation4 + $0x48] sm:$0xff] }
 0x9d6   : > { %17617 = vst [vmem:[#allocation49_spill] sm:$0xff] %v16319_v62  ;;  %17618 = vst [vmem:[#allocation53_spill] sm:$0xff] %v16323_v29  ;;  %v16343_v34 = vand.u32 4294901760, %v6838_v8 }
 0x9d7   : > { %7012 = vmatmul.mubr.f32.gmra.mrb[38].mxu0 %v7011_v24  ;;  %v7043_v50 = vsub.f32 %v16316_v49, %v17225_v52  ;;  %v17222_v58 = vand.u32 4294901760, %v16331_v48  ;;  %v6839_v24 = vld [vmem:[#allocation4 + $0x50] sm:$0xff] }
 0x9d8   : > { %v6763_v2 = vpop.permute.xlu1 %6762  ;;  %7017 = vmatprep.mubr.f32.mxu0 %v17612_v59  ;;  %11895 = vmatpush1.bf16.msra.mxu0 %v16125_v3  ;;  %v16336_v3 = vsub.f32 %v6837_v20, %v16323_v29  ;;  %17620 = vst [vmem:[#allocation65_spill] sm:$0xff] %v16343_v34 }
 0x9d9   : > { %6796 = vst.msk [vmem:[#allocation4 + $0x78] sm:$0xff] %vm6780_vm1, %v6763_v2  ;;  %11897 = vmatprep.subr.bf16.mxu0 %v16143_v4  ;;  %v7033_v2 = vand.u32 4294901760, %v7032_v41  ;;  %v16347_v4 = vand.u32 4294901760, %v6839_v24  ;;  %v7054_v20 = vsub.f32 %v16331_v48, %v17222_v58  ;;  %v16355_v41 = vsub.f32 %v6838_v8, %v16343_v34 }
 0x9da   : > { %17619 = vst [vmem:[#allocation59_spill] sm:$0xff] %v16336_v3 }
 0x9db   : > { %7023 = vmatmul.mubr.f32.gmra.mrb[40].mxu0 %v7022_v46  ;;  %17621 = vst [vmem:[#allocation29_spill] sm:$0xff] %v16347_v4  ;;  %v17223_v46 = vand.u32 4294901760, %v16336_v3  ;;  %17622 = vst [vmem:[#allocation21_spill] sm:$0xff] %v16355_v41  ;;  %v17224_v58 = vand.u32 4294901760, %v16355_v41 }
 0x9dc   : > { %7028 = vmatprep.mubr.f32.mxu0 %v17612_v59  ;;  %11899 = vmatpush1.bf16.msra.mxu0 %v16145_v15  ;;  %v7044_v15 = vand.u32 4294901760, %v7043_v50  ;;  %v6843_v47 = vld [vmem:[#allocation4 + $0x70] sm:$0xff] }
 0x9dd   : > { %11901 = vmatprep.subr.bf16.mxu0 %v16163_v28  ;;  %v6840_v28 = vld [vmem:[#allocation4 + $0x58] sm:$0xff]  ;;  %v7065_v50 = vsub.f32 %v16336_v3, %v17223_v46 }
 0x9de   : > { %v16367_v8 = vand.u32 4294901760, %v6840_v28 }
 0x9df   : > { %7034 = vmatmul.mubr.f32.gmra.mrb[42].mxu0 %v7033_v2  ;;  %v16360_v2 = vsub.f32 %v6839_v24, %v16347_v4 }
 0x9e0   : > { %7039 = vmatprep.mubr.f32.mxu0 %v17612_v59  ;;  %11903 = vmatpush1.bf16.msra.mxu0 %v16165_v36  ;;  %v7055_v36 = vand.u32 4294901760, %v7054_v20  ;;  %17624 = vst [vmem:[#allocation46_spill] sm:$0xff] %v16367_v8  ;;  %v16377_v20 = vsub.f32 %v6840_v28, %v16367_v8 }
 0x9e1   : > { %11905 = vmatprep.subr.bf16.mxu0 %v16183_v18  ;;  %17623 = vst [vmem:[#allocation44_spill] sm:$0xff] %v16360_v2  ;;  %v6841_v18 = vld [vmem:[#allocation4 + $0x60] sm:$0xff]  ;;  %v17229_v24 = vand.u32 4294901760, %v16360_v2 }
 0x9e2   : > { %v16379_v46 = vand.u32 4294901760, %v6841_v18 }
 0x9e3   : > { %7045 = vmatmul.mubr.f32.gmra.mrb[44].mxu0 %v7044_v15  ;;  %v7076_v15 = vsub.f32 %v16355_v41, %v17224_v58  ;;  %v17234_v58 = vand.u32 4294901760, %v16377_v20 }
 0x9e4   : > { %7050 = vmatprep.mubr.f32.mxu0 %v17612_v59  ;;  %11907 = vmatpush1.bf16.msra.mxu0 %v16185_v57  ;;  %v7066_v57 = vand.u32 4294901760, %v7065_v50  ;;  %17625 = vst [vmem:[#allocation50_spill] sm:$0xff] %v16379_v46  ;;  %v16390_v28 = vsub.f32 %v6841_v18, %v16379_v46  ;;  %v6844_v18 = vld [vmem:[#allocation4 + $0x78] sm:$0xff] }
 0x9e5   : > { %11909 = vmatprep.subr.bf16.mxu0 %v16203_v53  ;;  %v17626_v53 = vpack.c.bf16 %v15901_v25, %v15899_v40  ;;  %v7077_v50 = vand.u32 4294901760, %v7076_v15  ;;  %v7098_v41 = vsub.f32 %v16377_v20, %v17234_v58  ;;  %v16412_v58 = vand.u32 4294901760, %v6844_v18 }
 0x9e6   : > { %17627 = vst [vmem:[#allocation54_spill] sm:$0xff] %v16390_v28  ;;  %v17235_v15 = vand.u32 4294901760, %v16390_v28 }
 0x9e7   : > { %7056 = vmatmul.mubr.f32.gmra.mrb[46].mxu0 %v7055_v36  ;;  %v6842_v36 = vld [vmem:[#allocation4 + $0x68] sm:$0xff]  ;;  %17630 = vst [vmem:[#allocation70_spill] sm:$0xff] %v16412_v58 }
 0x9e8   : > { %7061 = vmatprep.mubr.f32.mxu0 %v17612_v59  ;;  %11911 = vmatpush1.bf16.msra.mxu0 %v16205_v14  ;;  %v7087_v14 = vsub.f32 %v16360_v2, %v17229_v24  ;;  %v16392_v52 = vand.u32 4294901760, %v6842_v36  ;;  %v7099_v2 = vand.u32 4294901760, %v7098_v41  ;;  %v16420_v41 = vsub.f32 %v6844_v18, %v16412_v58 }
 0x9e9   : > { %11913 = vmatprep.subr.bf16.mxu0 %v17626_v53  ;;  %v16395_v53 = vand.u32 4294901760, %v6843_v47 }
 0x9ea   : > { %17628 = vst [vmem:[#allocation60_spill] sm:$0xff] %v16392_v52  ;;  %v16402_v24 = vsub.f32 %v6842_v36, %v16392_v52 }
 0x9eb   : > { %7067 = vmatmul.mubr.f32.gmra.mrb[48].mxu0 %v7066_v57  ;;  %17629 = vst [vmem:[#allocation35_spill] sm:$0xff] %v16395_v53  ;;  %v7088_v57 = vand.u32 4294901760, %v7087_v14  ;;  %v7109_v14 = vsub.f32 %v16390_v28, %v17235_v15  ;;  %v17239_v28 = vand.u32 4294901760, %v16420_v41 }
 0x9ec   : > { %7072 = vmatprep.mubr.f32.mxu0 %v17612_v59  ;;  %v17238_v3 = vand.u32 4294901760, %v16402_v24 }
 0x9ed   : > { %v7110_v36 = vand.u32 4294901760, %v7109_v14 }
 0x9ef   : > { %7078 = vmatmul.mubr.f32.gmra.mrb[50].mxu0 %v7077_v50  ;;  %v16406_v50 = vsub.f32 %v6843_v47, %v16395_v53 }
 0x9f0   : > { %7083 = vmatprep.mubr.f32.mxu0 %v17612_v59 }
 0x9f1   : > { %v17240_v47 = vand.u32 4294901760, %v16406_v50 }
 0x9f3   : > { %7089 = vmatmul.mubr.f32.gmra.mrb[52].mxu0 %v7088_v57  ;;  %v7120_v57 = vsub.f32 %v16402_v24, %v17238_v3  ;;  %v7142_v3 = vsub.f32 %v16420_v41, %v17239_v28  ;;  %v17653_v28 = vld [vmem:[#allocation62_spill] sm:$0xff] }
 0x9f4   : > { %7094 = vmatprep.mubr.f32.mxu0 %v17612_v59 }
 0x9f5   : > { %v7121_v15 = vand.u32 4294901760, %v7120_v57  ;;  %v7143_v18 = vand.u32 4294901760, %v7142_v3  ;;  %v17633_v3 = vpack.c.bf16 %v15928_v7, %v15926_v37  ;;  %v17634_v57 = vpack.c.bf16 %v15935_v32, %v15930_v55 }
 0x9f7   : > { %7100 = vmatmul.mubr.f32.gmra.mrb[54].mxu0 %v7099_v2  ;;  %v7131_v2 = vsub.f32 %v16406_v50, %v17240_v47  ;;  %v17654_v47 = vld [vmem:[#allocation36_spill] sm:$0xff] }
 0x9f8   : > { %7105 = vmatprep.mubr.f32.mxu0 %v17612_v59 }
 0x9f9   : > { %v7132_v14 = vand.u32 4294901760, %v7131_v2  ;;  %v17635_v2 = vpack.c.bf16 %v15939_v61, %v15937_v42 }
 0x9fb   : > { %7111 = vmatmul.mubr.f32.gmra.mrb[56].mxu0 %v7110_v36  ;;  %v17631_v36 = vpack.c.bf16 %v15910_v54, %v15903_v13 }
 0x9fc   : > { %7116 = vmatprep.mubr.f32.mxu0 %v17612_v59 }
 0x9ff   : > { %7122 = vmatmul.mubr.f32.gmra.mrb[58].mxu0 %v7121_v15  ;;  %v17632_v15 = vpack.c.bf16 %v15918_v19, %v15914_v63 }
 0xa00   : > { %7127 = vmatprep.mubr.f32.mxu0 %v17612_v59 }
 0xa03   : > { %7133 = vmatmul.mubr.f32.gmra.mrb[60].mxu0 %v7132_v14  ;;  %v17636_v14 = vpack.c.bf16 %v15949_v12, %v15941_v27 }
 0xa04   : > { %7138 = vmatprep.mubr.f32.mxu0 %v17612_v59 }
 0xa07   : > { %7144 = vmatmul.mubr.f32.gmra.mrb[62].mxu0 %v7143_v18  ;;  %v17637_v18 = vpack.c.bf16 %v15953_v35, %v15951_v30 }
 0xa08   : > { %7374 = vmatprep.mubr.f32.mxu0 %v17612_v59 }
 0xa0b   : > { %7376 = vmatmul.mubr.f32.vlgmr.msra.gmra.mrb[32].mxu0 %v16240_v10 }
 0xa0c   : > { %11915 = vmatpush1.bf16.msra.mxu0 %v17631_v36  ;;  %7381 = vmatprep.mubr.f32.mxu0 %v17612_v59  ;;  %v17638_v36 = vpack.c.bf16 %v15968_v51, %v15966_v31 }
 0xa0d   : > { %11917 = vmatprep.subr.bf16.mxu0 %v17632_v15  ;;  %v17639_v15 = vpack.c.bf16 %v15974_v39, %v15970_v6 }
 0xa0f   : > { %7383 = vmatmul.mubr.f32.gmra.mrb[34].mxu0 %v16252_v44 }
 0xa10   : > { %7388 = vmatprep.mubr.f32.mxu0 %v17612_v59  ;;  %11919 = vmatpush1.bf16.msra.mxu0 %v17633_v3  ;;  %v17640_v3 = vpack.c.bf16 %v15986_v0, %v15984_v26 }
 0xa11   : > { %11921 = vmatprep.subr.bf16.mxu0 %v17634_v57  ;;  %v17641_v57 = vpack.c.bf16 %v15992_v11, %v15988_v23 }
 0xa13   : > { %7390 = vmatmul.mubr.f32.gmra.mrb[36].mxu0 %v16254_v43 }
 0xa14   : > { %7395 = vmatprep.mubr.f32.mxu0 %v17612_v59  ;;  %11923 = vmatpush1.bf16.msra.mxu0 %v17635_v2  ;;  %v17642_v2 = vpack.c.bf16 %v16004_v45, %v16002_v21 }
 0xa15   : > { %11925 = vmatprep.subr.bf16.mxu0 %v17636_v14  ;;  %v17643_v14 = vpack.c.bf16 %v16010_v38, %v16006_v33 }
 0xa17   : > { %7397 = vmatmul.mubr.f32.gmra.mrb[38].mxu0 %v16269_v16 }
 0xa18   : > { %7402 = vmatprep.mubr.f32.mxu0 %v17612_v59  ;;  %11927 = vmatpush1.bf16.msra.mxu0 %v17637_v18  ;;  %v17644_v18 = vld [vmem:[#allocation47_spill] sm:$0xff] }
 0xa19   : > { %11929 = vmatprep.subr.bf16.mxu0 %v17638_v36  ;;  %v17645_v36 = vpack.c.bf16 %v16023_v9, %v17644_v18 }
 0xa1b   : > { %7404 = vmatmul.mubr.f32.gmra.mrb[40].mxu0 %v16271_v5  ;;  %v17666_v5 = vld [vmem:[#allocation48_spill] sm:$0xff] }
 0xa1c   : > { %7409 = vmatprep.mubr.f32.mxu0 %v17612_v59  ;;  %11931 = vmatpush1.bf16.msra.mxu0 %v17639_v15  ;;  %v17646_v15 = vld [vmem:[#allocation55_spill] sm:$0xff] }
 0xa1d   : > { %11933 = vmatprep.subr.bf16.mxu0 %v17640_v3  ;;  %v17647_v3 = vld [vmem:[#allocation51_spill] sm:$0xff] }
 0xa1f   : > { %7411 = vmatmul.mubr.f32.gmra.mrb[42].mxu0 %v16291_v22  ;;  %v17665_v22 = vld [vmem:[#allocation42_spill] sm:$0xff] }
 0xa20   : > { %7416 = vmatprep.mubr.f32.mxu0 %v17612_v59  ;;  %11935 = vmatpush1.bf16.msra.mxu0 %v17641_v57  ;;  %v17648_v57 = vpack.c.bf16 %v17646_v15, %v17647_v3 }
 0xa21   : > { %11937 = vmatprep.subr.bf16.mxu0 %v17642_v2  ;;  %v17649_v2 = vld [vmem:[#allocation27_spill] sm:$0xff] }
 0xa23   : > { %7418 = vmatmul.mubr.f32.gmra.mrb[44].mxu0 %v16305_v17  ;;  %v17664_v17 = vld [vmem:[#allocation41_spill] sm:$0xff] }
 0xa24   : > { %7423 = vmatprep.mubr.f32.mxu0 %v17612_v59  ;;  %11939 = vmatpush1.bf16.msra.mxu0 %v17643_v14  ;;  %v17650_v14 = vld [vmem:[#allocation56_spill] sm:$0xff] }
 0xa25   : > { %11941 = vmatprep.subr.bf16.mxu0 %v17645_v36  ;;  %v17651_v36 = vld [vmem:[#allocation28_spill] sm:$0xff]  ;;  %v17678_v16 = vand.u32 4294901760, %v17650_v14 }
 0xa27   : > { %7425 = vmatmul.mubr.f32.gmra.mrb[46].mxu0 %v16319_v62  ;;  %v17663_v62 = vld [vmem:[#allocation40_spill] sm:$0xff] }
 0xa28   : > { %7430 = vmatprep.mubr.f32.mxu0 %v17612_v59  ;;  %11943 = vmatpush1.bf16.msra.mxu0 %v17648_v57  ;;  %v17652_v57 = vld [vmem:[#allocation30_spill] sm:$0xff] }
 0xa29   : > { %11945 = vmatprep.subr.bf16.mxu0 %v17649_v2 }
 0xa2b   : > { %7432 = vmatmul.mubr.f32.gmra.mrb[48].mxu0 %v16323_v29  ;;  %v17662_v29 = vld [vmem:[#allocation39_spill] sm:$0xff] }
 0xa2c   : > { %7437 = vmatprep.mubr.f32.mxu0 %v17612_v59 }
 0xa2f   : > { %7439 = vmatmul.mubr.f32.gmra.mrb[50].mxu0 %v16343_v34  ;;  %v17661_v34 = vld [vmem:[#allocation37_spill] sm:$0xff] }
 0xa30   : > { %7444 = vmatprep.mubr.f32.mxu0 %v17612_v59 }
 0xa33   : > { %7446 = vmatmul.mubr.f32.gmra.mrb[52].mxu0 %v16347_v4  ;;  %v17660_v4 = vld [vmem:[#allocation68_spill] sm:$0xff] }
 0xa34   : > { %7451 = vmatprep.mubr.f32.mxu0 %v17612_v59 }
 0xa37   : > { %7453 = vmatmul.mubr.f32.gmra.mrb[54].mxu0 %v16367_v8  ;;  %v17659_v8 = vld [vmem:[#allocation63_spill] sm:$0xff] }
 0xa38   : > { %7458 = vmatprep.mubr.f32.mxu0 %v17612_v59 }
 0xa3b   : > { %7460 = vmatmul.mubr.f32.gmra.mrb[56].mxu0 %v16379_v46  ;;  %v17658_v46 = vld [vmem:[#allocation69_spill] sm:$0xff] }
 0xa3c   : > { %7465 = vmatprep.mubr.f32.mxu0 %v17612_v59 }
 0xa3f   : > { %7467 = vmatmul.mubr.f32.gmra.mrb[58].mxu0 %v16392_v52  ;;  %v17657_v52 = vld [vmem:[#allocation64_spill] sm:$0xff] }
 0xa40   : > { %7472 = vmatprep.mubr.f32.mxu0 %v17612_v59 }
 0xa43   : > { %7474 = vmatmul.mubr.f32.gmra.mrb[60].mxu0 %v16395_v53  ;;  %v17655_v53 = vld [vmem:[#allocation58_spill] sm:$0xff] }
 0xa44   : > { %7479 = vmatprep.mubr.f32.mxu0 %v17612_v59 }
 0xa47   : > { %7481 = vmatmul.mubr.f32.gmra.mrb[62].mxu0 %v16412_v58  ;;  %v17656_v58 = vld [vmem:[#allocation57_spill] sm:$0xff] }
 0xa48   : > { %7615 = vmatprep.mubr.f32.mxu0 %v17612_v59 }
 0xa4b   : > { %7618 = vmatmul.mubr.f32.vlgmr.msra.gmra.mrb[32].mxu0 %v17650_v14  ;;  %v17697_v14 = vand.u32 4294901760, %v15986_v0  ;;  %v17703_v0 = vand.u32 4294901760, %v16303_v60 }
 0xa4c   : > { %11947 = vmatpush1.bf16.msra.mxu0 %v17651_v36  ;;  %7623 = vmatprep.mubr.f32.mxu0 %v17612_v59 }
 0xa4d   : > { %11949 = vmatprep.subr.bf16.mxu0 %v17652_v57 }
 0xa4f   : > { %7626 = vmatmul.mubr.f32.gmra.mrb[34].mxu0 %v17653_v28 }
 0xa50   : > { %7631 = vmatprep.mubr.f32.mxu0 %v17612_v59  ;;  %11951 = vmatpush1.bf16.msra.mxu0 %v17654_v47 }
 0xa51   : > { %11953 = vmatprep.subr.bf16.mxu0 %v17655_v53 }
 0xa53   : > { %7634 = vmatmul.mubr.f32.gmra.mrb[36].mxu0 %v16263_v1 }
 0xa54   : > { %7639 = vmatprep.mubr.f32.mxu0 %v17612_v59  ;;  %11955 = vmatpush1.bf16.msra.mxu0 %v17656_v58  ;;  %v17680_v58 = vand.u32 4294901760, %v15928_v7  ;;  %v17686_v7 = vand.u32 4294901760, %v15941_v27 }
 0xa55   : > { %11957 = vmatprep.subr.bf16.mxu0 %v17657_v52  ;;  %v17679_v52 = vand.u32 4294901760, %v15926_v37 }
 0xa57   : > { %7642 = vmatmul.mubr.f32.gmra.mrb[38].mxu0 %v17658_v46  ;;  %v11982_v43 = vpack.c.bf16 %v17680_v58, %v17679_v52  ;;  %v17689_v52 = vand.u32 4294901760, %v15951_v30  ;;  %v17692_v58 = vand.u32 4294901760, %v15968_v51  ;;  %v17698_v51 = vand.u32 4294901760, %v16282_v56 }
 0xa58   : > { %7647 = vmatprep.mubr.f32.mxu0 %v17612_v59  ;;  %11959 = vmatpush1.bf16.msra.mxu0 %v17659_v8  ;;  %v17671_v8 = vld [vmem:[#allocation21_spill] sm:$0xff] }
 0xa59   : > { %11961 = vmatprep.subr.bf16.mxu0 %v17660_v4 }
 0xa5b   : > { %7650 = vmatmul.mubr.f32.gmra.mrb[40].mxu0 %v16282_v56  ;;  %v17704_v56 = vand.u32 4294901760, %v16006_v33 }
 0xa5c   : > { %7655 = vmatprep.mubr.f32.mxu0 %v17612_v59  ;;  %11963 = vmatpush1.bf16.msra.mxu0 %v17661_v34  ;;  %v17667_v34 = vand.u32 4294901760, %v15899_v40  ;;  %v17673_v40 = vld [vmem:[#allocation54_spill] sm:$0xff] }
 0xa5d   : > { %11965 = vmatprep.subr.bf16.mxu0 %v17662_v29  ;;  %v17668_v29 = vand.u32 4294901760, %v15901_v25  ;;  %v17674_v25 = vand.u32 4294901760, %v15903_v13  ;;  %v17681_v13 = vand.u32 4294901760, %v15930_v55 }
 0xa5f   : > { %7658 = vmatmul.mubr.f32.gmra.mrb[42].mxu0 %v16303_v60  ;;  %v11976_v4 = vpack.c.bf16 %v17668_v29, %v17667_v34  ;;  %v17675_v29 = vand.u32 4294901760, %v15910_v54  ;;  %v17682_v54 = vand.u32 4294901760, %v15935_v32  ;;  %v17688_v32 = vand.u32 4294901760, %v16263_v1 }
 0xa60   : > { %7663 = vmatprep.mubr.f32.mxu0 %v17612_v59  ;;  %11967 = vmatpush1.bf16.msra.mxu0 %v17663_v62  ;;  %v17669_v62 = vld [vmem:[#allocation52_spill] sm:$0xff]  ;;  %v17694_v1 = vand.u32 4294901760, %v15970_v6  ;;  %v17709_v60 = vand.u32 4294901760, %v17647_v3  ;;  %v17724_v3 = vld [vmem:[#allocation63_spill] sm:$0xff] }
 0xa61   : > { %11969 = vmatprep.subr.bf16.mxu0 %v17664_v17  ;;  %v17670_v17 = vld [vmem:[#allocation59_spill] sm:$0xff]  ;;  %v11978_v34 = vpack.c.bf16 %v17675_v29, %v17674_v25  ;;  %v17700_v25 = vand.u32 4294901760, %v15992_v11  ;;  %v17702_v29 = vand.u32 4294901760, %v16004_v45  ;;  %v17706_v11 = vand.u32 4294901760, %v17644_v18 }
 0xa62   : > { %v17708_v45 = vand.u32 4294901760, %v16316_v49 }
 0xa63   : > { %7666 = vmatmul.mubr.f32.gmra.mrb[44].mxu0 %v16316_v49  ;;  %v17713_v49 = vand.u32 4294901760, %v17671_v8 }
 0xa64   : > { %7671 = vmatprep.mubr.f32.mxu0 %v17612_v59  ;;  %11971 = vmatpush1.bf16.msra.mxu0 %v17665_v22 }
 0xa65   : > { %11973 = vmatprep.subr.bf16.mxu0 %v17666_v5  ;;  %v17672_v5 = vld [vmem:[#allocation44_spill] sm:$0xff] }
 0xa66   : > { %v17714_v18 = vand.u32 4294901760, %v17672_v5 }
 0xa67   : > { %7674 = vmatmul.mubr.f32.gmra.mrb[46].mxu0 %v16331_v48 }
 0xa68   : > { %7679 = vmatprep.mubr.f32.mxu0 %v17612_v59  ;;  %11975 = vmatpush1.bf16.msra.mxu0 %v17669_v62  ;;  %v17677_v62 = vand.u32 4294901760, %v15918_v19  ;;  %v17683_v19 = vand.u32 4294901760, %v17653_v28  ;;  %v17695_v28 = vand.u32 4294901760, %v15974_v39  ;;  %v17701_v39 = vand.u32 4294901760, %v16002_v21 }
 0xa69   : > { %11977 = vmatprep.subr.bf16.mxu0 %v11976_v4  ;;  %v17676_v4 = vand.u32 4294901760, %v15914_v63  ;;  %v11984_v63 = vpack.c.bf16 %v17682_v54, %v17681_v13  ;;  %v17710_v13 = vand.u32 4294901760, %v17646_v15  ;;  %v17723_v15 = vld [vmem:[#allocation66_spill] sm:$0xff]  ;;  %v17731_v54 = vld [vmem:[#allocation41_spill] sm:$0xff] }
 0xa6a   : > { %v11994_v30 = vpack.c.bf16 %v17695_v28, %v17694_v1  ;;  %v6799_v28 = vld [vmem:[#allocation3 + $0x10] sm:$0xff] }
 0xa6b   : > { %7682 = vmatmul.mubr.f32.gmra.mrb[48].mxu0 %v17670_v17  ;;  %v11980_v22 = vpack.c.bf16 %v17677_v62, %v17676_v4  ;;  %v17685_v62 = vand.u32 4294901760, %v15939_v61  ;;  %v17691_v61 = vand.u32 4294901760, %v15966_v31  ;;  %v17707_v4 = vand.u32 4294901760, %v16023_v9 }
 0xa6c   : > { %7687 = vmatprep.mubr.f32.mxu0 %v17612_v59  ;;  %v12006_v33 = vpack.c.bf16 %v17710_v13, %v17709_v60  ;;  %v17712_v9 = vand.u32 4294901760, %v17670_v17  ;;  %v17716_v17 = vand.u32 4294901760, %v17673_v40 }
 0xa6d   : > { %v11992_v27 = vpack.c.bf16 %v17692_v58, %v17691_v61  ;;  %v12004_v21 = vpack.c.bf16 %v17707_v4, %v17706_v11  ;;  %v17744_v61 = vld [vmem:[#allocation70_spill] sm:$0xff]  ;;  %v6805_v4 = vld [vmem:[#allocation3 + $0x40] sm:$0xff] }
 0xa6f   : > { %7690 = vmatmul.mubr.f32.gmra.mrb[50].mxu0 %v17671_v8  ;;  %v17717_v8 = vand.u32 4294901760, %v16402_v24 }
 0xa70   : > { %7695 = vmatprep.mubr.f32.mxu0 %v17612_v59 }
 0xa73   : > { %7698 = vmatmul.mubr.f32.gmra.mrb[52].mxu0 %v17672_v5  ;;  %v17718_v5 = vand.u32 4294901760, %v16406_v50 }
 0xa74   : > { %7703 = vmatprep.mubr.f32.mxu0 %v17612_v59 }
 0xa77   : > { %7706 = vmatmul.mubr.f32.gmra.mrb[54].mxu0 %v16377_v20 }
 0xa78   : > { %7711 = vmatprep.mubr.f32.mxu0 %v17612_v59 }
 0xa7b   : > { %7714 = vmatmul.mubr.f32.gmra.mrb[56].mxu0 %v17673_v40  ;;  %v17730_v40 = vld [vmem:[#allocation40_spill] sm:$0xff] }
 0xa7c   : > { %7719 = vmatprep.mubr.f32.mxu0 %v17612_v59 }
 0xa7f   : > { %7722 = vmatmul.mubr.f32.gmra.mrb[58].mxu0 %v16402_v24  ;;  %v17720_v24 = vld [vmem:[#allocation61_spill] sm:$0xff] }
 0xa80   : > { %7727 = vmatprep.mubr.f32.mxu0 %v17612_v59 }
 0xa83   : > { %7730 = vmatmul.mubr.f32.gmra.mrb[60].mxu0 %v16406_v50  ;;  %v17721_v50 = vld [vmem:[#allocation57_spill] sm:$0xff] }
 0xa84   : > { %7735 = vmatprep.mubr.f32.mxu0 %v17612_v59 }
 0xa87   : > { %7738 = vmatmul.mubr.f32.gmra.mrb[62].mxu0 %v16420_v41 }
 0xa88   : > { %7840 = vmatprep.mubr.f32.mxu0 %v17612_v59 }
 0xa8b   : > { %7844 = vmatmul.mubr.f32.vlgmr.msra.gmra.mrb[32].mxu0 %v17678_v16  ;;  %v17684_v16 = vand.u32 4294901760, %v15937_v42 }
 0xa8c   : > { %11979 = vmatpush1.bf16.msra.mxu0 %v11978_v34  ;;  %7849 = vmatprep.mubr.f32.mxu0 %v17612_v59  ;;  %v17705_v34 = vand.u32 4294901760, %v16010_v38  ;;  %v17711_v38 = vand.u32 4294901760, %v16331_v48  ;;  %v17715_v48 = vand.u32 4294901760, %v16377_v20  ;;  %v17719_v20 = vand.u32 4294901760, %v16420_v41  ;;  %v17722_v41 = vld [vmem:[#allocation64_spill] sm:$0xff] }
 0xa8d   : > { %11981 = vmatprep.subr.bf16.mxu0 %v11980_v22  ;;  %v11986_v37 = vpack.c.bf16 %v17685_v62, %v17684_v16  ;;  %v17687_v22 = vand.u32 4294901760, %v15949_v12  ;;  %v17693_v12 = vand.u32 4294901760, %v17658_v46  ;;  %v17699_v46 = vand.u32 4294901760, %v15988_v23  ;;  %v17734_v16 = vld [vmem:[#allocation48_spill] sm:$0xff]  ;;  %v17735_v62 = vld [vmem:[#allocation49_spill] sm:$0xff] }
 0xa8e   : > { %v12002_v23 = vpack.c.bf16 %v17705_v34, %v17704_v56 }
 0xa8f   : > { %7853 = vmatmul.mubr.f32.gmra.mrb[34].mxu0 %v17683_v19  ;;  %v11988_v55 = vpack.c.bf16 %v17687_v22, %v17686_v7  ;;  %v11998_v6 = vpack.c.bf16 %v17700_v25, %v17699_v46  ;;  %v17733_v19 = vld [vmem:[#allocation42_spill] sm:$0xff]  ;;  %v17737_v7 = vld [vmem:[#allocation53_spill] sm:$0xff]  ;;  %v6801_v46 = vld [vmem:[#allocation3 + $0x20] sm:$0xff] }
 0xa90   : > { %7858 = vmatprep.mubr.f32.mxu0 %v17612_v59  ;;  %11983 = vmatpush1.bf16.msra.mxu0 %v11982_v43  ;;  %v17690_v43 = vand.u32 4294901760, %v15953_v35  ;;  %v17696_v35 = vand.u32 4294901760, %v15984_v26  ;;  %v12000_v26 = vpack.c.bf16 %v17702_v29, %v17701_v39  ;;  %v17738_v22 = vld [vmem:[#allocation65_spill] sm:$0xff] }
 0xa91   : > { %11985 = vmatprep.subr.bf16.mxu0 %v11984_v63  ;;  %v17732_v63 = vld [vmem:[#allocation45_spill] sm:$0xff] }
 0xa92   : > { %v11990_v42 = vpack.c.bf16 %v17690_v43, %v17689_v52  ;;  %v11996_v31 = vpack.c.bf16 %v17697_v14, %v17696_v35  ;;  %v17741_v52 = vld [vmem:[#allocation50_spill] sm:$0xff]  ;;  %v17742_v43 = vld [vmem:[#allocation60_spill] sm:$0xff]  ;;  %v6802_v25 = vld [vmem:[#allocation3 + $0x28] sm:$0xff] }
 0xa93   : > { %7862 = vmatmul.mubr.f32.gmra.mrb[36].mxu0 %v17688_v32  ;;  %v17740_v32 = vld [vmem:[#allocation46_spill] sm:$0xff] }
 0xa94   : > { %7867 = vmatprep.mubr.f32.mxu0 %v17612_v59  ;;  %11987 = vmatpush1.bf16.msra.mxu0 %v11986_v37  ;;  %v17736_v37 = vld [vmem:[#allocation52_spill] sm:$0xff] }
 0xa95   : > { %11989 = vmatprep.subr.bf16.mxu0 %v11988_v55  ;;  %v17739_v55 = vld [vmem:[#allocation29_spill] sm:$0xff] }
 0xa97   : > { %7871 = vmatmul.mubr.f32.gmra.mrb[38].mxu0 %v17693_v12 }
 0xa98   : > { %7876 = vmatprep.mubr.f32.mxu0 %v17612_v59  ;;  %11991 = vmatpush1.bf16.msra.mxu0 %v11990_v42  ;;  %v17743_v42 = vld [vmem:[#allocation35_spill] sm:$0xff] }
 0xa99   : > { %11993 = vmatprep.subr.bf16.mxu0 %v11992_v27 }
 0xa9b   : > { %7880 = vmatmul.mubr.f32.gmra.mrb[40].mxu0 %v17698_v51 }
 0xa9c   : > { %7885 = vmatprep.mubr.f32.mxu0 %v17612_v59  ;;  %11995 = vmatpush1.bf16.msra.mxu0 %v11994_v30  ;;  %v6800_v30 = vld [vmem:[#allocation3 + $0x18] sm:$0xff] }
 0xa9d   : > { %11997 = vmatprep.subr.bf16.mxu0 %v11996_v31 }
 0xa9f   : > { %7889 = vmatmul.mubr.f32.gmra.mrb[42].mxu0 %v17703_v0  ;;  %v6804_v0 = vld [vmem:[#allocation3 + $0x38] sm:$0xff] }
 0xaa0   : > { %7894 = vmatprep.mubr.f32.mxu0 %v17612_v59  ;;  %11999 = vmatpush1.bf16.msra.mxu0 %v11998_v6 }
 0xaa1   : > { %12001 = vmatprep.subr.bf16.mxu0 %v12000_v26  ;;  %v6803_v26 = vld [vmem:[#allocation3 + $0x30] sm:$0xff] }
 0xaa3   : > { %7898 = vmatmul.mubr.f32.gmra.mrb[44].mxu0 %v17708_v45 }
 0xaa4   : > { %7903 = vmatprep.mubr.f32.mxu0 %v17612_v59  ;;  %12003 = vmatpush1.bf16.msra.mxu0 %v12002_v23 }
 0xaa5   : > { %12005 = vmatprep.subr.bf16.mxu0 %v12004_v21  ;;  %v6806_v21 = vld [vmem:[#allocation3 + $0x48] sm:$0xff] }
 0xaa7   : > { %7907 = vmatmul.mubr.f32.gmra.mrb[46].mxu0 %v17711_v38  ;;  %v6807_v38 = vld [vmem:[#allocation3 + $0x50] sm:$0xff] }
 0xaa8   : > { %7912 = vmatprep.mubr.f32.mxu0 %v17612_v59  ;;  %12007 = vmatpush1.bf16.msra.mxu0 %v12006_v33 }
 0xaa9   : > { %12009 = vmatprep.subr.bf16.mxu0 %v17649_v2  ;;  %v17725_v2 = vld [vmem:[#allocation68_spill] sm:$0xff] }
 0xaab   : > { %7916 = vmatmul.mubr.f32.gmra.mrb[48].mxu0 %v17712_v9  ;;  %v6808_v9 = vld [vmem:[#allocation3 + $0x58] sm:$0xff] }
 0xaac   : > { %7921 = vmatprep.mubr.f32.mxu0 %v17612_v59 }
 0xaaf   : > { %7925 = vmatmul.mubr.f32.gmra.mrb[50].mxu0 %v17713_v49 }
 0xab0   : > { %7930 = vmatprep.mubr.f32.mxu0 %v17612_v59 }
 0xab3   : > { %7934 = vmatmul.mubr.f32.gmra.mrb[52].mxu0 %v17714_v18 }
 0xab4   : > { %7939 = vmatprep.mubr.f32.mxu0 %v17612_v59 }
 0xab7   : > { %7943 = vmatmul.mubr.f32.gmra.mrb[54].mxu0 %v17715_v48 }
 0xab8   : > { %7948 = vmatprep.mubr.f32.mxu0 %v17612_v59 }
 0xabb   : > { %7952 = vmatmul.mubr.f32.gmra.mrb[56].mxu0 %v17716_v17 }
 0xabc   : > { %7957 = vmatprep.mubr.f32.mxu0 %v17612_v59 }
 0xabf   : > { %7961 = vmatmul.mubr.f32.gmra.mrb[58].mxu0 %v17717_v8  ;;  %v6809_v8 = vld [vmem:[#allocation3 + $0x60] sm:$0xff] }
 0xac0   : > { %7966 = vmatprep.mubr.f32.mxu0 %v17612_v59 }
 0xac3   : > { %7970 = vmatmul.mubr.f32.gmra.mrb[60].mxu0 %v17718_v5  ;;  %v6810_v5 = vld [vmem:[#allocation3 + $0x68] sm:$0xff] }
 0xac4   : > { %7975 = vmatprep.mubr.f32.mxu0 %v17612_v59 }
 0xac7   : > { %7979 = vmatmul.mubr.f32.gmra.mrb[62].mxu0 %v17719_v20 }
 0xac8   : > { %8145 = vmatprep.mubr.f32.mxu0 %v17612_v59 }
 0xacb   : > { %8147 = vmatmul.mubr.f32.vlgmr.msra.gmra.mrb[32].mxu0 %v16240_v10 }
 0xacc   : > { %12011 = vmatpush1.bf16.msra.mxu0 %v17651_v36  ;;  %8152 = vmatprep.mubr.f32.mxu0 %v17612_v59  ;;  %v17726_v36 = vld [vmem:[#allocation67_spill] sm:$0xff] }
 0xacd   : > { %12013 = vmatprep.subr.bf16.mxu0 %v17652_v57  ;;  %v17729_v57 = vld [vmem:[#allocation43_spill] sm:$0xff] }
 0xacf   : > { %8154 = vmatmul.mubr.f32.gmra.mrb[34].mxu0 %v16252_v44 }
 0xad0   : > { %8159 = vmatprep.mubr.f32.mxu0 %v17612_v59  ;;  %12015 = vmatpush1.bf16.msra.mxu0 %v17654_v47  ;;  %v17728_v47 = vld [vmem:[#allocation39_spill] sm:$0xff] }
 0xad1   : > { %12017 = vmatprep.subr.bf16.mxu0 %v17655_v53  ;;  %v17727_v53 = vld [vmem:[#allocation37_spill] sm:$0xff] }
 0xad3   : > { %8161 = vmatmul.mubr.f32.gmra.mrb[36].mxu0 %v17720_v24 }
 0xad4   : > { %8166 = vmatprep.mubr.f32.mxu0 %v17612_v59  ;;  %12019 = vmatpush1.bf16.msra.mxu0 %v17721_v50 }
 0xad5   : > { %12021 = vmatprep.subr.bf16.mxu0 %v17722_v41 }
 0xad7   : > { %8168 = vmatmul.mubr.f32.gmra.mrb[38].mxu0 %v17723_v15 }
 0xad8   : > { %8173 = vmatprep.mubr.f32.mxu0 %v17612_v59  ;;  %12023 = vmatpush1.bf16.msra.mxu0 %v17724_v3  ;;  %v6812_v3 = vld [vmem:[#allocation3 + $0x78] sm:$0xff] }
 0xad9   : > { %12025 = vmatprep.subr.bf16.mxu0 %v17725_v2 }
 0xadb   : > { %8175 = vmatmul.mubr.f32.gmra.mrb[40].mxu0 %v17726_v36 }
 0xadc   : > { %8180 = vmatprep.mubr.f32.mxu0 %v17612_v59  ;;  %12027 = vmatpush1.bf16.msra.mxu0 %v17727_v53 }
 0xadd   : > { %12029 = vmatprep.subr.bf16.mxu0 %v17728_v47 }
 0xadf   : > { %8182 = vmatmul.mubr.f32.gmra.mrb[42].mxu0 %v17729_v57 }
 0xae0   : > { %8187 = vmatprep.mubr.f32.mxu0 %v17612_v59  ;;  %12031 = vmatpush1.bf16.msra.mxu0 %v17730_v40  ;;  %v6814_v40 = vld [vmem:[#allocation3 + $0x88] sm:$0xff] }
 0xae1   : > { %12033 = vmatprep.subr.bf16.mxu0 %v17731_v54 }
 0xae3   : > { %8189 = vmatmul.mubr.f32.gmra.mrb[44].mxu0 %v17732_v63 }
 0xae4   : > { %8194 = vmatprep.mubr.f32.mxu0 %v17612_v59  ;;  %12035 = vmatpush1.bf16.msra.mxu0 %v17733_v19 }
 0xae5   : > { %12037 = vmatprep.subr.bf16.mxu0 %v17734_v16 }
 0xae7   : > { %8196 = vmatmul.mubr.f32.gmra.mrb[46].mxu0 %v17735_v62 }
 0xae8   : > { %8201 = vmatprep.mubr.f32.mxu0 %v17612_v59  ;;  %12039 = vmatpush1.bf16.msra.mxu0 %v17736_v37  ;;  %v6816_v37 = vld [vmem:[#allocation3 + $0x98] sm:$0xff] }
 0xaeb   : > { %8203 = vmatmul.mubr.f32.gmra.mrb[48].mxu0 %v17737_v7 }
 0xaec   : > { %8208 = vmatprep.mubr.f32.mxu0 %v17612_v59 }
 0xaef   : > { %8210 = vmatmul.mubr.f32.gmra.mrb[50].mxu0 %v17738_v22 }
 0xaf0   : > { %8215 = vmatprep.mubr.f32.mxu0 %v17612_v59 }
 0xaf3   : > { %8217 = vmatmul.mubr.f32.gmra.mrb[52].mxu0 %v17739_v55 }
 0xaf4   : > { %8222 = vmatprep.mubr.f32.mxu0 %v17612_v59 }
 0xaf7   : > { %8224 = vmatmul.mubr.f32.gmra.mrb[54].mxu0 %v17740_v32 }
 0xaf8   : > { %8229 = vmatprep.mubr.f32.mxu0 %v17612_v59 }
 0xafb   : > { %8231 = vmatmul.mubr.f32.gmra.mrb[56].mxu0 %v17741_v52 }
 0xafc   : > { %8236 = vmatprep.mubr.f32.mxu0 %v17612_v59 }
 0xaff   : > { %8238 = vmatmul.mubr.f32.gmra.mrb[58].mxu0 %v17742_v43 }
 0xb00   : > { %8243 = vmatprep.mubr.f32.mxu0 %v17612_v59 }
 0xb03   : > { %8245 = vmatmul.mubr.f32.gmra.mrb[60].mxu0 %v17743_v42 }
 0xb04   : > { %8250 = vmatprep.mubr.f32.mxu0 %v17612_v59 }
 0xb07   : > { %8252 = vmatmul.mubr.f32.gmra.mrb[62].mxu0 %v17744_v61 }
 0xb08   : > { %8354 = vmatprep.mubr.f32.mxu0 %v17612_v59 }
 0xb0b   : > { %8356 = vmatmul.mubr.f32.vlgmr.msra.gmra.mrb[32].mxu0 %v16240_v10  ;;  %v6797_v10 = vld [vmem:[#allocation3] sm:$0xff] }
 0xb0c   : > { %8361 = vmatprep.mubr.f32.mxu0 %v17612_v59 }
 0xb0f   : > { %8363 = vmatmul.mubr.f32.gmra.mrb[34].mxu0 %v16252_v44  ;;  %v6798_v44 = vld [vmem:[#allocation3 + $0x8] sm:$0xff] }
 0xb10   : > { %8368 = vmatprep.mubr.f32.mxu0 %v17612_v59 }
 0xb13   : > { %8370 = vmatmul.mubr.f32.gmra.mrb[36].mxu0 %v17720_v24 }
 0xb14   : > { %8375 = vmatprep.mubr.f32.mxu0 %v17612_v59 }
 0xb17   : > { %8377 = vmatmul.mubr.f32.gmra.mrb[38].mxu0 %v17723_v15  ;;  %v6811_v15 = vld [vmem:[#allocation3 + $0x70] sm:$0xff] }
 0xb18   : > { %8382 = vmatprep.mubr.f32.mxu0 %v17612_v59 }
 0xb1b   : > { %8384 = vmatmul.mubr.f32.gmra.mrb[40].mxu0 %v17726_v36 }
 0xb1c   : > { %8389 = vmatprep.mubr.f32.mxu0 %v17612_v59 }
 0xb1f   : > { %8391 = vmatmul.mubr.f32.gmra.mrb[42].mxu0 %v17729_v57  ;;  %v6813_v57 = vld [vmem:[#allocation3 + $0x80] sm:$0xff] }
 0xb20   : > { %8396 = vmatprep.mubr.f32.mxu0 %v17612_v59 }
 0xb23   : > { %8398 = vmatmul.mubr.f32.gmra.mrb[44].mxu0 %v17732_v63 }
 0xb24   : > { %8403 = vmatprep.mubr.f32.mxu0 %v17612_v59 }
 0xb27   : > { %8405 = vmatmul.mubr.f32.gmra.mrb[46].mxu0 %v17735_v62  ;;  %v6815_v62 = vld [vmem:[#allocation3 + $0x90] sm:$0xff] }
 0xb28   : > { %8410 = vmatprep.mubr.f32.mxu0 %v17612_v59 }
 0xb2b   : > { %8412 = vmatmul.mubr.f32.gmra.mrb[48].mxu0 %v17737_v7 }
 0xb2c   : > { %8417 = vmatprep.mubr.f32.mxu0 %v17612_v59 }
 0xb2f   : > { %8419 = vmatmul.mubr.f32.gmra.mrb[50].mxu0 %v17738_v22 }
 0xb30   : > { %8424 = vmatprep.mubr.f32.mxu0 %v17612_v59 }
 0xb33   : > { %8426 = vmatmul.mubr.f32.gmra.mrb[52].mxu0 %v17739_v55 }
 0xb34   : > { %8431 = vmatprep.mubr.f32.mxu0 %v17612_v59 }
 0xb37   : > { %8433 = vmatmul.mubr.f32.gmra.mrb[54].mxu0 %v17740_v32 }
 0xb38   : > { %8438 = vmatprep.mubr.f32.mxu0 %v17612_v59 }
 0xb3b   : > { %8440 = vmatmul.mubr.f32.gmra.mrb[56].mxu0 %v17741_v52  ;;  %v6817_v52 = vld [vmem:[#allocation3 + $0xa0] sm:$0xff] }
 0xb3c   : > { %8445 = vmatprep.mubr.f32.mxu0 %v17612_v59 }
 0xb3f   : > { %8447 = vmatmul.mubr.f32.gmra.mrb[58].mxu0 %v17742_v43  ;;  %v6818_v43 = vld [vmem:[#allocation3 + $0xa8] sm:$0xff] }
 0xb40   : > { %8452 = vmatprep.mubr.f32.mxu0 %v17612_v59 }
 0xb43   : > { %8454 = vmatmul.mubr.f32.gmra.mrb[60].mxu0 %v17743_v42 }
 0xb44   : > { %8459 = vmatprep.mubr.f32.mxu0 %v17612_v59 }
 0xb47   : > { %8461 = vmatmul.mubr.f32.gmra.mrb[62].mxu0 %v17744_v61 }
 0xbde   : > { %v8357_v58 = vpop.f32.mrb[32].mxu0 }
 0xbdf   : > { %v8467_v27 = vadd.f32 %v8357_v58, %v6797_v10  ;;  %v8359_v12 = vpop.f32.mrb[33].mxu0  ;;  %v6819_v58 = vld [vmem:[#allocation3 + $0xb0] sm:$0xff] }
 0xbe0   : > { %v8468_v1 = vadd.f32 %v8359_v12, %v6798_v44 }
 0xbe1   : > { %8499 = vst [vmem:[#allocation3] sm:$0xff] %v8467_v27  ;;  %v6820_v27 = vld [vmem:[#allocation3 + $0xb8] sm:$0xff] }
 0xbe2   : > { %8500 = vst [vmem:[#allocation3 + $0x8] sm:$0xff] %v8468_v1  ;;  %v8364_v35 = vpop.f32.mrb[34].mxu0 }
 0xbe3   : > { %v8469_v14 = vadd.f32 %v8364_v35, %v6799_v28  ;;  %v8366_v31 = vpop.f32.mrb[35].mxu0  ;;  %v6821_v35 = vld [vmem:[#allocation3 + $0xc0] sm:$0xff] }
 0xbe4   : > { %v8470_v51 = vadd.f32 %v8366_v31, %v6800_v30 }
 0xbe5   : > { %8501 = vst [vmem:[#allocation3 + $0x10] sm:$0xff] %v8469_v14  ;;  %v6822_v14 = vld [vmem:[#allocation3 + $0xc8] sm:$0xff] }
 0xbe6   : > { %8502 = vst [vmem:[#allocation3 + $0x18] sm:$0xff] %v8470_v51  ;;  %v8371_v59 = vpop.f32.mrb[36].mxu0 }
 0xbe7   : > { %v8471_v6 = vadd.f32 %v8371_v59, %v6801_v46  ;;  %v8373_v39 = vpop.f32.mrb[37].mxu0  ;;  %v6823_v59 = vld [vmem:[#allocation3 + $0xd0] sm:$0xff] }
 0xbe8   : > { %v8472_v29 = vadd.f32 %v8373_v39, %v6802_v25 }
 0xbe9   : > { %8503 = vst [vmem:[#allocation3 + $0x20] sm:$0xff] %v8471_v6  ;;  %v6824_v6 = vld [vmem:[#allocation3 + $0xd8] sm:$0xff] }
 0xbea   : > { %8504 = vst [vmem:[#allocation3 + $0x28] sm:$0xff] %v8472_v29  ;;  %v8378_v56 = vpop.f32.mrb[38].mxu0 }
 0xbeb   : > { %v8473_v34 = vadd.f32 %v8378_v56, %v6803_v26  ;;  %v8380_v23 = vpop.f32.mrb[39].mxu0  ;;  %v6825_v56 = vld [vmem:[#allocation3 + $0xe0] sm:$0xff] }
 0xbec   : > { %v8474_v11 = vadd.f32 %v8380_v23, %v6804_v0 }
 0xbed   : > { %8505 = vst [vmem:[#allocation3 + $0x30] sm:$0xff] %v8473_v34  ;;  %v6826_v34 = vld [vmem:[#allocation3 + $0xe8] sm:$0xff] }
 0xbee   : > { %8506 = vst [vmem:[#allocation3 + $0x38] sm:$0xff] %v8474_v11  ;;  %v8385_v45 = vpop.f32.mrb[40].mxu0 }
 0xbef   : > { %v8475_v60 = vadd.f32 %v8385_v45, %v6805_v4  ;;  %v8387_v13 = vpop.f32.mrb[41].mxu0  ;;  %v6827_v45 = vld [vmem:[#allocation3 + $0xf0] sm:$0xff] }
 0xbf0   : > { %v8476_v33 = vadd.f32 %v8387_v13, %v6806_v21 }
 0xbf1   : > { %8507 = vst [vmem:[#allocation3 + $0x40] sm:$0xff] %v8475_v60  ;;  %v6828_v60 = vld [vmem:[#allocation3 + $0xf8] sm:$0xff] }
 0xbf2   : > { %8508 = vst [vmem:[#allocation3 + $0x48] sm:$0xff] %v8476_v33  ;;  %v8392_v49 = vpop.f32.mrb[42].mxu0 }
 0xbf3   : > { %v8477_v18 = vadd.f32 %v8392_v49, %v6807_v38  ;;  %v8394_v48 = vpop.f32.mrb[43].mxu0  ;;  %v8569_v49 = vlaneseq (!%p8959_p12) }
 0xbf4   : > { %v8478_v17 = vadd.f32 %v8394_v48, %v6808_v9 }
 0xbf5   : > { %8509 = vst [vmem:[#allocation3 + $0x50] sm:$0xff] %v8477_v18  ;;  %v8567_v18 = vld [vmem:[%s17746_s3] sm:$0x3] (!%p8959_p12)  ;;  %v8570_v48 = vshrl.u32 (!%p8959_p12), %v8569_v49, 7 }
 0xbf6   : > { %8510 = vst [vmem:[#allocation3 + $0x58] sm:$0xff] %v8478_v17  ;;  %v8399_v20 = vpop.f32.mrb[44].mxu0  ;;  %v8535_v17 = vld [vmem:[#allocation3] sm:$0xff] (!%p8959_p12) }
 0xbf7   : > { %v8479_v24 = vadd.f32 %v8399_v20, %v6809_v8  ;;  %v8401_v50 = vpop.f32.mrb[45].mxu0  ;;  %v8536_v8 = vld [vmem:[#allocation3 + $0x8] sm:$0xff] (!%p8959_p12)  ;;  %v8538_v20 = vld [vmem:[#allocation3 + $0x18] sm:$0xff] (!%p8959_p12) }
 0xbf8   : > { %v8480_v41 = vadd.f32 %v8401_v50, %v6810_v5  ;;  %v8537_v5 = vld [vmem:[#allocation3 + $0x10] sm:$0xff] (!%p8959_p12)  ;;  %v8575_v50 = vsub.s32 (!%p8959_p12), 1, %v8570_v48 }
 0xbf9   : > { %8511 = vst [vmem:[#allocation3 + $0x60] sm:$0xff] %v8479_v24  ;;  %v8571_v24 = vsub.s32 (!%p8959_p12), 0, %v8570_v48 }
 0xbfa   : > { %8512 = vst [vmem:[#allocation3 + $0x68] sm:$0xff] %v8480_v41  ;;  %v8406_v2 = vpop.f32.mrb[46].mxu0  ;;  %v8539_v41 = vld [vmem:[#allocation3 + $0x20] sm:$0xff] (!%p8959_p12) }
 0xbfb   : > { %v8481_v36 = vadd.f32 %v8406_v2, %v6811_v15  ;;  %v8408_v53 = vpop.f32.mrb[47].mxu0  ;;  %v8540_v15 = vld [vmem:[#allocation3 + $0x28] sm:$0xff] (!%p8959_p12)  ;;  %v8542_v2 = vld [vmem:[#allocation3 + $0x38] sm:$0xff] (!%p8959_p12) }
 0xbfc   : > { %v8482_v47 = vadd.f32 %v8408_v53, %v6812_v3  ;;  %v8541_v3 = vld [vmem:[#allocation3 + $0x30] sm:$0xff] (!%p8959_p12)  ;;  %v8544_v53 = vld [vmem:[#allocation3 + $0x48] sm:$0xff] (!%p8959_p12) }
 0xbfd   : > { %8513 = vst [vmem:[#allocation3 + $0x70] sm:$0xff] %v8481_v36  ;;  %v8543_v36 = vld [vmem:[#allocation3 + $0x40] sm:$0xff] (!%p8959_p12) }
 0xbfe   : > { %8514 = vst [vmem:[#allocation3 + $0x78] sm:$0xff] %v8482_v47  ;;  %v8413_v54 = vpop.f32.mrb[48].mxu0  ;;  %v8545_v47 = vld [vmem:[#allocation3 + $0x50] sm:$0xff] (!%p8959_p12) }
 0xbff   : > { %v8483_v63 = vadd.f32 %v8413_v54, %v6813_v57  ;;  %v8415_v19 = vpop.f32.mrb[49].mxu0  ;;  %v8546_v57 = vld [vmem:[#allocation3 + $0x58] sm:$0xff] (!%p8959_p12)  ;;  %v16755_v54 = vrot.slane (!%p8959_p12), %v8567_v18, %v8575_v50 }
 0xc00   : > { %v8484_v16 = vadd.f32 %v8415_v19, %v6814_v40  ;;  %v16753_v40 = vrot.slane (!%p8959_p12), %v8567_v18, %v8571_v24 }
 0xc01   : > { %8515 = vst [vmem:[#allocation3 + $0x80] sm:$0xff] %v8483_v63  ;;  %v8547_v63 = vld [vmem:[#allocation3 + $0x60] sm:$0xff] (!%p8959_p12)  ;;  %v8548_v19 = vld [vmem:[#allocation3 + $0x68] sm:$0xff] (!%p8959_p12) }
 0xc02   : > { %8516 = vst [vmem:[#allocation3 + $0x88] sm:$0xff] %v8484_v16  ;;  %v8420_v7 = vpop.f32.mrb[50].mxu0 }
 0xc03   : > { %v8485_v22 = vadd.f32 %v8420_v7, %v6815_v62  ;;  %v8422_v55 = vpop.f32.mrb[51].mxu0 }
 0xc04   : > { %v8486_v32 = vadd.f32 %v8422_v55, %v6816_v37  ;;  %v8549_v16 = vld [vmem:[#allocation3 + $0x70] sm:$0xff] (!%p8959_p12) }
 0xc05   : > { %8517 = vst [vmem:[#allocation3 + $0x90] sm:$0xff] %v8485_v22  ;;  %v8550_v62 = vld [vmem:[#allocation3 + $0x78] sm:$0xff] (!%p8959_p12) }
 0xc06   : > { %8518 = vst [vmem:[#allocation3 + $0x98] sm:$0xff] %v8486_v32  ;;  %v8427_v42 = vpop.f32.mrb[52].mxu0  ;;  %v8579_v32 = vadd.f32 (!%p8959_p12), %v16753_v40, %v8535_v17 }
 0xc07   : > { %v8487_v61 = vadd.f32 %v8427_v42, %v6817_v52  ;;  %v8429_v10 = vpop.f32.mrb[53].mxu0  ;;  %v8580_v52 = vadd.f32 (!%p8959_p12), %v16755_v54, %v8536_v8  ;;  %v8582_v42 = vadd.f32 (!%p8959_p12), %v16755_v54, %v8538_v20  ;;  %v8648_v8 = vld [vmem:[#allocation2 + $0x28] sm:$0xff] (!%p8959_p12)  ;;  %v8650_v20 = vld [vmem:[#allocation2 + $0x38] sm:$0xff] (!%p8959_p12) }
 0xc08   : > { %v8488_v44 = vadd.f32 %v8429_v10, %v6818_v43  ;;  %v8551_v37 = vld [vmem:[#allocation3 + $0x80] sm:$0xff] (!%p8959_p12)  ;;  %v8581_v43 = vadd.f32 (!%p8959_p12), %v16753_v40, %v8537_v5  ;;  %8611 = vst [vmem:[%s13195_s29] sm:$0xff] (!%p8959_p12), %v8579_v32  ;;  %v8649_v5 = vld [vmem:[#allocation2 + $0x30] sm:$0xff] (!%p8959_p12)  ;;  %v8658_v32 = vld [vmem:[#allocation2 + $0x78] sm:$0xff] (!%p8959_p12) }
 0xc09   : > { %8519 = vst [vmem:[#allocation3 + $0xa0] sm:$0xff] %v8487_v61  ;;  %v8552_v7 = vld [vmem:[#allocation3 + $0x88] sm:$0xff] (!%p8959_p12)  ;;  %8612 = vst [vmem:[%s13195_s29 + $0x8] sm:$0xff] (!%p8959_p12), %v8580_v52  ;;  %v8664_v52 = vmul.f32 (!%p8959_p12), 0.25, %v8648_v8 }
 0xc0a   : > { %8520 = vst [vmem:[#allocation3 + $0xa8] sm:$0xff] %v8488_v44  ;;  %v8434_v12 = vpop.f32.mrb[54].mxu0  ;;  %8613 = vst [vmem:[%s13195_s29 + $0x10] sm:$0xff] (!%p8959_p12), %v8581_v43  ;;  %v8665_v43 = vmul.f32 (!%p8959_p12), 0.25, %v8649_v5 }
 0xc0b   : > { %v8489_v1 = vadd.f32 %v8434_v12, %v6819_v58  ;;  %v8436_v28 = vpop.f32.mrb[55].mxu0  ;;  %v8584_v12 = vadd.f32 (!%p8959_p12), %v16755_v54, %v8540_v15  ;;  %8614 = vst [vmem:[%s13195_s29 + $0x18] sm:$0xff] (!%p8959_p12), %v8582_v42  ;;  %v8666_v42 = vmul.f32 (!%p8959_p12), 0.25, %v8650_v20  ;;  %8680 = vst [vmem:[%s13208_s16 + $0x28] sm:$0xff] (!%p8959_p12), %v8664_v52 }
 0xc0c   : > { %v8490_v30 = vadd.f32 %v8436_v28, %v6820_v27  ;;  %v8553_v22 = vld [vmem:[#allocation3 + $0x90] sm:$0xff] (!%p8959_p12)  ;;  %v8583_v27 = vadd.f32 (!%p8959_p12), %v16753_v40, %v8539_v41  ;;  %v8586_v28 = vadd.f32 (!%p8959_p12), %v16755_v54, %v8542_v2  ;;  %v8652_v2 = vld [vmem:[#allocation2 + $0x48] sm:$0xff] (!%p8959_p12)  ;;  %8681 = vst [vmem:[%s13208_s16 + $0x30] sm:$0xff] (!%p8959_p12), %v8665_v43 }
 0xc0d   : > { %8521 = vst [vmem:[#allocation3 + $0xb0] sm:$0xff] %v8489_v1  ;;  %v8554_v55 = vld [vmem:[#allocation3 + $0x98] sm:$0xff] (!%p8959_p12)  ;;  %v8585_v1 = vadd.f32 (!%p8959_p12), %v16753_v40, %v8541_v3  ;;  %8616 = vst [vmem:[%s13195_s29 + $0x28] sm:$0xff] (!%p8959_p12), %v8584_v12  ;;  %v8651_v3 = vld [vmem:[#allocation2 + $0x40] sm:$0xff] (!%p8959_p12) }
 0xc0e   : > { %8522 = vst [vmem:[#allocation3 + $0xb8] sm:$0xff] %v8490_v30  ;;  %v8441_v31 = vpop.f32.mrb[56].mxu0  ;;  %8615 = vst [vmem:[%s13195_s29 + $0x20] sm:$0xff] (!%p8959_p12), %v8583_v27 }
 0xc0f   : > { %v8491_v51 = vadd.f32 %v8441_v31, %v6821_v35  ;;  %v8443_v46 = vpop.f32.mrb[57].mxu0  ;;  %8617 = vst [vmem:[%s13195_s29 + $0x30] sm:$0xff] (!%p8959_p12), %v8585_v1  ;;  %8618 = vst [vmem:[%s13195_s29 + $0x38] sm:$0xff] (!%p8959_p12), %v8586_v28  ;;  %v8674_v28 = vmul.f32 (!%p8959_p12), 0.25, %v8658_v32 }
 0xc10   : > { %v8492_v25 = vadd.f32 %v8443_v46, %v6822_v14  ;;  %v8555_v61 = vld [vmem:[#allocation3 + $0xa0] sm:$0xff] (!%p8959_p12)  ;;  %v8588_v46 = vadd.f32 (!%p8959_p12), %v16755_v54, %v8544_v53  ;;  %8682 = vst [vmem:[%s13208_s16 + $0x38] sm:$0xff] (!%p8959_p12), %v8666_v42 }
 0xc11   : > { %8523 = vst [vmem:[#allocation3 + $0xc0] sm:$0xff] %v8491_v51  ;;  %v8556_v10 = vld [vmem:[#allocation3 + $0xa8] sm:$0xff] (!%p8959_p12)  ;;  %v8587_v51 = vadd.f32 (!%p8959_p12), %v16753_v40, %v8543_v36  ;;  %v8599_v49 = vadd.f32 (!%p8959_p12), %v16753_v40, %v8555_v61  ;;  %v8653_v36 = vld [vmem:[#allocation2 + $0x50] sm:$0xff] (!%p8959_p12)  ;;  %v8667_v61 = vmul.f32 (!%p8959_p12), 0.25, %v8651_v3  ;;  %8690 = vst [vmem:[%s13208_s16 + $0x78] sm:$0xff] (!%p8959_p12), %v8674_v28 }
 0xc12   : > { %8524 = vst [vmem:[#allocation3 + $0xc8] sm:$0xff] %v8492_v25  ;;  %v8448_v39 = vpop.f32.mrb[58].mxu0  ;;  %v8589_v25 = vadd.f32 (!%p8959_p12), %v16753_v40, %v8545_v47  ;;  %8620 = vst [vmem:[%s13195_s29 + $0x48] sm:$0xff] (!%p8959_p12), %v8588_v46  ;;  %v8600_v18 = vadd.f32 (!%p8959_p12), %v16755_v54, %v8556_v10  ;;  %v8668_v10 = vmul.f32 (!%p8959_p12), 0.25, %v8652_v2 }
 0xc13   : > { %v8493_v29 = vadd.f32 %v8448_v39, %v6823_v59  ;;  %v8450_v26 = vpop.f32.mrb[59].mxu0  ;;  %v8590_v59 = vadd.f32 (!%p8959_p12), %v16755_v54, %v8546_v57  ;;  %8619 = vst [vmem:[%s13195_s29 + $0x40] sm:$0xff] (!%p8959_p12), %v8587_v51  ;;  %8631 = vst [vmem:[%s13195_s29 + $0xa0] sm:$0xff] (!%p8959_p12), %v8599_v49 }
 0xc14   : > { %v8494_v0 = vadd.f32 %v8450_v26, %v6824_v6  ;;  %v8557_v44 = vld [vmem:[#allocation3 + $0xb0] sm:$0xff] (!%p8959_p12)  ;;  %v8591_v26 = vadd.f32 (!%p8959_p12), %v16753_v40, %v8547_v63  ;;  %8621 = vst [vmem:[%s13195_s29 + $0x50] sm:$0xff] (!%p8959_p12), %v8589_v25  ;;  %8632 = vst [vmem:[%s13195_s29 + $0xa8] sm:$0xff] (!%p8959_p12), %v8600_v18 }
 0xc15   : > { %8525 = vst [vmem:[#allocation3 + $0xd0] sm:$0xff] %v8493_v29  ;;  %v8558_v58 = vld [vmem:[#allocation3 + $0xb8] sm:$0xff] (!%p8959_p12)  ;;  %8622 = vst [vmem:[%s13195_s29 + $0x58] sm:$0xff] (!%p8959_p12), %v8590_v59  ;;  %v8601_v48 = vadd.f32 (!%p8959_p12), %v16753_v40, %v8557_v44  ;;  %v8669_v44 = vmul.f32 (!%p8959_p12), 0.25, %v8653_v36 }
 0xc16   : > { %8526 = vst [vmem:[#allocation3 + $0xd8] sm:$0xff] %v8494_v0  ;;  %v8455_v23 = vpop.f32.mrb[60].mxu0  ;;  %v8592_v0 = vadd.f32 (!%p8959_p12), %v16755_v54, %v8548_v19  ;;  %8623 = vst [vmem:[%s13195_s29 + $0x60] sm:$0xff] (!%p8959_p12), %v8591_v26  ;;  %v8602_v17 = vadd.f32 (!%p8959_p12), %v16755_v54, %v8558_v58  ;;  %v8654_v19 = vld [vmem:[#allocation2 + $0x58] sm:$0xff] (!%p8959_p12) }
 0xc17   : > { %v8495_v11 = vadd.f32 %v8455_v23, %v6825_v56  ;;  %v8457_v4 = vpop.f32.mrb[61].mxu0  ;;  %v8593_v56 = vadd.f32 (!%p8959_p12), %v16753_v40, %v8549_v16  ;;  %8633 = vst [vmem:[%s13195_s29 + $0xb0] sm:$0xff] (!%p8959_p12), %v8601_v48  ;;  %v8655_v16 = vld [vmem:[#allocation2 + $0x60] sm:$0xff] (!%p8959_p12)  ;;  %v8670_v58 = vmul.f32 (!%p8959_p12), 0.25, %v8654_v19  ;;  %8683 = vst [vmem:[%s13208_s16 + $0x40] sm:$0xff] (!%p8959_p12), %v8667_v61 }
 0xc18   : > { %v8496_v21 = vadd.f32 %v8457_v4, %v6826_v34  ;;  %8534 = sbr.rel (%p8959_p12) target bundleno = 3113 (0xc29), region = 162  ;;  %v8559_v30 = vld [vmem:[#allocation3 + $0xc0] sm:$0xff] (!%p8959_p12)  ;;  %v8594_v34 = vadd.f32 (!%p8959_p12), %v16755_v54, %v8550_v62  ;;  %v8644_v4 = vld [vmem:[#allocation2 + $0x8] sm:$0xff] (!%p8959_p12)  ;;  %8624 = vst [vmem:[%s13195_s29 + $0x68] sm:$0xff] (!%p8959_p12), %v8592_v0  ;;  %8634 = vst [vmem:[%s13195_s29 + $0xb8] sm:$0xff] (!%p8959_p12), %v8602_v17  ;;  %v8671_v27 = vmul.f32 (!%p8959_p12), 0.25, %v8655_v16 }
 0xc19   : > { %8527 = vst [vmem:[#allocation3 + $0xe0] sm:$0xff] %v8495_v11  ;;  %v8560_v35 = vld [vmem:[#allocation3 + $0xc8] sm:$0xff] (!%p8959_p12)  ;;  %v8643_v11 = vld [vmem:[#allocation2] sm:$0xff] (!%p8959_p12)  ;;  %8625 = vst [vmem:[%s13195_s29 + $0x70] sm:$0xff] (!%p8959_p12), %v8593_v56  ;;  %v8603_v24 = vadd.f32 (!%p8959_p12), %v16753_v40, %v8559_v30 }
 0xc1a   : > { %8528 = vst [vmem:[#allocation3 + $0xe8] sm:$0xff] %v8496_v21  ;;  %v8462_v13 = vpop.f32.mrb[62].mxu0  ;;  %v8595_v21 = vadd.f32 (!%p8959_p12), %v16753_v40, %v8551_v37  ;;  %8626 = vst [vmem:[%s13195_s29 + $0x78] sm:$0xff] (!%p8959_p12), %v8594_v34  ;;  %v8604_v50 = vadd.f32 (!%p8959_p12), %v16755_v54, %v8560_v35  ;;  %v8656_v62 = vld [vmem:[#allocation2 + $0x68] sm:$0xff] (!%p8959_p12)  ;;  %v8659_v37 = vmul.f32 (!%p8959_p12), 0.25, %v8643_v11 }
 0xc1b   : > { %v8497_v33 = vadd.f32 %v8462_v13, %v6827_v45  ;;  %v8464_v38 = vpop.f32.mrb[63].mxu0  ;;  %v8596_v45 = vadd.f32 (!%p8959_p12), %v16755_v54, %v8552_v7  ;;  %v8598_v13 = vadd.f32 (!%p8959_p12), %v16755_v54, %v8554_v55  ;;  %8635 = vst [vmem:[%s13195_s29 + $0xc0] sm:$0xff] (!%p8959_p12), %v8603_v24  ;;  %v8660_v7 = vmul.f32 (!%p8959_p12), 0.25, %v8644_v4  ;;  %v8657_v55 = vld [vmem:[#allocation2 + $0x70] sm:$0xff] (!%p8959_p12)  ;;  %8684 = vst [vmem:[%s13208_s16 + $0x48] sm:$0xff] (!%p8959_p12), %v8668_v10 }
 0xc1c   : > { %v8498_v9 = vadd.f32 %v8464_v38, %v6828_v60  ;;  %v8561_v14 = vld [vmem:[#allocation3 + $0xd0] sm:$0xff] (!%p8959_p12)  ;;  %v8597_v60 = vadd.f32 (!%p8959_p12), %v16753_v40, %v8553_v22  ;;  %v8646_v38 = vld [vmem:[#allocation2 + $0x18] sm:$0xff] (!%p8959_p12)  ;;  %8627 = vst [vmem:[%s13195_s29 + $0x80] sm:$0xff] (!%p8959_p12), %v8595_v21  ;;  %8636 = vst [vmem:[%s13195_s29 + $0xc8] sm:$0xff] (!%p8959_p12), %v8604_v50  ;;  %v8672_v12 = vmul.f32 (!%p8959_p12), 0.25, %v8656_v62  ;;  %v8673_v1 = vmul.f32 (!%p8959_p12), 0.25, %v8657_v55 }
 0xc1d   : > { %8529 = vst [vmem:[#allocation3 + $0xf0] sm:$0xff] %v8497_v33  ;;  %v8562_v31 = vld [vmem:[#allocation3 + $0xd8] sm:$0xff] (!%p8959_p12)  ;;  %v8645_v33 = vld [vmem:[#allocation2 + $0x10] sm:$0xff] (!%p8959_p12)  ;;  %8628 = vst [vmem:[%s13195_s29 + $0x88] sm:$0xff] (!%p8959_p12), %v8596_v45  ;;  %v8605_v41 = vadd.f32 (!%p8959_p12), %v16753_v40, %v8561_v14 }
 0xc1e   : > { %8530 = vst [vmem:[#allocation3 + $0xf8] sm:$0xff] %v8498_v9  ;;  %v8647_v9 = vld [vmem:[#allocation2 + $0x20] sm:$0xff] (!%p8959_p12)  ;;  %8629 = vst [vmem:[%s13195_s29 + $0x90] sm:$0xff] (!%p8959_p12), %v8597_v60  ;;  %v8606_v15 = vadd.f32 (!%p8959_p12), %v16755_v54, %v8562_v31  ;;  %v8661_v22 = vmul.f32 (!%p8959_p12), 0.25, %v8645_v33 }
 0xc1f   : > { %8630 = vst [vmem:[%s13195_s29 + $0x98] sm:$0xff] %v8598_v13  ;;  %8637 = vst [vmem:[%s13195_s29 + $0xd0] sm:$0xff] %v8605_v41 }
 0xc20   : > { %v8563_v6 = vld [vmem:[#allocation3 + $0xe0] sm:$0xff]  ;;  %8638 = vst [vmem:[%s13195_s29 + $0xd8] sm:$0xff] %v8606_v15  ;;  %8675 = vst [vmem:[%s13208_s16] sm:$0xff] %v8659_v37 }
 0xc21   : > { %v8564_v39 = vld [vmem:[#allocation3 + $0xe8] sm:$0xff]  ;;  %v8607_v53 = vadd.f32 %v16753_v40, %v8563_v6  ;;  %8676 = vst [vmem:[%s13208_s16 + $0x8] sm:$0xff] %v8660_v7  ;;  %8677 = vst [vmem:[%s13208_s16 + $0x10] sm:$0xff] %v8661_v22 }
 0xc22   : > { %v8608_v47 = vadd.f32 %v16755_v54, %v8564_v39  ;;  %8685 = vst [vmem:[%s13208_s16 + $0x50] sm:$0xff] %v8669_v44  ;;  %8686 = vst [vmem:[%s13208_s16 + $0x58] sm:$0xff] %v8670_v58 }
 0xc23   : > { %8639 = vst [vmem:[%s13195_s29 + $0xe0] sm:$0xff] %v8607_v53  ;;  %8687 = vst [vmem:[%s13208_s16 + $0x60] sm:$0xff] %v8671_v27 }
 0xc24   : > { %v8565_v29 = vld [vmem:[#allocation3 + $0xf0] sm:$0xff]  ;;  %8640 = vst [vmem:[%s13195_s29 + $0xe8] sm:$0xff] %v8608_v47  ;;  %8688 = vst [vmem:[%s13208_s16 + $0x68] sm:$0xff] %v8672_v12 }
 0xc25   : > { %v8566_v23 = vld [vmem:[#allocation3 + $0xf8] sm:$0xff]  ;;  %v8609_v57 = vadd.f32 %v16753_v40, %v8565_v29  ;;  %v8662_v40 = vmul.f32 0.25, %v8646_v38  ;;  %8689 = vst [vmem:[%s13208_s16 + $0x70] sm:$0xff] %v8673_v1 }
 0xc26   : > { %v8610_v63 = vadd.f32 %v16755_v54, %v8566_v23  ;;  %v8663_v54 = vmul.f32 0.25, %v8647_v9 }
 0xc27   : > { %8641 = vst [vmem:[%s13195_s29 + $0xf0] sm:$0xff] %v8609_v57  ;;  %8678 = vst [vmem:[%s13208_s16 + $0x18] sm:$0xff] %v8662_v40 }
 0xc28   : > { %8642 = vst [vmem:[%s13195_s29 + $0xf8] sm:$0xff] %v8610_v63  ;;  %8679 = vst [vmem:[%s13208_s16 + $0x20] sm:$0xff] %v8663_v54 }
 0xc29 PF: > { %s17747_s29 = sld [smem:[#allocation13_spill]]  ;;  %s17748_s18 = sld [smem:[#allocation77_spill]] }
 0xc2a   : > { %s8721_s4 = sshll.u32 %s13208_s16, 4  ;;  %s17749_s15 = sand.u32 1, %s12867_s22   ;;  %s16844_s4 = int_to_ptr.vmem [resolvable:$true] %s8721_s4 }
 0xc2b   : > { %s16848_s0 = scalar_lea.sflag [#allocation9], %s17749_s15  ;;  %s12773_s26 = scalar_lea.vmem %s16844_s4, 2048 }
 0xc2c   : > { %p12774_p13 = scmp.ne.s32.totalorder %s16844_s4, %s12773_s26  ;;  %s12920_s28 = smov [#allocation8]  }
 0xc2d   : > { %s12777_s5 = sshll.u32 %s12920_s28, 4  ;;  %s12778_s5 = int_to_ptr.vmem [resolvable:$false] %s12777_s5 }
 0xc2e   : > { %p12775_p0 = pnand %p12774_p13, %p13094_p5  ;;  %s12779_s24 = scalar_lea.vmem %s12778_s5, 4096 }
 0xc2f   : > { %s8967_s6 = sshll.u32 %s17747_s29, 11  ;;  %p12780_p4 = scmp.lt.s32.totalorder %s16844_s4, %s12778_s5 }
 0xc30   : > { %s16841_s12 = scalar_lea.hbm %s17748_s18, %s8967_s6  ;;  %p12776_p1 = pneg %p12775_p0 }
 0xc31   : > { %p12781_p2 = scmp.lt.s32.totalorder %s12779_s24, %s12773_s26 }
 0xc33   : > { %p12782_p3 = por %p12781_p2, %p12780_p4 }
 0xc35   : > { %p12783_p7 = pnand %p12782_p3, %p12776_p1 }
 0xc37   : > { %12786 = shalt.err (!%p12783_p7)
}
 0xc38   : > { %s12787_s16 = scalar_lea.hbm %s16841_s12, 2048  ;;  %s12791_s1 = scalar_lea.hbm %s17748_s18, 4096 }
 0xc39   : > { %p12788_p8 = scmp.ne.s32.totalorder %s16841_s12, %s12787_s16  ;;  %p12792_p11 = scmp.lt.u32.totalorder %s16841_s12, %s17748_s18 }
 0xc3a   : > { %p12793_p12 = scmp.lt.u32.totalorder %s12791_s1, %s12787_s16  ;;  %p12795_p0 = scmp.lt.u32.totalorder %s12787_s16, %s16841_s12 }
 0xc3b   : > { %p12789_p9 = pnand %p12788_p8, %p13094_p5 }
 0xc3c   : > { %p12794_p13 = por %p12793_p12, %p12792_p11 }
 0xc3d   : > { %p12790_p10 = pneg %p12789_p9 }
 0xc3e   : > { %p12796_p1 = por %p12795_p0, %p12794_p13 }
 0xc40   : > { %p12797_p4 = pnand %p12796_p1, %p12790_p10 }
 0xc42   : > { %12800 = shalt.err (!%p12797_p4)
}
 0xc43   : > { %s12921_s9 = smov 128   ;;  %s12922_s3 = smov 8  }
 0xc44   : > { %12521 = dma.vmem_to_hbm [thread:$0]  (%p13094_p5), %s16844_s4, 2048, %s16841_s12, %s16848_s0, %s12921_s9, %s12921_s9, %s12922_s3  }
 0xc45 PF: > { %p12527_p2 = scmp.ge.s32.totalorder %s12915_s10, 2  ;;  %s8749_s29 = sand.u32 1, %s12863_s21  }
 0xc46   : > { %s8750_s6 = scalar_lea.sflag [#allocation9], %s8749_s29 }
 0xc47   : > { %p12524_p3 = pnand %p12527_p2, %p13098_p6 }
 0xc49   : > { %12858 = dma.done.wait (!%p12524_p3), %s8750_s6, 2048  }
 0xc4a   : > { %12860 = vsyncadd (!%p12524_p3), %s8750_s6, 4294965248  ;;  %s20_s10 = sadd.s32 1, %s12915_s10   ;;  %s17751_s20 = sld [smem:[#allocation19_spill]] }
 0xc4b   : > { %p16877_p7 = scmp.ge.s32.totalorder %s20_s10, 6   ;;  %s17752_s28 = sld [smem:[#allocation11_spill]] }
 0xc4c   : > { %s17753_s29 = sld [smem:[#allocation18_spill]]  ;;  %s17754_s11 = sld [smem:[#allocation14_spill]] }
 0xc4d   : > { %s17755_s7 = sld [smem:[#allocation15_spill]]  ;;  %s17756_s8 = sld [smem:[#allocation16_spill]] }
 0xc4e   : > { %s17757_s9 = sld [smem:[#allocation17_spill]]  ;;  %s17758_s21 = smov %s12867_s22 }
 0xc4f   : > { %s17759_s22 = smov %s12871_s23  ;;  %s17760_s23 = smov %s13084_s13 }
 0xc50   : > { %s17761_s24 = smov %s12879_s25  ;;  %s17762_s25 = smov %s13081_s30 }
 0xc51   : > { %s17763_s26 = smov %s12887_s27  ;;  %s17764_s27 = smov %s17751_s20 }
 0xc52   : > { %s17765_s30 = smov %s17754_s11  ;;  %19 = sbr.rel (!%p16877_p7) target bundleno = 16 (0x10), region = 233 }
 0xc59   :  { %8755 = vsyncpa [#allocation9], 1 }
 0xc5a   :  { %8757 = vsyncpa [#allocation9 + $0x1], 1 }

</bundles_post_ra>
